<compile_context>
chip_gen: v7x
topology: tpu7x:2x2x1
jax: 0.10.0
libtpu: 0.0.40
codegen_flags: <defaults>
</compile_context>

<pallas_src>
import math
import functools

import jax
import jax.numpy as jnp
from jax import lax
from jax.experimental import pallas as pl
from jax.experimental.pallas import tpu as pltpu

SQRT2 = math.sqrt(2.0)


# ---------------------------------------------------------------------------
# Math helpers shared by the Pallas kernel and the plain-JAX reference.
# The only divergence point is `recip` (softmax denominator): approx EUP
# reciprocal in the kernel, exact 1/x in the reference.
# ---------------------------------------------------------------------------
def _gelu(x):
    # matches the PyTorch `gelu`: x * 0.5 * (1 + erf(x / sqrt(2)))
    return x * 0.5 * (1.0 + lax.erf(x / SQRT2))


def _sigmoid(x):
    return 1.0 / (1.0 + jnp.exp(-x))


def _bdot(x, w_bf16):
    # MXU matmul: activation cast to bf16, weight already bf16, f32 accumulate.
    return jnp.dot(x.astype(jnp.bfloat16), w_bf16,
                   preferred_element_type=jnp.float32)


def _softmax_last(x, recip):
    m = jnp.max(x, axis=-1, keepdims=True)
    e = jnp.exp(x - m)
    return e * recip(jnp.sum(e, axis=-1, keepdims=True))


def _layer_norm(x, gamma, beta, eps=1e-6):
    # UER/EditSQL LayerNorm: gamma*(x-mean)/(std+eps)+beta, torch.std unbiased.
    mean = jnp.mean(x, axis=-1, keepdims=True)
    d = x - mean
    var = jnp.sum(d * d, axis=-1, keepdims=True) * (1.0 / (x.shape[-1] - 1))
    return gamma * d / (jnp.sqrt(var) + eps) + beta


# ---------------------------------------------------------------------------
# Encoder2 (stacked BiLSTM), now fused into the kernel.
# TODO(synk): Encoder2's source is not in the provided module; it is
# reconstructed as the EditSQL-style stacked bidirectional LSTM encoder
# (state_size/2 per direction).
# ---------------------------------------------------------------------------
def _lstm_stack(inputs, wih_list, whh_list, b_list, half, reverse):
    """Stacked unidirectional LSTM, statically unrolled over time.

    Weight containers hold Pallas refs (kernel) or jnp arrays (reference);
    each layer's weights are loaded once, right before use.
    """
    seq = inputs
    S = seq.shape[0]
    final_h, final_c = [], []
    for l in range(len(wih_list)):
        w_ih = wih_list[l][...]            # [in_dim, 4*half] bf16
        w_hh = whh_list[l][...]            # [half, 4*half]   bf16
        b = b_list[l][...]                 # [1, 4*half]      f32 (b_ih + b_hh)
        # Input projection for all timesteps in one MXU pass.
        x_proj = _bdot(seq, w_ih) + b      # [S, 4*half]
        h = jnp.zeros((1, half), jnp.float32)
        c = jnp.zeros((1, half), jnp.float32)
        outs = [None] * S
        order = range(S - 1, -1, -1) if reverse else range(S)
        for t in order:
            gates = x_proj[t:t + 1, :] + _bdot(h, w_hh)   # [1, 4*half]
            i_g = _sigmoid(gates[:, 0 * half:1 * half])
            f_g = _sigmoid(gates[:, 1 * half:2 * half])
            g_g = jnp.tanh(gates[:, 2 * half:3 * half])
            o_g = _sigmoid(gates[:, 3 * half:4 * half])
            c = f_g * c + i_g * g_g
            h = o_g * jnp.tanh(c)
            outs[t] = h
        seq = jnp.concatenate(outs, axis=0)                # [S, half]
        final_h.append(h)
        final_c.append(c)
    return seq, final_h, final_c


# ---------------------------------------------------------------------------
# Full forward (BiLSTM + 2.5 transformer blocks + last_linear fusion).
# `p` contains Pallas refs in the kernel and jnp arrays in the reference;
# only `[...]` / `[i]` indexing is used so both work identically.
# ---------------------------------------------------------------------------
def _forward_core(emb, p, cfg, recip):
    S = emb.shape[0]
    D = cfg["state_size"]
    H = cfg["heads"]
    dh = D // H
    half = cfg["half"]
    L = cfg["num_layers"]

    # --- Encoder2 branch -----------------------------------------------------
    fw_out, fw_h, fw_c = _lstm_stack(emb, p["fw_wih"], p["fw_whh"], p["fw_b"],
                                     half, reverse=False)
    bw_out, bw_h, bw_c = _lstm_stack(emb, p["bw_wih"], p["bw_whh"], p["bw_b"],
                                     half, reverse=True)
    enc_out = jnp.concatenate([fw_out, bw_out], axis=-1)           # [S, D]
    cell = jnp.concatenate(
        [jnp.concatenate([fw_c[l], bw_c[l]], axis=-1) for l in range(L)], axis=0)
    hidden = jnp.concatenate(
        [jnp.concatenate([fw_h[l], bw_h[l]], axis=-1) for l in range(L)], axis=0)

    # --- transformer branch ----------------------------------------------------
    def attn(i, x):
        wqkv = p["attn_wqkv"][i]           # [D, 3D] bf16 (Q pre-scaled by 1/sqrt(dh))
        bqkv = p["attn_bqkv"][i]           # [1, 3D] f32
        wo_h = p["attn_wo_h"][i]           # [H, dh, D] bf16
        bo = p["attn_bo"][i]               # [1, D] f32
        qkv = _bdot(x, wqkv) + bqkv        # [S, 3D]
        q = jnp.swapaxes(qkv[:, :D].reshape(S, H, dh), 0, 1).astype(jnp.bfloat16)
        k = jnp.swapaxes(qkv[:, D:2 * D].reshape(S, H, dh), 0, 1).astype(jnp.bfloat16)
        v = jnp.swapaxes(qkv[:, 2 * D:].reshape(S, H, dh), 0, 1).astype(jnp.bfloat16)
        scores = jnp.einsum("hqd,hkd->hqk", q, k,
                            preferred_element_type=jnp.float32)    # scale folded
        probs = _softmax_last(scores, recip)                        # [H, S, S]
        ctx = jnp.einsum("hqk,hkd->hqd", probs.astype(jnp.bfloat16), v,
                         preferred_element_type=jnp.float32)        # [H, S, dh]
        # Output projection folded over heads (no relayout of ctx back to [S, D]):
        proj = jnp.einsum("hqd,hdn->hqn", ctx.astype(jnp.bfloat16), wo_h,
                          preferred_element_type=jnp.float32)       # [H, S, D]
        return jnp.sum(proj, axis=0) + bo

    def ffn(i, x):
        inter = _gelu(_bdot(x, p["ff_w1"][i]) + p["ff_b1"][i])
        return _bdot(inter, p["ff_w2"][i]) + p["ff_b2"][i]

    def ln(i, x):
        return _layer_norm(x, p["ln_g"][i], p["ln_b"][i])

    h = _gelu(_bdot(emb, p["w1"][...]) + p["b1"][...])

    inter = ln(0, attn(0, h) + h)          # _1_self_attn / _1_layer_norm_1
    h = ln(1, ffn(0, inter) + inter)       # _1_feed_forward / _1_layer_norm_2
    inter = ln(2, attn(1, h) + h)          # _2_*
    h = ln(3, ffn(1, inter) + inter)
    trans_out = ffn(2, attn(2, h))         # final self_attn + feed_forward (no LN)

    # last_linear(cat([enc_out, trans_out])) + gelu, concat split into 2 matmuls.
    out = _gelu(_bdot(enc_out, p["wl_enc"][...])
                + _bdot(trans_out, p["wl_trans"][...]) + p["bl"][...])
    return out, cell, hidden


# ---------------------------------------------------------------------------
# Pallas kernel plumbing
# ---------------------------------------------------------------------------
_LSTM_KEYS = ("fw_wih", "fw_whh", "fw_b", "bw_wih", "bw_whh", "bw_b")
_SINGLE_KEYS = ("w1", "b1", "attn_wqkv", "attn_bqkv", "attn_wo_h", "attn_bo",
                "ln_g", "ln_b", "ff_w1", "ff_b1", "ff_w2", "ff_b2",
                "wl_enc", "wl_trans", "bl")


def _flat_args(kp, num_layers):
    args = []
    for k in _LSTM_KEYS:
        args.extend(kp[k][l] for l in range(num_layers))
    args.extend(kp[k] for k in _SINGLE_KEYS)
    return args


def _dense_out_shape(S, D):
    # lane-dense output shape (multiple of 128 lanes) when evenly packable
    if D < 128 and 128 % D == 0 and (S * D) % 128 == 0:
        return ((S * D) // 128, 128)
    return (S, D)


def _lane_pack(x, dense_shape):
    """Re-pack [S, D] row-major into the lane-dense store shape via static
    row slices + lane concat (avoids a sublane->lane reshape relayout path)."""
    if tuple(dense_shape) == tuple(x.shape):
        return x
    S = x.shape[0]
    R = dense_shape[0]
    g = S // R                                   # source rows per packed row
    rows = [jnp.concatenate([x[i * g + j:i * g + j + 1, :] for j in range(g)],
                            axis=1) for i in range(R)]
    return jnp.concatenate(rows, axis=0)


def _fused_kernel(cfg, *refs):
    L = cfg["num_layers"]
    it = iter(refs)
    emb_ref = next(it)
    p = {}
    for k in _LSTM_KEYS:
        p[k] = [next(it) for _ in range(L)]
    for k in _SINGLE_KEYS:
        p[k] = next(it)
    out_ref = next(it)
    cell_ref = next(it)
    hid_ref = next(it)

    out, cell, hidden = _forward_core(
        emb_ref[...], p, cfg, recip=lambda s: pl.reciprocal(s, approx=True))

    out_ref[...] = _lane_pack(out, out_ref.shape)   # lane-dense [*, 128] store
    cell_ref[...] = cell                            # tiny [L, D] states
    hid_ref[...] = hidden


def run_fused_pallas(emb, kp, cfg):
    S, D, L = cfg["seq_len"], cfg["state_size"], cfg["num_layers"]
    args = [emb] + _flat_args(kp, L)
    vmem = pl.BlockSpec(memory_space=pltpu.MemorySpace.VMEM)
    dense = _dense_out_shape(S, D)
    out_d, cell, hidden = pl.pallas_call(
        functools.partial(_fused_kernel, cfg),
        out_shape=(jax.ShapeDtypeStruct(dense, jnp.float32),
                   jax.ShapeDtypeStruct((L, D), jnp.float32),
                   jax.ShapeDtypeStruct((L, D), jnp.float32)),
        in_specs=[vmem] * len(args),
        out_specs=(vmem, vmem, vmem),
    )(*args)
    return out_d.reshape(S, D), cell, hidden


# ---------------------------------------------------------------------------
# Plain-JAX reference (identical math, exact softmax reciprocal)
# ---------------------------------------------------------------------------
def reference_forward(emb, kp, cfg):
    return _forward_core(emb, kp, cfg, recip=lambda s: 1.0 / s)


# ---------------------------------------------------------------------------
# Deterministic parameter construction + offline kernel-ready prep
# ---------------------------------------------------------------------------
class _KeyGen:
    def __init__(self, key):
        self._key = key

    def __call__(self):
        self._key, sub = jax.random.split(self._key)
        return sub


def make_params(key, input_size, state_size, num_layers):
    """Random f32 parameters (linear weights already in [in, out] layout)."""
    D = state_size
    half = state_size // 2
    kg = _KeyGen(key)

    def mat(shape, scale=0.08):
        return jax.random.normal(kg(), shape, jnp.float32) * scale

    params = dict(
        w1=mat((input_size, D)), b1=mat((1, D), 0.02),
        # fused QKV per attention module (0=_1_self_attn, 1=_2_self_attn, 2=self_attn)
        attn_wqkv=mat((3, D, 3 * D)), attn_bqkv=mat((3, 1, 3 * D), 0.02),
        attn_wo=mat((3, D, D)), attn_bo=mat((3, 1, D), 0.02),
        ln_g=1.0 + mat((4, 1, D), 0.01), ln_b=mat((4, 1, D), 0.01),
        ff_w1=mat((3, D, D)), ff_b1=mat((3, 1, D), 0.02),
        ff_w2=mat((3, D, D)), ff_b2=mat((3, 1, D), 0.02),
        wl=mat((2 * D, D)), bl=mat((1, D), 0.02),   # last_linear [2D -> D]
    )

    def lstm_layer(in_dim):       # PyTorch LSTM layout: [4*half, in] / [4*half, half]
        return dict(w_ih=mat((4 * half, in_dim)), w_hh=mat((4 * half, half)),
                    b_ih=mat((4 * half,), 0.02), b_hh=mat((4 * half,), 0.02))

    params["lstm_fw"] = [lstm_layer(input_size if l == 0 else half)
                         for l in range(num_layers)]
    params["lstm_bw"] = [lstm_layer(input_size if l == 0 else half)
                         for l in range(num_layers)]
    return params


def prepare_params(params, heads):
    """Offline weight prep: bf16 matmul weights, 1/sqrt(dh) folded into the Q
    block, Wo reshaped per head [H, dh, D], last_linear split for the concat,
    LSTM weights transposed and the two biases fused."""
    D = params["attn_wo"].shape[-1]
    dh = D // heads
    inv = 1.0 / math.sqrt(dh)
    bf = lambda a: a.astype(jnp.bfloat16)

    wqkv = params["attn_wqkv"].at[:, :, :D].multiply(inv)   # fold scale into Q
    bqkv = params["attn_bqkv"].at[:, :, :D].multiply(inv)

    kp = dict(
        w1=bf(params["w1"]), b1=params["b1"],
        attn_wqkv=bf(wqkv), attn_bqkv=bqkv,
        attn_wo_h=bf(params["attn_wo"].reshape(3, heads, dh, D)),
        attn_bo=params["attn_bo"],
        ln_g=params["ln_g"], ln_b=params["ln_b"],
        ff_w1=bf(params["ff_w1"]), ff_b1=params["ff_b1"],
        ff_w2=bf(params["ff_w2"]), ff_b2=params["ff_b2"],
        wl_enc=bf(params["wl"][:D]),      # rows multiplying encoder output
        wl_trans=bf(params["wl"][D:]),    # rows multiplying transformer output
        bl=params["bl"],
    )
    for src, pre in (("lstm_fw", "fw"), ("lstm_bw", "bw")):
        kp[pre + "_wih"] = [bf(l["w_ih"].T) for l in params[src]]
        kp[pre + "_whh"] = [bf(l["w_hh"].T) for l in params[src]]
        kp[pre + "_b"] = [(l["b_ih"] + l["b_hh"]).reshape(1, -1)
                          for l in params[src]]
    return kp


# ---------------------------------------------------------------------------
if __name__ == "__main__":
    key = jax.random.PRNGKey(0)
    input_size = 16
    state_size = 32
    seq_len = 8
    vocab = 20
    num_layers = 1

    # heads_num selection exactly as in __init__ (last divisor in [4, 9])
    heads = -1
    for i in range(4, 10):
        if state_size % i == 0:
            heads = i
    assert heads != -1

    cfg = dict(num_layers=num_layers, seq_len=seq_len, input_size=input_size,
               state_size=state_size, heads=heads, half=state_size // 2)

    k_emb, k_par = jax.random.split(key)
    emb_table = jax.random.normal(k_emb, (vocab, input_size), jnp.float32) * 0.1
    token_ids = jnp.arange(seq_len, dtype=jnp.int32) % vocab
    emb = emb_table[token_ids]          # "embedder(token)" -> [seq, input_size]

    params = make_params(k_par, input_size, state_size, num_layers)
    kp = prepare_params(params, heads)

    # Single fused Pallas kernel: BiLSTM + transformer stack + last_linear.
    out, cell, hidden = run_fused_pallas(emb, kp, cfg)
    jax.block_until_ready(out)

    # Verify against a plain-JAX reference of the same math.
    ref_out, ref_cell, ref_hidden = reference_forward(emb, kp, cfg)
    assert out.shape == (seq_len, state_size)
    for got, ref in ((out, ref_out), (cell, ref_cell), (hidden, ref_hidden)):
        max_err = float(jnp.max(jnp.abs(got - ref)))
        assert jnp.allclose(got, ref, atol=5e-3, rtol=5e-3), \
            f"max abs err {max_err}"

    # Module returns (x, final_outputs): x = Encoder2 final (cell, hidden)
    # states; final_outputs is the list of per-token output vectors.
    x_state = (cell, hidden)
    final_outputs = [out[i] for i in range(seq_len)]
    jax.block_until_ready(x_state)
    jax.block_until_ready(final_outputs)

    print("KERNEL_OK")
</pallas_src>

<mosaic_0001>
module attributes {stable_mosaic.version = 11 : i64} {
  func.func @_fused_kernel(%arg0: memref<8x16xf32, #tpu.memory_space<vmem>>, %arg1: memref<16x64xbf16, #tpu.memory_space<vmem>>, %arg2: memref<16x64xbf16, #tpu.memory_space<vmem>>, %arg3: memref<1x64xf32, #tpu.memory_space<vmem>>, %arg4: memref<16x64xbf16, #tpu.memory_space<vmem>>, %arg5: memref<16x64xbf16, #tpu.memory_space<vmem>>, %arg6: memref<1x64xf32, #tpu.memory_space<vmem>>, %arg7: memref<16x32xbf16, #tpu.memory_space<vmem>>, %arg8: memref<1x32xf32, #tpu.memory_space<vmem>>, %arg9: memref<3x32x96xbf16, #tpu.memory_space<vmem>>, %arg10: memref<3x1x96xf32, #tpu.memory_space<vmem>>, %arg11: memref<3x8x4x32xbf16, #tpu.memory_space<vmem>>, %arg12: memref<3x1x32xf32, #tpu.memory_space<vmem>>, %arg13: memref<4x1x32xf32, #tpu.memory_space<vmem>>, %arg14: memref<4x1x32xf32, #tpu.memory_space<vmem>>, %arg15: memref<3x32x32xbf16, #tpu.memory_space<vmem>>, %arg16: memref<3x1x32xf32, #tpu.memory_space<vmem>>, %arg17: memref<3x32x32xbf16, #tpu.memory_space<vmem>>, %arg18: memref<3x1x32xf32, #tpu.memory_space<vmem>>, %arg19: memref<32x32xbf16, #tpu.memory_space<vmem>>, %arg20: memref<32x32xbf16, #tpu.memory_space<vmem>>, %arg21: memref<1x32xf32, #tpu.memory_space<vmem>>, %arg22: memref<2x128xf32, #tpu.memory_space<vmem>>, %arg23: memref<1x32xf32, #tpu.memory_space<vmem>>, %arg24: memref<1x32xf32, #tpu.memory_space<vmem>>) attributes {dimension_semantics = [], scalar_prefetch = 0 : i64, scratch_operands = 0 : i64, tpu.core_type = #tpu.core_type<tc>} {
    %c0 = arith.constant 0 : index
    %c0_0 = arith.constant 0 : index
    %0 = vector.load %arg0[%c0, %c0_0] : memref<8x16xf32, #tpu.memory_space<vmem>>, vector<8x16xf32>
    %c0_1 = arith.constant 0 : index
    %c0_2 = arith.constant 0 : index
    %1 = vector.load %arg1[%c0_1, %c0_2] : memref<16x64xbf16, #tpu.memory_space<vmem>>, vector<16x64xbf16>
    %c0_3 = arith.constant 0 : index
    %c0_4 = arith.constant 0 : index
    %2 = vector.load %arg2[%c0_3, %c0_4] : memref<16x64xbf16, #tpu.memory_space<vmem>>, vector<16x64xbf16>
    %c0_5 = arith.constant 0 : index
    %c0_6 = arith.constant 0 : index
    %3 = vector.load %arg3[%c0_5, %c0_6] : memref<1x64xf32, #tpu.memory_space<vmem>>, vector<1x64xf32>
    %4 = arith.truncf %0 : vector<8x16xf32> to vector<8x16xbf16>
    %cst = arith.constant dense<0.000000e+00> : vector<8x64xf32>
    %5 = tpu.matmul %4, %1, %cst {dimension_numbers = #tpu.dot_dimension_numbers<[1], [0], [0], [1], [0, 0, 1, 1], [], []>} : vector<8x16xbf16>, vector<16x64xbf16>, vector<8x64xf32> -> vector<8x64xf32>
    %6 = vector.broadcast %3 : vector<1x64xf32> to vector<8x64xf32>
    %7 = arith.addf %5, %6 : vector<8x64xf32>
    %cst_7 = arith.constant 0.000000e+00 : f32
    %8 = vector.broadcast %cst_7 : f32 to vector<1x16xf32>
    %cst_8 = arith.constant 0.000000e+00 : f32
    %9 = vector.broadcast %cst_8 : f32 to vector<1x16xf32>
    %10 = vector.extract_strided_slice %7 {offsets = [0, 0], sizes = [1, 64], strides = [1, 1]} : vector<8x64xf32> to vector<1x64xf32>
    %11 = arith.truncf %8 : vector<1x16xf32> to vector<1x16xbf16>
    %cst_9 = arith.constant dense<0.000000e+00> : vector<1x64xf32>
    %12 = tpu.matmul %11, %2, %cst_9 {dimension_numbers = #tpu.dot_dimension_numbers<[1], [0], [0], [1], [0, 0, 1, 1], [], []>} : vector<1x16xbf16>, vector<16x64xbf16>, vector<1x64xf32> -> vector<1x64xf32>
    %13 = arith.addf %10, %12 : vector<1x64xf32>
    %14 = vector.extract_strided_slice %13 {offsets = [0, 0], sizes = [1, 16], strides = [1, 1]} : vector<1x64xf32> to vector<1x16xf32>
    %cst_10 = arith.constant 0.000000e+00 : f32
    %15 = vector.broadcast %cst_10 : f32 to vector<1x16xf32>
    %16 = arith.subf %15, %14 : vector<1x16xf32>
    %17 = math.exp %16 : vector<1x16xf32>
    %cst_11 = arith.constant 1.000000e+00 : f32
    %18 = vector.broadcast %cst_11 : f32 to vector<1x16xf32>
    %19 = arith.addf %18, %17 : vector<1x16xf32>
    %cst_12 = arith.constant 1.000000e+00 : f32
    %20 = vector.broadcast %cst_12 : f32 to vector<1x16xf32>
    %21 = arith.divf %20, %19 : vector<1x16xf32>
    %22 = vector.extract_strided_slice %13 {offsets = [0, 16], sizes = [1, 16], strides = [1, 1]} : vector<1x64xf32> to vector<1x16xf32>
    %cst_13 = arith.constant 0.000000e+00 : f32
    %23 = vector.broadcast %cst_13 : f32 to vector<1x16xf32>
    %24 = arith.subf %23, %22 : vector<1x16xf32>
    %25 = math.exp %24 : vector<1x16xf32>
    %cst_14 = arith.constant 1.000000e+00 : f32
    %26 = vector.broadcast %cst_14 : f32 to vector<1x16xf32>
    %27 = arith.addf %26, %25 : vector<1x16xf32>
    %cst_15 = arith.constant 1.000000e+00 : f32
    %28 = vector.broadcast %cst_15 : f32 to vector<1x16xf32>
    %29 = arith.divf %28, %27 : vector<1x16xf32>
    %30 = vector.extract_strided_slice %13 {offsets = [0, 32], sizes = [1, 16], strides = [1, 1]} : vector<1x64xf32> to vector<1x16xf32>
    %31 = math.tanh %30 : vector<1x16xf32>
    %32 = vector.extract_strided_slice %13 {offsets = [0, 48], sizes = [1, 16], strides = [1, 1]} : vector<1x64xf32> to vector<1x16xf32>
    %cst_16 = arith.constant 0.000000e+00 : f32
    %33 = vector.broadcast %cst_16 : f32 to vector<1x16xf32>
    %34 = arith.subf %33, %32 : vector<1x16xf32>
    %35 = math.exp %34 : vector<1x16xf32>
    %cst_17 = arith.constant 1.000000e+00 : f32
    %36 = vector.broadcast %cst_17 : f32 to vector<1x16xf32>
    %37 = arith.addf %36, %35 : vector<1x16xf32>
    %cst_18 = arith.constant 1.000000e+00 : f32
    %38 = vector.broadcast %cst_18 : f32 to vector<1x16xf32>
    %39 = arith.divf %38, %37 : vector<1x16xf32>
    %40 = arith.mulf %29, %9 : vector<1x16xf32>
    %41 = arith.mulf %21, %31 : vector<1x16xf32>
    %42 = arith.addf %40, %41 : vector<1x16xf32>
    %43 = math.tanh %42 : vector<1x16xf32>
    %44 = arith.mulf %39, %43 : vector<1x16xf32>
    %45 = vector.extract_strided_slice %7 {offsets = [1, 0], sizes = [1, 64], strides = [1, 1]} : vector<8x64xf32> to vector<1x64xf32>
    %46 = arith.truncf %44 : vector<1x16xf32> to vector<1x16xbf16>
    %cst_19 = arith.constant dense<0.000000e+00> : vector<1x64xf32>
    %47 = tpu.matmul %46, %2, %cst_19 {dimension_numbers = #tpu.dot_dimension_numbers<[1], [0], [0], [1], [0, 0, 1, 1], [], []>} : vector<1x16xbf16>, vector<16x64xbf16>, vector<1x64xf32> -> vector<1x64xf32>
    %48 = arith.addf %45, %47 : vector<1x64xf32>
    %49 = vector.extract_strided_slice %48 {offsets = [0, 0], sizes = [1, 16], strides = [1, 1]} : vector<1x64xf32> to vector<1x16xf32>
    %cst_20 = arith.constant 0.000000e+00 : f32
    %50 = vector.broadcast %cst_20 : f32 to vector<1x16xf32>
    %51 = arith.subf %50, %49 : vector<1x16xf32>
    %52 = math.exp %51 : vector<1x16xf32>
    %cst_21 = arith.constant 1.000000e+00 : f32
    %53 = vector.broadcast %cst_21 : f32 to vector<1x16xf32>
    %54 = arith.addf %53, %52 : vector<1x16xf32>
    %cst_22 = arith.constant 1.000000e+00 : f32
    %55 = vector.broadcast %cst_22 : f32 to vector<1x16xf32>
    %56 = arith.divf %55, %54 : vector<1x16xf32>
    %57 = vector.extract_strided_slice %48 {offsets = [0, 16], sizes = [1, 16], strides = [1, 1]} : vector<1x64xf32> to vector<1x16xf32>
    %cst_23 = arith.constant 0.000000e+00 : f32
    %58 = vector.broadcast %cst_23 : f32 to vector<1x16xf32>
    %59 = arith.subf %58, %57 : vector<1x16xf32>
    %60 = math.exp %59 : vector<1x16xf32>
    %cst_24 = arith.constant 1.000000e+00 : f32
    %61 = vector.broadcast %cst_24 : f32 to vector<1x16xf32>
    %62 = arith.addf %61, %60 : vector<1x16xf32>
    %cst_25 = arith.constant 1.000000e+00 : f32
    %63 = vector.broadcast %cst_25 : f32 to vector<1x16xf32>
    %64 = arith.divf %63, %62 : vector<1x16xf32>
    %65 = vector.extract_strided_slice %48 {offsets = [0, 32], sizes = [1, 16], strides = [1, 1]} : vector<1x64xf32> to vector<1x16xf32>
    %66 = math.tanh %65 : vector<1x16xf32>
    %67 = vector.extract_strided_slice %48 {offsets = [0, 48], sizes = [1, 16], strides = [1, 1]} : vector<1x64xf32> to vector<1x16xf32>
    %cst_26 = arith.constant 0.000000e+00 : f32
    %68 = vector.broadcast %cst_26 : f32 to vector<1x16xf32>
    %69 = arith.subf %68, %67 : vector<1x16xf32>
    %70 = math.exp %69 : vector<1x16xf32>
    %cst_27 = arith.constant 1.000000e+00 : f32
    %71 = vector.broadcast %cst_27 : f32 to vector<1x16xf32>
    %72 = arith.addf %71, %70 : vector<1x16xf32>
    %cst_28 = arith.constant 1.000000e+00 : f32
    %73 = vector.broadcast %cst_28 : f32 to vector<1x16xf32>
    %74 = arith.divf %73, %72 : vector<1x16xf32>
    %75 = arith.mulf %64, %42 : vector<1x16xf32>
    %76 = arith.mulf %56, %66 : vector<1x16xf32>
    %77 = arith.addf %75, %76 : vector<1x16xf32>
    %78 = math.tanh %77 : vector<1x16xf32>
    %79 = arith.mulf %74, %78 : vector<1x16xf32>
    %80 = vector.extract_strided_slice %7 {offsets = [2, 0], sizes = [1, 64], strides = [1, 1]} : vector<8x64xf32> to vector<1x64xf32>
    %81 = arith.truncf %79 : vector<1x16xf32> to vector<1x16xbf16>
    %cst_29 = arith.constant dense<0.000000e+00> : vector<1x64xf32>
    %82 = tpu.matmul %81, %2, %cst_29 {dimension_numbers = #tpu.dot_dimension_numbers<[1], [0], [0], [1], [0, 0, 1, 1], [], []>} : vector<1x16xbf16>, vector<16x64xbf16>, vector<1x64xf32> -> vector<1x64xf32>
    %83 = arith.addf %80, %82 : vector<1x64xf32>
    %84 = vector.extract_strided_slice %83 {offsets = [0, 0], sizes = [1, 16], strides = [1, 1]} : vector<1x64xf32> to vector<1x16xf32>
    %cst_30 = arith.constant 0.000000e+00 : f32
    %85 = vector.broadcast %cst_30 : f32 to vector<1x16xf32>
    %86 = arith.subf %85, %84 : vector<1x16xf32>
    %87 = math.exp %86 : vector<1x16xf32>
    %cst_31 = arith.constant 1.000000e+00 : f32
    %88 = vector.broadcast %cst_31 : f32 to vector<1x16xf32>
    %89 = arith.addf %88, %87 : vector<1x16xf32>
    %cst_32 = arith.constant 1.000000e+00 : f32
    %90 = vector.broadcast %cst_32 : f32 to vector<1x16xf32>
    %91 = arith.divf %90, %89 : vector<1x16xf32>
    %92 = vector.extract_strided_slice %83 {offsets = [0, 16], sizes = [1, 16], strides = [1, 1]} : vector<1x64xf32> to vector<1x16xf32>
    %cst_33 = arith.constant 0.000000e+00 : f32
    %93 = vector.broadcast %cst_33 : f32 to vector<1x16xf32>
    %94 = arith.subf %93, %92 : vector<1x16xf32>
    %95 = math.exp %94 : vector<1x16xf32>
    %cst_34 = arith.constant 1.000000e+00 : f32
    %96 = vector.broadcast %cst_34 : f32 to vector<1x16xf32>
    %97 = arith.addf %96, %95 : vector<1x16xf32>
    %cst_35 = arith.constant 1.000000e+00 : f32
    %98 = vector.broadcast %cst_35 : f32 to vector<1x16xf32>
    %99 = arith.divf %98, %97 : vector<1x16xf32>
    %100 = vector.extract_strided_slice %83 {offsets = [0, 32], sizes = [1, 16], strides = [1, 1]} : vector<1x64xf32> to vector<1x16xf32>
    %101 = math.tanh %100 : vector<1x16xf32>
    %102 = vector.extract_strided_slice %83 {offsets = [0, 48], sizes = [1, 16], strides = [1, 1]} : vector<1x64xf32> to vector<1x16xf32>
    %cst_36 = arith.constant 0.000000e+00 : f32
    %103 = vector.broadcast %cst_36 : f32 to vector<1x16xf32>
    %104 = arith.subf %103, %102 : vector<1x16xf32>
    %105 = math.exp %104 : vector<1x16xf32>
    %cst_37 = arith.constant 1.000000e+00 : f32
    %106 = vector.broadcast %cst_37 : f32 to vector<1x16xf32>
    %107 = arith.addf %106, %105 : vector<1x16xf32>
    %cst_38 = arith.constant 1.000000e+00 : f32
    %108 = vector.broadcast %cst_38 : f32 to vector<1x16xf32>
    %109 = arith.divf %108, %107 : vector<1x16xf32>
    %110 = arith.mulf %99, %77 : vector<1x16xf32>
    %111 = arith.mulf %91, %101 : vector<1x16xf32>
    %112 = arith.addf %110, %111 : vector<1x16xf32>
    %113 = math.tanh %112 : vector<1x16xf32>
    %114 = arith.mulf %109, %113 : vector<1x16xf32>
    %115 = vector.extract_strided_slice %7 {offsets = [3, 0], sizes = [1, 64], strides = [1, 1]} : vector<8x64xf32> to vector<1x64xf32>
    %116 = arith.truncf %114 : vector<1x16xf32> to vector<1x16xbf16>
    %cst_39 = arith.constant dense<0.000000e+00> : vector<1x64xf32>
    %117 = tpu.matmul %116, %2, %cst_39 {dimension_numbers = #tpu.dot_dimension_numbers<[1], [0], [0], [1], [0, 0, 1, 1], [], []>} : vector<1x16xbf16>, vector<16x64xbf16>, vector<1x64xf32> -> vector<1x64xf32>
    %118 = arith.addf %115, %117 : vector<1x64xf32>
    %119 = vector.extract_strided_slice %118 {offsets = [0, 0], sizes = [1, 16], strides = [1, 1]} : vector<1x64xf32> to vector<1x16xf32>
    %cst_40 = arith.constant 0.000000e+00 : f32
    %120 = vector.broadcast %cst_40 : f32 to vector<1x16xf32>
    %121 = arith.subf %120, %119 : vector<1x16xf32>
    %122 = math.exp %121 : vector<1x16xf32>
    %cst_41 = arith.constant 1.000000e+00 : f32
    %123 = vector.broadcast %cst_41 : f32 to vector<1x16xf32>
    %124 = arith.addf %123, %122 : vector<1x16xf32>
    %cst_42 = arith.constant 1.000000e+00 : f32
    %125 = vector.broadcast %cst_42 : f32 to vector<1x16xf32>
    %126 = arith.divf %125, %124 : vector<1x16xf32>
    %127 = vector.extract_strided_slice %118 {offsets = [0, 16], sizes = [1, 16], strides = [1, 1]} : vector<1x64xf32> to vector<1x16xf32>
    %cst_43 = arith.constant 0.000000e+00 : f32
    %128 = vector.broadcast %cst_43 : f32 to vector<1x16xf32>
    %129 = arith.subf %128, %127 : vector<1x16xf32>
    %130 = math.exp %129 : vector<1x16xf32>
    %cst_44 = arith.constant 1.000000e+00 : f32
    %131 = vector.broadcast %cst_44 : f32 to vector<1x16xf32>
    %132 = arith.addf %131, %130 : vector<1x16xf32>
    %cst_45 = arith.constant 1.000000e+00 : f32
    %133 = vector.broadcast %cst_45 : f32 to vector<1x16xf32>
    %134 = arith.divf %133, %132 : vector<1x16xf32>
    %135 = vector.extract_strided_slice %118 {offsets = [0, 32], sizes = [1, 16], strides = [1, 1]} : vector<1x64xf32> to vector<1x16xf32>
    %136 = math.tanh %135 : vector<1x16xf32>
    %137 = vector.extract_strided_slice %118 {offsets = [0, 48], sizes = [1, 16], strides = [1, 1]} : vector<1x64xf32> to vector<1x16xf32>
    %cst_46 = arith.constant 0.000000e+00 : f32
    %138 = vector.broadcast %cst_46 : f32 to vector<1x16xf32>
    %139 = arith.subf %138, %137 : vector<1x16xf32>
    %140 = math.exp %139 : vector<1x16xf32>
    %cst_47 = arith.constant 1.000000e+00 : f32
    %141 = vector.broadcast %cst_47 : f32 to vector<1x16xf32>
    %142 = arith.addf %141, %140 : vector<1x16xf32>
    %cst_48 = arith.constant 1.000000e+00 : f32
    %143 = vector.broadcast %cst_48 : f32 to vector<1x16xf32>
    %144 = arith.divf %143, %142 : vector<1x16xf32>
    %145 = arith.mulf %134, %112 : vector<1x16xf32>
    %146 = arith.mulf %126, %136 : vector<1x16xf32>
    %147 = arith.addf %145, %146 : vector<1x16xf32>
    %148 = math.tanh %147 : vector<1x16xf32>
    %149 = arith.mulf %144, %148 : vector<1x16xf32>
    %150 = vector.extract_strided_slice %7 {offsets = [4, 0], sizes = [1, 64], strides = [1, 1]} : vector<8x64xf32> to vector<1x64xf32>
    %151 = arith.truncf %149 : vector<1x16xf32> to vector<1x16xbf16>
    %cst_49 = arith.constant dense<0.000000e+00> : vector<1x64xf32>
    %152 = tpu.matmul %151, %2, %cst_49 {dimension_numbers = #tpu.dot_dimension_numbers<[1], [0], [0], [1], [0, 0, 1, 1], [], []>} : vector<1x16xbf16>, vector<16x64xbf16>, vector<1x64xf32> -> vector<1x64xf32>
    %153 = arith.addf %150, %152 : vector<1x64xf32>
    %154 = vector.extract_strided_slice %153 {offsets = [0, 0], sizes = [1, 16], strides = [1, 1]} : vector<1x64xf32> to vector<1x16xf32>
    %cst_50 = arith.constant 0.000000e+00 : f32
    %155 = vector.broadcast %cst_50 : f32 to vector<1x16xf32>
    %156 = arith.subf %155, %154 : vector<1x16xf32>
    %157 = math.exp %156 : vector<1x16xf32>
    %cst_51 = arith.constant 1.000000e+00 : f32
    %158 = vector.broadcast %cst_51 : f32 to vector<1x16xf32>
    %159 = arith.addf %158, %157 : vector<1x16xf32>
    %cst_52 = arith.constant 1.000000e+00 : f32
    %160 = vector.broadcast %cst_52 : f32 to vector<1x16xf32>
    %161 = arith.divf %160, %159 : vector<1x16xf32>
    %162 = vector.extract_strided_slice %153 {offsets = [0, 16], sizes = [1, 16], strides = [1, 1]} : vector<1x64xf32> to vector<1x16xf32>
    %cst_53 = arith.constant 0.000000e+00 : f32
    %163 = vector.broadcast %cst_53 : f32 to vector<1x16xf32>
    %164 = arith.subf %163, %162 : vector<1x16xf32>
    %165 = math.exp %164 : vector<1x16xf32>
    %cst_54 = arith.constant 1.000000e+00 : f32
    %166 = vector.broadcast %cst_54 : f32 to vector<1x16xf32>
    %167 = arith.addf %166, %165 : vector<1x16xf32>
    %cst_55 = arith.constant 1.000000e+00 : f32
    %168 = vector.broadcast %cst_55 : f32 to vector<1x16xf32>
    %169 = arith.divf %168, %167 : vector<1x16xf32>
    %170 = vector.extract_strided_slice %153 {offsets = [0, 32], sizes = [1, 16], strides = [1, 1]} : vector<1x64xf32> to vector<1x16xf32>
    %171 = math.tanh %170 : vector<1x16xf32>
    %172 = vector.extract_strided_slice %153 {offsets = [0, 48], sizes = [1, 16], strides = [1, 1]} : vector<1x64xf32> to vector<1x16xf32>
    %cst_56 = arith.constant 0.000000e+00 : f32
    %173 = vector.broadcast %cst_56 : f32 to vector<1x16xf32>
    %174 = arith.subf %173, %172 : vector<1x16xf32>
    %175 = math.exp %174 : vector<1x16xf32>
    %cst_57 = arith.constant 1.000000e+00 : f32
    %176 = vector.broadcast %cst_57 : f32 to vector<1x16xf32>
    %177 = arith.addf %176, %175 : vector<1x16xf32>
    %cst_58 = arith.constant 1.000000e+00 : f32
    %178 = vector.broadcast %cst_58 : f32 to vector<1x16xf32>
    %179 = arith.divf %178, %177 : vector<1x16xf32>
    %180 = arith.mulf %169, %147 : vector<1x16xf32>
    %181 = arith.mulf %161, %171 : vector<1x16xf32>
    %182 = arith.addf %180, %181 : vector<1x16xf32>
    %183 = math.tanh %182 : vector<1x16xf32>
    %184 = arith.mulf %179, %183 : vector<1x16xf32>
    %185 = vector.extract_strided_slice %7 {offsets = [5, 0], sizes = [1, 64], strides = [1, 1]} : vector<8x64xf32> to vector<1x64xf32>
    %186 = arith.truncf %184 : vector<1x16xf32> to vector<1x16xbf16>
    %cst_59 = arith.constant dense<0.000000e+00> : vector<1x64xf32>
    %187 = tpu.matmul %186, %2, %cst_59 {dimension_numbers = #tpu.dot_dimension_numbers<[1], [0], [0], [1], [0, 0, 1, 1], [], []>} : vector<1x16xbf16>, vector<16x64xbf16>, vector<1x64xf32> -> vector<1x64xf32>
    %188 = arith.addf %185, %187 : vector<1x64xf32>
    %189 = vector.extract_strided_slice %188 {offsets = [0, 0], sizes = [1, 16], strides = [1, 1]} : vector<1x64xf32> to vector<1x16xf32>
    %cst_60 = arith.constant 0.000000e+00 : f32
    %190 = vector.broadcast %cst_60 : f32 to vector<1x16xf32>
    %191 = arith.subf %190, %189 : vector<1x16xf32>
    %192 = math.exp %191 : vector<1x16xf32>
    %cst_61 = arith.constant 1.000000e+00 : f32
    %193 = vector.broadcast %cst_61 : f32 to vector<1x16xf32>
    %194 = arith.addf %193, %192 : vector<1x16xf32>
    %cst_62 = arith.constant 1.000000e+00 : f32
    %195 = vector.broadcast %cst_62 : f32 to vector<1x16xf32>
    %196 = arith.divf %195, %194 : vector<1x16xf32>
    %197 = vector.extract_strided_slice %188 {offsets = [0, 16], sizes = [1, 16], strides = [1, 1]} : vector<1x64xf32> to vector<1x16xf32>
    %cst_63 = arith.constant 0.000000e+00 : f32
    %198 = vector.broadcast %cst_63 : f32 to vector<1x16xf32>
    %199 = arith.subf %198, %197 : vector<1x16xf32>
    %200 = math.exp %199 : vector<1x16xf32>
    %cst_64 = arith.constant 1.000000e+00 : f32
    %201 = vector.broadcast %cst_64 : f32 to vector<1x16xf32>
    %202 = arith.addf %201, %200 : vector<1x16xf32>
    %cst_65 = arith.constant 1.000000e+00 : f32
    %203 = vector.broadcast %cst_65 : f32 to vector<1x16xf32>
    %204 = arith.divf %203, %202 : vector<1x16xf32>
    %205 = vector.extract_strided_slice %188 {offsets = [0, 32], sizes = [1, 16], strides = [1, 1]} : vector<1x64xf32> to vector<1x16xf32>
    %206 = math.tanh %205 : vector<1x16xf32>
    %207 = vector.extract_strided_slice %188 {offsets = [0, 48], sizes = [1, 16], strides = [1, 1]} : vector<1x64xf32> to vector<1x16xf32>
    %cst_66 = arith.constant 0.000000e+00 : f32
    %208 = vector.broadcast %cst_66 : f32 to vector<1x16xf32>
    %209 = arith.subf %208, %207 : vector<1x16xf32>
    %210 = math.exp %209 : vector<1x16xf32>
    %cst_67 = arith.constant 1.000000e+00 : f32
    %211 = vector.broadcast %cst_67 : f32 to vector<1x16xf32>
    %212 = arith.addf %211, %210 : vector<1x16xf32>
    %cst_68 = arith.constant 1.000000e+00 : f32
    %213 = vector.broadcast %cst_68 : f32 to vector<1x16xf32>
    %214 = arith.divf %213, %212 : vector<1x16xf32>
    %215 = arith.mulf %204, %182 : vector<1x16xf32>
    %216 = arith.mulf %196, %206 : vector<1x16xf32>
    %217 = arith.addf %215, %216 : vector<1x16xf32>
    %218 = math.tanh %217 : vector<1x16xf32>
    %219 = arith.mulf %214, %218 : vector<1x16xf32>
    %220 = vector.extract_strided_slice %7 {offsets = [6, 0], sizes = [1, 64], strides = [1, 1]} : vector<8x64xf32> to vector<1x64xf32>
    %221 = arith.truncf %219 : vector<1x16xf32> to vector<1x16xbf16>
    %cst_69 = arith.constant dense<0.000000e+00> : vector<1x64xf32>
    %222 = tpu.matmul %221, %2, %cst_69 {dimension_numbers = #tpu.dot_dimension_numbers<[1], [0], [0], [1], [0, 0, 1, 1], [], []>} : vector<1x16xbf16>, vector<16x64xbf16>, vector<1x64xf32> -> vector<1x64xf32>
    %223 = arith.addf %220, %222 : vector<1x64xf32>
    %224 = vector.extract_strided_slice %223 {offsets = [0, 0], sizes = [1, 16], strides = [1, 1]} : vector<1x64xf32> to vector<1x16xf32>
    %cst_70 = arith.constant 0.000000e+00 : f32
    %225 = vector.broadcast %cst_70 : f32 to vector<1x16xf32>
    %226 = arith.subf %225, %224 : vector<1x16xf32>
    %227 = math.exp %226 : vector<1x16xf32>
    %cst_71 = arith.constant 1.000000e+00 : f32
    %228 = vector.broadcast %cst_71 : f32 to vector<1x16xf32>
    %229 = arith.addf %228, %227 : vector<1x16xf32>
    %cst_72 = arith.constant 1.000000e+00 : f32
    %230 = vector.broadcast %cst_72 : f32 to vector<1x16xf32>
    %231 = arith.divf %230, %229 : vector<1x16xf32>
    %232 = vector.extract_strided_slice %223 {offsets = [0, 16], sizes = [1, 16], strides = [1, 1]} : vector<1x64xf32> to vector<1x16xf32>
    %cst_73 = arith.constant 0.000000e+00 : f32
    %233 = vector.broadcast %cst_73 : f32 to vector<1x16xf32>
    %234 = arith.subf %233, %232 : vector<1x16xf32>
    %235 = math.exp %234 : vector<1x16xf32>
    %cst_74 = arith.constant 1.000000e+00 : f32
    %236 = vector.broadcast %cst_74 : f32 to vector<1x16xf32>
    %237 = arith.addf %236, %235 : vector<1x16xf32>
    %cst_75 = arith.constant 1.000000e+00 : f32
    %238 = vector.broadcast %cst_75 : f32 to vector<1x16xf32>
    %239 = arith.divf %238, %237 : vector<1x16xf32>
    %240 = vector.extract_strided_slice %223 {offsets = [0, 32], sizes = [1, 16], strides = [1, 1]} : vector<1x64xf32> to vector<1x16xf32>
    %241 = math.tanh %240 : vector<1x16xf32>
    %242 = vector.extract_strided_slice %223 {offsets = [0, 48], sizes = [1, 16], strides = [1, 1]} : vector<1x64xf32> to vector<1x16xf32>
    %cst_76 = arith.constant 0.000000e+00 : f32
    %243 = vector.broadcast %cst_76 : f32 to vector<1x16xf32>
    %244 = arith.subf %243, %242 : vector<1x16xf32>
    %245 = math.exp %244 : vector<1x16xf32>
    %cst_77 = arith.constant 1.000000e+00 : f32
    %246 = vector.broadcast %cst_77 : f32 to vector<1x16xf32>
    %247 = arith.addf %246, %245 : vector<1x16xf32>
    %cst_78 = arith.constant 1.000000e+00 : f32
    %248 = vector.broadcast %cst_78 : f32 to vector<1x16xf32>
    %249 = arith.divf %248, %247 : vector<1x16xf32>
    %250 = arith.mulf %239, %217 : vector<1x16xf32>
    %251 = arith.mulf %231, %241 : vector<1x16xf32>
    %252 = arith.addf %250, %251 : vector<1x16xf32>
    %253 = math.tanh %252 : vector<1x16xf32>
    %254 = arith.mulf %249, %253 : vector<1x16xf32>
    %255 = vector.extract_strided_slice %7 {offsets = [7, 0], sizes = [1, 64], strides = [1, 1]} : vector<8x64xf32> to vector<1x64xf32>
    %256 = arith.truncf %254 : vector<1x16xf32> to vector<1x16xbf16>
    %cst_79 = arith.constant dense<0.000000e+00> : vector<1x64xf32>
    %257 = tpu.matmul %256, %2, %cst_79 {dimension_numbers = #tpu.dot_dimension_numbers<[1], [0], [0], [1], [0, 0, 1, 1], [], []>} : vector<1x16xbf16>, vector<16x64xbf16>, vector<1x64xf32> -> vector<1x64xf32>
    %258 = arith.addf %255, %257 : vector<1x64xf32>
    %259 = vector.extract_strided_slice %258 {offsets = [0, 0], sizes = [1, 16], strides = [1, 1]} : vector<1x64xf32> to vector<1x16xf32>
    %cst_80 = arith.constant 0.000000e+00 : f32
    %260 = vector.broadcast %cst_80 : f32 to vector<1x16xf32>
    %261 = arith.subf %260, %259 : vector<1x16xf32>
    %262 = math.exp %261 : vector<1x16xf32>
    %cst_81 = arith.constant 1.000000e+00 : f32
    %263 = vector.broadcast %cst_81 : f32 to vector<1x16xf32>
    %264 = arith.addf %263, %262 : vector<1x16xf32>
    %cst_82 = arith.constant 1.000000e+00 : f32
    %265 = vector.broadcast %cst_82 : f32 to vector<1x16xf32>
    %266 = arith.divf %265, %264 : vector<1x16xf32>
    %267 = vector.extract_strided_slice %258 {offsets = [0, 16], sizes = [1, 16], strides = [1, 1]} : vector<1x64xf32> to vector<1x16xf32>
    %cst_83 = arith.constant 0.000000e+00 : f32
    %268 = vector.broadcast %cst_83 : f32 to vector<1x16xf32>
    %269 = arith.subf %268, %267 : vector<1x16xf32>
    %270 = math.exp %269 : vector<1x16xf32>
    %cst_84 = arith.constant 1.000000e+00 : f32
    %271 = vector.broadcast %cst_84 : f32 to vector<1x16xf32>
    %272 = arith.addf %271, %270 : vector<1x16xf32>
    %cst_85 = arith.constant 1.000000e+00 : f32
    %273 = vector.broadcast %cst_85 : f32 to vector<1x16xf32>
    %274 = arith.divf %273, %272 : vector<1x16xf32>
    %275 = vector.extract_strided_slice %258 {offsets = [0, 32], sizes = [1, 16], strides = [1, 1]} : vector<1x64xf32> to vector<1x16xf32>
    %276 = math.tanh %275 : vector<1x16xf32>
    %277 = vector.extract_strided_slice %258 {offsets = [0, 48], sizes = [1, 16], strides = [1, 1]} : vector<1x64xf32> to vector<1x16xf32>
    %cst_86 = arith.constant 0.000000e+00 : f32
    %278 = vector.broadcast %cst_86 : f32 to vector<1x16xf32>
    %279 = arith.subf %278, %277 : vector<1x16xf32>
    %280 = math.exp %279 : vector<1x16xf32>
    %cst_87 = arith.constant 1.000000e+00 : f32
    %281 = vector.broadcast %cst_87 : f32 to vector<1x16xf32>
    %282 = arith.addf %281, %280 : vector<1x16xf32>
    %cst_88 = arith.constant 1.000000e+00 : f32
    %283 = vector.broadcast %cst_88 : f32 to vector<1x16xf32>
    %284 = arith.divf %283, %282 : vector<1x16xf32>
    %285 = arith.mulf %274, %252 : vector<1x16xf32>
    %286 = arith.mulf %266, %276 : vector<1x16xf32>
    %287 = arith.addf %285, %286 : vector<1x16xf32>
    %288 = math.tanh %287 : vector<1x16xf32>
    %289 = arith.mulf %284, %288 : vector<1x16xf32>
    %290 = tpu.concatenate %44, %79, %114, %149, %184, %219, %254, %289 in 0 : vector<1x16xf32>, vector<1x16xf32>, vector<1x16xf32>, vector<1x16xf32>, vector<1x16xf32>, vector<1x16xf32>, vector<1x16xf32>, vector<1x16xf32> -> vector<8x16xf32>
    %c0_89 = arith.constant 0 : index
    %c0_90 = arith.constant 0 : index
    %291 = vector.load %arg4[%c0_89, %c0_90] : memref<16x64xbf16, #tpu.memory_space<vmem>>, vector<16x64xbf16>
    %c0_91 = arith.constant 0 : index
    %c0_92 = arith.constant 0 : index
    %292 = vector.load %arg5[%c0_91, %c0_92] : memref<16x64xbf16, #tpu.memory_space<vmem>>, vector<16x64xbf16>
    %c0_93 = arith.constant 0 : index
    %c0_94 = arith.constant 0 : index
    %293 = vector.load %arg6[%c0_93, %c0_94] : memref<1x64xf32, #tpu.memory_space<vmem>>, vector<1x64xf32>
    %294 = arith.truncf %0 : vector<8x16xf32> to vector<8x16xbf16>
    %cst_95 = arith.constant dense<0.000000e+00> : vector<8x64xf32>
    %295 = tpu.matmul %294, %291, %cst_95 {dimension_numbers = #tpu.dot_dimension_numbers<[1], [0], [0], [1], [0, 0, 1, 1], [], []>} : vector<8x16xbf16>, vector<16x64xbf16>, vector<8x64xf32> -> vector<8x64xf32>
    %296 = vector.broadcast %293 : vector<1x64xf32> to vector<8x64xf32>
    %297 = arith.addf %295, %296 : vector<8x64xf32>
    %cst_96 = arith.constant 0.000000e+00 : f32
    %298 = vector.broadcast %cst_96 : f32 to vector<1x16xf32>
    %cst_97 = arith.constant 0.000000e+00 : f32
    %299 = vector.broadcast %cst_97 : f32 to vector<1x16xf32>
    %300 = vector.extract_strided_slice %297 {offsets = [7, 0], sizes = [1, 64], strides = [1, 1]} : vector<8x64xf32> to vector<1x64xf32>
    %301 = arith.truncf %298 : vector<1x16xf32> to vector<1x16xbf16>
    %cst_98 = arith.constant dense<0.000000e+00> : vector<1x64xf32>
    %302 = tpu.matmul %301, %292, %cst_98 {dimension_numbers = #tpu.dot_dimension_numbers<[1], [0], [0], [1], [0, 0, 1, 1], [], []>} : vector<1x16xbf16>, vector<16x64xbf16>, vector<1x64xf32> -> vector<1x64xf32>
    %303 = arith.addf %300, %302 : vector<1x64xf32>
    %304 = vector.extract_strided_slice %303 {offsets = [0, 0], sizes = [1, 16], strides = [1, 1]} : vector<1x64xf32> to vector<1x16xf32>
    %cst_99 = arith.constant 0.000000e+00 : f32
    %305 = vector.broadcast %cst_99 : f32 to vector<1x16xf32>
    %306 = arith.subf %305, %304 : vector<1x16xf32>
    %307 = math.exp %306 : vector<1x16xf32>
    %cst_100 = arith.constant 1.000000e+00 : f32
    %308 = vector.broadcast %cst_100 : f32 to vector<1x16xf32>
    %309 = arith.addf %308, %307 : vector<1x16xf32>
    %cst_101 = arith.constant 1.000000e+00 : f32
    %310 = vector.broadcast %cst_101 : f32 to vector<1x16xf32>
    %311 = arith.divf %310, %309 : vector<1x16xf32>
    %312 = vector.extract_strided_slice %303 {offsets = [0, 16], sizes = [1, 16], strides = [1, 1]} : vector<1x64xf32> to vector<1x16xf32>
    %cst_102 = arith.constant 0.000000e+00 : f32
    %313 = vector.broadcast %cst_102 : f32 to vector<1x16xf32>
    %314 = arith.subf %313, %312 : vector<1x16xf32>
    %315 = math.exp %314 : vector<1x16xf32>
    %cst_103 = arith.constant 1.000000e+00 : f32
    %316 = vector.broadcast %cst_103 : f32 to vector<1x16xf32>
    %317 = arith.addf %316, %315 : vector<1x16xf32>
    %cst_104 = arith.constant 1.000000e+00 : f32
    %318 = vector.broadcast %cst_104 : f32 to vector<1x16xf32>
    %319 = arith.divf %318, %317 : vector<1x16xf32>
    %320 = vector.extract_strided_slice %303 {offsets = [0, 32], sizes = [1, 16], strides = [1, 1]} : vector<1x64xf32> to vector<1x16xf32>
    %321 = math.tanh %320 : vector<1x16xf32>
    %322 = vector.extract_strided_slice %303 {offsets = [0, 48], sizes = [1, 16], strides = [1, 1]} : vector<1x64xf32> to vector<1x16xf32>
    %cst_105 = arith.constant 0.000000e+00 : f32
    %323 = vector.broadcast %cst_105 : f32 to vector<1x16xf32>
    %324 = arith.subf %323, %322 : vector<1x16xf32>
    %325 = math.exp %324 : vector<1x16xf32>
    %cst_106 = arith.constant 1.000000e+00 : f32
    %326 = vector.broadcast %cst_106 : f32 to vector<1x16xf32>
    %327 = arith.addf %326, %325 : vector<1x16xf32>
    %cst_107 = arith.constant 1.000000e+00 : f32
    %328 = vector.broadcast %cst_107 : f32 to vector<1x16xf32>
    %329 = arith.divf %328, %327 : vector<1x16xf32>
    %330 = arith.mulf %319, %299 : vector<1x16xf32>
    %331 = arith.mulf %311, %321 : vector<1x16xf32>
    %332 = arith.addf %330, %331 : vector<1x16xf32>
    %333 = math.tanh %332 : vector<1x16xf32>
    %334 = arith.mulf %329, %333 : vector<1x16xf32>
    %335 = vector.extract_strided_slice %297 {offsets = [6, 0], sizes = [1, 64], strides = [1, 1]} : vector<8x64xf32> to vector<1x64xf32>
    %336 = arith.truncf %334 : vector<1x16xf32> to vector<1x16xbf16>
    %cst_108 = arith.constant dense<0.000000e+00> : vector<1x64xf32>
    %337 = tpu.matmul %336, %292, %cst_108 {dimension_numbers = #tpu.dot_dimension_numbers<[1], [0], [0], [1], [0, 0, 1, 1], [], []>} : vector<1x16xbf16>, vector<16x64xbf16>, vector<1x64xf32> -> vector<1x64xf32>
    %338 = arith.addf %335, %337 : vector<1x64xf32>
    %339 = vector.extract_strided_slice %338 {offsets = [0, 0], sizes = [1, 16], strides = [1, 1]} : vector<1x64xf32> to vector<1x16xf32>
    %cst_109 = arith.constant 0.000000e+00 : f32
    %340 = vector.broadcast %cst_109 : f32 to vector<1x16xf32>
    %341 = arith.subf %340, %339 : vector<1x16xf32>
    %342 = math.exp %341 : vector<1x16xf32>
    %cst_110 = arith.constant 1.000000e+00 : f32
    %343 = vector.broadcast %cst_110 : f32 to vector<1x16xf32>
    %344 = arith.addf %343, %342 : vector<1x16xf32>
    %cst_111 = arith.constant 1.000000e+00 : f32
    %345 = vector.broadcast %cst_111 : f32 to vector<1x16xf32>
    %346 = arith.divf %345, %344 : vector<1x16xf32>
    %347 = vector.extract_strided_slice %338 {offsets = [0, 16], sizes = [1, 16], strides = [1, 1]} : vector<1x64xf32> to vector<1x16xf32>
    %cst_112 = arith.constant 0.000000e+00 : f32
    %348 = vector.broadcast %cst_112 : f32 to vector<1x16xf32>
    %349 = arith.subf %348, %347 : vector<1x16xf32>
    %350 = math.exp %349 : vector<1x16xf32>
    %cst_113 = arith.constant 1.000000e+00 : f32
    %351 = vector.broadcast %cst_113 : f32 to vector<1x16xf32>
    %352 = arith.addf %351, %350 : vector<1x16xf32>
    %cst_114 = arith.constant 1.000000e+00 : f32
    %353 = vector.broadcast %cst_114 : f32 to vector<1x16xf32>
    %354 = arith.divf %353, %352 : vector<1x16xf32>
    %355 = vector.extract_strided_slice %338 {offsets = [0, 32], sizes = [1, 16], strides = [1, 1]} : vector<1x64xf32> to vector<1x16xf32>
    %356 = math.tanh %355 : vector<1x16xf32>
    %357 = vector.extract_strided_slice %338 {offsets = [0, 48], sizes = [1, 16], strides = [1, 1]} : vector<1x64xf32> to vector<1x16xf32>
    %cst_115 = arith.constant 0.000000e+00 : f32
    %358 = vector.broadcast %cst_115 : f32 to vector<1x16xf32>
    %359 = arith.subf %358, %357 : vector<1x16xf32>
    %360 = math.exp %359 : vector<1x16xf32>
    %cst_116 = arith.constant 1.000000e+00 : f32
    %361 = vector.broadcast %cst_116 : f32 to vector<1x16xf32>
    %362 = arith.addf %361, %360 : vector<1x16xf32>
    %cst_117 = arith.constant 1.000000e+00 : f32
    %363 = vector.broadcast %cst_117 : f32 to vector<1x16xf32>
    %364 = arith.divf %363, %362 : vector<1x16xf32>
    %365 = arith.mulf %354, %332 : vector<1x16xf32>
    %366 = arith.mulf %346, %356 : vector<1x16xf32>
    %367 = arith.addf %365, %366 : vector<1x16xf32>
    %368 = math.tanh %367 : vector<1x16xf32>
    %369 = arith.mulf %364, %368 : vector<1x16xf32>
    %370 = vector.extract_strided_slice %297 {offsets = [5, 0], sizes = [1, 64], strides = [1, 1]} : vector<8x64xf32> to vector<1x64xf32>
    %371 = arith.truncf %369 : vector<1x16xf32> to vector<1x16xbf16>
    %cst_118 = arith.constant dense<0.000000e+00> : vector<1x64xf32>
    %372 = tpu.matmul %371, %292, %cst_118 {dimension_numbers = #tpu.dot_dimension_numbers<[1], [0], [0], [1], [0, 0, 1, 1], [], []>} : vector<1x16xbf16>, vector<16x64xbf16>, vector<1x64xf32> -> vector<1x64xf32>
    %373 = arith.addf %370, %372 : vector<1x64xf32>
    %374 = vector.extract_strided_slice %373 {offsets = [0, 0], sizes = [1, 16], strides = [1, 1]} : vector<1x64xf32> to vector<1x16xf32>
    %cst_119 = arith.constant 0.000000e+00 : f32
    %375 = vector.broadcast %cst_119 : f32 to vector<1x16xf32>
    %376 = arith.subf %375, %374 : vector<1x16xf32>
    %377 = math.exp %376 : vector<1x16xf32>
    %cst_120 = arith.constant 1.000000e+00 : f32
    %378 = vector.broadcast %cst_120 : f32 to vector<1x16xf32>
    %379 = arith.addf %378, %377 : vector<1x16xf32>
    %cst_121 = arith.constant 1.000000e+00 : f32
    %380 = vector.broadcast %cst_121 : f32 to vector<1x16xf32>
    %381 = arith.divf %380, %379 : vector<1x16xf32>
    %382 = vector.extract_strided_slice %373 {offsets = [0, 16], sizes = [1, 16], strides = [1, 1]} : vector<1x64xf32> to vector<1x16xf32>
    %cst_122 = arith.constant 0.000000e+00 : f32
    %383 = vector.broadcast %cst_122 : f32 to vector<1x16xf32>
    %384 = arith.subf %383, %382 : vector<1x16xf32>
    %385 = math.exp %384 : vector<1x16xf32>
    %cst_123 = arith.constant 1.000000e+00 : f32
    %386 = vector.broadcast %cst_123 : f32 to vector<1x16xf32>
    %387 = arith.addf %386, %385 : vector<1x16xf32>
    %cst_124 = arith.constant 1.000000e+00 : f32
    %388 = vector.broadcast %cst_124 : f32 to vector<1x16xf32>
    %389 = arith.divf %388, %387 : vector<1x16xf32>
    %390 = vector.extract_strided_slice %373 {offsets = [0, 32], sizes = [1, 16], strides = [1, 1]} : vector<1x64xf32> to vector<1x16xf32>
    %391 = math.tanh %390 : vector<1x16xf32>
    %392 = vector.extract_strided_slice %373 {offsets = [0, 48], sizes = [1, 16], strides = [1, 1]} : vector<1x64xf32> to vector<1x16xf32>
    %cst_125 = arith.constant 0.000000e+00 : f32
    %393 = vector.broadcast %cst_125 : f32 to vector<1x16xf32>
    %394 = arith.subf %393, %392 : vector<1x16xf32>
    %395 = math.exp %394 : vector<1x16xf32>
    %cst_126 = arith.constant 1.000000e+00 : f32
    %396 = vector.broadcast %cst_126 : f32 to vector<1x16xf32>
    %397 = arith.addf %396, %395 : vector<1x16xf32>
    %cst_127 = arith.constant 1.000000e+00 : f32
    %398 = vector.broadcast %cst_127 : f32 to vector<1x16xf32>
    %399 = arith.divf %398, %397 : vector<1x16xf32>
    %400 = arith.mulf %389, %367 : vector<1x16xf32>
    %401 = arith.mulf %381, %391 : vector<1x16xf32>
    %402 = arith.addf %400, %401 : vector<1x16xf32>
    %403 = math.tanh %402 : vector<1x16xf32>
    %404 = arith.mulf %399, %403 : vector<1x16xf32>
    %405 = vector.extract_strided_slice %297 {offsets = [4, 0], sizes = [1, 64], strides = [1, 1]} : vector<8x64xf32> to vector<1x64xf32>
    %406 = arith.truncf %404 : vector<1x16xf32> to vector<1x16xbf16>
    %cst_128 = arith.constant dense<0.000000e+00> : vector<1x64xf32>
    %407 = tpu.matmul %406, %292, %cst_128 {dimension_numbers = #tpu.dot_dimension_numbers<[1], [0], [0], [1], [0, 0, 1, 1], [], []>} : vector<1x16xbf16>, vector<16x64xbf16>, vector<1x64xf32> -> vector<1x64xf32>
    %408 = arith.addf %405, %407 : vector<1x64xf32>
    %409 = vector.extract_strided_slice %408 {offsets = [0, 0], sizes = [1, 16], strides = [1, 1]} : vector<1x64xf32> to vector<1x16xf32>
    %cst_129 = arith.constant 0.000000e+00 : f32
    %410 = vector.broadcast %cst_129 : f32 to vector<1x16xf32>
    %411 = arith.subf %410, %409 : vector<1x16xf32>
    %412 = math.exp %411 : vector<1x16xf32>
    %cst_130 = arith.constant 1.000000e+00 : f32
    %413 = vector.broadcast %cst_130 : f32 to vector<1x16xf32>
    %414 = arith.addf %413, %412 : vector<1x16xf32>
    %cst_131 = arith.constant 1.000000e+00 : f32
    %415 = vector.broadcast %cst_131 : f32 to vector<1x16xf32>
    %416 = arith.divf %415, %414 : vector<1x16xf32>
    %417 = vector.extract_strided_slice %408 {offsets = [0, 16], sizes = [1, 16], strides = [1, 1]} : vector<1x64xf32> to vector<1x16xf32>
    %cst_132 = arith.constant 0.000000e+00 : f32
    %418 = vector.broadcast %cst_132 : f32 to vector<1x16xf32>
    %419 = arith.subf %418, %417 : vector<1x16xf32>
    %420 = math.exp %419 : vector<1x16xf32>
    %cst_133 = arith.constant 1.000000e+00 : f32
    %421 = vector.broadcast %cst_133 : f32 to vector<1x16xf32>
    %422 = arith.addf %421, %420 : vector<1x16xf32>
    %cst_134 = arith.constant 1.000000e+00 : f32
    %423 = vector.broadcast %cst_134 : f32 to vector<1x16xf32>
    %424 = arith.divf %423, %422 : vector<1x16xf32>
    %425 = vector.extract_strided_slice %408 {offsets = [0, 32], sizes = [1, 16], strides = [1, 1]} : vector<1x64xf32> to vector<1x16xf32>
    %426 = math.tanh %425 : vector<1x16xf32>
    %427 = vector.extract_strided_slice %408 {offsets = [0, 48], sizes = [1, 16], strides = [1, 1]} : vector<1x64xf32> to vector<1x16xf32>
    %cst_135 = arith.constant 0.000000e+00 : f32
    %428 = vector.broadcast %cst_135 : f32 to vector<1x16xf32>
    %429 = arith.subf %428, %427 : vector<1x16xf32>
    %430 = math.exp %429 : vector<1x16xf32>
    %cst_136 = arith.constant 1.000000e+00 : f32
    %431 = vector.broadcast %cst_136 : f32 to vector<1x16xf32>
    %432 = arith.addf %431, %430 : vector<1x16xf32>
    %cst_137 = arith.constant 1.000000e+00 : f32
    %433 = vector.broadcast %cst_137 : f32 to vector<1x16xf32>
    %434 = arith.divf %433, %432 : vector<1x16xf32>
    %435 = arith.mulf %424, %402 : vector<1x16xf32>
    %436 = arith.mulf %416, %426 : vector<1x16xf32>
    %437 = arith.addf %435, %436 : vector<1x16xf32>
    %438 = math.tanh %437 : vector<1x16xf32>
    %439 = arith.mulf %434, %438 : vector<1x16xf32>
    %440 = vector.extract_strided_slice %297 {offsets = [3, 0], sizes = [1, 64], strides = [1, 1]} : vector<8x64xf32> to vector<1x64xf32>
    %441 = arith.truncf %439 : vector<1x16xf32> to vector<1x16xbf16>
    %cst_138 = arith.constant dense<0.000000e+00> : vector<1x64xf32>
    %442 = tpu.matmul %441, %292, %cst_138 {dimension_numbers = #tpu.dot_dimension_numbers<[1], [0], [0], [1], [0, 0, 1, 1], [], []>} : vector<1x16xbf16>, vector<16x64xbf16>, vector<1x64xf32> -> vector<1x64xf32>
    %443 = arith.addf %440, %442 : vector<1x64xf32>
    %444 = vector.extract_strided_slice %443 {offsets = [0, 0], sizes = [1, 16], strides = [1, 1]} : vector<1x64xf32> to vector<1x16xf32>
    %cst_139 = arith.constant 0.000000e+00 : f32
    %445 = vector.broadcast %cst_139 : f32 to vector<1x16xf32>
    %446 = arith.subf %445, %444 : vector<1x16xf32>
    %447 = math.exp %446 : vector<1x16xf32>
    %cst_140 = arith.constant 1.000000e+00 : f32
    %448 = vector.broadcast %cst_140 : f32 to vector<1x16xf32>
    %449 = arith.addf %448, %447 : vector<1x16xf32>
    %cst_141 = arith.constant 1.000000e+00 : f32
    %450 = vector.broadcast %cst_141 : f32 to vector<1x16xf32>
    %451 = arith.divf %450, %449 : vector<1x16xf32>
    %452 = vector.extract_strided_slice %443 {offsets = [0, 16], sizes = [1, 16], strides = [1, 1]} : vector<1x64xf32> to vector<1x16xf32>
    %cst_142 = arith.constant 0.000000e+00 : f32
    %453 = vector.broadcast %cst_142 : f32 to vector<1x16xf32>
    %454 = arith.subf %453, %452 : vector<1x16xf32>
    %455 = math.exp %454 : vector<1x16xf32>
    %cst_143 = arith.constant 1.000000e+00 : f32
    %456 = vector.broadcast %cst_143 : f32 to vector<1x16xf32>
    %457 = arith.addf %456, %455 : vector<1x16xf32>
    %cst_144 = arith.constant 1.000000e+00 : f32
    %458 = vector.broadcast %cst_144 : f32 to vector<1x16xf32>
    %459 = arith.divf %458, %457 : vector<1x16xf32>
    %460 = vector.extract_strided_slice %443 {offsets = [0, 32], sizes = [1, 16], strides = [1, 1]} : vector<1x64xf32> to vector<1x16xf32>
    %461 = math.tanh %460 : vector<1x16xf32>
    %462 = vector.extract_strided_slice %443 {offsets = [0, 48], sizes = [1, 16], strides = [1, 1]} : vector<1x64xf32> to vector<1x16xf32>
    %cst_145 = arith.constant 0.000000e+00 : f32
    %463 = vector.broadcast %cst_145 : f32 to vector<1x16xf32>
    %464 = arith.subf %463, %462 : vector<1x16xf32>
    %465 = math.exp %464 : vector<1x16xf32>
    %cst_146 = arith.constant 1.000000e+00 : f32
    %466 = vector.broadcast %cst_146 : f32 to vector<1x16xf32>
    %467 = arith.addf %466, %465 : vector<1x16xf32>
    %cst_147 = arith.constant 1.000000e+00 : f32
    %468 = vector.broadcast %cst_147 : f32 to vector<1x16xf32>
    %469 = arith.divf %468, %467 : vector<1x16xf32>
    %470 = arith.mulf %459, %437 : vector<1x16xf32>
    %471 = arith.mulf %451, %461 : vector<1x16xf32>
    %472 = arith.addf %470, %471 : vector<1x16xf32>
    %473 = math.tanh %472 : vector<1x16xf32>
    %474 = arith.mulf %469, %473 : vector<1x16xf32>
    %475 = vector.extract_strided_slice %297 {offsets = [2, 0], sizes = [1, 64], strides = [1, 1]} : vector<8x64xf32> to vector<1x64xf32>
    %476 = arith.truncf %474 : vector<1x16xf32> to vector<1x16xbf16>
    %cst_148 = arith.constant dense<0.000000e+00> : vector<1x64xf32>
    %477 = tpu.matmul %476, %292, %cst_148 {dimension_numbers = #tpu.dot_dimension_numbers<[1], [0], [0], [1], [0, 0, 1, 1], [], []>} : vector<1x16xbf16>, vector<16x64xbf16>, vector<1x64xf32> -> vector<1x64xf32>
    %478 = arith.addf %475, %477 : vector<1x64xf32>
    %479 = vector.extract_strided_slice %478 {offsets = [0, 0], sizes = [1, 16], strides = [1, 1]} : vector<1x64xf32> to vector<1x16xf32>
    %cst_149 = arith.constant 0.000000e+00 : f32
    %480 = vector.broadcast %cst_149 : f32 to vector<1x16xf32>
    %481 = arith.subf %480, %479 : vector<1x16xf32>
    %482 = math.exp %481 : vector<1x16xf32>
    %cst_150 = arith.constant 1.000000e+00 : f32
    %483 = vector.broadcast %cst_150 : f32 to vector<1x16xf32>
    %484 = arith.addf %483, %482 : vector<1x16xf32>
    %cst_151 = arith.constant 1.000000e+00 : f32
    %485 = vector.broadcast %cst_151 : f32 to vector<1x16xf32>
    %486 = arith.divf %485, %484 : vector<1x16xf32>
    %487 = vector.extract_strided_slice %478 {offsets = [0, 16], sizes = [1, 16], strides = [1, 1]} : vector<1x64xf32> to vector<1x16xf32>
    %cst_152 = arith.constant 0.000000e+00 : f32
    %488 = vector.broadcast %cst_152 : f32 to vector<1x16xf32>
    %489 = arith.subf %488, %487 : vector<1x16xf32>
    %490 = math.exp %489 : vector<1x16xf32>
    %cst_153 = arith.constant 1.000000e+00 : f32
    %491 = vector.broadcast %cst_153 : f32 to vector<1x16xf32>
    %492 = arith.addf %491, %490 : vector<1x16xf32>
    %cst_154 = arith.constant 1.000000e+00 : f32
    %493 = vector.broadcast %cst_154 : f32 to vector<1x16xf32>
    %494 = arith.divf %493, %492 : vector<1x16xf32>
    %495 = vector.extract_strided_slice %478 {offsets = [0, 32], sizes = [1, 16], strides = [1, 1]} : vector<1x64xf32> to vector<1x16xf32>
    %496 = math.tanh %495 : vector<1x16xf32>
    %497 = vector.extract_strided_slice %478 {offsets = [0, 48], sizes = [1, 16], strides = [1, 1]} : vector<1x64xf32> to vector<1x16xf32>
    %cst_155 = arith.constant 0.000000e+00 : f32
    %498 = vector.broadcast %cst_155 : f32 to vector<1x16xf32>
    %499 = arith.subf %498, %497 : vector<1x16xf32>
    %500 = math.exp %499 : vector<1x16xf32>
    %cst_156 = arith.constant 1.000000e+00 : f32
    %501 = vector.broadcast %cst_156 : f32 to vector<1x16xf32>
    %502 = arith.addf %501, %500 : vector<1x16xf32>
    %cst_157 = arith.constant 1.000000e+00 : f32
    %503 = vector.broadcast %cst_157 : f32 to vector<1x16xf32>
    %504 = arith.divf %503, %502 : vector<1x16xf32>
    %505 = arith.mulf %494, %472 : vector<1x16xf32>
    %506 = arith.mulf %486, %496 : vector<1x16xf32>
    %507 = arith.addf %505, %506 : vector<1x16xf32>
    %508 = math.tanh %507 : vector<1x16xf32>
    %509 = arith.mulf %504, %508 : vector<1x16xf32>
    %510 = vector.extract_strided_slice %297 {offsets = [1, 0], sizes = [1, 64], strides = [1, 1]} : vector<8x64xf32> to vector<1x64xf32>
    %511 = arith.truncf %509 : vector<1x16xf32> to vector<1x16xbf16>
    %cst_158 = arith.constant dense<0.000000e+00> : vector<1x64xf32>
    %512 = tpu.matmul %511, %292, %cst_158 {dimension_numbers = #tpu.dot_dimension_numbers<[1], [0], [0], [1], [0, 0, 1, 1], [], []>} : vector<1x16xbf16>, vector<16x64xbf16>, vector<1x64xf32> -> vector<1x64xf32>
    %513 = arith.addf %510, %512 : vector<1x64xf32>
    %514 = vector.extract_strided_slice %513 {offsets = [0, 0], sizes = [1, 16], strides = [1, 1]} : vector<1x64xf32> to vector<1x16xf32>
    %cst_159 = arith.constant 0.000000e+00 : f32
    %515 = vector.broadcast %cst_159 : f32 to vector<1x16xf32>
    %516 = arith.subf %515, %514 : vector<1x16xf32>
    %517 = math.exp %516 : vector<1x16xf32>
    %cst_160 = arith.constant 1.000000e+00 : f32
    %518 = vector.broadcast %cst_160 : f32 to vector<1x16xf32>
    %519 = arith.addf %518, %517 : vector<1x16xf32>
    %cst_161 = arith.constant 1.000000e+00 : f32
    %520 = vector.broadcast %cst_161 : f32 to vector<1x16xf32>
    %521 = arith.divf %520, %519 : vector<1x16xf32>
    %522 = vector.extract_strided_slice %513 {offsets = [0, 16], sizes = [1, 16], strides = [1, 1]} : vector<1x64xf32> to vector<1x16xf32>
    %cst_162 = arith.constant 0.000000e+00 : f32
    %523 = vector.broadcast %cst_162 : f32 to vector<1x16xf32>
    %524 = arith.subf %523, %522 : vector<1x16xf32>
    %525 = math.exp %524 : vector<1x16xf32>
    %cst_163 = arith.constant 1.000000e+00 : f32
    %526 = vector.broadcast %cst_163 : f32 to vector<1x16xf32>
    %527 = arith.addf %526, %525 : vector<1x16xf32>
    %cst_164 = arith.constant 1.000000e+00 : f32
    %528 = vector.broadcast %cst_164 : f32 to vector<1x16xf32>
    %529 = arith.divf %528, %527 : vector<1x16xf32>
    %530 = vector.extract_strided_slice %513 {offsets = [0, 32], sizes = [1, 16], strides = [1, 1]} : vector<1x64xf32> to vector<1x16xf32>
    %531 = math.tanh %530 : vector<1x16xf32>
    %532 = vector.extract_strided_slice %513 {offsets = [0, 48], sizes = [1, 16], strides = [1, 1]} : vector<1x64xf32> to vector<1x16xf32>
    %cst_165 = arith.constant 0.000000e+00 : f32
    %533 = vector.broadcast %cst_165 : f32 to vector<1x16xf32>
    %534 = arith.subf %533, %532 : vector<1x16xf32>
    %535 = math.exp %534 : vector<1x16xf32>
    %cst_166 = arith.constant 1.000000e+00 : f32
    %536 = vector.broadcast %cst_166 : f32 to vector<1x16xf32>
    %537 = arith.addf %536, %535 : vector<1x16xf32>
    %cst_167 = arith.constant 1.000000e+00 : f32
    %538 = vector.broadcast %cst_167 : f32 to vector<1x16xf32>
    %539 = arith.divf %538, %537 : vector<1x16xf32>
    %540 = arith.mulf %529, %507 : vector<1x16xf32>
    %541 = arith.mulf %521, %531 : vector<1x16xf32>
    %542 = arith.addf %540, %541 : vector<1x16xf32>
    %543 = math.tanh %542 : vector<1x16xf32>
    %544 = arith.mulf %539, %543 : vector<1x16xf32>
    %545 = vector.extract_strided_slice %297 {offsets = [0, 0], sizes = [1, 64], strides = [1, 1]} : vector<8x64xf32> to vector<1x64xf32>
    %546 = arith.truncf %544 : vector<1x16xf32> to vector<1x16xbf16>
    %cst_168 = arith.constant dense<0.000000e+00> : vector<1x64xf32>
    %547 = tpu.matmul %546, %292, %cst_168 {dimension_numbers = #tpu.dot_dimension_numbers<[1], [0], [0], [1], [0, 0, 1, 1], [], []>} : vector<1x16xbf16>, vector<16x64xbf16>, vector<1x64xf32> -> vector<1x64xf32>
    %548 = arith.addf %545, %547 : vector<1x64xf32>
    %549 = vector.extract_strided_slice %548 {offsets = [0, 0], sizes = [1, 16], strides = [1, 1]} : vector<1x64xf32> to vector<1x16xf32>
    %cst_169 = arith.constant 0.000000e+00 : f32
    %550 = vector.broadcast %cst_169 : f32 to vector<1x16xf32>
    %551 = arith.subf %550, %549 : vector<1x16xf32>
    %552 = math.exp %551 : vector<1x16xf32>
    %cst_170 = arith.constant 1.000000e+00 : f32
    %553 = vector.broadcast %cst_170 : f32 to vector<1x16xf32>
    %554 = arith.addf %553, %552 : vector<1x16xf32>
    %cst_171 = arith.constant 1.000000e+00 : f32
    %555 = vector.broadcast %cst_171 : f32 to vector<1x16xf32>
    %556 = arith.divf %555, %554 : vector<1x16xf32>
    %557 = vector.extract_strided_slice %548 {offsets = [0, 16], sizes = [1, 16], strides = [1, 1]} : vector<1x64xf32> to vector<1x16xf32>
    %cst_172 = arith.constant 0.000000e+00 : f32
    %558 = vector.broadcast %cst_172 : f32 to vector<1x16xf32>
    %559 = arith.subf %558, %557 : vector<1x16xf32>
    %560 = math.exp %559 : vector<1x16xf32>
    %cst_173 = arith.constant 1.000000e+00 : f32
    %561 = vector.broadcast %cst_173 : f32 to vector<1x16xf32>
    %562 = arith.addf %561, %560 : vector<1x16xf32>
    %cst_174 = arith.constant 1.000000e+00 : f32
    %563 = vector.broadcast %cst_174 : f32 to vector<1x16xf32>
    %564 = arith.divf %563, %562 : vector<1x16xf32>
    %565 = vector.extract_strided_slice %548 {offsets = [0, 32], sizes = [1, 16], strides = [1, 1]} : vector<1x64xf32> to vector<1x16xf32>
    %566 = math.tanh %565 : vector<1x16xf32>
    %567 = vector.extract_strided_slice %548 {offsets = [0, 48], sizes = [1, 16], strides = [1, 1]} : vector<1x64xf32> to vector<1x16xf32>
    %cst_175 = arith.constant 0.000000e+00 : f32
    %568 = vector.broadcast %cst_175 : f32 to vector<1x16xf32>
    %569 = arith.subf %568, %567 : vector<1x16xf32>
    %570 = math.exp %569 : vector<1x16xf32>
    %cst_176 = arith.constant 1.000000e+00 : f32
    %571 = vector.broadcast %cst_176 : f32 to vector<1x16xf32>
    %572 = arith.addf %571, %570 : vector<1x16xf32>
    %cst_177 = arith.constant 1.000000e+00 : f32
    %573 = vector.broadcast %cst_177 : f32 to vector<1x16xf32>
    %574 = arith.divf %573, %572 : vector<1x16xf32>
    %575 = arith.mulf %564, %542 : vector<1x16xf32>
    %576 = arith.mulf %556, %566 : vector<1x16xf32>
    %577 = arith.addf %575, %576 : vector<1x16xf32>
    %578 = math.tanh %577 : vector<1x16xf32>
    %579 = arith.mulf %574, %578 : vector<1x16xf32>
    %580 = tpu.concatenate %579, %544, %509, %474, %439, %404, %369, %334 in 0 : vector<1x16xf32>, vector<1x16xf32>, vector<1x16xf32>, vector<1x16xf32>, vector<1x16xf32>, vector<1x16xf32>, vector<1x16xf32>, vector<1x16xf32> -> vector<8x16xf32>
    %581 = tpu.concatenate %290, %580 in 1 : vector<8x16xf32>, vector<8x16xf32> -> vector<8x32xf32>
    %582 = tpu.concatenate %287, %577 in 1 : vector<1x16xf32>, vector<1x16xf32> -> vector<1x32xf32>
    %583 = tpu.concatenate %289, %579 in 1 : vector<1x16xf32>, vector<1x16xf32> -> vector<1x32xf32>
    %c0_178 = arith.constant 0 : index
    %c0_179 = arith.constant 0 : index
    %584 = vector.load %arg7[%c0_178, %c0_179] : memref<16x32xbf16, #tpu.memory_space<vmem>>, vector<16x32xbf16>
    %585 = arith.truncf %0 : vector<8x16xf32> to vector<8x16xbf16>
    %cst_180 = arith.constant dense<0.000000e+00> : vector<8x32xf32>
    %586 = tpu.matmul %585, %584, %cst_180 {dimension_numbers = #tpu.dot_dimension_numbers<[1], [0], [0], [1], [0, 0, 1, 1], [], []>} : vector<8x16xbf16>, vector<16x32xbf16>, vector<8x32xf32> -> vector<8x32xf32>
    %c0_181 = arith.constant 0 : index
    %c0_182 = arith.constant 0 : index
    %587 = vector.load %arg8[%c0_181, %c0_182] : memref<1x32xf32, #tpu.memory_space<vmem>>, vector<1x32xf32>
    %588 = vector.broadcast %587 : vector<1x32xf32> to vector<8x32xf32>
    %589 = arith.addf %586, %588 : vector<8x32xf32>
    %cst_183 = arith.constant 5.000000e-01 : f32
    %590 = vector.broadcast %cst_183 : f32 to vector<8x32xf32>
    %591 = arith.mulf %589, %590 : vector<8x32xf32>
    %cst_184 = arith.constant 1.41421354 : f32
    %592 = vector.broadcast %cst_184 : f32 to vector<8x32xf32>
    %593 = arith.divf %589, %592 : vector<8x32xf32>
    %594 = math.erf %593 : vector<8x32xf32>
    %cst_185 = arith.constant 1.000000e+00 : f32
    %595 = vector.broadcast %cst_185 : f32 to vector<8x32xf32>
    %596 = arith.addf %595, %594 : vector<8x32xf32>
    %597 = arith.mulf %591, %596 : vector<8x32xf32>
    %c0_186 = arith.constant 0 : index
    %c0_187 = arith.constant 0 : index
    %c0_188 = arith.constant 0 : index
    %598 = vector.load %arg9[%c0_186, %c0_187, %c0_188] : memref<3x32x96xbf16, #tpu.memory_space<vmem>>, vector<1x32x96xbf16>
    %599 = vector.shape_cast %598 : vector<1x32x96xbf16> to vector<32x96xbf16>
    %c0_189 = arith.constant 0 : index
    %c0_190 = arith.constant 0 : index
    %c0_191 = arith.constant 0 : index
    %600 = vector.load %arg10[%c0_189, %c0_190, %c0_191] : memref<3x1x96xf32, #tpu.memory_space<vmem>>, vector<1x1x96xf32>
    %601 = vector.shape_cast %600 : vector<1x1x96xf32> to vector<1x96xf32>
    %c0_192 = arith.constant 0 : index
    %c0_193 = arith.constant 0 : index
    %c0_194 = arith.constant 0 : index
    %c0_195 = arith.constant 0 : index
    %602 = vector.load %arg11[%c0_192, %c0_193, %c0_194, %c0_195] : memref<3x8x4x32xbf16, #tpu.memory_space<vmem>>, vector<1x8x4x32xbf16>
    %603 = vector.shape_cast %602 : vector<1x8x4x32xbf16> to vector<8x4x32xbf16>
    %c0_196 = arith.constant 0 : index
    %c0_197 = arith.constant 0 : index
    %c0_198 = arith.constant 0 : index
    %604 = vector.load %arg12[%c0_196, %c0_197, %c0_198] : memref<3x1x32xf32, #tpu.memory_space<vmem>>, vector<1x1x32xf32>
    %605 = vector.shape_cast %604 : vector<1x1x32xf32> to vector<1x32xf32>
    %606 = arith.truncf %597 : vector<8x32xf32> to vector<8x32xbf16>
    %cst_199 = arith.constant dense<0.000000e+00> : vector<8x96xf32>
    %607 = tpu.matmul %606, %599, %cst_199 {dimension_numbers = #tpu.dot_dimension_numbers<[1], [0], [0], [1], [0, 0, 1, 1], [], []>} : vector<8x32xbf16>, vector<32x96xbf16>, vector<8x96xf32> -> vector<8x96xf32>
    %608 = vector.broadcast %601 : vector<1x96xf32> to vector<8x96xf32>
    %609 = arith.addf %607, %608 : vector<8x96xf32>
    %610 = vector.extract_strided_slice %609 {offsets = [0, 0], sizes = [8, 32], strides = [1, 1]} : vector<8x96xf32> to vector<8x32xf32>
    %611 = vector.shape_cast %610 : vector<8x32xf32> to vector<8x8x4xf32>
    %612 = tpu.transpose %611, [1, 0, 2] : vector<8x8x4xf32> -> vector<8x8x4xf32>
    %613 = arith.truncf %612 : vector<8x8x4xf32> to vector<8x8x4xbf16>
    %614 = vector.extract_strided_slice %609 {offsets = [0, 32], sizes = [8, 32], strides = [1, 1]} : vector<8x96xf32> to vector<8x32xf32>
    %615 = vector.shape_cast %614 : vector<8x32xf32> to vector<8x8x4xf32>
    %616 = tpu.transpose %615, [1, 0, 2] : vector<8x8x4xf32> -> vector<8x8x4xf32>
    %617 = arith.truncf %616 : vector<8x8x4xf32> to vector<8x8x4xbf16>
    %618 = vector.extract_strided_slice %609 {offsets = [0, 64], sizes = [8, 32], strides = [1, 1]} : vector<8x96xf32> to vector<8x32xf32>
    %619 = vector.shape_cast %618 : vector<8x32xf32> to vector<8x8x4xf32>
    %620 = tpu.transpose %619, [1, 0, 2] : vector<8x8x4xf32> -> vector<8x8x4xf32>
    %621 = arith.truncf %620 : vector<8x8x4xf32> to vector<8x8x4xbf16>
    "tpu.trace_start"() <{level = 10 : i32, message = "hqd,hkd->hqk"}> : () -> ()
    %cst_200 = arith.constant dense<0.000000e+00> : vector<8x8x8xf32>
    %622 = tpu.matmul %613, %617, %cst_200 {dimension_numbers = #tpu.dot_dimension_numbers<[2], [2], [1], [1], [0, 0, 0, 1, 1, 1], [0], [0]>} : vector<8x8x4xbf16>, vector<8x8x4xbf16>, vector<8x8x8xf32> -> vector<8x8x8xf32>
    "tpu.trace_stop"() : () -> ()
    %cst_201 = arith.constant dense<0xFF800000> : vector<8x8xf32>
    %623 = vector.multi_reduction <maximumf>, %622, %cst_201 [2] : vector<8x8x8xf32> to vector<8x8xf32>
    %624 = vector.shape_cast %623 : vector<8x8xf32> to vector<8x8x1xf32>
    %625 = vector.broadcast %624 : vector<8x8x1xf32> to vector<8x8x8xf32>
    %626 = arith.subf %622, %625 : vector<8x8x8xf32>
    %627 = math.exp %626 : vector<8x8x8xf32>
    %cst_202 = arith.constant dense<0.000000e+00> : vector<8x8xf32>
    %628 = vector.multi_reduction <add>, %627, %cst_202 [2] : vector<8x8x8xf32> to vector<8x8xf32>
    %629 = vector.shape_cast %628 : vector<8x8xf32> to vector<8x8x1xf32>
    %630 = tpu.reciprocal %629 {approx = true} : vector<8x8x1xf32> -> vector<8x8x1xf32>
    %631 = vector.broadcast %630 : vector<8x8x1xf32> to vector<8x8x8xf32>
    %632 = arith.mulf %627, %631 : vector<8x8x8xf32>
    %633 = arith.truncf %632 : vector<8x8x8xf32> to vector<8x8x8xbf16>
    "tpu.trace_start"() <{level = 10 : i32, message = "hqk,hkd->hqd"}> : () -> ()
    %cst_203 = arith.constant dense<0.000000e+00> : vector<8x8x4xf32>
    %634 = tpu.matmul %633, %621, %cst_203 {dimension_numbers = #tpu.dot_dimension_numbers<[2], [1], [1], [2], [0, 0, 0, 1, 1, 2], [0], [0]>} : vector<8x8x8xbf16>, vector<8x8x4xbf16>, vector<8x8x4xf32> -> vector<8x8x4xf32>
    "tpu.trace_stop"() : () -> ()
    %635 = arith.truncf %634 : vector<8x8x4xf32> to vector<8x8x4xbf16>
    "tpu.trace_start"() <{level = 10 : i32, message = "hqd,hdn->hqn"}> : () -> ()
    %cst_204 = arith.constant dense<0.000000e+00> : vector<8x8x32xf32>
    %636 = tpu.matmul %635, %603, %cst_204 {dimension_numbers = #tpu.dot_dimension_numbers<[2], [1], [1], [2], [0, 0, 0, 1, 1, 2], [0], [0]>} : vector<8x8x4xbf16>, vector<8x4x32xbf16>, vector<8x8x32xf32> -> vector<8x8x32xf32>
    "tpu.trace_stop"() : () -> ()
    %cst_205 = arith.constant dense<0.000000e+00> : vector<8x32xf32>
    %637 = vector.multi_reduction <add>, %636, %cst_205 [0] : vector<8x8x32xf32> to vector<8x32xf32>
    %638 = vector.broadcast %605 : vector<1x32xf32> to vector<8x32xf32>
    %639 = arith.addf %637, %638 : vector<8x32xf32>
    %640 = arith.addf %639, %597 : vector<8x32xf32>
    %c0_206 = arith.constant 0 : index
    %c0_207 = arith.constant 0 : index
    %c0_208 = arith.constant 0 : index
    %641 = vector.load %arg13[%c0_206, %c0_207, %c0_208] : memref<4x1x32xf32, #tpu.memory_space<vmem>>, vector<1x1x32xf32>
    %642 = vector.shape_cast %641 : vector<1x1x32xf32> to vector<1x32xf32>
    %c0_209 = arith.constant 0 : index
    %c0_210 = arith.constant 0 : index
    %c0_211 = arith.constant 0 : index
    %643 = vector.load %arg14[%c0_209, %c0_210, %c0_211] : memref<4x1x32xf32, #tpu.memory_space<vmem>>, vector<1x1x32xf32>
    %644 = vector.shape_cast %643 : vector<1x1x32xf32> to vector<1x32xf32>
    %cst_212 = arith.constant dense<0.000000e+00> : vector<8xf32>
    %645 = vector.multi_reduction <add>, %640, %cst_212 [1] : vector<8x32xf32> to vector<8xf32>
    %646 = vector.shape_cast %645 : vector<8xf32> to vector<8x1xf32>
    %cst_213 = arith.constant 3.200000e+01 : f32
    %647 = vector.broadcast %cst_213 : f32 to vector<8x1xf32>
    %648 = arith.divf %646, %647 : vector<8x1xf32>
    %649 = vector.broadcast %648 : vector<8x1xf32> to vector<8x32xf32>
    %650 = arith.subf %640, %649 : vector<8x32xf32>
    %651 = arith.mulf %650, %650 : vector<8x32xf32>
    %cst_214 = arith.constant dense<0.000000e+00> : vector<8xf32>
    %652 = vector.multi_reduction <add>, %651, %cst_214 [1] : vector<8x32xf32> to vector<8xf32>
    %653 = vector.shape_cast %652 : vector<8xf32> to vector<8x1xf32>
    %cst_215 = arith.constant 0.0322580636 : f32
    %654 = vector.broadcast %cst_215 : f32 to vector<8x1xf32>
    %655 = arith.mulf %653, %654 : vector<8x1xf32>
    %656 = vector.broadcast %642 : vector<1x32xf32> to vector<8x32xf32>
    %657 = arith.mulf %656, %650 : vector<8x32xf32>
    %658 = math.sqrt %655 : vector<8x1xf32>
    %cst_216 = arith.constant 9.99999997E-7 : f32
    %659 = vector.broadcast %cst_216 : f32 to vector<8x1xf32>
    %660 = arith.addf %658, %659 : vector<8x1xf32>
    %661 = vector.broadcast %660 : vector<8x1xf32> to vector<8x32xf32>
    %662 = arith.divf %657, %661 : vector<8x32xf32>
    %663 = vector.broadcast %644 : vector<1x32xf32> to vector<8x32xf32>
    %664 = arith.addf %662, %663 : vector<8x32xf32>
    %c0_217 = arith.constant 0 : index
    %c0_218 = arith.constant 0 : index
    %c0_219 = arith.constant 0 : index
    %665 = vector.load %arg15[%c0_217, %c0_218, %c0_219] : memref<3x32x32xbf16, #tpu.memory_space<vmem>>, vector<1x32x32xbf16>
    %666 = vector.shape_cast %665 : vector<1x32x32xbf16> to vector<32x32xbf16>
    %667 = arith.truncf %664 : vector<8x32xf32> to vector<8x32xbf16>
    %cst_220 = arith.constant dense<0.000000e+00> : vector<8x32xf32>
    %668 = tpu.matmul %667, %666, %cst_220 {dimension_numbers = #tpu.dot_dimension_numbers<[1], [0], [0], [1], [0, 0, 1, 1], [], []>} : vector<8x32xbf16>, vector<32x32xbf16>, vector<8x32xf32> -> vector<8x32xf32>
    %c0_221 = arith.constant 0 : index
    %c0_222 = arith.constant 0 : index
    %c0_223 = arith.constant 0 : index
    %669 = vector.load %arg16[%c0_221, %c0_222, %c0_223] : memref<3x1x32xf32, #tpu.memory_space<vmem>>, vector<1x1x32xf32>
    %670 = vector.shape_cast %669 : vector<1x1x32xf32> to vector<1x32xf32>
    %671 = vector.broadcast %670 : vector<1x32xf32> to vector<8x32xf32>
    %672 = arith.addf %668, %671 : vector<8x32xf32>
    %cst_224 = arith.constant 5.000000e-01 : f32
    %673 = vector.broadcast %cst_224 : f32 to vector<8x32xf32>
    %674 = arith.mulf %672, %673 : vector<8x32xf32>
    %cst_225 = arith.constant 1.41421354 : f32
    %675 = vector.broadcast %cst_225 : f32 to vector<8x32xf32>
    %676 = arith.divf %672, %675 : vector<8x32xf32>
    %677 = math.erf %676 : vector<8x32xf32>
    %cst_226 = arith.constant 1.000000e+00 : f32
    %678 = vector.broadcast %cst_226 : f32 to vector<8x32xf32>
    %679 = arith.addf %678, %677 : vector<8x32xf32>
    %680 = arith.mulf %674, %679 : vector<8x32xf32>
    %c0_227 = arith.constant 0 : index
    %c0_228 = arith.constant 0 : index
    %c0_229 = arith.constant 0 : index
    %681 = vector.load %arg17[%c0_227, %c0_228, %c0_229] : memref<3x32x32xbf16, #tpu.memory_space<vmem>>, vector<1x32x32xbf16>
    %682 = vector.shape_cast %681 : vector<1x32x32xbf16> to vector<32x32xbf16>
    %683 = arith.truncf %680 : vector<8x32xf32> to vector<8x32xbf16>
    %cst_230 = arith.constant dense<0.000000e+00> : vector<8x32xf32>
    %684 = tpu.matmul %683, %682, %cst_230 {dimension_numbers = #tpu.dot_dimension_numbers<[1], [0], [0], [1], [0, 0, 1, 1], [], []>} : vector<8x32xbf16>, vector<32x32xbf16>, vector<8x32xf32> -> vector<8x32xf32>
    %c0_231 = arith.constant 0 : index
    %c0_232 = arith.constant 0 : index
    %c0_233 = arith.constant 0 : index
    %685 = vector.load %arg18[%c0_231, %c0_232, %c0_233] : memref<3x1x32xf32, #tpu.memory_space<vmem>>, vector<1x1x32xf32>
    %686 = vector.shape_cast %685 : vector<1x1x32xf32> to vector<1x32xf32>
    %687 = vector.broadcast %686 : vector<1x32xf32> to vector<8x32xf32>
    %688 = arith.addf %684, %687 : vector<8x32xf32>
    %689 = arith.addf %688, %664 : vector<8x32xf32>
    %c1 = arith.constant 1 : index
    %c0_234 = arith.constant 0 : index
    %c0_235 = arith.constant 0 : index
    %690 = vector.load %arg13[%c1, %c0_234, %c0_235] : memref<4x1x32xf32, #tpu.memory_space<vmem>>, vector<1x1x32xf32>
    %691 = vector.shape_cast %690 : vector<1x1x32xf32> to vector<1x32xf32>
    %c1_236 = arith.constant 1 : index
    %c0_237 = arith.constant 0 : index
    %c0_238 = arith.constant 0 : index
    %692 = vector.load %arg14[%c1_236, %c0_237, %c0_238] : memref<4x1x32xf32, #tpu.memory_space<vmem>>, vector<1x1x32xf32>
    %693 = vector.shape_cast %692 : vector<1x1x32xf32> to vector<1x32xf32>
    %cst_239 = arith.constant dense<0.000000e+00> : vector<8xf32>
    %694 = vector.multi_reduction <add>, %689, %cst_239 [1] : vector<8x32xf32> to vector<8xf32>
    %695 = vector.shape_cast %694 : vector<8xf32> to vector<8x1xf32>
    %cst_240 = arith.constant 3.200000e+01 : f32
    %696 = vector.broadcast %cst_240 : f32 to vector<8x1xf32>
    %697 = arith.divf %695, %696 : vector<8x1xf32>
    %698 = vector.broadcast %697 : vector<8x1xf32> to vector<8x32xf32>
    %699 = arith.subf %689, %698 : vector<8x32xf32>
    %700 = arith.mulf %699, %699 : vector<8x32xf32>
    %cst_241 = arith.constant dense<0.000000e+00> : vector<8xf32>
    %701 = vector.multi_reduction <add>, %700, %cst_241 [1] : vector<8x32xf32> to vector<8xf32>
    %702 = vector.shape_cast %701 : vector<8xf32> to vector<8x1xf32>
    %cst_242 = arith.constant 0.0322580636 : f32
    %703 = vector.broadcast %cst_242 : f32 to vector<8x1xf32>
    %704 = arith.mulf %702, %703 : vector<8x1xf32>
    %705 = vector.broadcast %691 : vector<1x32xf32> to vector<8x32xf32>
    %706 = arith.mulf %705, %699 : vector<8x32xf32>
    %707 = math.sqrt %704 : vector<8x1xf32>
    %cst_243 = arith.constant 9.99999997E-7 : f32
    %708 = vector.broadcast %cst_243 : f32 to vector<8x1xf32>
    %709 = arith.addf %707, %708 : vector<8x1xf32>
    %710 = vector.broadcast %709 : vector<8x1xf32> to vector<8x32xf32>
    %711 = arith.divf %706, %710 : vector<8x32xf32>
    %712 = vector.broadcast %693 : vector<1x32xf32> to vector<8x32xf32>
    %713 = arith.addf %711, %712 : vector<8x32xf32>
    %c1_244 = arith.constant 1 : index
    %c0_245 = arith.constant 0 : index
    %c0_246 = arith.constant 0 : index
    %714 = vector.load %arg9[%c1_244, %c0_245, %c0_246] : memref<3x32x96xbf16, #tpu.memory_space<vmem>>, vector<1x32x96xbf16>
    %715 = vector.shape_cast %714 : vector<1x32x96xbf16> to vector<32x96xbf16>
    %c1_247 = arith.constant 1 : index
    %c0_248 = arith.constant 0 : index
    %c0_249 = arith.constant 0 : index
    %716 = vector.load %arg10[%c1_247, %c0_248, %c0_249] : memref<3x1x96xf32, #tpu.memory_space<vmem>>, vector<1x1x96xf32>
    %717 = vector.shape_cast %716 : vector<1x1x96xf32> to vector<1x96xf32>
    %c1_250 = arith.constant 1 : index
    %c0_251 = arith.constant 0 : index
    %c0_252 = arith.constant 0 : index
    %c0_253 = arith.constant 0 : index
    %718 = vector.load %arg11[%c1_250, %c0_251, %c0_252, %c0_253] : memref<3x8x4x32xbf16, #tpu.memory_space<vmem>>, vector<1x8x4x32xbf16>
    %719 = vector.shape_cast %718 : vector<1x8x4x32xbf16> to vector<8x4x32xbf16>
    %c1_254 = arith.constant 1 : index
    %c0_255 = arith.constant 0 : index
    %c0_256 = arith.constant 0 : index
    %720 = vector.load %arg12[%c1_254, %c0_255, %c0_256] : memref<3x1x32xf32, #tpu.memory_space<vmem>>, vector<1x1x32xf32>
    %721 = vector.shape_cast %720 : vector<1x1x32xf32> to vector<1x32xf32>
    %722 = arith.truncf %713 : vector<8x32xf32> to vector<8x32xbf16>
    %cst_257 = arith.constant dense<0.000000e+00> : vector<8x96xf32>
    %723 = tpu.matmul %722, %715, %cst_257 {dimension_numbers = #tpu.dot_dimension_numbers<[1], [0], [0], [1], [0, 0, 1, 1], [], []>} : vector<8x32xbf16>, vector<32x96xbf16>, vector<8x96xf32> -> vector<8x96xf32>
    %724 = vector.broadcast %717 : vector<1x96xf32> to vector<8x96xf32>
    %725 = arith.addf %723, %724 : vector<8x96xf32>
    %726 = vector.extract_strided_slice %725 {offsets = [0, 0], sizes = [8, 32], strides = [1, 1]} : vector<8x96xf32> to vector<8x32xf32>
    %727 = vector.shape_cast %726 : vector<8x32xf32> to vector<8x8x4xf32>
    %728 = tpu.transpose %727, [1, 0, 2] : vector<8x8x4xf32> -> vector<8x8x4xf32>
    %729 = arith.truncf %728 : vector<8x8x4xf32> to vector<8x8x4xbf16>
    %730 = vector.extract_strided_slice %725 {offsets = [0, 32], sizes = [8, 32], strides = [1, 1]} : vector<8x96xf32> to vector<8x32xf32>
    %731 = vector.shape_cast %730 : vector<8x32xf32> to vector<8x8x4xf32>
    %732 = tpu.transpose %731, [1, 0, 2] : vector<8x8x4xf32> -> vector<8x8x4xf32>
    %733 = arith.truncf %732 : vector<8x8x4xf32> to vector<8x8x4xbf16>
    %734 = vector.extract_strided_slice %725 {offsets = [0, 64], sizes = [8, 32], strides = [1, 1]} : vector<8x96xf32> to vector<8x32xf32>
    %735 = vector.shape_cast %734 : vector<8x32xf32> to vector<8x8x4xf32>
    %736 = tpu.transpose %735, [1, 0, 2] : vector<8x8x4xf32> -> vector<8x8x4xf32>
    %737 = arith.truncf %736 : vector<8x8x4xf32> to vector<8x8x4xbf16>
    "tpu.trace_start"() <{level = 10 : i32, message = "hqd,hkd->hqk"}> : () -> ()
    %cst_258 = arith.constant dense<0.000000e+00> : vector<8x8x8xf32>
    %738 = tpu.matmul %729, %733, %cst_258 {dimension_numbers = #tpu.dot_dimension_numbers<[2], [2], [1], [1], [0, 0, 0, 1, 1, 1], [0], [0]>} : vector<8x8x4xbf16>, vector<8x8x4xbf16>, vector<8x8x8xf32> -> vector<8x8x8xf32>
    "tpu.trace_stop"() : () -> ()
    %cst_259 = arith.constant dense<0xFF800000> : vector<8x8xf32>
    %739 = vector.multi_reduction <maximumf>, %738, %cst_259 [2] : vector<8x8x8xf32> to vector<8x8xf32>
    %740 = vector.shape_cast %739 : vector<8x8xf32> to vector<8x8x1xf32>
    %741 = vector.broadcast %740 : vector<8x8x1xf32> to vector<8x8x8xf32>
    %742 = arith.subf %738, %741 : vector<8x8x8xf32>
    %743 = math.exp %742 : vector<8x8x8xf32>
    %cst_260 = arith.constant dense<0.000000e+00> : vector<8x8xf32>
    %744 = vector.multi_reduction <add>, %743, %cst_260 [2] : vector<8x8x8xf32> to vector<8x8xf32>
    %745 = vector.shape_cast %744 : vector<8x8xf32> to vector<8x8x1xf32>
    %746 = tpu.reciprocal %745 {approx = true} : vector<8x8x1xf32> -> vector<8x8x1xf32>
    %747 = vector.broadcast %746 : vector<8x8x1xf32> to vector<8x8x8xf32>
    %748 = arith.mulf %743, %747 : vector<8x8x8xf32>
    %749 = arith.truncf %748 : vector<8x8x8xf32> to vector<8x8x8xbf16>
    "tpu.trace_start"() <{level = 10 : i32, message = "hqk,hkd->hqd"}> : () -> ()
    %cst_261 = arith.constant dense<0.000000e+00> : vector<8x8x4xf32>
    %750 = tpu.matmul %749, %737, %cst_261 {dimension_numbers = #tpu.dot_dimension_numbers<[2], [1], [1], [2], [0, 0, 0, 1, 1, 2], [0], [0]>} : vector<8x8x8xbf16>, vector<8x8x4xbf16>, vector<8x8x4xf32> -> vector<8x8x4xf32>
    "tpu.trace_stop"() : () -> ()
    %751 = arith.truncf %750 : vector<8x8x4xf32> to vector<8x8x4xbf16>
    "tpu.trace_start"() <{level = 10 : i32, message = "hqd,hdn->hqn"}> : () -> ()
    %cst_262 = arith.constant dense<0.000000e+00> : vector<8x8x32xf32>
    %752 = tpu.matmul %751, %719, %cst_262 {dimension_numbers = #tpu.dot_dimension_numbers<[2], [1], [1], [2], [0, 0, 0, 1, 1, 2], [0], [0]>} : vector<8x8x4xbf16>, vector<8x4x32xbf16>, vector<8x8x32xf32> -> vector<8x8x32xf32>
    "tpu.trace_stop"() : () -> ()
    %cst_263 = arith.constant dense<0.000000e+00> : vector<8x32xf32>
    %753 = vector.multi_reduction <add>, %752, %cst_263 [0] : vector<8x8x32xf32> to vector<8x32xf32>
    %754 = vector.broadcast %721 : vector<1x32xf32> to vector<8x32xf32>
    %755 = arith.addf %753, %754 : vector<8x32xf32>
    %756 = arith.addf %755, %713 : vector<8x32xf32>
    %c2 = arith.constant 2 : index
    %c0_264 = arith.constant 0 : index
    %c0_265 = arith.constant 0 : index
    %757 = vector.load %arg13[%c2, %c0_264, %c0_265] : memref<4x1x32xf32, #tpu.memory_space<vmem>>, vector<1x1x32xf32>
    %758 = vector.shape_cast %757 : vector<1x1x32xf32> to vector<1x32xf32>
    %c2_266 = arith.constant 2 : index
    %c0_267 = arith.constant 0 : index
    %c0_268 = arith.constant 0 : index
    %759 = vector.load %arg14[%c2_266, %c0_267, %c0_268] : memref<4x1x32xf32, #tpu.memory_space<vmem>>, vector<1x1x32xf32>
    %760 = vector.shape_cast %759 : vector<1x1x32xf32> to vector<1x32xf32>
    %cst_269 = arith.constant dense<0.000000e+00> : vector<8xf32>
    %761 = vector.multi_reduction <add>, %756, %cst_269 [1] : vector<8x32xf32> to vector<8xf32>
    %762 = vector.shape_cast %761 : vector<8xf32> to vector<8x1xf32>
    %cst_270 = arith.constant 3.200000e+01 : f32
    %763 = vector.broadcast %cst_270 : f32 to vector<8x1xf32>
    %764 = arith.divf %762, %763 : vector<8x1xf32>
    %765 = vector.broadcast %764 : vector<8x1xf32> to vector<8x32xf32>
    %766 = arith.subf %756, %765 : vector<8x32xf32>
    %767 = arith.mulf %766, %766 : vector<8x32xf32>
    %cst_271 = arith.constant dense<0.000000e+00> : vector<8xf32>
    %768 = vector.multi_reduction <add>, %767, %cst_271 [1] : vector<8x32xf32> to vector<8xf32>
    %769 = vector.shape_cast %768 : vector<8xf32> to vector<8x1xf32>
    %cst_272 = arith.constant 0.0322580636 : f32
    %770 = vector.broadcast %cst_272 : f32 to vector<8x1xf32>
    %771 = arith.mulf %769, %770 : vector<8x1xf32>
    %772 = vector.broadcast %758 : vector<1x32xf32> to vector<8x32xf32>
    %773 = arith.mulf %772, %766 : vector<8x32xf32>
    %774 = math.sqrt %771 : vector<8x1xf32>
    %cst_273 = arith.constant 9.99999997E-7 : f32
    %775 = vector.broadcast %cst_273 : f32 to vector<8x1xf32>
    %776 = arith.addf %774, %775 : vector<8x1xf32>
    %777 = vector.broadcast %776 : vector<8x1xf32> to vector<8x32xf32>
    %778 = arith.divf %773, %777 : vector<8x32xf32>
    %779 = vector.broadcast %760 : vector<1x32xf32> to vector<8x32xf32>
    %780 = arith.addf %778, %779 : vector<8x32xf32>
    %c1_274 = arith.constant 1 : index
    %c0_275 = arith.constant 0 : index
    %c0_276 = arith.constant 0 : index
    %781 = vector.load %arg15[%c1_274, %c0_275, %c0_276] : memref<3x32x32xbf16, #tpu.memory_space<vmem>>, vector<1x32x32xbf16>
    %782 = vector.shape_cast %781 : vector<1x32x32xbf16> to vector<32x32xbf16>
    %783 = arith.truncf %780 : vector<8x32xf32> to vector<8x32xbf16>
    %cst_277 = arith.constant dense<0.000000e+00> : vector<8x32xf32>
    %784 = tpu.matmul %783, %782, %cst_277 {dimension_numbers = #tpu.dot_dimension_numbers<[1], [0], [0], [1], [0, 0, 1, 1], [], []>} : vector<8x32xbf16>, vector<32x32xbf16>, vector<8x32xf32> -> vector<8x32xf32>
    %c1_278 = arith.constant 1 : index
    %c0_279 = arith.constant 0 : index
    %c0_280 = arith.constant 0 : index
    %785 = vector.load %arg16[%c1_278, %c0_279, %c0_280] : memref<3x1x32xf32, #tpu.memory_space<vmem>>, vector<1x1x32xf32>
    %786 = vector.shape_cast %785 : vector<1x1x32xf32> to vector<1x32xf32>
    %787 = vector.broadcast %786 : vector<1x32xf32> to vector<8x32xf32>
    %788 = arith.addf %784, %787 : vector<8x32xf32>
    %cst_281 = arith.constant 5.000000e-01 : f32
    %789 = vector.broadcast %cst_281 : f32 to vector<8x32xf32>
    %790 = arith.mulf %788, %789 : vector<8x32xf32>
    %cst_282 = arith.constant 1.41421354 : f32
    %791 = vector.broadcast %cst_282 : f32 to vector<8x32xf32>
    %792 = arith.divf %788, %791 : vector<8x32xf32>
    %793 = math.erf %792 : vector<8x32xf32>
    %cst_283 = arith.constant 1.000000e+00 : f32
    %794 = vector.broadcast %cst_283 : f32 to vector<8x32xf32>
    %795 = arith.addf %794, %793 : vector<8x32xf32>
    %796 = arith.mulf %790, %795 : vector<8x32xf32>
    %c1_284 = arith.constant 1 : index
    %c0_285 = arith.constant 0 : index
    %c0_286 = arith.constant 0 : index
    %797 = vector.load %arg17[%c1_284, %c0_285, %c0_286] : memref<3x32x32xbf16, #tpu.memory_space<vmem>>, vector<1x32x32xbf16>
    %798 = vector.shape_cast %797 : vector<1x32x32xbf16> to vector<32x32xbf16>
    %799 = arith.truncf %796 : vector<8x32xf32> to vector<8x32xbf16>
    %cst_287 = arith.constant dense<0.000000e+00> : vector<8x32xf32>
    %800 = tpu.matmul %799, %798, %cst_287 {dimension_numbers = #tpu.dot_dimension_numbers<[1], [0], [0], [1], [0, 0, 1, 1], [], []>} : vector<8x32xbf16>, vector<32x32xbf16>, vector<8x32xf32> -> vector<8x32xf32>
    %c1_288 = arith.constant 1 : index
    %c0_289 = arith.constant 0 : index
    %c0_290 = arith.constant 0 : index
    %801 = vector.load %arg18[%c1_288, %c0_289, %c0_290] : memref<3x1x32xf32, #tpu.memory_space<vmem>>, vector<1x1x32xf32>
    %802 = vector.shape_cast %801 : vector<1x1x32xf32> to vector<1x32xf32>
    %803 = vector.broadcast %802 : vector<1x32xf32> to vector<8x32xf32>
    %804 = arith.addf %800, %803 : vector<8x32xf32>
    %805 = arith.addf %804, %780 : vector<8x32xf32>
    %c3 = arith.constant 3 : index
    %c0_291 = arith.constant 0 : index
    %c0_292 = arith.constant 0 : index
    %806 = vector.load %arg13[%c3, %c0_291, %c0_292] : memref<4x1x32xf32, #tpu.memory_space<vmem>>, vector<1x1x32xf32>
    %807 = vector.shape_cast %806 : vector<1x1x32xf32> to vector<1x32xf32>
    %c3_293 = arith.constant 3 : index
    %c0_294 = arith.constant 0 : index
    %c0_295 = arith.constant 0 : index
    %808 = vector.load %arg14[%c3_293, %c0_294, %c0_295] : memref<4x1x32xf32, #tpu.memory_space<vmem>>, vector<1x1x32xf32>
    %809 = vector.shape_cast %808 : vector<1x1x32xf32> to vector<1x32xf32>
    %cst_296 = arith.constant dense<0.000000e+00> : vector<8xf32>
    %810 = vector.multi_reduction <add>, %805, %cst_296 [1] : vector<8x32xf32> to vector<8xf32>
    %811 = vector.shape_cast %810 : vector<8xf32> to vector<8x1xf32>
    %cst_297 = arith.constant 3.200000e+01 : f32
    %812 = vector.broadcast %cst_297 : f32 to vector<8x1xf32>
    %813 = arith.divf %811, %812 : vector<8x1xf32>
    %814 = vector.broadcast %813 : vector<8x1xf32> to vector<8x32xf32>
    %815 = arith.subf %805, %814 : vector<8x32xf32>
    %816 = arith.mulf %815, %815 : vector<8x32xf32>
    %cst_298 = arith.constant dense<0.000000e+00> : vector<8xf32>
    %817 = vector.multi_reduction <add>, %816, %cst_298 [1] : vector<8x32xf32> to vector<8xf32>
    %818 = vector.shape_cast %817 : vector<8xf32> to vector<8x1xf32>
    %cst_299 = arith.constant 0.0322580636 : f32
    %819 = vector.broadcast %cst_299 : f32 to vector<8x1xf32>
    %820 = arith.mulf %818, %819 : vector<8x1xf32>
    %821 = vector.broadcast %807 : vector<1x32xf32> to vector<8x32xf32>
    %822 = arith.mulf %821, %815 : vector<8x32xf32>
    %823 = math.sqrt %820 : vector<8x1xf32>
    %cst_300 = arith.constant 9.99999997E-7 : f32
    %824 = vector.broadcast %cst_300 : f32 to vector<8x1xf32>
    %825 = arith.addf %823, %824 : vector<8x1xf32>
    %826 = vector.broadcast %825 : vector<8x1xf32> to vector<8x32xf32>
    %827 = arith.divf %822, %826 : vector<8x32xf32>
    %828 = vector.broadcast %809 : vector<1x32xf32> to vector<8x32xf32>
    %829 = arith.addf %827, %828 : vector<8x32xf32>
    %c2_301 = arith.constant 2 : index
    %c0_302 = arith.constant 0 : index
    %c0_303 = arith.constant 0 : index
    %830 = vector.load %arg9[%c2_301, %c0_302, %c0_303] : memref<3x32x96xbf16, #tpu.memory_space<vmem>>, vector<1x32x96xbf16>
    %831 = vector.shape_cast %830 : vector<1x32x96xbf16> to vector<32x96xbf16>
    %c2_304 = arith.constant 2 : index
    %c0_305 = arith.constant 0 : index
    %c0_306 = arith.constant 0 : index
    %832 = vector.load %arg10[%c2_304, %c0_305, %c0_306] : memref<3x1x96xf32, #tpu.memory_space<vmem>>, vector<1x1x96xf32>
    %833 = vector.shape_cast %832 : vector<1x1x96xf32> to vector<1x96xf32>
    %c2_307 = arith.constant 2 : index
    %c0_308 = arith.constant 0 : index
    %c0_309 = arith.constant 0 : index
    %c0_310 = arith.constant 0 : index
    %834 = vector.load %arg11[%c2_307, %c0_308, %c0_309, %c0_310] : memref<3x8x4x32xbf16, #tpu.memory_space<vmem>>, vector<1x8x4x32xbf16>
    %835 = vector.shape_cast %834 : vector<1x8x4x32xbf16> to vector<8x4x32xbf16>
    %c2_311 = arith.constant 2 : index
    %c0_312 = arith.constant 0 : index
    %c0_313 = arith.constant 0 : index
    %836 = vector.load %arg12[%c2_311, %c0_312, %c0_313] : memref<3x1x32xf32, #tpu.memory_space<vmem>>, vector<1x1x32xf32>
    %837 = vector.shape_cast %836 : vector<1x1x32xf32> to vector<1x32xf32>
    %838 = arith.truncf %829 : vector<8x32xf32> to vector<8x32xbf16>
    %cst_314 = arith.constant dense<0.000000e+00> : vector<8x96xf32>
    %839 = tpu.matmul %838, %831, %cst_314 {dimension_numbers = #tpu.dot_dimension_numbers<[1], [0], [0], [1], [0, 0, 1, 1], [], []>} : vector<8x32xbf16>, vector<32x96xbf16>, vector<8x96xf32> -> vector<8x96xf32>
    %840 = vector.broadcast %833 : vector<1x96xf32> to vector<8x96xf32>
    %841 = arith.addf %839, %840 : vector<8x96xf32>
    %842 = vector.extract_strided_slice %841 {offsets = [0, 0], sizes = [8, 32], strides = [1, 1]} : vector<8x96xf32> to vector<8x32xf32>
    %843 = vector.shape_cast %842 : vector<8x32xf32> to vector<8x8x4xf32>
    %844 = tpu.transpose %843, [1, 0, 2] : vector<8x8x4xf32> -> vector<8x8x4xf32>
    %845 = arith.truncf %844 : vector<8x8x4xf32> to vector<8x8x4xbf16>
    %846 = vector.extract_strided_slice %841 {offsets = [0, 32], sizes = [8, 32], strides = [1, 1]} : vector<8x96xf32> to vector<8x32xf32>
    %847 = vector.shape_cast %846 : vector<8x32xf32> to vector<8x8x4xf32>
    %848 = tpu.transpose %847, [1, 0, 2] : vector<8x8x4xf32> -> vector<8x8x4xf32>
    %849 = arith.truncf %848 : vector<8x8x4xf32> to vector<8x8x4xbf16>
    %850 = vector.extract_strided_slice %841 {offsets = [0, 64], sizes = [8, 32], strides = [1, 1]} : vector<8x96xf32> to vector<8x32xf32>
    %851 = vector.shape_cast %850 : vector<8x32xf32> to vector<8x8x4xf32>
    %852 = tpu.transpose %851, [1, 0, 2] : vector<8x8x4xf32> -> vector<8x8x4xf32>
    %853 = arith.truncf %852 : vector<8x8x4xf32> to vector<8x8x4xbf16>
    "tpu.trace_start"() <{level = 10 : i32, message = "hqd,hkd->hqk"}> : () -> ()
    %cst_315 = arith.constant dense<0.000000e+00> : vector<8x8x8xf32>
    %854 = tpu.matmul %845, %849, %cst_315 {dimension_numbers = #tpu.dot_dimension_numbers<[2], [2], [1], [1], [0, 0, 0, 1, 1, 1], [0], [0]>} : vector<8x8x4xbf16>, vector<8x8x4xbf16>, vector<8x8x8xf32> -> vector<8x8x8xf32>
    "tpu.trace_stop"() : () -> ()
    %cst_316 = arith.constant dense<0xFF800000> : vector<8x8xf32>
    %855 = vector.multi_reduction <maximumf>, %854, %cst_316 [2] : vector<8x8x8xf32> to vector<8x8xf32>
    %856 = vector.shape_cast %855 : vector<8x8xf32> to vector<8x8x1xf32>
    %857 = vector.broadcast %856 : vector<8x8x1xf32> to vector<8x8x8xf32>
    %858 = arith.subf %854, %857 : vector<8x8x8xf32>
    %859 = math.exp %858 : vector<8x8x8xf32>
    %cst_317 = arith.constant dense<0.000000e+00> : vector<8x8xf32>
    %860 = vector.multi_reduction <add>, %859, %cst_317 [2] : vector<8x8x8xf32> to vector<8x8xf32>
    %861 = vector.shape_cast %860 : vector<8x8xf32> to vector<8x8x1xf32>
    %862 = tpu.reciprocal %861 {approx = true} : vector<8x8x1xf32> -> vector<8x8x1xf32>
    %863 = vector.broadcast %862 : vector<8x8x1xf32> to vector<8x8x8xf32>
    %864 = arith.mulf %859, %863 : vector<8x8x8xf32>
    %865 = arith.truncf %864 : vector<8x8x8xf32> to vector<8x8x8xbf16>
    "tpu.trace_start"() <{level = 10 : i32, message = "hqk,hkd->hqd"}> : () -> ()
    %cst_318 = arith.constant dense<0.000000e+00> : vector<8x8x4xf32>
    %866 = tpu.matmul %865, %853, %cst_318 {dimension_numbers = #tpu.dot_dimension_numbers<[2], [1], [1], [2], [0, 0, 0, 1, 1, 2], [0], [0]>} : vector<8x8x8xbf16>, vector<8x8x4xbf16>, vector<8x8x4xf32> -> vector<8x8x4xf32>
    "tpu.trace_stop"() : () -> ()
    %867 = arith.truncf %866 : vector<8x8x4xf32> to vector<8x8x4xbf16>
    "tpu.trace_start"() <{level = 10 : i32, message = "hqd,hdn->hqn"}> : () -> ()
    %cst_319 = arith.constant dense<0.000000e+00> : vector<8x8x32xf32>
    %868 = tpu.matmul %867, %835, %cst_319 {dimension_numbers = #tpu.dot_dimension_numbers<[2], [1], [1], [2], [0, 0, 0, 1, 1, 2], [0], [0]>} : vector<8x8x4xbf16>, vector<8x4x32xbf16>, vector<8x8x32xf32> -> vector<8x8x32xf32>
    "tpu.trace_stop"() : () -> ()
    %cst_320 = arith.constant dense<0.000000e+00> : vector<8x32xf32>
    %869 = vector.multi_reduction <add>, %868, %cst_320 [0] : vector<8x8x32xf32> to vector<8x32xf32>
    %870 = vector.broadcast %837 : vector<1x32xf32> to vector<8x32xf32>
    %871 = arith.addf %869, %870 : vector<8x32xf32>
    %c2_321 = arith.constant 2 : index
    %c0_322 = arith.constant 0 : index
    %c0_323 = arith.constant 0 : index
    %872 = vector.load %arg15[%c2_321, %c0_322, %c0_323] : memref<3x32x32xbf16, #tpu.memory_space<vmem>>, vector<1x32x32xbf16>
    %873 = vector.shape_cast %872 : vector<1x32x32xbf16> to vector<32x32xbf16>
    %874 = arith.truncf %871 : vector<8x32xf32> to vector<8x32xbf16>
    %cst_324 = arith.constant dense<0.000000e+00> : vector<8x32xf32>
    %875 = tpu.matmul %874, %873, %cst_324 {dimension_numbers = #tpu.dot_dimension_numbers<[1], [0], [0], [1], [0, 0, 1, 1], [], []>} : vector<8x32xbf16>, vector<32x32xbf16>, vector<8x32xf32> -> vector<8x32xf32>
    %c2_325 = arith.constant 2 : index
    %c0_326 = arith.constant 0 : index
    %c0_327 = arith.constant 0 : index
    %876 = vector.load %arg16[%c2_325, %c0_326, %c0_327] : memref<3x1x32xf32, #tpu.memory_space<vmem>>, vector<1x1x32xf32>
    %877 = vector.shape_cast %876 : vector<1x1x32xf32> to vector<1x32xf32>
    %878 = vector.broadcast %877 : vector<1x32xf32> to vector<8x32xf32>
    %879 = arith.addf %875, %878 : vector<8x32xf32>
    %cst_328 = arith.constant 5.000000e-01 : f32
    %880 = vector.broadcast %cst_328 : f32 to vector<8x32xf32>
    %881 = arith.mulf %879, %880 : vector<8x32xf32>
    %cst_329 = arith.constant 1.41421354 : f32
    %882 = vector.broadcast %cst_329 : f32 to vector<8x32xf32>
    %883 = arith.divf %879, %882 : vector<8x32xf32>
    %884 = math.erf %883 : vector<8x32xf32>
    %cst_330 = arith.constant 1.000000e+00 : f32
    %885 = vector.broadcast %cst_330 : f32 to vector<8x32xf32>
    %886 = arith.addf %885, %884 : vector<8x32xf32>
    %887 = arith.mulf %881, %886 : vector<8x32xf32>
    %c2_331 = arith.constant 2 : index
    %c0_332 = arith.constant 0 : index
    %c0_333 = arith.constant 0 : index
    %888 = vector.load %arg17[%c2_331, %c0_332, %c0_333] : memref<3x32x32xbf16, #tpu.memory_space<vmem>>, vector<1x32x32xbf16>
    %889 = vector.shape_cast %888 : vector<1x32x32xbf16> to vector<32x32xbf16>
    %890 = arith.truncf %887 : vector<8x32xf32> to vector<8x32xbf16>
    %cst_334 = arith.constant dense<0.000000e+00> : vector<8x32xf32>
    %891 = tpu.matmul %890, %889, %cst_334 {dimension_numbers = #tpu.dot_dimension_numbers<[1], [0], [0], [1], [0, 0, 1, 1], [], []>} : vector<8x32xbf16>, vector<32x32xbf16>, vector<8x32xf32> -> vector<8x32xf32>
    %c2_335 = arith.constant 2 : index
    %c0_336 = arith.constant 0 : index
    %c0_337 = arith.constant 0 : index
    %892 = vector.load %arg18[%c2_335, %c0_336, %c0_337] : memref<3x1x32xf32, #tpu.memory_space<vmem>>, vector<1x1x32xf32>
    %893 = vector.shape_cast %892 : vector<1x1x32xf32> to vector<1x32xf32>
    %894 = vector.broadcast %893 : vector<1x32xf32> to vector<8x32xf32>
    %895 = arith.addf %891, %894 : vector<8x32xf32>
    %c0_338 = arith.constant 0 : index
    %c0_339 = arith.constant 0 : index
    %896 = vector.load %arg19[%c0_338, %c0_339] : memref<32x32xbf16, #tpu.memory_space<vmem>>, vector<32x32xbf16>
    %897 = arith.truncf %581 : vector<8x32xf32> to vector<8x32xbf16>
    %cst_340 = arith.constant dense<0.000000e+00> : vector<8x32xf32>
    %898 = tpu.matmul %897, %896, %cst_340 {dimension_numbers = #tpu.dot_dimension_numbers<[1], [0], [0], [1], [0, 0, 1, 1], [], []>} : vector<8x32xbf16>, vector<32x32xbf16>, vector<8x32xf32> -> vector<8x32xf32>
    %c0_341 = arith.constant 0 : index
    %c0_342 = arith.constant 0 : index
    %899 = vector.load %arg20[%c0_341, %c0_342] : memref<32x32xbf16, #tpu.memory_space<vmem>>, vector<32x32xbf16>
    %900 = arith.truncf %895 : vector<8x32xf32> to vector<8x32xbf16>
    %cst_343 = arith.constant dense<0.000000e+00> : vector<8x32xf32>
    %901 = tpu.matmul %900, %899, %cst_343 {dimension_numbers = #tpu.dot_dimension_numbers<[1], [0], [0], [1], [0, 0, 1, 1], [], []>} : vector<8x32xbf16>, vector<32x32xbf16>, vector<8x32xf32> -> vector<8x32xf32>
    %902 = arith.addf %898, %901 : vector<8x32xf32>
    %c0_344 = arith.constant 0 : index
    %c0_345 = arith.constant 0 : index
    %903 = vector.load %arg21[%c0_344, %c0_345] : memref<1x32xf32, #tpu.memory_space<vmem>>, vector<1x32xf32>
    %904 = vector.broadcast %903 : vector<1x32xf32> to vector<8x32xf32>
    %905 = arith.addf %902, %904 : vector<8x32xf32>
    %cst_346 = arith.constant 5.000000e-01 : f32
    %906 = vector.broadcast %cst_346 : f32 to vector<8x32xf32>
    %907 = arith.mulf %905, %906 : vector<8x32xf32>
    %cst_347 = arith.constant 1.41421354 : f32
    %908 = vector.broadcast %cst_347 : f32 to vector<8x32xf32>
    %909 = arith.divf %905, %908 : vector<8x32xf32>
    %910 = math.erf %909 : vector<8x32xf32>
    %cst_348 = arith.constant 1.000000e+00 : f32
    %911 = vector.broadcast %cst_348 : f32 to vector<8x32xf32>
    %912 = arith.addf %911, %910 : vector<8x32xf32>
    %913 = arith.mulf %907, %912 : vector<8x32xf32>
    %914 = vector.extract_strided_slice %913 {offsets = [0, 0], sizes = [1, 32], strides = [1, 1]} : vector<8x32xf32> to vector<1x32xf32>
    %915 = vector.extract_strided_slice %913 {offsets = [1, 0], sizes = [1, 32], strides = [1, 1]} : vector<8x32xf32> to vector<1x32xf32>
    %916 = vector.extract_strided_slice %913 {offsets = [2, 0], sizes = [1, 32], strides = [1, 1]} : vector<8x32xf32> to vector<1x32xf32>
    %917 = vector.extract_strided_slice %913 {offsets = [3, 0], sizes = [1, 32], strides = [1, 1]} : vector<8x32xf32> to vector<1x32xf32>
    %918 = tpu.concatenate %914, %915, %916, %917 in 1 : vector<1x32xf32>, vector<1x32xf32>, vector<1x32xf32>, vector<1x32xf32> -> vector<1x128xf32>
    %919 = vector.extract_strided_slice %913 {offsets = [4, 0], sizes = [1, 32], strides = [1, 1]} : vector<8x32xf32> to vector<1x32xf32>
    %920 = vector.extract_strided_slice %913 {offsets = [5, 0], sizes = [1, 32], strides = [1, 1]} : vector<8x32xf32> to vector<1x32xf32>
    %921 = vector.extract_strided_slice %913 {offsets = [6, 0], sizes = [1, 32], strides = [1, 1]} : vector<8x32xf32> to vector<1x32xf32>
    %922 = vector.extract_strided_slice %913 {offsets = [7, 0], sizes = [1, 32], strides = [1, 1]} : vector<8x32xf32> to vector<1x32xf32>
    %923 = tpu.concatenate %919, %920, %921, %922 in 1 : vector<1x32xf32>, vector<1x32xf32>, vector<1x32xf32>, vector<1x32xf32> -> vector<1x128xf32>
    %924 = tpu.concatenate %918, %923 in 0 : vector<1x128xf32>, vector<1x128xf32> -> vector<2x128xf32>
    %c0_349 = arith.constant 0 : index
    %c0_350 = arith.constant 0 : index
    %925 = vector.load %arg22[%c0_349, %c0_350] : memref<2x128xf32, #tpu.memory_space<vmem>>, vector<2x128xf32>
    tpu.vector_store %arg22[%c0_349, %c0_350], %924 {strides = array<i32>} : memref<2x128xf32, #tpu.memory_space<vmem>>, vector<2x128xf32>,
    %c0_351 = arith.constant 0 : index
    %c0_352 = arith.constant 0 : index
    %926 = vector.load %arg23[%c0_351, %c0_352] : memref<1x32xf32, #tpu.memory_space<vmem>>, vector<1x32xf32>
    tpu.vector_store %arg23[%c0_351, %c0_352], %582 {strides = array<i32>} : memref<1x32xf32, #tpu.memory_space<vmem>>, vector<1x32xf32>,
    %c0_353 = arith.constant 0 : index
    %c0_354 = arith.constant 0 : index
    %927 = vector.load %arg24[%c0_353, %c0_354] : memref<1x32xf32, #tpu.memory_space<vmem>>, vector<1x32xf32>
    tpu.vector_store %arg24[%c0_353, %c0_354], %583 {strides = array<i32>} : memref<1x32xf32, #tpu.memory_space<vmem>>, vector<1x32xf32>,
    return
  }
}

</mosaic_0001>

<bundles_post_ra>
// kernel: tpu_custom_call.1
= control target key start
LH: loop header
LB: loop body
LE: loop exit
PB: predicated region body
PF: predicated region fallthrough
CT: control target
= control target key end

     0   :  { %s13195_s0 = inlined_call_operand.hbm [shape: f32[8,16], index: 0, kind: input, shape index: {}]   ;;  %s13196_s1 = inlined_call_operand.hbm [shape: bf16[16,64], index: 1, kind: input, shape index: {}]   ;;  %s13197_s2 = inlined_call_operand.hbm [shape: bf16[16,64], index: 2, kind: input, shape index: {}]   ;;  %s13198_s3 = inlined_call_operand.hbm [shape: f32[1,64], index: 3, kind: input, shape index: {}]   ;;  %s13199_s4 = inlined_call_operand.hbm [shape: bf16[16,64], index: 4, kind: input, shape index: {}]   ;;  %s13200_s5 = inlined_call_operand.hbm [shape: bf16[16,64], index: 5, kind: input, shape index: {}]   ;;  %s13201_s6 = inlined_call_operand.hbm [shape: f32[1,64], index: 6, kind: input, shape index: {}]   ;;  %s13202_s7 = inlined_call_operand.hbm [shape: bf16[16,32], index: 7, kind: input, shape index: {}]   ;;  %s13203_s8 = inlined_call_operand.hbm [shape: f32[1,32], index: 8, kind: input, shape index: {}]   ;;  %s13204_s9 = inlined_call_operand.hbm [shape: bf16[3,32,96], index: 9, kind: input, shape index: {}]   ;;  %s13205_s10 = inlined_call_operand.hbm [shape: f32[3,1,96], index: 10, kind: input, shape index: {}]   ;;  %s13206_s11 = inlined_call_operand.hbm [shape: bf16[3,8,4,32], index: 11, kind: input, shape index: {}]   ;;  %s13207_s12 = inlined_call_operand.hbm [shape: f32[3,1,32], index: 12, kind: input, shape index: {}]   ;;  %s13208_s13 = inlined_call_operand.hbm [shape: f32[4,1,32], index: 13, kind: input, shape index: {}]   ;;  %s13209_s14 = inlined_call_operand.hbm [shape: f32[4,1,32], index: 14, kind: input, shape index: {}]   ;;  %s13210_s15 = inlined_call_operand.vmem [shape: bf16[3,32,32], index: 15, kind: input, shape index: {}]   ;;  %s13211_s16 = inlined_call_operand.hbm [shape: f32[3,1,32], index: 16, kind: input, shape index: {}]   ;;  %s13212_s17 = inlined_call_operand.hbm [shape: bf16[3,32,32], index: 17, kind: input, shape index: {}]   ;;  %s13213_s18 = inlined_call_operand.vmem [shape: f32[3,1,32], index: 18, kind: input, shape index: {}]   ;;  %s13214_s19 = inlined_call_operand.vmem [shape: bf16[32,32], index: 19, kind: input, shape index: {}]   ;;  %s13215_s20 = inlined_call_operand.hbm [shape: bf16[32,32], index: 20, kind: input, shape index: {}]   ;;  %s13216_s21 = inlined_call_operand.vmem [shape: f32[1,32], index: 21, kind: input, shape index: {}]   ;;  %s13217_s22 = inlined_call_operand.hbm [shape: f32[2,128], index: 22, kind: output, shape index: {0}]   ;;  %s13218_s23 = inlined_call_operand.hbm [shape: f32[1,32], index: 23, kind: output, shape index: {1}]   ;;  %s13219_s24 = inlined_call_operand.hbm [shape: f32[1,32], index: 24, kind: output, shape index: {2}]  }
   0x1   :  { %13232 = sst [smem:[#allocation47_spill]] %s13195_s0 }
   0x2   :  { %13233 = sst [smem:[#allocation48_spill]] %s13196_s1 }
   0x3   :  { %13234 = sst [smem:[#allocation49_spill]] %s13197_s2 }
   0x4   :  { %13235 = sst [smem:[#allocation50_spill]] %s13198_s3 }
   0x5   :  { %13236 = sst [smem:[#allocation51_spill]] %s13199_s4 }
   0x6   :  { %13237 = sst [smem:[#allocation52_spill]] %s13200_s5 }
   0x7   :  { %13238 = sst [smem:[#allocation53_spill]] %s13201_s6 }
   0x8   :  { %13239 = sst [smem:[#allocation54_spill]] %s13202_s7 }
   0x9   :  { %13240 = sst [smem:[#allocation55_spill]] %s13203_s8 }
   0xa   :  { %13241 = sst [smem:[#allocation56_spill]] %s13217_s22 }
   0xb   :  { %13242 = sst [smem:[#allocation57_spill]] %s13218_s23 }
   0xc   :  { %13243 = sst [smem:[#allocation58_spill]] %s13219_s24 }
   0xd   :  { %30 = vsyncpa [#allocation3], 0 }
   0xe   :  { %31 = vsyncpa [#allocation6], 0 }
   0xf   :  { %32 = vsyncpa [#allocation9], 0 }
  0x10   :  { %33 = vsyncpa [#allocation12], 0 }
  0x11   :  { %34 = vsyncpa [#allocation15], 0 }
  0x12   :  { %35 = vsyncpa [#allocation18], 0 }
  0x13   :  { %36 = vsyncpa [#allocation21], 0 }
  0x14   :  { %37 = vsyncpa [#allocation24], 0 }
  0x15   :  { %38 = vsyncpa [#allocation27], 0 }
  0x16   :  { %39 = vsyncpa [#allocation30], 0 }
  0x17   :  { %40 = vsyncpa [#allocation4], 0 }
  0x18   :  { %41 = vsyncpa [#allocation33], 0  ;;  %s11139_s5 = smov [#allocation5]   ;;  %s13244_s6 = sld [smem:[#allocation48_spill]] }
  0x19   :  { %s57_s26 = sshll.u32 %s11139_s5, 4  ;;  %s58_s26 = int_to_ptr.vmem [resolvable:$true] %s57_s26 }
  0x1e   :  { %s10653_s2 = scalar_lea.hbm %s13244_s6, 128 }
  0x1f   :  { %p10654_p0 = scmp.ne.s32.totalorder %s13244_s6, %s10653_s2  ;;  %p10657_p1 = scmp.lt.u32.totalorder %s10653_s2, %s13244_s6 }
  0x21   :  { %p10659_p2 = pnand %p10657_p1, %p10654_p0 }
  0x23   :  { %10662 = shalt.err (!%p10659_p2)
}
  0x24   :  { %s10663_s3 = scalar_lea.vmem %s58_s26, 128  ;;  %p10668_p4 = scmp.lt.s32.totalorder %s58_s26, %s58_s26 }
  0x25   :  { %p10664_p3 = scmp.ne.s32.totalorder %s58_s26, %s10663_s3  ;;  %p10669_p5 = scmp.lt.s32.totalorder %s10663_s3, %s10663_s3 }
  0x27   :  { %p10670_p6 = por %p10669_p5, %p10668_p4 }
  0x29   :  { %p10671_p7 = pnand %p10670_p6, %p10664_p3 }
  0x2b   :  { %10674 = shalt.err (!%p10671_p7)
}
  0x2c   :  { %s11140_s25 = smov 64   ;;  %s11141_s8 = smov 4  }
  0x2d   :  { %63 = dma.hbm_to_vmem [thread:$0]  %s13244_s6, 128, %s58_s26, [#allocation6], %s11140_s25, %s11140_s25, %s11141_s8  }
  0x2e   :  { %s11142_s5 = smov [#allocation8]   ;;  %s11143_s28 = smov [#allocation11]  }
  0x2f   :  { %s82_s27 = sshll.u32 %s11142_s5, 4  ;;  %s103_s2 = sshll.u32 %s11143_s28, 4  ;;  %s83_s27 = int_to_ptr.vmem [resolvable:$true] %s82_s27  ;;  %s104_s2 = int_to_ptr.vmem [resolvable:$true] %s103_s2 }
  0x30   :  { %s13245_s7 = sld [smem:[#allocation50_spill]] }
  0x36   :  { %s10675_s30 = scalar_lea.hbm %s13245_s7, 16 }
  0x37   :  { %p10676_p8 = scmp.ne.s32.totalorder %s13245_s7, %s10675_s30  ;;  %p10679_p9 = scmp.lt.u32.totalorder %s10675_s30, %s13245_s7 }
  0x39   :  { %p10681_p10 = pnand %p10679_p9, %p10676_p8 }
  0x3b   :  { %10684 = shalt.err (!%p10681_p10)
}
  0x3c   :  { %s10685_s26 = scalar_lea.vmem %s83_s27, 16  ;;  %s10689_s6 = scalar_lea.vmem %s83_s27, 32 }
  0x3d   :  { %p10686_p11 = scmp.ne.s32.totalorder %s83_s27, %s10685_s26  ;;  %p10690_p12 = scmp.lt.s32.totalorder %s83_s27, %s83_s27 }
  0x3e   :  { %p10691_p13 = scmp.lt.s32.totalorder %s10689_s6, %s10685_s26 }
  0x40   :  { %p10692_p0 = por %p10691_p13, %p10690_p12 }
  0x42   :  { %p10693_p1 = pnand %p10692_p0, %p10686_p11 }
  0x44   :  { %10696 = shalt.err (!%p10693_p1)
}
  0x45   :  { %85 = dma.hbm_to_vmem [thread:$0]  %s13245_s7, 16, %s83_s27, [#allocation9]  }
  0x46   :  { %s13246_s28 = sld [smem:[#allocation52_spill]] }
  0x4c   :  { %s10697_s22 = scalar_lea.hbm %s13246_s28, 128 }
  0x4d   :  { %p10698_p2 = scmp.ne.s32.totalorder %s13246_s28, %s10697_s22  ;;  %p10701_p3 = scmp.lt.u32.totalorder %s10697_s22, %s13246_s28 }
  0x4f   :  { %p10703_p4 = pnand %p10701_p3, %p10698_p2 }
  0x51   :  { %10706 = shalt.err (!%p10703_p4)
}
  0x52   :  { %s10707_s3 = scalar_lea.vmem %s104_s2, 128  ;;  %p10712_p6 = scmp.lt.s32.totalorder %s104_s2, %s104_s2 }
  0x53   :  { %p10708_p5 = scmp.ne.s32.totalorder %s104_s2, %s10707_s3  ;;  %p10713_p7 = scmp.lt.s32.totalorder %s10707_s3, %s10707_s3 }
  0x55   :  { %p10714_p8 = por %p10713_p7, %p10712_p6 }
  0x57   :  { %p10715_p9 = pnand %p10714_p8, %p10708_p5 }
  0x59   :  { %10718 = shalt.err (!%p10715_p9)
}
  0x5a   :  { %109 = dma.hbm_to_vmem [thread:$0]  %s13246_s28, 128, %s104_s2, [#allocation12], %s11140_s25, %s11140_s25, %s11141_s8  }
  0x5b   :  { %s11144_s26 = smov [#allocation14]   ;;  %s11145_s4 = smov [#allocation17]  }
  0x5c   :  { %s125_s6 = sshll.u32 %s11144_s26, 4  ;;  %s147_s1 = sshll.u32 %s11145_s4, 4  ;;  %s126_s6 = int_to_ptr.vmem [resolvable:$true] %s125_s6  ;;  %s148_s1 = int_to_ptr.vmem [resolvable:$true] %s147_s1 }
  0x5d   :  { %s13247_s22 = sld [smem:[#allocation54_spill]] }
  0x63   :  { %s10719_s23 = scalar_lea.hbm %s13247_s22, 128 }
  0x64   :  { %p10720_p10 = scmp.ne.s32.totalorder %s13247_s22, %s10719_s23  ;;  %p10723_p11 = scmp.lt.u32.totalorder %s10719_s23, %s13247_s22 }
  0x66   :  { %p10725_p12 = pnand %p10723_p11, %p10720_p10 }
  0x68   :  { %10728 = shalt.err (!%p10725_p12)
}
  0x69   :  { %s10729_s2 = scalar_lea.vmem %s126_s6, 128  ;;  %p10734_p0 = scmp.lt.s32.totalorder %s126_s6, %s126_s6 }
  0x6a   :  { %p10730_p13 = scmp.ne.s32.totalorder %s126_s6, %s10729_s2  ;;  %p10735_p1 = scmp.lt.s32.totalorder %s10729_s2, %s10729_s2 }
  0x6c   :  { %p10736_p2 = por %p10735_p1, %p10734_p0 }
  0x6e   :  { %p10737_p3 = pnand %p10736_p2, %p10730_p13 }
  0x70   :  { %10740 = shalt.err (!%p10737_p3)
}
  0x71   :  { %131 = dma.hbm_to_vmem [thread:$0]  %s13247_s22, 128, %s126_s6, [#allocation15], %s11140_s25, %s11140_s25, %s11141_s8  }
  0x72   :  { %s10741_s4 = scalar_lea.hbm %s13204_s9, 768 }
  0x73   :  { %p10742_p4 = scmp.ne.s32.totalorder %s13204_s9, %s10741_s4  ;;  %p10745_p5 = scmp.lt.u32.totalorder %s10741_s4, %s13204_s9 }
  0x75   :  { %p10747_p6 = pnand %p10745_p5, %p10742_p4 }
  0x77   :  { %10750 = shalt.err (!%p10747_p6)
}
  0x78   :  { %s10751_s0 = scalar_lea.vmem %s148_s1, 768  ;;  %p10756_p8 = scmp.lt.s32.totalorder %s148_s1, %s148_s1 }
  0x79   :  { %p10752_p7 = scmp.ne.s32.totalorder %s148_s1, %s10751_s0  ;;  %p10757_p9 = scmp.lt.s32.totalorder %s10751_s0, %s10751_s0 }
  0x7b   :  { %p10758_p10 = por %p10757_p9, %p10756_p8 }
  0x7d   :  { %p10759_p11 = pnand %p10758_p10, %p10752_p7 }
  0x7f   :  { %10762 = shalt.err (!%p10759_p11)
}
  0x80   :  { %153 = dma.hbm_to_vmem [thread:$0]  %s13204_s9, 768, %s148_s1, [#allocation18], %s11140_s25, %s11140_s25, %s11141_s8  }
  0x81   :  { %s11146_s30 = smov [#allocation20]   ;;  %s10763_s27 = scalar_lea.hbm %s13206_s11, 768 }
  0x82   :  { %s171_s3 = sshll.u32 %s11146_s30, 4  ;;  %p10764_p12 = scmp.ne.s32.totalorder %s13206_s11, %s10763_s27  ;;  %s172_s3 = int_to_ptr.vmem [resolvable:$true] %s171_s3 }
  0x83   :  { %p10767_p13 = scmp.lt.u32.totalorder %s10763_s27, %s13206_s11 }
  0x85   :  { %p10769_p0 = pnand %p10767_p13, %p10764_p12 }
  0x87   :  { %10772 = shalt.err (!%p10769_p0)
}
  0x88   :  { %s10773_s5 = scalar_lea.vmem %s172_s3, 768  ;;  %p10778_p2 = scmp.lt.s32.totalorder %s172_s3, %s172_s3 }
  0x89   :  { %p10774_p1 = scmp.ne.s32.totalorder %s172_s3, %s10773_s5  ;;  %p10779_p3 = scmp.lt.s32.totalorder %s10773_s5, %s10773_s5 }
  0x8b   :  { %p10780_p4 = por %p10779_p3, %p10778_p2 }
  0x8d   :  { %p10781_p5 = pnand %p10780_p4, %p10774_p1 }
  0x8f   :  { %10784 = shalt.err (!%p10781_p5)
}
  0x90   :  { %s11147_s9 = smov 32   ;;  %s11148_s1 = smov 2  }
  0x91   :  { %177 = dma.hbm_to_vmem [thread:$0]  %s13206_s11, 768, %s172_s3, [#allocation21], %s11147_s9, %s11147_s9, %s11148_s1  }
  0x92   :  { %s11149_s0 = smov [#allocation23]   ;;  %s11150_s22 = smov [#allocation26]  }
  0x93   :  { %s195_s6 = sshll.u32 %s11149_s0, 4  ;;  %s221_s30 = sshll.u32 %s11150_s22, 4  ;;  %s196_s6 = int_to_ptr.vmem [resolvable:$true] %s195_s6  ;;  %s11391_s30 = int_to_ptr.vmem [resolvable:$true] %s221_s30 }
  0x94   :  { %s10785_s27 = scalar_lea.hbm %s13208_s13, 64 }
  0x95   :  { %p10786_p6 = scmp.ne.s32.totalorder %s13208_s13, %s10785_s27  ;;  %p10789_p7 = scmp.lt.u32.totalorder %s10785_s27, %s13208_s13 }
  0x97   :  { %p10791_p8 = pnand %p10789_p7, %p10786_p6 }
  0x99   :  { %10794 = shalt.err (!%p10791_p8)
}
  0x9a   :  { %s10795_s11 = scalar_lea.vmem %s196_s6, 64  ;;  %p10800_p10 = scmp.lt.s32.totalorder %s196_s6, %s196_s6 }
  0x9b   :  { %p10796_p9 = scmp.ne.s32.totalorder %s196_s6, %s10795_s11  ;;  %p10801_p11 = scmp.lt.s32.totalorder %s10795_s11, %s10795_s11 }
  0x9d   :  { %p10802_p12 = por %p10801_p11, %p10800_p10 }
  0x9f   :  { %p10803_p13 = pnand %p10802_p12, %p10796_p9 }
  0xa1   :  { %10806 = shalt.err (!%p10803_p13)
}
  0xa2   :  { %s11151_s3 = smov 16   ;;  %s11152_s5 = smov 1  }
  0xa3   :  { %201 = dma.hbm_to_vmem [thread:$0]  %s13208_s13, 64, %s196_s6, [#allocation24], %s11151_s3, %s11151_s3, %s11152_s5  }
  0xa4   :  { %s10807_s22 = scalar_lea.hbm %s13211_s16, 48 }
  0xa5   :  { %p10808_p0 = scmp.ne.s32.totalorder %s13211_s16, %s10807_s22  ;;  %p10811_p1 = scmp.lt.u32.totalorder %s10807_s22, %s13211_s16 }
  0xa7   :  { %p10813_p2 = pnand %p10811_p1, %p10808_p0 }
  0xa9   :  { %10816 = shalt.err (!%p10813_p2)
}
  0xaa   :  { %s10817_s26 = scalar_lea.vmem %s11391_s30, 48  ;;  %s10821_s13 = scalar_lea.vmem %s11391_s30, 64 }
  0xab   :  { %p10818_p3 = scmp.ne.s32.totalorder %s11391_s30, %s10817_s26  ;;  %p10822_p4 = scmp.lt.s32.totalorder %s11391_s30, %s11391_s30 }
  0xac   :  { %p10823_p5 = scmp.lt.s32.totalorder %s10821_s13, %s10817_s26 }
  0xae   :  { %p10824_p6 = por %p10823_p5, %p10822_p4 }
  0xb0   :  { %p10825_p7 = pnand %p10824_p6, %p10818_p3 }
  0xb2   :  { %10828 = shalt.err (!%p10825_p7)
}
  0xb3   :  { %227 = dma.hbm_to_vmem [thread:$0]  %s13211_s16, 48, %s11391_s30, [#allocation27], %s11151_s3, %s11151_s3, %s11152_s5  }
  0xb4   :  { %s11153_s24 = smov [#allocation2]   ;;  %s11154_s1 = smov [#allocation7]  }
  0xb5   :  { %s48_s11 = sshll.u32 %s11153_s24, 4  ;;  %s69_s23 = sshll.u32 %s11154_s1, 4  ;;  %s49_s11 = int_to_ptr.vmem [resolvable:$true] %s48_s11  ;;  %s11429_s23 = int_to_ptr.vmem [resolvable:$true] %s69_s23 }
  0xb6   :  { %s13248_s22 = sld [smem:[#allocation47_spill]] }
  0xbc   :  { %s10829_s2 = scalar_lea.hbm %s13248_s22, 128 }
  0xbd   :  { %p10830_p8 = scmp.ne.s32.totalorder %s13248_s22, %s10829_s2  ;;  %p10833_p9 = scmp.lt.u32.totalorder %s10829_s2, %s13248_s22 }
  0xbf   :  { %p10835_p10 = pnand %p10833_p9, %p10830_p8 }
  0xc1   :  { %10838 = shalt.err (!%p10835_p10)
}
  0xc2   :  { %s10839_s16 = scalar_lea.vmem %s49_s11, 128  ;;  %p10844_p12 = scmp.lt.s32.totalorder %s49_s11, %s49_s11 }
  0xc3   :  { %p10840_p11 = scmp.ne.s32.totalorder %s49_s11, %s10839_s16  ;;  %p10845_p13 = scmp.lt.s32.totalorder %s10839_s16, %s10839_s16 }
  0xc5   :  { %p10846_p0 = por %p10845_p13, %p10844_p12 }
  0xc7   :  { %p10847_p1 = pnand %p10846_p0, %p10840_p11 }
  0xc9   :  { %10850 = shalt.err (!%p10847_p1)
}
  0xca   :  { %51 = dma.hbm_to_vmem [thread:$0]  %s13248_s22, 128, %s49_s11, [#allocation3]  }
  0xcb   :  { %s13249_s24 = sld [smem:[#allocation49_spill]] }
  0xd1   :  { %s10851_s1 = scalar_lea.hbm %s13249_s24, 128 }
  0xd2   :  { %p10852_p2 = scmp.ne.s32.totalorder %s13249_s24, %s10851_s1  ;;  %p10855_p3 = scmp.lt.u32.totalorder %s10851_s1, %s13249_s24 }
  0xd4   :  { %p10857_p4 = pnand %p10855_p3, %p10852_p2 }
  0xd6   :  { %10860 = shalt.err (!%p10857_p4)
}
  0xd7   :  { %s10861_s27 = scalar_lea.vmem %s11429_s23, 128  ;;  %p10866_p6 = scmp.lt.s32.totalorder %s11429_s23, %s11429_s23 }
  0xd8   :  { %p10862_p5 = scmp.ne.s32.totalorder %s11429_s23, %s10861_s27  ;;  %p10867_p7 = scmp.lt.s32.totalorder %s10861_s27, %s10861_s27 }
  0xda   :  { %p10868_p8 = por %p10867_p7, %p10866_p6 }
  0xdc   :  { %p10869_p9 = pnand %p10868_p8, %p10862_p5 }
  0xde   :  { %10872 = shalt.err (!%p10869_p9)
}
  0xdf   :  { %75 = dma.hbm_to_vmem [thread:$0]  %s13249_s24, 128, %s11429_s23, [#allocation6], %s11140_s25, %s11140_s25, %s11141_s8  }
  0xe0   :  { %s11155_s7 = smov [#allocation10]   ;;  %s11156_s16 = smov [#allocation13]  }
  0xe1   :  { %s91_s26 = sshll.u32 %s11155_s7, 4  ;;  %s116_s30 = sshll.u32 %s11156_s16, 4  ;;  %s92_s26 = int_to_ptr.vmem [resolvable:$true] %s91_s26  ;;  %s117_s30 = int_to_ptr.vmem [resolvable:$true] %s116_s30 }
  0xe2   :  { %s13250_s4 = sld [smem:[#allocation51_spill]] }
  0xe8   :  { %s10873_s1 = scalar_lea.hbm %s13250_s4, 128 }
  0xe9   :  { %p10874_p10 = scmp.ne.s32.totalorder %s13250_s4, %s10873_s1  ;;  %p10877_p11 = scmp.lt.u32.totalorder %s10873_s1, %s13250_s4 }
  0xeb   :  { %p10879_p12 = pnand %p10877_p11, %p10874_p10 }
  0xed   :  { %10882 = shalt.err (!%p10879_p12)
}
  0xee   :  { %s10883_s23 = scalar_lea.vmem %s92_s26, 128  ;;  %p10888_p0 = scmp.lt.s32.totalorder %s92_s26, %s92_s26 }
  0xef   :  { %p10884_p13 = scmp.ne.s32.totalorder %s92_s26, %s10883_s23  ;;  %p10889_p1 = scmp.lt.s32.totalorder %s10883_s23, %s10883_s23 }
  0xf1   :  { %p10890_p2 = por %p10889_p1, %p10888_p0 }
  0xf3   :  { %p10891_p3 = pnand %p10890_p2, %p10884_p13 }
  0xf5   :  { %10894 = shalt.err (!%p10891_p3)
}
  0xf6   :  { %97 = dma.hbm_to_vmem [thread:$0]  %s13250_s4, 128, %s92_s26, [#allocation9], %s11140_s25, %s11140_s25, %s11141_s8  }
  0xf7   :  { %s13251_s7 = sld [smem:[#allocation53_spill]] }
  0xfd   :  { %s10895_s16 = scalar_lea.hbm %s13251_s7, 16 }
  0xfe   :  { %p10896_p4 = scmp.ne.s32.totalorder %s13251_s7, %s10895_s16  ;;  %p10899_p5 = scmp.lt.u32.totalorder %s10895_s16, %s13251_s7 }
 0x100   :  { %p10901_p6 = pnand %p10899_p5, %p10896_p4 }
 0x102   :  { %10904 = shalt.err (!%p10901_p6)
}
 0x103   :  { %s10905_s0 = scalar_lea.vmem %s117_s30, 16  ;;  %s10909_s2 = scalar_lea.vmem %s117_s30, 32 }
 0x104   :  { %p10906_p7 = scmp.ne.s32.totalorder %s117_s30, %s10905_s0  ;;  %p10910_p8 = scmp.lt.s32.totalorder %s117_s30, %s117_s30 }
 0x105   :  { %p10911_p9 = scmp.lt.s32.totalorder %s10909_s2, %s10905_s0 }
 0x107   :  { %p10912_p10 = por %p10911_p9, %p10910_p8 }
 0x109   :  { %p10913_p11 = pnand %p10912_p10, %p10906_p7 }
 0x10b   :  { %10916 = shalt.err (!%p10913_p11)
}
 0x10c   :  { %119 = dma.hbm_to_vmem [thread:$0]  %s13251_s7, 16, %s117_s30, [#allocation12]  }
 0x10d   :  { %s11157_s28 = smov [#allocation16]   ;;  %s11158_s24 = smov [#allocation19]  }
 0x10e   :  { %s138_s23 = sshll.u32 %s11157_s28, 4  ;;  %s159_s27 = sshll.u32 %s11158_s24, 4  ;;  %s139_s23 = int_to_ptr.vmem [resolvable:$true] %s138_s23  ;;  %s11490_s27 = int_to_ptr.vmem [resolvable:$true] %s159_s27 }
 0x10f   :  { %s13252_s16 = sld [smem:[#allocation55_spill]] }
 0x115   :  { %s10917_s13 = scalar_lea.hbm %s13252_s16, 16 }
 0x116   :  { %p10918_p12 = scmp.ne.s32.totalorder %s13252_s16, %s10917_s13  ;;  %p10921_p13 = scmp.lt.u32.totalorder %s10917_s13, %s13252_s16 }
 0x118   :  { %p10923_p0 = pnand %p10921_p13, %p10918_p12 }
 0x11a   :  { %10926 = shalt.err (!%p10923_p0)
}
 0x11b   :  { %s10927_s30 = scalar_lea.vmem %s139_s23, 16  ;;  %s10931_s7 = scalar_lea.vmem %s139_s23, 32 }
 0x11c   :  { %p10928_p1 = scmp.ne.s32.totalorder %s139_s23, %s10927_s30  ;;  %p10932_p2 = scmp.lt.s32.totalorder %s139_s23, %s139_s23 }
 0x11d   :  { %p10933_p3 = scmp.lt.s32.totalorder %s10931_s7, %s10927_s30 }
 0x11f   :  { %p10934_p4 = por %p10933_p3, %p10932_p2 }
 0x121   :  { %p10935_p5 = pnand %p10934_p4, %p10928_p1 }
 0x123   :  { %10938 = shalt.err (!%p10935_p5)
}
 0x124   :  { %141 = dma.hbm_to_vmem [thread:$0]  %s13252_s16, 16, %s139_s23, [#allocation15]  }
 0x125   :  { %s10939_s24 = scalar_lea.hbm %s13205_s10, 48 }
 0x126   :  { %p10940_p6 = scmp.ne.s32.totalorder %s13205_s10, %s10939_s24  ;;  %p10943_p7 = scmp.lt.u32.totalorder %s10939_s24, %s13205_s10 }
 0x128   :  { %p10945_p8 = pnand %p10943_p7, %p10940_p6 }
 0x12a   :  { %10948 = shalt.err (!%p10945_p8)
}
 0x12b   :  { %s10949_s1 = scalar_lea.vmem %s11490_s27, 48  ;;  %s10953_s23 = scalar_lea.vmem %s11490_s27, 64 }
 0x12c   :  { %p10950_p9 = scmp.ne.s32.totalorder %s11490_s27, %s10949_s1  ;;  %p10954_p10 = scmp.lt.s32.totalorder %s11490_s27, %s11490_s27 }
 0x12d   :  { %p10955_p11 = scmp.lt.s32.totalorder %s10953_s23, %s10949_s1 }
 0x12f   :  { %p10956_p12 = por %p10955_p11, %p10954_p10 }
 0x131   :  { %p10957_p13 = pnand %p10956_p12, %p10950_p9 }
 0x133   :  { %10960 = shalt.err (!%p10957_p13)
}
 0x134   :  { %165 = dma.hbm_to_vmem [thread:$0]  %s13205_s10, 48, %s11490_s27, [#allocation18], %s11151_s3, %s11151_s3, %s11152_s5  }
 0x135   :  { %s11159_s0 = smov [#allocation22]   ;;  %s11160_s7 = smov [#allocation25]  }
 0x136   :  { %s183_s30 = sshll.u32 %s11159_s0, 4  ;;  %s207_s2 = sshll.u32 %s11160_s7, 4  ;;  %s184_s30 = int_to_ptr.vmem [resolvable:$true] %s183_s30  ;;  %s11525_s2 = int_to_ptr.vmem [resolvable:$true] %s207_s2 }
 0x137   :  { %s10961_s28 = scalar_lea.hbm %s13207_s12, 48 }
 0x138   :  { %p10962_p0 = scmp.ne.s32.totalorder %s13207_s12, %s10961_s28  ;;  %p10965_p1 = scmp.lt.u32.totalorder %s10961_s28, %s13207_s12 }
 0x13a   :  { %p10967_p2 = pnand %p10965_p1, %p10962_p0 }
 0x13c   :  { %10970 = shalt.err (!%p10967_p2)
}
 0x13d   :  { %s10971_s10 = scalar_lea.vmem %s184_s30, 48  ;;  %s10975_s27 = scalar_lea.vmem %s184_s30, 64 }
 0x13e   :  { %p10972_p3 = scmp.ne.s32.totalorder %s184_s30, %s10971_s10  ;;  %p10976_p4 = scmp.lt.s32.totalorder %s184_s30, %s184_s30 }
 0x13f   :  { %p10977_p5 = scmp.lt.s32.totalorder %s10975_s27, %s10971_s10 }
 0x141   :  { %p10978_p6 = por %p10977_p5, %p10976_p4 }
 0x143   :  { %p10979_p7 = pnand %p10978_p6, %p10972_p3 }
 0x145   :  { %10982 = shalt.err (!%p10979_p7)
}
 0x146   :  { %189 = dma.hbm_to_vmem [thread:$0]  %s13207_s12, 48, %s184_s30, [#allocation21], %s11151_s3, %s11151_s3, %s11152_s5  }
 0x147   :  { %s10983_s29 = scalar_lea.hbm %s13209_s14, 64 }
 0x148   :  { %p10984_p8 = scmp.ne.s32.totalorder %s13209_s14, %s10983_s29  ;;  %p10987_p9 = scmp.lt.u32.totalorder %s10983_s29, %s13209_s14 }
 0x14a   :  { %p10989_p10 = pnand %p10987_p9, %p10984_p8 }
 0x14c   :  { %10992 = shalt.err (!%p10989_p10)
}
 0x14d   :  { %s10993_s28 = scalar_lea.vmem %s11525_s2, 64  ;;  %p10998_p12 = scmp.lt.s32.totalorder %s11525_s2, %s11525_s2 }
 0x14e   :  { %p10994_p11 = scmp.ne.s32.totalorder %s11525_s2, %s10993_s28  ;;  %p10999_p13 = scmp.lt.s32.totalorder %s10993_s28, %s10993_s28 }
 0x150   :  { %p11000_p0 = por %p10999_p13, %p10998_p12 }
 0x152   :  { %p11001_p1 = pnand %p11000_p0, %p10994_p11 }
 0x154   :  { %11004 = shalt.err (!%p11001_p1)
}
 0x155   :  { %213 = dma.hbm_to_vmem [thread:$0]  %s13209_s14, 64, %s11525_s2, [#allocation24], %s11151_s3, %s11151_s3, %s11152_s5  }
 0x156   :  { %s11161_s24 = smov [#allocation28]   ;;  %s11162_s22 = smov [#allocation29]  }
 0x157   :  { %s233_s11 = sshll.u32 %s11161_s24, 4  ;;  %s249_s13 = sshll.u32 %s11162_s22, 4  ;;  %s234_s11 = int_to_ptr.vmem [resolvable:$true] %s233_s11  ;;  %s11562_s13 = int_to_ptr.vmem [resolvable:$true] %s249_s13 }
 0x158   :  { %s11005_s6 = scalar_lea.hbm %s13212_s17, 768 }
 0x159   :  { %p11006_p2 = scmp.ne.s32.totalorder %s13212_s17, %s11005_s6  ;;  %p11009_p3 = scmp.lt.u32.totalorder %s11005_s6, %s13212_s17 }
 0x15b   :  { %p11011_p4 = pnand %p11009_p3, %p11006_p2 }
 0x15d   :  { %11014 = shalt.err (!%p11011_p4)
}
 0x15e   :  { %s11015_s14 = scalar_lea.vmem %s234_s11, 768  ;;  %p11020_p6 = scmp.lt.s32.totalorder %s234_s11, %s234_s11 }
 0x15f   :  { %p11016_p5 = scmp.ne.s32.totalorder %s234_s11, %s11015_s14  ;;  %p11021_p7 = scmp.lt.s32.totalorder %s11015_s14, %s11015_s14 }
 0x161   :  { %p11022_p8 = por %p11021_p7, %p11020_p6 }
 0x163   :  { %p11023_p9 = pnand %p11022_p8, %p11016_p5 }
 0x165   :  { %11026 = shalt.err (!%p11023_p9)
}
 0x166   :  { %239 = dma.hbm_to_vmem [thread:$0]  %s13212_s17, 768, %s234_s11, [#allocation27], %s11140_s25, %s11140_s25, %s11141_s8  }
 0x167   :  { %s11027_s26 = scalar_lea.hbm %s13215_s20, 256 }
 0x168   :  { %p11028_p10 = scmp.ne.s32.totalorder %s13215_s20, %s11027_s26  ;;  %p11031_p11 = scmp.lt.u32.totalorder %s11027_s26, %s13215_s20 }
 0x16a   :  { %p11033_p12 = pnand %p11031_p11, %p11028_p10 }
 0x16c   :  { %11036 = shalt.err (!%p11033_p12)
}
 0x16d   :  { %s11037_s24 = scalar_lea.vmem %s11562_s13, 256  ;;  %p11042_p0 = scmp.lt.s32.totalorder %s11562_s13, %s11562_s13 }
 0x16e   :  { %p11038_p13 = scmp.ne.s32.totalorder %s11562_s13, %s11037_s24  ;;  %p11043_p1 = scmp.lt.s32.totalorder %s11037_s24, %s11037_s24 }
 0x170   :  { %p11044_p2 = por %p11043_p1, %p11042_p0 }
 0x172   :  { %p11045_p3 = pnand %p11044_p2, %p11038_p13 }
 0x174   :  { %11048 = shalt.err (!%p11045_p3)
}
 0x175   :  { %255 = dma.hbm_to_vmem [thread:$0]  %s13215_s20, 256, %s11562_s13, [#allocation30], %s11140_s25, %s11140_s25, %s11141_s8  }
 0x176   :  { %11115 = dma.done.wait [#allocation3], 128  }
 0x177   :  { %11116 = vsyncadd [#allocation3], 4294967168 }
 0x178   :  { %11117 = dma.done.wait [#allocation6], 256  }
 0x179   :  { %11118 = vsyncadd [#allocation6], 4294967040 }
 0x17a   :  { %11119 = dma.done.wait [#allocation9], 144  }
 0x17b   :  { %11120 = vsyncadd [#allocation9], 4294967152 }
 0x17c   :  { %11121 = dma.done.wait [#allocation12], 144  }
 0x17d   :  { %11122 = vsyncadd [#allocation12], 4294967152 }
 0x17e   :  { %11123 = dma.done.wait [#allocation15], 144  }
 0x17f   :  { %11124 = vsyncadd [#allocation15], 4294967152 }
 0x180   :  { %11125 = dma.done.wait [#allocation18], 816  }
 0x181   :  { %11126 = vsyncadd [#allocation18], 4294966480 }
 0x182   :  { %11127 = dma.done.wait [#allocation21], 816  }
 0x183   :  { %11128 = vsyncadd [#allocation21], 4294966480 }
 0x184   :  { %11129 = dma.done.wait [#allocation24], 128  }
 0x185   :  { %11130 = vsyncadd [#allocation24], 4294967168 }
 0x186   :  { %11131 = dma.done.wait [#allocation27], 816  }
 0x187   :  { %11132 = vsyncadd [#allocation27], 4294966480 }
 0x188   :  { %11133 = dma.done.wait [#allocation30], 256  }
 0x189   :  { %11134 = vsyncadd [#allocation30], 4294967040  ;;  %v11163_v0 = vmov 0.0   ;;  %vm11164_vm0 = vmmov 0   ;;  %v10376_v1 = vld [vmem:[#allocation5] sm:$0xff]   ;;  %v11605_v2 = vld [vmem:[#allocation7] sm:$0xff]  }
 0x18a   :  { %9701 = vmatprep.subr.bf16.mxu0 %v11163_v0  ;;  %9707 = vmatprep.subr.bf16.mxu1 %v11163_v0  ;;  %v313_v3 = vld [vmem:[#allocation2] sm:$0xff]  ;;  %vm332_vm1 = vcmask 130048   ;;  %v11165_v5 = vmov 0   ;;  %v9253_v6 = vld [vmem:[#allocation8] ss:$0 sm:$0xff]  ;;  %s11166_s20 = smov 96  }
 0x18b   :  { %9703 = vmatprep.mubr.msk.bf16.mxu0 %vm11164_vm0, %v11163_v0  ;;  %9709 = vmatprep.mubr.msk.bf16.mxu1 %vm11164_vm0, %v11163_v0  ;;  %v11608_v4 = vpack.c.bf16 %v313_v3, %v313_v3  ;;  %s11167_s8 = smov 80   ;;  %vm1007_vm2 = vcmask 1040384   ;;  %vm1009_vm3 = vcmask 1041408   ;;  %vm1011_vm4 = vcmask 1042432   ;;  %s11168_s22 = smov 120  }
 0x18c   :  { %9702 = vmatpush3.bf16.msra.mxu0 %v10376_v1  ;;  %9708 = vmatpush3.bf16.msra.mxu1 %v11605_v2  ;;  %vm1013_vm5 = vcmask 1043456   ;;  %vm1015_vm6 = vcmask 1044480   ;;  %vm1017_vm7 = vcmask 1045504   ;;  %vm1837_vm8 = vcmask 261120   ;;  %s11169_s13 = smov 124   ;;  %s11170_s10 = smov 112  }
 0x18d   :  { %9713 = vmatprep.subr.bf16.mxu0 %v11163_v0  ;;  %9719 = vmatprep.subr.bf16.mxu1 %v11163_v0  ;;  %s11171_s27 = smov 116   ;;  %s11172_s6 = smov 104   ;;  %vm2791_vm9 = vcmask 31744   ;;  %vm3160_vm10 = vcmask 64512  }
 0x18e   :  { %s11173_s1 = smov 108   ;;  %s11174_s23 = smov 100  }
 0x18f   :  { %9704 = vmatmul.mubr.msk.bf16.vlgmr.msra.gmra.mrb[0].mxu0 %vm332_vm1, %v11608_v4  ;;  %9710 = vmatmul.mubr.bf16.vlgmr.msra.gmra.mrb[0].mxu1 %v11165_v5 }
 0x190   :  { %9714 = vmatpush3.bf16.msra.mxu0 %v11605_v2  ;;  %9715 = vmatprep.mubr.msk.bf16.mxu0 %vm11164_vm0, %v11163_v0 }
 0x191   :  { %9720 = vmatpush3.bf16.msra.mxu1 %v11605_v2  ;;  %9721 = vmatprep.mubr.msk.bf16.mxu1 %vm11164_vm0, %v11163_v0 }
 0x192   :  { %9725 = vmatprep.subr.bf16.mxu0 %v11163_v0  ;;  %9731 = vmatprep.subr.bf16.mxu1 %v11163_v0 }
 0x262   :  { %v370_v7 = vpop.f32.mrb[0].mxu0  ;;  %v419_v9 = vpop.f32.mrb[0].mxu1 }
 0x263   :  { %v11623_v8 = vadd.f32 %v9253_v6, %v370_v7  ;;  %v9705_v10 = vpop.f32.mrb[1].mxu0  ;;  %v9711_v11 = vpop.f32.mrb[1].mxu1 }
 0x264   :  { %v373_v12 = vpop.f32.mrb[2].mxu0  ;;  %v422_v14 = vpop.f32.mrb[2].mxu1 }
 0x265   :  { %v425_v13 = vadd.f32 %v419_v9, %v11623_v8  ;;  %v9706_v15 = vpop.f32.mrb[3].mxu0  ;;  %v9712_v16 = vpop.f32.mrb[3].mxu1 }
 0x267   :  { %10403 = vtanh.f32 %v425_v13  ;;  %v426_v18 = vsub.f32 0.0, %v425_v13 }
 0x269   :  { %v427_v19 = vmul.f32 1.442695, %v426_v18 }
 0x26b   :  { %10405 = vpow2.f32 %v427_v19 }
 0x271   :  { %v10404_v17 = vpop.eup %10403 }
 0x272   :  { %435 = vrot.lane.b32.xlu0 %v10404_v17, %s11166_s20 }
 0x275   :  { %v10406_v20 = vpop.eup %10405 }
 0x276   :  { %v429_v21 = vadd.f32 1.0, %v10406_v20 }
 0x278   :  { %10407 = vrcp.f32 %v429_v21 }
 0x282   :  { %v10408_v22 = vpop.eup %10407 }
 0x283   :  { %v433_v25 = vmul.f32 0.0, %v10408_v22 }
 0x2e4   :  { %v436_v23 = vpop.permute.xlu0 %435 }
 0x2e5   :  { %v438_v24 = vmul.f32 %v10408_v22, %v436_v23 }
 0x2e7   :  { %440 = vrot.lane.b32.xlu0 %v438_v24, %s11151_s3 }
 0x359   :  { %v441_v26 = vpop.permute.xlu0 %440 }
 0x35a   :  { %v443_v27 = vadd.f32 %v441_v26, %v433_v25 }
 0x35c   :  { %10409 = vtanh.f32 %v443_v27  ;;  %v509_v47 = vrot.slane %v443_v27, 7 }
 0x366   :  { %v10410_v28 = vpop.eup %10409 }
 0x367   :  { %446 = vrot.lane.b32.xlu1 %v10410_v28, %s11147_s9 }
 0x3d9   :  { %v447_v29 = vpop.permute.xlu1 %446 }
 0x3da   :  { %v11629_v30 = vmul.f32 %v10408_v22, %v447_v29 }
 0x3dc   :  { %v450_v31 = vpack.c.bf16 %v11629_v30, %v11629_v30 }
 0x3de   :  { %452 = vrot.lane.b32.xlu1 %v450_v31, %s11167_s8 }
 0x450   :  { %v453_v32 = vpop.permute.xlu1 %452 }
 0x451   :  { %9716 = vmatmul.mubr.msk.bf16.vlgmr.msra.gmra.mrb[4].mxu0 %vm332_vm1, %v453_v32 }
 0x452   :  { %9726 = vmatpush3.bf16.msra.mxu0 %v11605_v2  ;;  %9727 = vmatprep.mubr.msk.bf16.mxu0 %vm11164_vm0, %v11163_v0 }
 0x453   :  { %9737 = vmatprep.subr.bf16.mxu0 %v11163_v0 }
 0x524   :  { %v491_v33 = vpop.f32.mrb[4].mxu0 }
 0x525   :  { %v498_v34 = vrot.slane %v491_v33, 7  ;;  %v9717_v35 = vpop.f32.mrb[5].mxu0 }
 0x526   :  { %v494_v36 = vpop.f32.mrb[6].mxu0 }
 0x527   :  { %v500_v37 = vadd.f32 %v498_v34, %v11623_v8  ;;  %v9718_v38 = vpop.f32.mrb[7].mxu0 }
 0x529   :  { %10411 = vtanh.f32 %v500_v37  ;;  %v501_v40 = vsub.f32 0.0, %v500_v37 }
 0x52b   :  { %v502_v41 = vmul.f32 1.442695, %v501_v40 }
 0x52d   :  { %10413 = vpow2.f32 %v502_v41 }
 0x533   :  { %v10412_v39 = vpop.eup %10411 }
 0x534   :  { %513 = vrot.lane.b32.xlu0 %v10412_v39, %s11166_s20 }
 0x537   :  { %v10414_v42 = vpop.eup %10413 }
 0x538   :  { %v504_v43 = vadd.f32 1.0, %v10414_v42 }
 0x53a   :  { %10415 = vrcp.f32 %v504_v43 }
 0x544   :  { %v10416_v44 = vpop.eup %10415 }
 0x545   :  { %v511_v48 = vmul.f32 %v10416_v44, %v509_v47 }
 0x5a6   :  { %v514_v45 = vpop.permute.xlu0 %513 }
 0x5a7   :  { %v516_v46 = vmul.f32 %v10416_v44, %v514_v45 }
 0x5a9   :  { %518 = vrot.lane.b32.xlu1 %v516_v46, %s11151_s3 }
 0x61b   :  { %v519_v49 = vpop.permute.xlu1 %518 }
 0x61c   :  { %v521_v50 = vadd.f32 %v519_v49, %v511_v48 }
 0x61e   :  { %10417 = vtanh.f32 %v521_v50  ;;  %v589_v12 = vrot.slane %v521_v50, 7 }
 0x628   :  { %v10418_v51 = vpop.eup %10417 }
 0x629   :  { %524 = vrot.lane.b32.xlu0 %v10418_v51, %s11147_s9 }
 0x69b   :  { %v525_v52 = vpop.permute.xlu0 %524 }
 0x69c   :  { %v527_v53 = vmul.f32 %v10416_v44, %v525_v52 }
 0x69e   :  { %v528_v54 = vpack.c.bf16 %v527_v53, %v527_v53  ;;  %v1008_v19 = vsel %vm1007_vm2, %v11629_v30, %v527_v53 }
 0x6a0   :  { %v530_v55 = vshrl.u32 %v528_v54, 16 }
 0x6a2   :  { %532 = vrot.lane.b32.xlu1 %v530_v55, %s11167_s8 }
 0x714   :  { %v533_v56 = vpop.permute.xlu1 %532 }
 0x715   :  { %9722 = vmatmul.mubr.msk.bf16.vlgmr.msra.gmra.mrb[4].mxu1 %vm332_vm1, %v533_v56 }
 0x716   :  { %9732 = vmatpush3.bf16.msra.mxu1 %v11605_v2  ;;  %9733 = vmatprep.mubr.msk.bf16.mxu1 %vm11164_vm0, %v11163_v0 }
 0x717   :  { %9743 = vmatprep.subr.bf16.mxu1 %v11163_v0 }
 0x7e8   :  { %v571_v57 = vpop.f32.mrb[4].mxu1 }
 0x7e9   :  { %v578_v58 = vrot.slane %v571_v57, 6  ;;  %v9723_v59 = vpop.f32.mrb[5].mxu1 }
 0x7ea   :  { %v574_v60 = vpop.f32.mrb[6].mxu1 }
 0x7eb   :  { %v580_v61 = vadd.f32 %v578_v58, %v11623_v8  ;;  %v9724_v62 = vpop.f32.mrb[7].mxu1 }
 0x7ed   :  { %10419 = vtanh.f32 %v580_v61  ;;  %v581_v1 = vsub.f32 0.0, %v580_v61 }
 0x7ef   :  { %v582_v3 = vmul.f32 1.442695, %v581_v1 }
 0x7f1   :  { %10421 = vpow2.f32 %v582_v3 }
 0x7f7   :  { %v10420_v63 = vpop.eup %10419 }
 0x7f8   :  { %593 = vrot.lane.b32.xlu0 %v10420_v63, %s11166_s20 }
 0x7fb   :  { %v10422_v6 = vpop.eup %10421 }
 0x7fc   :  { %v584_v7 = vadd.f32 1.0, %v10422_v6 }
 0x7fe   :  { %10423 = vrcp.f32 %v584_v7 }
 0x808   :  { %v10424_v9 = vpop.eup %10423 }
 0x809   :  { %v591_v13 = vmul.f32 %v10424_v9, %v589_v12 }
 0x86a   :  { %v594_v10 = vpop.permute.xlu0 %593 }
 0x86b   :  { %v596_v11 = vmul.f32 %v10424_v9, %v594_v10 }
 0x86d   :  { %598 = vrot.lane.b32.xlu1 %v596_v11, %s11151_s3 }
 0x8df   :  { %v599_v14 = vpop.permute.xlu1 %598 }
 0x8e0   :  { %v601_v15 = vadd.f32 %v599_v14, %v591_v13 }
 0x8e2   :  { %10425 = vtanh.f32 %v601_v15  ;;  %v668_v38 = vrot.slane %v601_v15, 7 }
 0x8ec   :  { %v10426_v16 = vpop.eup %10425 }
 0x8ed   :  { %604 = vrot.lane.b32.xlu0 %v10426_v16, %s11147_s9 }
 0x95f   :  { %v605_v17 = vpop.permute.xlu0 %604 }
 0x960   :  { %v607_v18 = vmul.f32 %v10424_v9, %v605_v17 }
 0x962   :  { %v608_v20 = vpack.c.bf16 %v607_v18, %v607_v18  ;;  %v1010_v21 = vsel %vm1009_vm3, %v1008_v19, %v607_v18 }
 0x964   :  { %v610_v22 = vrot.slane %v608_v20, 1 }
 0x966   :  { %611 = vrot.lane.b32.xlu1 %v610_v22, %s11167_s8 }
 0x9d8   :  { %v612_v23 = vpop.permute.xlu1 %611 }
 0x9d9   :  { %9728 = vmatmul.mubr.msk.bf16.vlgmr.msra.gmra.mrb[8].mxu0 %vm332_vm1, %v612_v23 }
 0x9da   :  { %9738 = vmatpush3.bf16.msra.mxu0 %v11605_v2  ;;  %9739 = vmatprep.mubr.msk.bf16.mxu0 %vm11164_vm0, %v11163_v0 }
 0x9db   :  { %9749 = vmatprep.subr.bf16.mxu0 %v11163_v0 }
 0xaac   :  { %v650_v24 = vpop.f32.mrb[8].mxu0 }
 0xaad   :  { %v657_v25 = vrot.slane %v650_v24, 5  ;;  %v9729_v26 = vpop.f32.mrb[9].mxu0 }
 0xaae   :  { %v653_v27 = vpop.f32.mrb[10].mxu0 }
 0xaaf   :  { %v659_v28 = vadd.f32 %v657_v25, %v11623_v8  ;;  %v9730_v29 = vpop.f32.mrb[11].mxu0 }
 0xab1   :  { %10427 = vtanh.f32 %v659_v28  ;;  %v660_v31 = vsub.f32 0.0, %v659_v28 }
 0xab3   :  { %v661_v32 = vmul.f32 1.442695, %v660_v31 }
 0xab5   :  { %10429 = vpow2.f32 %v661_v32 }
 0xabb   :  { %v10428_v30 = vpop.eup %10427 }
 0xabc   :  { %672 = vrot.lane.b32.xlu0 %v10428_v30, %s11166_s20 }
 0xabf   :  { %v10430_v33 = vpop.eup %10429 }
 0xac0   :  { %v663_v34 = vadd.f32 1.0, %v10430_v33 }
 0xac2   :  { %10431 = vrcp.f32 %v663_v34 }
 0xacc   :  { %v10432_v35 = vpop.eup %10431 }
 0xacd   :  { %v670_v39 = vmul.f32 %v10432_v35, %v668_v38 }
 0xb2e   :  { %v673_v36 = vpop.permute.xlu0 %672 }
 0xb2f   :  { %v675_v37 = vmul.f32 %v10432_v35, %v673_v36 }
 0xb31   :  { %677 = vrot.lane.b32.xlu1 %v675_v37, %s11151_s3 }
 0xba3   :  { %v678_v40 = vpop.permute.xlu1 %677 }
 0xba4   :  { %v680_v41 = vadd.f32 %v678_v40, %v670_v39 }
 0xba6   :  { %10433 = vtanh.f32 %v680_v41  ;;  %v749_v1 = vrot.slane %v680_v41, 7 }
 0xbb0   :  { %v10434_v42 = vpop.eup %10433 }
 0xbb1   :  { %683 = vrot.lane.b32.xlu0 %v10434_v42, %s11147_s9 }
 0xc23   :  { %v684_v43 = vpop.permute.xlu0 %683 }
 0xc24   :  { %v686_v44 = vmul.f32 %v10432_v35, %v684_v43 }
 0xc26   :  { %v687_v45 = vpack.c.bf16 %v686_v44, %v686_v44  ;;  %v1012_v46 = vsel %vm1011_vm4, %v1010_v21, %v686_v44 }
 0xc28   :  { %v689_v47 = vshrl.u32 %v687_v45, 16 }
 0xc2a   :  { %v691_v48 = vrot.slane %v689_v47, 1 }
 0xc2c   :  { %692 = vrot.lane.b32.xlu1 %v691_v48, %s11167_s8 }
 0xc9e   :  { %v693_v49 = vpop.permute.xlu1 %692 }
 0xc9f   :  { %9734 = vmatmul.mubr.msk.bf16.vlgmr.msra.gmra.mrb[8].mxu1 %vm332_vm1, %v693_v49 }
 0xca0   :  { %9744 = vmatpush3.bf16.msra.mxu1 %v11605_v2  ;;  %9745 = vmatprep.mubr.msk.bf16.mxu1 %vm11164_vm0, %v11163_v0 }
 0xca1   :  { %9755 = vmatprep.subr.bf16.mxu1 %v11163_v0 }
 0xd72   :  { %v731_v50 = vpop.f32.mrb[8].mxu1 }
 0xd73   :  { %v738_v51 = vrot.slane %v731_v50, 4  ;;  %v9735_v52 = vpop.f32.mrb[9].mxu1 }
 0xd74   :  { %v734_v53 = vpop.f32.mrb[10].mxu1 }
 0xd75   :  { %v740_v54 = vadd.f32 %v738_v51, %v11623_v8  ;;  %v9736_v55 = vpop.f32.mrb[11].mxu1 }
 0xd77   :  { %10435 = vtanh.f32 %v740_v54  ;;  %v741_v57 = vsub.f32 0.0, %v740_v54 }
 0xd79   :  { %v742_v58 = vmul.f32 1.442695, %v741_v57 }
 0xd7b   :  { %10437 = vpow2.f32 %v742_v58 }
 0xd81   :  { %v10436_v56 = vpop.eup %10435 }
 0xd82   :  { %753 = vrot.lane.b32.xlu0 %v10436_v56, %s11166_s20 }
 0xd85   :  { %v10438_v59 = vpop.eup %10437 }
 0xd86   :  { %v744_v60 = vadd.f32 1.0, %v10438_v59 }
 0xd88   :  { %10439 = vrcp.f32 %v744_v60  ;;  %v10378_v60 = vld [vmem:[#allocation10] sm:$0xff]  }
 0xd92   :  { %v10440_v61 = vpop.eup %10439 }
 0xd93   :  { %v751_v3 = vmul.f32 %v10440_v61, %v749_v1 }
 0xdf4   :  { %v754_v62 = vpop.permute.xlu0 %753 }
 0xdf5   :  { %v756_v63 = vmul.f32 %v10440_v61, %v754_v62 }
 0xdf7   :  { %758 = vrot.lane.b32.xlu1 %v756_v63, %s11151_s3 }
 0xe69   :  { %v759_v6 = vpop.permute.xlu1 %758 }
 0xe6a   :  { %v761_v7 = vadd.f32 %v759_v6, %v751_v3 }
 0xe6c   :  { %10441 = vtanh.f32 %v761_v7  ;;  %v828_v29 = vrot.slane %v761_v7, 7 }
 0xe76   :  { %v10442_v9 = vpop.eup %10441 }
 0xe77   :  { %764 = vrot.lane.b32.xlu0 %v10442_v9, %s11147_s9 }
 0xee9   :  { %v765_v10 = vpop.permute.xlu0 %764 }
 0xeea   :  { %v767_v11 = vmul.f32 %v10440_v61, %v765_v10  ;;  %v11701_v61 = vld [vmem:[#allocation11] sm:$0xff]  }
 0xeec   :  { %v768_v12 = vpack.c.bf16 %v767_v11, %v767_v11  ;;  %v1014_v13 = vsel %vm1013_vm5, %v1012_v46, %v767_v11 }
 0xeee   :  { %v770_v14 = vrot.slane %v768_v12, 2 }
 0xef0   :  { %771 = vrot.lane.b32.xlu1 %v770_v14, %s11167_s8 }
 0xf62   :  { %v772_v15 = vpop.permute.xlu1 %771 }
 0xf63   :  { %9740 = vmatmul.mubr.msk.bf16.vlgmr.msra.gmra.mrb[12].mxu0 %vm332_vm1, %v772_v15 }
 0xf64   :  { %9750 = vmatpush3.bf16.msra.mxu0 %v11605_v2  ;;  %9751 = vmatprep.mubr.msk.bf16.mxu0 %vm11164_vm0, %v11163_v0 }
 0xf65   :  { %9761 = vmatprep.subr.bf16.mxu0 %v11163_v0 }
0x1036   :  { %v810_v16 = vpop.f32.mrb[12].mxu0 }
0x1037   :  { %v817_v17 = vrot.slane %v810_v16, 3  ;;  %v9741_v18 = vpop.f32.mrb[13].mxu0 }
0x1038   :  { %v813_v19 = vpop.f32.mrb[14].mxu0 }
0x1039   :  { %v819_v20 = vadd.f32 %v817_v17, %v11623_v8  ;;  %v9742_v21 = vpop.f32.mrb[15].mxu0  ;;  %v9264_v17 = vld [vmem:[#allocation13] ss:$0 sm:$0xff] }
0x103b   :  { %10443 = vtanh.f32 %v819_v20  ;;  %v820_v23 = vsub.f32 0.0, %v819_v20 }
0x103d   :  { %v821_v24 = vmul.f32 1.442695, %v820_v23 }
0x103f   :  { %10445 = vpow2.f32 %v821_v24 }
0x1045   :  { %v10444_v22 = vpop.eup %10443 }
0x1046   :  { %832 = vrot.lane.b32.xlu0 %v10444_v22, %s11166_s20 }
0x1049   :  { %v10446_v2 = vpop.eup %10445 }
0x104a   :  { %v823_v25 = vadd.f32 1.0, %v10446_v2 }
0x104c   :  { %10447 = vrcp.f32 %v823_v25 }
0x1056   :  { %v10448_v26 = vpop.eup %10447 }
0x1057   :  { %v830_v30 = vmul.f32 %v10448_v26, %v828_v29 }
0x10b8   :  { %v833_v27 = vpop.permute.xlu0 %832 }
0x10b9   :  { %v835_v28 = vmul.f32 %v10448_v26, %v833_v27 }
0x10bb   :  { %837 = vrot.lane.b32.xlu1 %v835_v28, %s11151_s3 }
0x112d   :  { %v838_v31 = vpop.permute.xlu1 %837 }
0x112e   :  { %v840_v32 = vadd.f32 %v838_v31, %v830_v30 }
0x1130   :  { %10449 = vtanh.f32 %v840_v32  ;;  %v909_v55 = vrot.slane %v840_v32, 7 }
0x113a   :  { %v10450_v33 = vpop.eup %10449 }
0x113b   :  { %843 = vrot.lane.b32.xlu0 %v10450_v33, %s11147_s9 }
0x11ad   :  { %v844_v34 = vpop.permute.xlu0 %843 }
0x11ae   :  { %v846_v35 = vmul.f32 %v10448_v26, %v844_v34 }
0x11b0   :  { %v847_v36 = vpack.c.bf16 %v846_v35, %v846_v35  ;;  %v1016_v37 = vsel %vm1015_vm6, %v1014_v13, %v846_v35 }
0x11b2   :  { %v849_v38 = vshrl.u32 %v847_v36, 16 }
0x11b4   :  { %v851_v39 = vrot.slane %v849_v38, 2 }
0x11b6   :  { %852 = vrot.lane.b32.xlu1 %v851_v39, %s11167_s8 }
0x1228   :  { %v853_v40 = vpop.permute.xlu1 %852 }
0x1229   :  { %9746 = vmatmul.mubr.msk.bf16.vlgmr.msra.gmra.mrb[12].mxu1 %vm332_vm1, %v853_v40 }
0x122a   :  { %9757 = vmatprep.mubr.msk.bf16.mxu1 %vm11164_vm0, %v11163_v0  ;;  %9756 = vmatpush3.bf16.msra.mxu1 %v10378_v60 }
0x122b   :  { %9767 = vmatprep.subr.bf16.mxu1 %v11163_v0 }
0x1231   :  { %9758 = vmatmul.mubr.msk.bf16.vlgmr.msra.gmra.mrb[16].mxu1 %vm332_vm1, %v11608_v4 }
0x1232   :  { %9768 = vmatpush3.bf16.msra.mxu1 %v11701_v61  ;;  %9769 = vmatprep.mubr.msk.bf16.mxu1 %vm11164_vm0, %v11163_v0 }
0x1233   :  { %9779 = vmatprep.subr.bf16.mxu1 %v11163_v0 }
0x12fc   :  { %v891_v41 = vpop.f32.mrb[12].mxu1 }
0x12fd   :  { %v898_v42 = vrot.slane %v891_v41, 2  ;;  %v9747_v43 = vpop.f32.mrb[13].mxu1 }
0x12fe   :  { %v894_v44 = vpop.f32.mrb[14].mxu1 }
0x12ff   :  { %v900_v45 = vadd.f32 %v898_v42, %v11623_v8  ;;  %v9748_v46 = vpop.f32.mrb[15].mxu1 }
0x1301   :  { %10451 = vtanh.f32 %v900_v45  ;;  %v901_v48 = vsub.f32 0.0, %v900_v45 }
0x1303   :  { %v902_v49 = vmul.f32 1.442695, %v901_v48 }
0x1304   :  { %v1072_v9 = vpop.f32.mrb[16].mxu1 }
0x1305   :  { %10453 = vpow2.f32 %v902_v49  ;;  %v9759_v10 = vpop.f32.mrb[17].mxu1  ;;  %v11725_v18 = vadd.f32 %v9264_v17, %v1072_v9 }
0x1306   :  { %v1075_v11 = vpop.f32.mrb[18].mxu1 }
0x1307   :  { %v9760_v12 = vpop.f32.mrb[19].mxu1 }
0x130b   :  { %v10452_v47 = vpop.eup %10451 }
0x130c   :  { %913 = vrot.lane.b32.xlu0 %v10452_v47, %s11166_s20 }
0x130f   :  { %v10454_v50 = vpop.eup %10453 }
0x1310   :  { %v904_v51 = vadd.f32 1.0, %v10454_v50 }
0x1312   :  { %10455 = vrcp.f32 %v904_v51 }
0x131c   :  { %v10456_v52 = vpop.eup %10455 }
0x131d   :  { %v911_v56 = vmul.f32 %v10456_v52, %v909_v55 }
0x137e   :  { %v914_v53 = vpop.permute.xlu0 %913 }
0x137f   :  { %v916_v54 = vmul.f32 %v10456_v52, %v914_v53 }
0x1381   :  { %918 = vrot.lane.b32.xlu1 %v916_v54, %s11151_s3 }
0x13f3   :  { %v919_v57 = vpop.permute.xlu1 %918 }
0x13f4   :  { %v11696_v58 = vadd.f32 %v919_v57, %v911_v56 }
0x13f6   :  { %10457 = vtanh.f32 %v11696_v58 }
0x1400   :  { %v10458_v59 = vpop.eup %10457 }
0x1401   :  { %924 = vrot.lane.b32.xlu0 %v10458_v59, %s11147_s9 }
0x1473   :  { %v925_v62 = vpop.permute.xlu0 %924 }
0x1474   :  { %v927_v63 = vmul.f32 %v10456_v52, %v925_v62 }
0x1476   :  { %v928_v1 = vpack.c.bf16 %v927_v63, %v927_v63  ;;  %v11710_v3 = vsel %vm1017_vm7, %v1016_v37, %v927_v63 }
0x1478   :  { %v930_v6 = vrot.slane %v928_v1, 3 }
0x147a   :  { %931 = vrot.lane.b32.xlu1 %v930_v6, %s11167_s8 }
0x14ec   :  { %v932_v7 = vpop.permute.xlu1 %931 }
0x14ed   :  { %9752 = vmatmul.mubr.msk.bf16.vlgmr.msra.gmra.mrb[16].mxu0 %vm332_vm1, %v932_v7 }
0x14ee   :  { %9762 = vmatpush3.bf16.msra.mxu0 %v11701_v61  ;;  %9763 = vmatprep.mubr.msk.bf16.mxu0 %vm11164_vm0, %v11163_v0 }
0x14ef   :  { %9773 = vmatprep.subr.bf16.mxu0 %v11163_v0 }
0x14f5   :  { %9764 = vmatmul.mubr.bf16.vlgmr.msra.gmra.mrb[20].mxu0 %v11165_v5 }
0x14f6   :  { %9774 = vmatpush3.bf16.msra.mxu0 %v11701_v61  ;;  %9775 = vmatprep.mubr.msk.bf16.mxu0 %vm11164_vm0, %v11163_v0 }
0x14f7   :  { %9785 = vmatprep.subr.bf16.mxu0 %v11163_v0 }
0x15c0   :  { %v11723_v13 = vpop.f32.mrb[16].mxu0 }
0x15c1   :  { %v9753_v14 = vpop.f32.mrb[17].mxu0 }
0x15c2   :  { %v973_v15 = vpop.f32.mrb[18].mxu0 }
0x15c3   :  { %v9754_v16 = vpop.f32.mrb[19].mxu0 }
0x15c8   :  { %v1118_v5 = vpop.f32.mrb[20].mxu0 }
0x15c9   :  { %v1125_v19 = vrot.slane %v1118_v5, 1  ;;  %v9765_v20 = vpop.f32.mrb[21].mxu0 }
0x15ca   :  { %v1121_v21 = vpop.f32.mrb[22].mxu0 }
0x15cb   :  { %v1127_v22 = vadd.f32 %v1125_v19, %v11725_v18  ;;  %v9766_v23 = vpop.f32.mrb[23].mxu0 }
0x15cd   :  { %10459 = vtanh.f32 %v1127_v22  ;;  %v1128_v2 = vsub.f32 0.0, %v1127_v22 }
0x15cf   :  { %v1129_v25 = vmul.f32 1.442695, %v1128_v2 }
0x15d1   :  { %10461 = vpow2.f32 %v1129_v25 }
0x15d7   :  { %v10460_v24 = vpop.eup %10459 }
0x15d8   :  { %1137 = vrot.lane.b32.xlu0 %v10460_v24, %s11166_s20 }
0x15db   :  { %v10462_v26 = vpop.eup %10461 }
0x15dc   :  { %v1131_v27 = vadd.f32 1.0, %v10462_v26 }
0x15de   :  { %10463 = vrcp.f32 %v1131_v27 }
0x15e8   :  { %v10464_v28 = vpop.eup %10463 }
0x15e9   :  { %v1135_v31 = vmul.f32 0.0, %v10464_v28 }
0x164a   :  { %v1138_v29 = vpop.permute.xlu0 %1137 }
0x164b   :  { %v1140_v30 = vmul.f32 %v10464_v28, %v1138_v29 }
0x164d   :  { %1142 = vrot.lane.b32.xlu1 %v1140_v30, %s11151_s3 }
0x16bf   :  { %v1143_v32 = vpop.permute.xlu1 %1142 }
0x16c0   :  { %v1145_v33 = vadd.f32 %v1143_v32, %v1135_v31 }
0x16c2   :  { %10465 = vtanh.f32 %v1145_v33  ;;  %v1214_v55 = vrot.slane %v1145_v33, 1 }
0x16cc   :  { %v10466_v34 = vpop.eup %10465 }
0x16cd   :  { %1148 = vrot.lane.b32.xlu0 %v10466_v34, %s11147_s9 }
0x173f   :  { %v1149_v35 = vpop.permute.xlu0 %1148 }
0x1740   :  { %v11731_v36 = vmul.f32 %v10464_v28, %v1149_v35 }
0x1742   :  { %v1152_v37 = vpack.c.bf16 %v11731_v36, %v11731_v36 }
0x1744   :  { %v1154_v38 = vshrl.u32 %v1152_v37, 16 }
0x1746   :  { %v1156_v39 = vrot.slane %v1154_v38, 3 }
0x1748   :  { %1157 = vrot.lane.b32.xlu1 %v1156_v39, %s11167_s8 }
0x17ba   :  { %v1158_v40 = vpop.permute.xlu1 %1157 }
0x17bb   :  { %9770 = vmatmul.mubr.msk.bf16.vlgmr.msra.gmra.mrb[20].mxu1 %vm332_vm1, %v1158_v40 }
0x17bc   :  { %9780 = vmatpush3.bf16.msra.mxu1 %v11701_v61  ;;  %9781 = vmatprep.mubr.msk.bf16.mxu1 %vm11164_vm0, %v11163_v0 }
0x17bd   :  { %9791 = vmatprep.subr.bf16.mxu1 %v11163_v0 }
0x188e   :  { %v1196_v41 = vpop.f32.mrb[20].mxu1 }
0x188f   :  { %v1203_v42 = vrot.slane %v1196_v41, 2  ;;  %v9771_v43 = vpop.f32.mrb[21].mxu1 }
0x1890   :  { %v1199_v44 = vpop.f32.mrb[22].mxu1 }
0x1891   :  { %v1205_v45 = vadd.f32 %v1203_v42, %v11725_v18  ;;  %v9772_v46 = vpop.f32.mrb[23].mxu1 }
0x1893   :  { %10467 = vtanh.f32 %v1205_v45  ;;  %v1206_v48 = vsub.f32 0.0, %v1205_v45 }
0x1895   :  { %v1207_v49 = vmul.f32 1.442695, %v1206_v48 }
0x1897   :  { %10469 = vpow2.f32 %v1207_v49 }
0x189d   :  { %v10468_v47 = vpop.eup %10467 }
0x189e   :  { %1218 = vrot.lane.b32.xlu0 %v10468_v47, %s11166_s20 }
0x18a1   :  { %v10470_v50 = vpop.eup %10469 }
0x18a2   :  { %v1209_v51 = vadd.f32 1.0, %v10470_v50 }
0x18a4   :  { %10471 = vrcp.f32 %v1209_v51 }
0x18ae   :  { %v10472_v52 = vpop.eup %10471 }
0x18af   :  { %v1216_v56 = vmul.f32 %v10472_v52, %v1214_v55 }
0x1910   :  { %v1219_v53 = vpop.permute.xlu0 %1218 }
0x1911   :  { %v1221_v54 = vmul.f32 %v10472_v52, %v1219_v53 }
0x1913   :  { %1223 = vrot.lane.b32.xlu1 %v1221_v54, %s11151_s3 }
0x1985   :  { %v1224_v57 = vpop.permute.xlu1 %1223 }
0x1986   :  { %v1226_v59 = vadd.f32 %v1224_v57, %v1216_v56 }
0x1988   :  { %10473 = vtanh.f32 %v1226_v59  ;;  %v1293_v24 = vrot.slane %v1226_v59, 1 }
0x1992   :  { %v10474_v60 = vpop.eup %10473 }
0x1993   :  { %1229 = vrot.lane.b32.xlu0 %v10474_v60, %s11147_s9 }
0x1a05   :  { %v1230_v62 = vpop.permute.xlu0 %1229 }
0x1a06   :  { %v11745_v63 = vmul.f32 %v10472_v52, %v1230_v62 }
0x1a08   :  { %v1233_v1 = vpack.c.bf16 %v11745_v63, %v11745_v63 }
0x1a0a   :  { %v1235_v6 = vrot.slane %v1233_v1, 3 }
0x1a0c   :  { %1236 = vrot.lane.b32.xlu1 %v1235_v6, %s11167_s8 }
0x1a7e   :  { %v1237_v7 = vpop.permute.xlu1 %1236 }
0x1a7f   :  { %9776 = vmatmul.mubr.msk.bf16.vlgmr.msra.gmra.mrb[24].mxu0 %vm332_vm1, %v1237_v7 }
0x1a80   :  { %9786 = vmatpush3.bf16.msra.mxu0 %v11701_v61  ;;  %9787 = vmatprep.mubr.msk.bf16.mxu0 %vm11164_vm0, %v11163_v0 }
0x1a81   :  { %9797 = vmatprep.subr.bf16.mxu0 %v11163_v0 }
0x1b52   :  { %v1275_v9 = vpop.f32.mrb[24].mxu0 }
0x1b53   :  { %v1282_v10 = vrot.slane %v1275_v9, 3  ;;  %v9777_v11 = vpop.f32.mrb[25].mxu0 }
0x1b54   :  { %v1278_v12 = vpop.f32.mrb[26].mxu0 }
0x1b55   :  { %v1284_v14 = vadd.f32 %v1282_v10, %v11725_v18  ;;  %v9778_v15 = vpop.f32.mrb[27].mxu0 }
0x1b57   :  { %10475 = vtanh.f32 %v1284_v14  ;;  %v1285_v17 = vsub.f32 0.0, %v1284_v14 }
0x1b59   :  { %v1286_v5 = vmul.f32 1.442695, %v1285_v17 }
0x1b5b   :  { %10477 = vpow2.f32 %v1286_v5 }
0x1b61   :  { %v10476_v16 = vpop.eup %10475 }
0x1b62   :  { %1297 = vrot.lane.b32.xlu0 %v10476_v16, %s11166_s20 }
0x1b65   :  { %v10478_v19 = vpop.eup %10477 }
0x1b66   :  { %v1288_v20 = vadd.f32 1.0, %v10478_v19 }
0x1b68   :  { %10479 = vrcp.f32 %v1288_v20 }
0x1b72   :  { %v10480_v21 = vpop.eup %10479 }
0x1b73   :  { %v1295_v2 = vmul.f32 %v10480_v21, %v1293_v24 }
0x1bd4   :  { %v1298_v22 = vpop.permute.xlu0 %1297 }
0x1bd5   :  { %v1300_v23 = vmul.f32 %v10480_v21, %v1298_v22 }
0x1bd7   :  { %1302 = vrot.lane.b32.xlu1 %v1300_v23, %s11151_s3 }
0x1c49   :  { %v1303_v25 = vpop.permute.xlu1 %1302 }
0x1c4a   :  { %v1305_v26 = vadd.f32 %v1303_v25, %v1295_v2 }
0x1c4c   :  { %10481 = vtanh.f32 %v1305_v26  ;;  %v1374_v49 = vrot.slane %v1305_v26, 1 }
0x1c56   :  { %v10482_v27 = vpop.eup %10481 }
0x1c57   :  { %1308 = vrot.lane.b32.xlu0 %v10482_v27, %s11147_s9 }
0x1cc9   :  { %v1309_v28 = vpop.permute.xlu0 %1308 }
0x1cca   :  { %v11759_v29 = vmul.f32 %v10480_v21, %v1309_v28 }
0x1ccc   :  { %v1312_v30 = vpack.c.bf16 %v11759_v29, %v11759_v29 }
0x1cce   :  { %v1314_v31 = vshrl.u32 %v1312_v30, 16 }
0x1cd0   :  { %v1316_v32 = vrot.slane %v1314_v31, 2 }
0x1cd2   :  { %1317 = vrot.lane.b32.xlu1 %v1316_v32, %s11167_s8 }
0x1d44   :  { %v1318_v33 = vpop.permute.xlu1 %1317 }
0x1d45   :  { %9782 = vmatmul.mubr.msk.bf16.vlgmr.msra.gmra.mrb[24].mxu1 %vm332_vm1, %v1318_v33 }
0x1d46   :  { %9792 = vmatpush3.bf16.msra.mxu1 %v11701_v61  ;;  %9793 = vmatprep.mubr.msk.bf16.mxu1 %vm11164_vm0, %v11163_v0 }
0x1d47   :  { %9803 = vmatprep.subr.bf16.mxu1 %v11163_v0 }
0x1e18   :  { %v1356_v34 = vpop.f32.mrb[24].mxu1 }
0x1e19   :  { %v1363_v35 = vrot.slane %v1356_v34, 4  ;;  %v9783_v37 = vpop.f32.mrb[25].mxu1 }
0x1e1a   :  { %v1359_v38 = vpop.f32.mrb[26].mxu1 }
0x1e1b   :  { %v1365_v39 = vadd.f32 %v1363_v35, %v11725_v18  ;;  %v9784_v40 = vpop.f32.mrb[27].mxu1 }
0x1e1d   :  { %10483 = vtanh.f32 %v1365_v39  ;;  %v1366_v42 = vsub.f32 0.0, %v1365_v39 }
0x1e1f   :  { %v1367_v43 = vmul.f32 1.442695, %v1366_v42 }
0x1e21   :  { %10485 = vpow2.f32 %v1367_v43 }
0x1e27   :  { %v10484_v41 = vpop.eup %10483 }
0x1e28   :  { %1378 = vrot.lane.b32.xlu0 %v10484_v41, %s11166_s20 }
0x1e2b   :  { %v10486_v44 = vpop.eup %10485 }
0x1e2c   :  { %v1369_v45 = vadd.f32 1.0, %v10486_v44 }
0x1e2e   :  { %10487 = vrcp.f32 %v1369_v45 }
0x1e38   :  { %v10488_v46 = vpop.eup %10487 }
0x1e39   :  { %v1376_v50 = vmul.f32 %v10488_v46, %v1374_v49 }
0x1e9a   :  { %v1379_v47 = vpop.permute.xlu0 %1378 }
0x1e9b   :  { %v1381_v48 = vmul.f32 %v10488_v46, %v1379_v47 }
0x1e9d   :  { %1383 = vrot.lane.b32.xlu1 %v1381_v48, %s11151_s3 }
0x1f0f   :  { %v1384_v51 = vpop.permute.xlu1 %1383 }
0x1f10   :  { %v1386_v52 = vadd.f32 %v1384_v51, %v1376_v50 }
0x1f12   :  { %10489 = vtanh.f32 %v1386_v52  ;;  %v1453_v19 = vrot.slane %v1386_v52, 1 }
0x1f1c   :  { %v10490_v53 = vpop.eup %10489 }
0x1f1d   :  { %1389 = vrot.lane.b32.xlu0 %v10490_v53, %s11147_s9 }
0x1f8f   :  { %v1390_v54 = vpop.permute.xlu0 %1389 }
0x1f90   :  { %v11773_v55 = vmul.f32 %v10488_v46, %v1390_v54 }
0x1f92   :  { %v1393_v56 = vpack.c.bf16 %v11773_v55, %v11773_v55 }
0x1f94   :  { %v1395_v57 = vrot.slane %v1393_v56, 2 }
0x1f96   :  { %1396 = vrot.lane.b32.xlu1 %v1395_v57, %s11167_s8 }
0x2008   :  { %v1397_v59 = vpop.permute.xlu1 %1396 }
0x2009   :  { %9788 = vmatmul.mubr.msk.bf16.vlgmr.msra.gmra.mrb[28].mxu0 %vm332_vm1, %v1397_v59 }
0x200a   :  { %9798 = vmatpush3.bf16.msra.mxu0 %v11701_v61  ;;  %9799 = vmatprep.mubr.msk.bf16.mxu0 %vm11164_vm0, %v11163_v0 }
0x200b   :  { %9809 = vmatprep.subr.bf16.mxu0 %v11163_v0 }
0x20dc   :  { %v1435_v60 = vpop.f32.mrb[28].mxu0 }
0x20dd   :  { %v1442_v62 = vrot.slane %v1435_v60, 5  ;;  %v9789_v1 = vpop.f32.mrb[29].mxu0 }
0x20de   :  { %v1438_v6 = vpop.f32.mrb[30].mxu0 }
0x20df   :  { %v1444_v7 = vadd.f32 %v1442_v62, %v11725_v18  ;;  %v9790_v9 = vpop.f32.mrb[31].mxu0 }
0x20e1   :  { %10491 = vtanh.f32 %v1444_v7  ;;  %v1445_v11 = vsub.f32 0.0, %v1444_v7 }
0x20e3   :  { %v1446_v12 = vmul.f32 1.442695, %v1445_v11  ;;  %v10380_v11 = vld [vmem:[#allocation14] sm:$0xff]  }
0x20e5   :  { %10493 = vpow2.f32 %v1446_v12 }
0x20eb   :  { %v10492_v10 = vpop.eup %10491 }
0x20ec   :  { %1457 = vrot.lane.b32.xlu0 %v10492_v10, %s11166_s20 }
0x20ef   :  { %v10494_v14 = vpop.eup %10493 }
0x20f0   :  { %v1448_v15 = vadd.f32 1.0, %v10494_v14 }
0x20f2   :  { %10495 = vrcp.f32 %v1448_v15 }
0x20fc   :  { %v10496_v16 = vpop.eup %10495 }
0x20fd   :  { %v1455_v20 = vmul.f32 %v10496_v16, %v1453_v19 }
0x215e   :  { %v1458_v17 = vpop.permute.xlu0 %1457 }
0x215f   :  { %v1460_v5 = vmul.f32 %v10496_v16, %v1458_v17 }
0x2161   :  { %1462 = vrot.lane.b32.xlu1 %v1460_v5, %s11151_s3 }
0x21d3   :  { %v1463_v21 = vpop.permute.xlu1 %1462 }
0x21d4   :  { %v1465_v22 = vadd.f32 %v1463_v21, %v1455_v20 }
0x21d6   :  { %10497 = vtanh.f32 %v1465_v22  ;;  %v1534_v44 = vrot.slane %v1465_v22, 1 }
0x21e0   :  { %v10498_v23 = vpop.eup %10497 }
0x21e1   :  { %1468 = vrot.lane.b32.xlu0 %v10498_v23, %s11147_s9 }
0x2253   :  { %v1469_v24 = vpop.permute.xlu0 %1468 }
0x2254   :  { %v11787_v2 = vmul.f32 %v10496_v16, %v1469_v24 }
0x2256   :  { %v1472_v25 = vpack.c.bf16 %v11787_v2, %v11787_v2 }
0x2258   :  { %v1474_v26 = vshrl.u32 %v1472_v25, 16 }
0x225a   :  { %v1476_v27 = vrot.slane %v1474_v26, 1 }
0x225c   :  { %1477 = vrot.lane.b32.xlu1 %v1476_v27, %s11167_s8 }
0x22ce   :  { %v1478_v28 = vpop.permute.xlu1 %1477 }
0x22cf   :  { %9794 = vmatmul.mubr.msk.bf16.vlgmr.msra.gmra.mrb[28].mxu1 %vm332_vm1, %v1478_v28  ;;  %v9275_v28 = vld [vmem:[#allocation16] ss:$0 sm:$0xff] }
0x22d0   :  { %9804 = vmatpush3.bf16.msra.mxu1 %v11701_v61  ;;  %9805 = vmatprep.mubr.msk.bf16.mxu1 %vm11164_vm0, %v11163_v0 }
0x22d1   :  { %9815 = vmatprep.subr.bf16.mxu1 %v11163_v0 }
0x23a2   :  { %v1516_v30 = vpop.f32.mrb[28].mxu1 }
0x23a3   :  { %v1523_v31 = vrot.slane %v1516_v30, 6  ;;  %v9795_v32 = vpop.f32.mrb[29].mxu1 }
0x23a4   :  { %v1519_v33 = vpop.f32.mrb[30].mxu1 }
0x23a5   :  { %v1525_v34 = vadd.f32 %v1523_v31, %v11725_v18  ;;  %v9796_v35 = vpop.f32.mrb[31].mxu1  ;;  %v10381_v33 = vld [vmem:[#allocation17] sm:$0xff]  }
0x23a7   :  { %10499 = vtanh.f32 %v1525_v34  ;;  %v1526_v38 = vsub.f32 0.0, %v1525_v34 }
0x23a9   :  { %v1527_v39 = vmul.f32 1.442695, %v1526_v38  ;;  %v10382_v38 = vld [vmem:[#allocation17 + $0x8] sm:$0xff]  }
0x23ab   :  { %10501 = vpow2.f32 %v1527_v39 }
0x23b1   :  { %v10500_v37 = vpop.eup %10499 }
0x23b2   :  { %1538 = vrot.lane.b32.xlu0 %v10500_v37, %s11166_s20 }
0x23b5   :  { %v10502_v61 = vpop.eup %10501 }
0x23b6   :  { %v1529_v40 = vadd.f32 1.0, %v10502_v61 }
0x23b8   :  { %10503 = vrcp.f32 %v1529_v40 }
0x23c2   :  { %v10504_v41 = vpop.eup %10503 }
0x23c3   :  { %v1536_v45 = vmul.f32 %v10504_v41, %v1534_v44  ;;  %v9278_v44 = vld [vmem:[#allocation19] ss:$0 sm:$0xff] }
0x2424   :  { %v1539_v42 = vpop.permute.xlu0 %1538 }
0x2425   :  { %v1541_v43 = vmul.f32 %v10504_v41, %v1539_v42 }
0x2427   :  { %1543 = vrot.lane.b32.xlu1 %v1541_v43, %s11151_s3 }
0x2499   :  { %v1544_v46 = vpop.permute.xlu1 %1543 }
0x249a   :  { %v1546_v47 = vadd.f32 %v1544_v46, %v1536_v45 }
0x249c   :  { %10505 = vtanh.f32 %v1546_v47  ;;  %v1613_v16 = vrot.slane %v1546_v47, 1 }
0x24a6   :  { %v10506_v48 = vpop.eup %10505 }
0x24a7   :  { %1549 = vrot.lane.b32.xlu0 %v10506_v48, %s11147_s9 }
0x2519   :  { %v1550_v49 = vpop.permute.xlu0 %1549 }
0x251a   :  { %v11801_v50 = vmul.f32 %v10504_v41, %v1550_v49 }
0x251c   :  { %v1553_v51 = vpack.c.bf16 %v11801_v50, %v11801_v50 }
0x251e   :  { %v1555_v52 = vrot.slane %v1553_v51, 1 }
0x2520   :  { %1556 = vrot.lane.b32.xlu1 %v1555_v52, %s11167_s8 }
0x2592   :  { %v1557_v53 = vpop.permute.xlu1 %1556 }
0x2593   :  { %9800 = vmatmul.mubr.msk.bf16.vlgmr.msra.gmra.mrb[32].mxu0 %vm332_vm1, %v1557_v53 }
0x2594   :  { %9811 = vmatprep.mubr.msk.bf16.mxu0 %vm11164_vm0, %v11163_v0  ;;  %9810 = vmatpush3.bf16.msra.mxu0 %v10380_v11 }
0x2595   :  { %9823 = vmatprep.subr.bf16.mxu0 %v11163_v0 }
0x259b   :  { %9812 = vmatmul.mubr.msk.bf16.vlgmr.msra.gmra.mrb[36].mxu0 %vm332_vm1, %v11608_v4 }
0x259c   :  { %9825 = vmatprep.mubr.msk.bf16.mxu0 %vm11164_vm0, %v11163_v0 }
0x2666   :  { %v1595_v54 = vpop.f32.mrb[32].mxu0 }
0x2667   :  { %v1602_v56 = vrot.slane %v1595_v54, 7  ;;  %v9801_v57 = vpop.f32.mrb[33].mxu0 }
0x2668   :  { %v1598_v59 = vpop.f32.mrb[34].mxu0 }
0x2669   :  { %v1604_v60 = vadd.f32 %v1602_v56, %v11725_v18  ;;  %v9802_v62 = vpop.f32.mrb[35].mxu0 }
0x266b   :  { %10507 = vtanh.f32 %v1604_v60  ;;  %v1605_v6 = vsub.f32 0.0, %v1604_v60  ;;  %v11175_v60 = vmov 1983009808  }
0x266c   :  { %v1906_v62 = vunpack.c.l.s4 %v11175_v60 }
0x266d   :  { %v1606_v7 = vmul.f32 1.442695, %v1605_v6 }
0x266e   :  { %v1792_v21 = vpop.f32.mrb[36].mxu0  ;;  %v1907_v6 = vunpack.c.0.s8 %v1906_v62 }
0x266f   :  { %10509 = vpow2.f32 %v1606_v7  ;;  %v9813_v4 = vpop.f32.mrb[37].mxu0  ;;  %v1793_v30 = vadd.f32 %v9275_v28, %v1792_v21 }
0x2670   :  { %v1795_v22 = vpop.f32.mrb[38].mxu0 }
0x2671   :  { %v9814_v23 = vpop.f32.mrb[39].mxu0  ;;  %v1800_v31 = vmul.f32 0.70710677, %v1793_v30  ;;  %v1798_v34 = vmul.f32 0.5, %v1793_v30 }
0x2675   :  { %v10508_v1 = vpop.eup %10507 }
0x2676   :  { %1617 = vrot.lane.b32.xlu0 %v10508_v1, %s11166_s20  ;;  %v1908_v1 = vlaneseq }
0x2678   :  { %v1909_v7 = vshrl.u32 %v1908_v1, 7 }
0x2679   :  { %v10510_v9 = vpop.eup %10509 }
0x267a   :  { %v1608_v10 = vadd.f32 1.0, %v10510_v9  ;;  %v11176_v9 = vmov 1934713408  }
0x267c   :  { %10511 = vrcp.f32 %v1608_v10  ;;  %v1970_v10 = vunpack.c.l.s4 %v11176_v9 }
0x2686   :  { %v10512_v12 = vpop.eup %10511 }
0x2687   :  { %v1615_v17 = vmul.f32 %v10512_v12, %v1613_v16 }
0x26e8   :  { %v1618_v14 = vpop.permute.xlu0 %1617 }
0x26e9   :  { %v1620_v15 = vmul.f32 %v10512_v12, %v1618_v14  ;;  %v11871_v14 = vsub.s32 %v1907_v6, %v1909_v7 }
0x26eb   :  { %1622 = vrot.lane.b32.xlu1 %v1620_v15, %s11151_s3 }
0x275d   :  { %v1623_v5 = vpop.permute.xlu1 %1622 }
0x275e   :  { %v11817_v19 = vadd.f32 %v1623_v5, %v1615_v17  ;;  %v1971_v17 = vunpack.c.0.s8 %v1970_v10 }
0x2760   :  { %10513 = vtanh.f32 %v11817_v19  ;;  %v11877_v22 = vsub.s32 %v1971_v17, %v1909_v7 }
0x2761   :  { %10515 = verf.f32 %v1800_v31 }
0x276a   :  { %v10514_v20 = vpop.eup %10513 }
0x276b   :  { %1628 = vrot.lane.b32.xlu0 %v10514_v20, %s11147_s9  ;;  %v10516_v32 = vpop.eup %10515 }
0x276c   :  { %v1802_v35 = vadd.f32 1.0, %v10516_v32 }
0x276e   :  { %v11829_v39 = vmul.f32 %v1802_v35, %v1798_v34 }
0x2770   :  { %v1818_v61 = vpack.c.bf16 %v11829_v39, %v11829_v39 }
0x27dd   :  { %v1629_v24 = vpop.permute.xlu0 %1628 }
0x27de   :  { %v11821_v25 = vmul.f32 %v10512_v12, %v1629_v24 }
0x27e0   :  { %v1632_v26 = vpack.c.bf16 %v11821_v25, %v11821_v25 }
0x27e2   :  { %v1634_v27 = vshrl.u32 %v1632_v26, 16 }
0x27e4   :  { %1636 = vrot.lane.b32.xlu1 %v1634_v27, %s11167_s8 }
0x2856   :  { %v1637_v37 = vpop.permute.xlu1 %1636 }
0x2857   :  { %9806 = vmatmul.mubr.msk.bf16.vlgmr.msra.gmra.mrb[32].mxu1 %vm332_vm1, %v1637_v37 }
0x2858   :  { %9816 = vmatpush3.bf16.msra.mxu1 %v10381_v33  ;;  %9819 = vmatprep.mubr.msk.bf16.mxu1 %vm11164_vm0, %v11163_v0 }
0x2859   :  { %9817 = vmatprep.subr.bf16.mxu1 %v11163_v0 }
0x285c   :  { %9818 = vmatpush3.bf16.msra.mxu1 %v10382_v38 }
0x285d   :  { %9829 = vmatprep.subr.bf16.mxu1 %v11163_v0 }
0x285f   :  { %9820 = vmatmul.mubr.msk.bf16.vlgmr.msra.gmra.mrb[36].mxu1 %vm1837_vm8, %v1818_v61 }
0x2860   :  { %9831 = vmatprep.mubr.msk.bf16.mxu1 %vm11164_vm0, %v11163_v0 }
0x292a   :  { %v11838_v40 = vpop.f32.mrb[32].mxu1 }
0x292b   :  { %v9807_v41 = vpop.f32.mrb[33].mxu1 }
0x292c   :  { %v1678_v42 = vpop.f32.mrb[34].mxu1 }
0x292d   :  { %v9808_v43 = vpop.f32.mrb[35].mxu1 }
0x2932   :  { %v1875_v45 = vpop.f32.mrb[36].mxu1 }
0x2933   :  { %v1876_v46 = vadd.f32 %v9278_v44, %v1875_v45  ;;  %v9821_v47 = vpop.f32.mrb[37].mxu1 }
0x2934   :  { %v1878_v48 = vpop.f32.mrb[38].mxu1 }
0x2935   :  { %1885 = vrot.lane.b32.xlu1 %v1876_v46, %s11168_s22  ;;  %1882 = vrot.lane.b32.xlu0 %v1876_v46, %s11169_s13  ;;  %v9822_v49 = vpop.f32.mrb[39].mxu1 }
0x2939   :  { %1891 = vrot.lane.b32.xlu1 %v1876_v46, %s11170_s10  ;;  %1888 = vrot.lane.b32.xlu0 %v1876_v46, %s11171_s27 }
0x293d   :  { %1897 = vrot.lane.b32.xlu1 %v1876_v46, %s11172_s6  ;;  %1894 = vrot.lane.b32.xlu0 %v1876_v46, %s11173_s1 }
0x2941   :  { %2183 = vrot.lane.b32.xlu1 %v1876_v46, %s11166_s20  ;;  %1900 = vrot.lane.b32.xlu0 %v1876_v46, %s11174_s23 }
0x29a7   :  { %v1886_v51 = vpop.permute.xlu1 %1885  ;;  %v1883_v52 = vpop.permute.xlu0 %1882 }
0x29a8   :  { %2187 = vrot.lane.b32.xlu1 %v1886_v51, %s11166_s20  ;;  %2185 = vrot.lane.b32.xlu0 %v1883_v52, %s11166_s20  ;;  %v1903_v15 = vcombine.low %v1876_v46, %v1886_v51  ;;  %v1904_v16 = vcombine.high %v1876_v46, %v1886_v51 }
0x29aa   :  { %v1911_v21 = vrot.slane %v1903_v15, %v11871_v14  ;;  %v1918_v4 = vrot.slane %v1904_v16, %v11871_v14 }
0x29ab   :  { %v11850_v53 = vpop.permute.xlu1 %1891  ;;  %v1889_v54 = vpop.permute.xlu0 %1888 }
0x29ac   :  { %2191 = vrot.lane.b32.xlu1 %v11850_v53, %s11166_s20  ;;  %2189 = vrot.lane.b32.xlu0 %v1889_v54, %s11166_s20  ;;  %v1919_v11 = vcombine.low %v1883_v52, %v1889_v54  ;;  %v1920_v12 = vcombine.high %v1883_v52, %v1889_v54 }
0x29ae   :  { %v1927_v5 = vrot.slane %v1919_v11, %v11871_v14  ;;  %v1934_v20 = vrot.slane %v1920_v12, %v11871_v14 }
0x29af   :  { %v11855_v56 = vpop.permute.xlu1 %1897  ;;  %v11857_v57 = vpop.permute.xlu0 %1894 }
0x29b0   :  { %2195 = vrot.lane.b32.xlu1 %v11855_v56, %s11166_s20  ;;  %2193 = vrot.lane.b32.xlu0 %v11857_v57, %s11166_s20  ;;  %v1967_v23 = vcombine.low %v1911_v21, %v1927_v5  ;;  %v1968_v24 = vcombine.high %v1911_v21, %v1927_v5  ;;  %v1983_v26 = vcombine.low %v1918_v4, %v1934_v20 }
0x29b1   :  { %v1984_v27 = vcombine.high %v1918_v4, %v1934_v20  ;;  %v1935_v41 = vcombine.low %v11850_v53, %v11855_v56  ;;  %v1936_v42 = vcombine.high %v11850_v53, %v11855_v56 }
0x29b2   :  { %v1975_v28 = vrot.slane %v1967_v23, %v11877_v22  ;;  %v1982_v30 = vrot.slane %v1968_v24, %v11877_v22  ;;  %v1991_v31 = vrot.slane %v1983_v26, %v11877_v22 }
0x29b3   :  { %v11863_v59 = vpop.permute.xlu0 %1900  ;;  %v1998_v32 = vrot.slane %v1984_v27, %v11877_v22  ;;  %v2184_v43 = vpop.permute.xlu1 %2183 }
0x29b4   :  { %2489 = vrot.lane.b32.xlu1 %v1883_v52, %s11140_s25  ;;  %2197 = vrot.lane.b32.xlu0 %v11863_v59, %s11166_s20  ;;  %v9282_v33 = vcombine.low %v1975_v28, %v1982_v30  ;;  %v9284_v34 = vcombine.high %v1975_v28, %v1982_v30  ;;  %v1951_v38 = vcombine.low %v11857_v57, %v11863_v59 }
0x29b5   :  { %v9286_v35 = vcombine.low %v1991_v31, %v1998_v32  ;;  %v9288_v37 = vcombine.high %v1991_v31, %v1998_v32  ;;  %v1952_v61 = vcombine.high %v11857_v57, %v11863_v59  ;;  %v1950_v52 = vrot.slane %v1936_v42, %v11871_v14 }
0x29b6   :  { %v2047_v44 = vrot.slane %v9282_v33, %v11871_v14  ;;  %v2063_v45 = vrot.slane %v9284_v34, %v11871_v14  ;;  %v1959_v48 = vrot.slane %v1951_v38, %v11871_v14 }
0x29b7   :  { %v2095_v47 = vrot.slane %v9288_v37, %v11871_v14  ;;  %v1966_v49 = vrot.slane %v1952_v61, %v11871_v14 }
0x29b8   :  { %2491 = vrot.lane.b32.xlu1 %v1886_v51, %s11140_s25  ;;  %2487 = vrot.lane.b32.xlu0 %v1876_v46, %s11140_s25  ;;  %v2079_v46 = vrot.slane %v9286_v35, %v11871_v14  ;;  %v1943_v51 = vrot.slane %v1935_v41, %v11871_v14  ;;  %v2103_v62 = vcombine.low %v2047_v44, %v2063_v45 }
0x29b9   :  { %v2104_v6 = vcombine.high %v2047_v44, %v2063_v45  ;;  %v2015_v11 = vcombine.low %v1950_v52, %v1966_v49  ;;  %v2016_v12 = vcombine.high %v1950_v52, %v1966_v49 }
0x29ba   :  { %v2135_v1 = vcombine.low %v2079_v46, %v2095_v47  ;;  %v2136_v7 = vcombine.high %v2079_v46, %v2095_v47  ;;  %v1999_v9 = vcombine.low %v1943_v51, %v1959_v48  ;;  %v2000_v10 = vcombine.high %v1943_v51, %v1959_v48 }
0x29bb   :  { %v2111_v20 = vrot.slane %v2103_v62, %v11877_v22  ;;  %v11902_v4 = vrot.slane %v2104_v6, %v11877_v22  ;;  %v11910_v30 = vrot.slane %v2015_v11, %v11877_v22  ;;  %v11913_v31 = vrot.slane %v2016_v12, %v11877_v22 }
0x29bc   :  { %2493 = vrot.lane.b32.xlu0 %v1889_v54, %s11140_s25  ;;  %v2143_v21 = vrot.slane %v2135_v1, %v11877_v22  ;;  %v11905_v23 = vrot.slane %v2136_v7, %v11877_v22  ;;  %v2007_v27 = vrot.slane %v1999_v9, %v11877_v22  ;;  %v2014_v28 = vrot.slane %v2000_v10, %v11877_v22 }
0x29bd   :  { %v9287_v49 = vcombine.low %v11910_v30, %v11913_v31  ;;  %v9289_v51 = vcombine.high %v11910_v30, %v11913_v31 }
0x29be   :  { %v11919_v38 = vcombine.low %v2111_v20, %v2143_v21  ;;  %v11921_v61 = vcombine.high %v2111_v20, %v2143_v21  ;;  %v11925_v41 = vcombine.low %v11902_v4, %v11905_v23  ;;  %v9283_v47 = vcombine.low %v2007_v27, %v2014_v28 }
0x29bf   :  { %v9285_v48 = vcombine.high %v2007_v27, %v2014_v28 }
0x29c0   :  { %v2175_v9 = vpack.c.bf16 %v11919_v38, %v11919_v38  ;;  %v2176_v10 = vpack.c.bf16 %v11921_v61, %v11921_v61 }
0x2a1a   :  { %v2188_v54 = vpop.permute.xlu1 %2187  ;;  %v2186_v60 = vpop.permute.xlu0 %2185 }
0x2a1b   :  { %v2207_v15 = vcombine.low %v2184_v43, %v2188_v54  ;;  %v2208_v16 = vcombine.high %v2184_v43, %v2188_v54 }
0x2a1d   :  { %v2215_v32 = vrot.slane %v2207_v15, %v11871_v14  ;;  %v2222_v33 = vrot.slane %v2208_v16, %v11871_v14 }
0x2a1e   :  { %v2192_v17 = vpop.permute.xlu1 %2191  ;;  %v2190_v5 = vpop.permute.xlu0 %2189 }
0x2a1f   :  { %v2223_v24 = vcombine.low %v2186_v60, %v2190_v5  ;;  %v2224_v26 = vcombine.high %v2186_v60, %v2190_v5 }
0x2a21   :  { %v2231_v34 = vrot.slane %v2223_v24, %v11871_v14  ;;  %v2238_v35 = vrot.slane %v2224_v26, %v11871_v14  ;;  %v11940_v24 = vrot.slane %v9283_v47, %v11871_v14 }
0x2a22   :  { %v2196_v37 = vpop.permute.xlu1 %2195  ;;  %v2194_v46 = vpop.permute.xlu0 %2193 }
0x2a23   :  { %v2271_v42 = vcombine.low %v2215_v32, %v2231_v34  ;;  %v2272_v43 = vcombine.high %v2215_v32, %v2231_v34  ;;  %v2287_v44 = vcombine.low %v2222_v33, %v2238_v35  ;;  %v2288_v45 = vcombine.high %v2222_v33, %v2238_v35 }
0x2a24   :  { %v2239_v1 = vcombine.low %v2192_v17, %v2196_v37  ;;  %v2240_v6 = vcombine.high %v2192_v17, %v2196_v37  ;;  %v11943_v17 = vrot.slane %v9285_v48, %v11871_v14 }
0x2a25   :  { %v2279_v52 = vrot.slane %v2271_v42, %v11877_v22  ;;  %v2286_v54 = vrot.slane %v2272_v43, %v11877_v22  ;;  %v2295_v60 = vrot.slane %v2287_v44, %v11877_v22  ;;  %v2302_v62 = vrot.slane %v2288_v45, %v11877_v22 }
0x2a26   :  { %v2490_v7 = vpop.permute.xlu1 %2489  ;;  %v2198_v5 = vpop.permute.xlu0 %2197  ;;  %v2247_v33 = vrot.slane %v2239_v1, %v11871_v14  ;;  %v2254_v34 = vrot.slane %v2240_v6, %v11871_v14  ;;  %v2119_v61 = vcombine.low %v11940_v24, %v11943_v17 }
0x2a27   :  { %v9290_v11 = vcombine.low %v2279_v52, %v2286_v54  ;;  %v9292_v12 = vcombine.high %v2279_v52, %v2286_v54  ;;  %v9294_v15 = vcombine.low %v2295_v60, %v2302_v62  ;;  %v9296_v16 = vcombine.high %v2295_v60, %v2302_v62 }
0x2a28   :  { %v2255_v20 = vcombine.low %v2194_v46, %v2198_v5  ;;  %v2256_v21 = vcombine.high %v2194_v46, %v2198_v5 }
0x2a29   :  { %v2351_v26 = vrot.slane %v9290_v11, %v11871_v14  ;;  %v2367_v27 = vrot.slane %v9292_v12, %v11871_v14  ;;  %v2383_v28 = vrot.slane %v9294_v15, %v11871_v14  ;;  %v2399_v32 = vrot.slane %v9296_v16, %v11871_v14 }
0x2a2a   :  { %v2263_v35 = vrot.slane %v2255_v20, %v11871_v14  ;;  %v2270_v37 = vrot.slane %v2256_v21, %v11871_v14  ;;  %v2492_v42 = vpop.permute.xlu1 %2491  ;;  %v2488_v43 = vpop.permute.xlu0 %2487 }
0x2a2b   :  { %v2407_v44 = vcombine.low %v2351_v26, %v2367_v27  ;;  %v2439_v45 = vcombine.low %v2383_v28, %v2399_v32  ;;  %v2408_v46 = vcombine.high %v2351_v26, %v2367_v27  ;;  %v2440_v47 = vcombine.high %v2383_v28, %v2399_v32 }
0x2a2c   :  { %v2303_v48 = vcombine.low %v2247_v33, %v2263_v35  ;;  %v2304_v52 = vcombine.high %v2247_v33, %v2263_v35  ;;  %v2319_v54 = vcombine.low %v2254_v34, %v2270_v37  ;;  %v2320_v60 = vcombine.high %v2254_v34, %v2270_v37 }
0x2a2d   :  { %v2511_v62 = vcombine.low %v2488_v43, %v2492_v42  ;;  %v2512_v11 = vcombine.high %v2488_v43, %v2492_v42  ;;  %v2415_v1 = vrot.slane %v2407_v44, %v11877_v22  ;;  %v2447_v6 = vrot.slane %v2439_v45, %v11877_v22 }
0x2a2e   :  { %v2311_v12 = vrot.slane %v2303_v48, %v11877_v22  ;;  %v2318_v15 = vrot.slane %v2304_v52, %v11877_v22  ;;  %v2327_v16 = vrot.slane %v2319_v54, %v11877_v22  ;;  %v2334_v5 = vrot.slane %v2320_v60, %v11877_v22  ;;  %v2494_v26 = vpop.permute.xlu0 %2493 }
0x2a2f   :  { %v2519_v20 = vrot.slane %v2511_v62, %v11871_v14  ;;  %v2526_v21 = vrot.slane %v2512_v11, %v11871_v14  ;;  %v2471_v27 = vcombine.low %v2415_v1, %v2447_v6  ;;  %v2472_v28 = vcombine.high %v2415_v1, %v2447_v6 }
0x2a30   :  { %v9291_v32 = vcombine.low %v2311_v12, %v2318_v15  ;;  %v9293_v33 = vcombine.high %v2311_v12, %v2318_v15  ;;  %v9295_v34 = vcombine.low %v2327_v16, %v2334_v5  ;;  %v9297_v35 = vcombine.high %v2327_v16, %v2334_v5 }
0x2a31   :  { %v2527_v37 = vcombine.low %v2490_v7, %v2494_v26  ;;  %v2528_v42 = vcombine.high %v2490_v7, %v2494_v26  ;;  %v2479_v43 = vpack.c.bf16 %v2471_v27, %v2471_v27  ;;  %v2480_v44 = vpack.c.bf16 %v2472_v28, %v2472_v28 }
0x2a32   :  { %v2422_v45 = vrot.slane %v2408_v46, %v11877_v22  ;;  %v2454_v48 = vrot.slane %v2440_v47, %v11877_v22  ;;  %v2358_v52 = vrot.slane %v9291_v32, %v11871_v14  ;;  %v2374_v54 = vrot.slane %v9293_v33, %v11871_v14 }
0x2a33   :  { %v2535_v60 = vrot.slane %v2527_v37, %v11871_v14  ;;  %v2542_v62 = vrot.slane %v2528_v42, %v11871_v14  ;;  %v2796_v11 = vsel %vm2791_vm9, %v2479_v43, 0  ;;  %v2842_v1 = vsel %vm2791_vm9, %v2480_v44, 0 }
0x2a34   :  { %9824 = vmatpush3.bf16.xpose.msra.mxu0 %v2796_v11  ;;  %9830 = vmatpush3.bf16.xpose.msra.mxu1 %v2842_v1  ;;  %v2473_v7 = vcombine.low %v2422_v45, %v2454_v48  ;;  %v2474_v6 = vcombine.high %v2422_v45, %v2454_v48  ;;  %v2390_v46 = vrot.slane %v9295_v34, %v11871_v14 }
0x2a35   :  { %v2575_v12 = vcombine.low %v2519_v20, %v2535_v60  ;;  %v2576_v47 = vcombine.high %v2519_v20, %v2535_v60  ;;  %v2591_v15 = vcombine.low %v2526_v21, %v2542_v62  ;;  %v2592_v16 = vcombine.high %v2526_v21, %v2542_v62  ;;  %9835 = vmatprep.subr.bf16.mxu0 %v11163_v0 }
0x2a36   :  { %9841 = vmatprep.subr.bf16.mxu1 %v11163_v0  ;;  %v2481_v5 = vpack.c.bf16 %v2473_v7, %v2473_v7  ;;  %v2482_v26 = vpack.c.bf16 %v2474_v6, %v2474_v6  ;;  %v2406_v27 = vrot.slane %v9297_v35, %v11871_v14  ;;  %v2423_v28 = vcombine.low %v2358_v52, %v2374_v54 }
0x2a37   :  { %v2583_v32 = vrot.slane %v2575_v12, %v11877_v22  ;;  %v2590_v33 = vrot.slane %v2576_v47, %v11877_v22  ;;  %v2599_v37 = vrot.slane %v2591_v15, %v11877_v22  ;;  %v2606_v34 = vrot.slane %v2592_v16, %v11877_v22 }
0x2a38   :  { %v2431_v20 = vrot.slane %v2423_v28, %v11877_v22  ;;  %v2455_v21 = vcombine.low %v2390_v46, %v2406_v27  ;;  %v11982_v42 = vrot.slane %v9287_v49, %v11871_v14  ;;  %v11988_v35 = vrot.slane %v9289_v51, %v11871_v14 }
0x2a39   :  { %v9298_v43 = vcombine.low %v2583_v32, %v2590_v33  ;;  %v9300_v44 = vcombine.high %v2583_v32, %v2590_v33  ;;  %v9302_v45 = vcombine.low %v2599_v37, %v2606_v34  ;;  %v9304_v48 = vcombine.high %v2599_v37, %v2606_v34 }
0x2a3a   :  { %v2170_v60 = vcombine.high %v11902_v4, %v11905_v23  ;;  %v2463_v62 = vrot.slane %v2455_v21, %v11877_v22  ;;  %v2424_v11 = vcombine.high %v2358_v52, %v2374_v54  ;;  %v2456_v1 = vcombine.high %v2390_v46, %v2406_v27 }
0x2a3b   :  { %9826 = vmatmul.mubr.msk.bf16.vlgmr.msra.gmra.mrb[40].mxu0 %vm2791_vm9, %v2175_v9  ;;  %9832 = vmatmul.mubr.msk.bf16.vlgmr.msra.gmra.mrb[40].mxu1 %vm2791_vm9, %v2176_v10  ;;  %v2888_v30 = vsel %vm2791_vm9, %v2481_v5, 0  ;;  %v2934_v31 = vsel %vm2791_vm9, %v2482_v26, 0  ;;  %v2655_v4 = vrot.slane %v9298_v43, %v11871_v14  ;;  %v2671_v23 = vrot.slane %v9300_v44, %v11871_v14 }
0x2a3c   :  { %9836 = vmatpush3.bf16.xpose.msra.mxu0 %v2888_v30  ;;  %9842 = vmatpush3.bf16.xpose.msra.mxu1 %v2934_v31  ;;  %v2475_v49 = vcombine.low %v2431_v20, %v2463_v62  ;;  %v2476_v51 = vcombine.high %v2431_v20, %v2463_v62  ;;  %v2687_v38 = vrot.slane %v9302_v45, %v11871_v14 }
0x2a3d   :  { %9837 = vmatprep.mubr.msk.bf16.mxu0 %vm11164_vm0, %v11163_v0  ;;  %9843 = vmatprep.mubr.msk.bf16.mxu1 %vm11164_vm0, %v11163_v0  ;;  %v2151_v9 = vcombine.low %v11982_v42, %v11988_v35  ;;  %v2703_v10 = vrot.slane %v9304_v48, %v11871_v14  ;;  %v2438_v52 = vrot.slane %v2424_v11, %v11877_v22 }
0x2a3e   :  { %9847 = vmatprep.subr.bf16.mxu0 %v11163_v0  ;;  %9853 = vmatprep.subr.bf16.mxu1 %v11163_v0  ;;  %v2470_v54 = vrot.slane %v2456_v1, %v11877_v22  ;;  %v2712_v7 = vcombine.high %v2655_v4, %v2671_v23  ;;  %v2483_v6 = vpack.c.bf16 %v2475_v49, %v2475_v49 }
0x2a3f   :  { %v2484_v46 = vpack.c.bf16 %v2476_v51, %v2476_v51  ;;  %v2744_v47 = vcombine.high %v2687_v38, %v2703_v10  ;;  %v2177_v15 = vpack.c.bf16 %v11925_v41, %v11925_v41  ;;  %v2178_v16 = vpack.c.bf16 %v2170_v60, %v2170_v60 }
0x2a40   :  { %v2726_v12 = vrot.slane %v2712_v7, %v11877_v22  ;;  %v2127_v5 = vrot.slane %v2119_v61, %v11877_v22  ;;  %v2159_v26 = vrot.slane %v2151_v9, %v11877_v22  ;;  %v2477_v27 = vcombine.low %v2438_v52, %v2470_v54 }
0x2a41   :  { %v2711_v28 = vcombine.low %v2655_v4, %v2671_v23  ;;  %v2758_v32 = vrot.slane %v2744_v47, %v11877_v22  ;;  %v2980_v33 = vsel %vm2791_vm9, %v2483_v6, 0  ;;  %v3026_v37 = vsel %vm2791_vm9, %v2484_v46, 0 }
0x2a42   :  { %v2478_v34 = vcombine.high %v2438_v52, %v2470_v54  ;;  %v2743_v20 = vcombine.low %v2687_v38, %v2703_v10  ;;  %v2120_v41 = vcombine.high %v11940_v24, %v11943_v17  ;;  %v2171_v44 = vcombine.low %v2127_v5, %v2159_v26 }
0x2a43   :  { %9838 = vmatmul.mubr.msk.bf16.vlgmr.msra.gmra.mrb[44].mxu0 %vm2791_vm9, %v2177_v15  ;;  %9844 = vmatmul.mubr.msk.bf16.vlgmr.msra.gmra.mrb[44].mxu1 %vm2791_vm9, %v2178_v16  ;;  %v12031_v21 = vcombine.high %v2726_v12, %v2758_v32  ;;  %v12033_v43 = vcombine.low %v2726_v12, %v2758_v32  ;;  %v2172_v45 = vcombine.high %v2127_v5, %v2159_v26 }
0x2a44   :  { %9848 = vmatpush3.bf16.xpose.msra.mxu0 %v2980_v33  ;;  %9854 = vmatpush3.bf16.xpose.msra.mxu1 %v3026_v37  ;;  %v2152_v48 = vcombine.high %v11982_v42, %v11988_v35  ;;  %v2485_v24 = vpack.c.bf16 %v2477_v27, %v2477_v27  ;;  %v2486_v17 = vpack.c.bf16 %v2478_v34, %v2478_v34 }
0x2a45   :  { %9849 = vmatprep.mubr.msk.bf16.mxu0 %vm11164_vm0, %v11163_v0  ;;  %9855 = vmatprep.mubr.msk.bf16.mxu1 %vm11164_vm0, %v11163_v0  ;;  %v2719_v60 = vrot.slane %v2711_v28, %v11877_v22  ;;  %v2751_v62 = vrot.slane %v2743_v20, %v11877_v22  ;;  %v2179_v11 = vpack.c.bf16 %v2171_v44, %v2171_v44 }
0x2a46   :  { %9859 = vmatprep.subr.bf16.mxu0 %v11163_v0  ;;  %9865 = vmatprep.subr.bf16.mxu1 %v11163_v0  ;;  %v2180_v1 = vpack.c.bf16 %v2172_v45, %v2172_v45  ;;  %v2134_v30 = vrot.slane %v2120_v41, %v11877_v22  ;;  %v2166_v31 = vrot.slane %v2152_v48, %v11877_v22  ;;  %v3072_v42 = vsel %vm2791_vm9, %v2485_v24, 0 }
0x2a47   :  { %v3118_v35 = vsel %vm2791_vm9, %v2486_v17, 0  ;;  %v2775_v4 = vcombine.low %v2719_v60, %v2751_v62  ;;  %v2776_v23 = vcombine.high %v2719_v60, %v2751_v62 }
0x2a48   :  { %v2173_v49 = vcombine.low %v2134_v30, %v2166_v31  ;;  %v2174_v51 = vcombine.high %v2134_v30, %v2166_v31 }
0x2a49   :  { %v2783_v38 = vpack.c.bf16 %v2775_v4, %v2775_v4  ;;  %v2784_v61 = vpack.c.bf16 %v2776_v23, %v2776_v23 }
0x2a4a   :  { %v2181_v9 = vpack.c.bf16 %v2173_v49, %v2173_v49  ;;  %v2182_v10 = vpack.c.bf16 %v2174_v51, %v2174_v51 }
0x2a4b   :  { %9850 = vmatmul.mubr.msk.bf16.vlgmr.msra.gmra.mrb[48].mxu0 %vm2791_vm9, %v2179_v11  ;;  %9856 = vmatmul.mubr.msk.bf16.vlgmr.msra.gmra.mrb[48].mxu1 %vm2791_vm9, %v2180_v1  ;;  %v3261_v52 = vsel %vm1013_vm5, %v2783_v38, 0  ;;  %v3307_v54 = vsel %vm1013_vm5, %v2784_v61, 0 }
0x2a4c   :  { %9860 = vmatpush3.bf16.xpose.msra.mxu0 %v3072_v42  ;;  %9866 = vmatpush3.bf16.xpose.msra.mxu1 %v3118_v35 }
0x2a4d   :  { %9861 = vmatprep.mubr.msk.bf16.mxu0 %vm11164_vm0, %v11163_v0  ;;  %9867 = vmatprep.mubr.msk.bf16.mxu1 %vm11164_vm0, %v11163_v0 }
0x2a4e   :  { %9871 = vmatprep.subr.bf16.mxu0 %v11163_v0  ;;  %9877 = vmatprep.subr.bf16.mxu1 %v11163_v0 }
0x2a53   :  { %9862 = vmatmul.mubr.msk.bf16.vlgmr.msra.gmra.mrb[52].mxu0 %vm2791_vm9, %v2181_v9  ;;  %9868 = vmatmul.mubr.msk.bf16.vlgmr.msra.gmra.mrb[52].mxu1 %vm2791_vm9, %v2182_v10 }
0x2a54   :  { %9872 = vmatpush3.bf16.msra.mxu0 %v3261_v52  ;;  %9878 = vmatpush3.bf16.msra.mxu1 %v3307_v54 }
0x2a55   :  { %9873 = vmatprep.mubr.msk.bf16.mxu0 %vm11164_vm0, %v11163_v0  ;;  %9879 = vmatprep.mubr.msk.bf16.mxu1 %vm11164_vm0, %v11163_v0 }
0x2a56   :  { %9883 = vmatprep.subr.bf16.mxu0 %v11163_v0  ;;  %9889 = vmatprep.subr.bf16.mxu1 %v11163_v0 }
0x2b0e   :  { %v2832_v7 = vpop.f32.mrb[40].mxu0  ;;  %v2878_v6 = vpop.f32.mrb[40].mxu1 }
0x2b0f   :  { %v9827_v46 = vpop.f32.mrb[41].mxu0  ;;  %v9833_v12 = vpop.f32.mrb[41].mxu1  ;;  %v3164_v47 = vsel %vm3160_vm10, %v2878_v6, -inf  ;;  %v3161_v15 = vsel %vm3160_vm10, %v2832_v7, -inf }
0x2b10   :  { %3165 = vmax.xlane.f32.xlu0 %v3164_v47  ;;  %v2881_v16 = vpop.f32.mrb[42].mxu1  ;;  %3162 = vmax.xlane.f32.xlu1 %v3161_v15  ;;  %v2835_v5 = vpop.f32.mrb[42].mxu0 }
0x2b11   :  { %v9828_v26 = vpop.f32.mrb[43].mxu0  ;;  %v9834_v27 = vpop.f32.mrb[43].mxu1 }
0x2b16   :  { %v2924_v28 = vpop.f32.mrb[44].mxu0  ;;  %v2970_v32 = vpop.f32.mrb[44].mxu1 }
0x2b17   :  { %v9839_v33 = vpop.f32.mrb[45].mxu0  ;;  %v9845_v37 = vpop.f32.mrb[45].mxu1  ;;  %v3170_v34 = vsel %vm3160_vm10, %v2970_v32, -inf  ;;  %v3167_v20 = vsel %vm3160_vm10, %v2924_v28, -inf }
0x2b18   :  { %v2973_v41 = vpop.f32.mrb[46].mxu1  ;;  %3171 = vmax.xlane.f32.xlu1 %v3170_v34  ;;  %3168 = vmax.xlane.f32.xlu0 %v3167_v20  ;;  %v2927_v44 = vpop.f32.mrb[46].mxu0 }
0x2b19   :  { %v9840_v45 = vpop.f32.mrb[47].mxu0  ;;  %v9846_v48 = vpop.f32.mrb[47].mxu1 }
0x2b1e   :  { %v3016_v24 = vpop.f32.mrb[48].mxu0  ;;  %v3062_v17 = vpop.f32.mrb[48].mxu1 }
0x2b1f   :  { %v9851_v60 = vpop.f32.mrb[49].mxu0  ;;  %v9857_v62 = vpop.f32.mrb[49].mxu1  ;;  %v3176_v11 = vsel %vm3160_vm10, %v3062_v17, -inf  ;;  %v3173_v1 = vsel %vm3160_vm10, %v3016_v24, -inf }
0x2b20   :  { %v3065_v30 = vpop.f32.mrb[50].mxu1  ;;  %3177 = vmax.xlane.f32.xlu1 %v3176_v11  ;;  %3174 = vmax.xlane.f32.xlu0 %v3173_v1  ;;  %v3019_v31 = vpop.f32.mrb[50].mxu0 }
0x2b21   :  { %v9852_v42 = vpop.f32.mrb[51].mxu0  ;;  %v9858_v35 = vpop.f32.mrb[51].mxu1 }
0x2b26   :  { %v3108_v4 = vpop.f32.mrb[52].mxu0  ;;  %v3154_v23 = vpop.f32.mrb[52].mxu1 }
0x2b27   :  { %v9863_v49 = vpop.f32.mrb[53].mxu0  ;;  %v9869_v51 = vpop.f32.mrb[53].mxu1  ;;  %v3182_v38 = vsel %vm3160_vm10, %v3154_v23, -inf  ;;  %v3179_v61 = vsel %vm3160_vm10, %v3108_v4, -inf }
0x2b28   :  { %v3157_v9 = vpop.f32.mrb[54].mxu1  ;;  %3183 = vmax.xlane.f32.xlu1 %v3182_v38  ;;  %3180 = vmax.xlane.f32.xlu0 %v3179_v61  ;;  %v3111_v10 = vpop.f32.mrb[54].mxu0 }
0x2b29   :  { %v9864_v52 = vpop.f32.mrb[55].mxu0  ;;  %v9870_v54 = vpop.f32.mrb[55].mxu1 }
0x2b39   :  { %2497 = vrot.lane.b32.xlu1 %v11857_v57, %s11140_s25 }
0x2b3e   :  { %2495 = vrot.lane.b32.xlu0 %v11850_v53, %s11140_s25 }
0x2b9d   :  { %v3166_v46 = vpop.xlane.xlu0 %3165  ;;  %v3163_v12 = vpop.xlane.xlu1 %3162 }
0x2b9e   :  { %v3186_v47 = vsub.f32 %v2878_v6, %v3166_v46  ;;  %v3185_v15 = vsub.f32 %v2832_v7, %v3163_v12 }
0x2ba0   :  { %v3195_v16 = vmul.f32 1.442695, %v3186_v47  ;;  %v3193_v5 = vmul.f32 1.442695, %v3185_v15 }
0x2ba2   :  { %10517 = vpow2.f32 %v3195_v16 }
0x2ba3   :  { %10519 = vpow2.f32 %v3193_v5  ;;  %v2786_v5 = vpack.c.bf16 %v12031_v21, %v12031_v21 }
0x2ba5   :  { %v3172_v26 = vpop.xlane.xlu1 %3171  ;;  %v3169_v27 = vpop.xlane.xlu0 %3168 }
0x2ba6   :  { %v3188_v33 = vsub.f32 %v2970_v32, %v3172_v26  ;;  %v3187_v37 = vsub.f32 %v2924_v28, %v3169_v27  ;;  %v2785_v27 = vpack.c.bf16 %v12033_v43, %v12033_v43 }
0x2ba8   :  { %v3199_v34 = vmul.f32 1.442695, %v3188_v33  ;;  %v3197_v20 = vmul.f32 1.442695, %v3187_v37 }
0x2baa   :  { %10521 = vpow2.f32 %v3199_v34  ;;  %v3399_v34 = vsel %vm1013_vm5, %v2786_v5, 0 }
0x2bab   :  { %10523 = vpow2.f32 %v3197_v20 }
0x2bac   :  { %v10518_v57 = vpop.eup %10517 }
0x2bad   :  { %v10520_v41 = vpop.eup %10519  ;;  %v3178_v44 = vpop.xlane.xlu1 %3177  ;;  %v3212_v45 = vsel %vm3160_vm10, %v10518_v57, 0.0 }
0x2bae   :  { %v3175_v53 = vpop.xlane.xlu0 %3174  ;;  %v3190_v6 = vsub.f32 %v3062_v17, %v3178_v44  ;;  %3213 = vadd.xlane.f32.xlu1 %v3212_v45  ;;  %v3209_v48 = vsel %vm3160_vm10, %v10520_v41, 0.0  ;;  %v3353_v44 = vsel %vm1013_vm5, %v2785_v27, 0 }
0x2baf   :  { %v3189_v7 = vsub.f32 %v3016_v24, %v3175_v53  ;;  %3210 = vadd.xlane.f32.xlu0 %v3209_v48 }
0x2bb0   :  { %v3203_v60 = vmul.f32 1.442695, %v3190_v6 }
0x2bb1   :  { %v3201_v62 = vmul.f32 1.442695, %v3189_v7 }
0x2bb2   :  { %10525 = vpow2.f32 %v3203_v60 }
0x2bb3   :  { %10527 = vpow2.f32 %v3201_v62 }
0x2bb4   :  { %v10522_v28 = vpop.eup %10521 }
0x2bb5   :  { %v12081_v32 = vpop.eup %10523  ;;  %v3218_v11 = vsel %vm3160_vm10, %v10522_v28, 0.0  ;;  %v3181_v42 = vpop.xlane.xlu0 %3180 }
0x2bb6   :  { %v3215_v1 = vsel %vm3160_vm10, %v12081_v32, 0.0  ;;  %3219 = vadd.xlane.f32.xlu0 %v3218_v11  ;;  %v3184_v35 = vpop.xlane.xlu1 %3183  ;;  %v3191_v49 = vsub.f32 %v3108_v4, %v3181_v42 }
0x2bb7   :  { %3216 = vadd.xlane.f32.xlu1 %v3215_v1  ;;  %v3192_v51 = vsub.f32 %v3154_v23, %v3184_v35 }
0x2bb8   :  { %v3205_v38 = vmul.f32 1.442695, %v3191_v49 }
0x2bb9   :  { %v3207_v61 = vmul.f32 1.442695, %v3192_v51  ;;  %v2496_v54 = vpop.permute.xlu0 %2495 }
0x2bba   :  { %10529 = vpow2.f32 %v3205_v38 }
0x2bbb   :  { %10531 = vpow2.f32 %v3207_v61 }
0x2bbc   :  { %v12086_v17 = vpop.eup %10525 }
0x2bbd   :  { %v12088_v24 = vpop.eup %10527  ;;  %v3224_v30 = vsel %vm3160_vm10, %v12086_v17, 0.0 }
0x2bbe   :  { %3225 = vadd.xlane.f32.xlu1 %v3224_v30  ;;  %v3221_v31 = vsel %vm3160_vm10, %v12088_v24, 0.0 }
0x2bbf   :  { %3222 = vadd.xlane.f32.xlu0 %v3221_v31 }
0x2bc4   :  { %v12098_v9 = vpop.eup %10529 }
0x2bc5   :  { %v12100_v10 = vpop.eup %10531  ;;  %v3227_v52 = vsel %vm3160_vm10, %v12098_v9, 0.0 }
0x2bcf   :  { %2499 = vrot.lane.b32.xlu1 %v11855_v56, %s11140_s25  ;;  %v3230_v56 = vsel %vm3160_vm10, %v12100_v10, 0.0 }
0x2bd5   :  { %2501 = vrot.lane.b32.xlu0 %v11863_v59, %s11140_s25  ;;  %v2498_v59 = vpop.permute.xlu1 %2497 }
0x2bf3   :  { %3228 = vadd.xlane.f32.xlu1 %v3227_v52 }
0x2bf4   :  { %3231 = vadd.xlane.f32.xlu0 %v3230_v56 }
0x2c3b   :  { %v3214_v4 = vpop.xlane.xlu1 %3213 }
0x2c3c   :  { %10533 = vrcp.f32 %v3214_v4  ;;  %v3211_v23 = vpop.xlane.xlu0 %3210 }
0x2c3d   :  { %10535 = vrcp.f32 %v3211_v23 }
0x2c43   :  { %v3220_v46 = vpop.xlane.xlu0 %3219 }
0x2c44   :  { %v3217_v12 = vpop.xlane.xlu1 %3216  ;;  %10537 = vrcp.f32 %v3220_v46 }
0x2c45   :  { %10539 = vrcp.f32 %v3217_v12 }
0x2c46   :  { %v10534_v47 = vpop.eup %10533 }
0x2c47   :  { %v10536_v15 = vpop.eup %10535  ;;  %v3242_v16 = vmul.f32 %v10534_v47, %v10518_v57 }
0x2c48   :  { %v3241_v26 = vmul.f32 %v10536_v15, %v10520_v41 }
0x2c49   :  { %v3250_v33 = vpack.c.bf16 %v3242_v16, %v3242_v16 }
0x2c4a   :  { %v3249_v37 = vpack.c.bf16 %v3241_v26, %v3241_v26 }
0x2c4b   :  { %9880 = vmatmul.mubr.msk.bf16.vlgmr.msra.gmra.mrb[56].mxu1 %vm3160_vm10, %v3250_v33  ;;  %v3226_v20 = vpop.xlane.xlu1 %3225 }
0x2c4c   :  { %9890 = vmatpush3.bf16.msra.mxu1 %v3399_v34  ;;  %9874 = vmatmul.mubr.msk.bf16.vlgmr.msra.gmra.mrb[56].mxu0 %vm3160_vm10, %v3249_v37  ;;  %v3223_v57 = vpop.xlane.xlu0 %3222  ;;  %10541 = vrcp.f32 %v3226_v20 }
0x2c4d   :  { %9884 = vmatpush3.bf16.msra.mxu0 %v3353_v44  ;;  %9885 = vmatprep.mubr.msk.bf16.mxu0 %vm11164_vm0, %v11163_v0  ;;  %10543 = vrcp.f32 %v3223_v57 }
0x2c4e   :  { %v10538_v21 = vpop.eup %10537  ;;  %9891 = vmatprep.mubr.msk.bf16.mxu1 %vm11164_vm0, %v11163_v0  ;;  %9895 = vmatprep.subr.bf16.mxu0 %v11163_v0 }
0x2c4f   :  { %v10540_v43 = vpop.eup %10539  ;;  %v2500_v41 = vpop.permute.xlu1 %2499  ;;  %v3244_v53 = vmul.f32 %v10538_v21, %v10522_v28  ;;  %9901 = vmatprep.subr.bf16.mxu1 %v11163_v0 }
0x2c50   :  { %v2543_v45 = vcombine.low %v2496_v54, %v2500_v41  ;;  %v2544_v6 = vcombine.high %v2496_v54, %v2500_v41  ;;  %v2502_v7 = vpop.permute.xlu0 %2501  ;;  %v3243_v48 = vmul.f32 %v10540_v43, %v12081_v32 }
0x2c51   :  { %v2559_v60 = vcombine.low %v2498_v59, %v2502_v7  ;;  %v2560_v62 = vcombine.high %v2498_v59, %v2502_v7  ;;  %v3252_v11 = vpack.c.bf16 %v3244_v53, %v3244_v53 }
0x2c52   :  { %v2551_v1 = vrot.slane %v2543_v45, %v11871_v14  ;;  %v2558_v30 = vrot.slane %v2544_v6, %v11871_v14  ;;  %v3251_v31 = vpack.c.bf16 %v3243_v48, %v3243_v48 }
0x2c53   :  { %v2567_v42 = vrot.slane %v2559_v60, %v11871_v14  ;;  %v2574_v35 = vrot.slane %v2560_v62, %v11871_v14  ;;  %9892 = vmatmul.mubr.msk.bf16.vlgmr.msra.gmra.mrb[60].mxu1 %vm3160_vm10, %v3252_v11 }
0x2c54   :  { %9886 = vmatmul.mubr.msk.bf16.vlgmr.msra.gmra.mrb[60].mxu0 %vm3160_vm10, %v3251_v31  ;;  %9903 = vmatprep.mubr.msk.bf16.mxu1 %vm11164_vm0, %v11163_v0 }
0x2c55   :  { %v2607_v28 = vcombine.low %v2551_v1, %v2567_v42  ;;  %v2608_v32 = vcombine.high %v2551_v1, %v2567_v42  ;;  %v2623_v49 = vcombine.low %v2558_v30, %v2574_v35  ;;  %v2624_v51 = vcombine.high %v2558_v30, %v2574_v35  ;;  %9897 = vmatprep.mubr.msk.bf16.mxu0 %vm11164_vm0, %v11163_v0 }
0x2c56   :  { %v10542_v33 = vpop.eup %10541 }
0x2c57   :  { %v2615_v38 = vrot.slane %v2607_v28, %v11877_v22  ;;  %v2622_v61 = vrot.slane %v2608_v32, %v11877_v22  ;;  %v2631_v52 = vrot.slane %v2623_v49, %v11877_v22  ;;  %v2638_v56 = vrot.slane %v2624_v51, %v11877_v22  ;;  %v10544_v57 = vpop.eup %10543 }
0x2c58   :  { %v3245_v7 = vmul.f32 %v10544_v57, %v12088_v24  ;;  %v3246_v48 = vmul.f32 %v10542_v33, %v12086_v17 }
0x2c59   :  { %v9299_v59 = vcombine.low %v2615_v38, %v2622_v61  ;;  %v9301_v54 = vcombine.high %v2615_v38, %v2622_v61  ;;  %v9303_v4 = vcombine.low %v2631_v52, %v2638_v56  ;;  %v9305_v23 = vcombine.high %v2631_v52, %v2638_v56  ;;  %v1809_v52 = vld [vmem:[#allocation20] sm:$0x3]  ;;  %v1810_v56 = vld [vmem:[#allocation20 + $0x2] sm:$0x3] }
0x2c5a   :  { %v3253_v30 = vpack.c.bf16 %v3245_v7, %v3245_v7  ;;  %v3254_v31 = vpack.c.bf16 %v3246_v48, %v3246_v48 }
0x2c5b   :  { %v2662_v46 = vrot.slane %v9299_v59, %v11871_v14  ;;  %v2678_v12 = vrot.slane %v9301_v54, %v11871_v14  ;;  %v2694_v47 = vrot.slane %v9303_v4, %v11871_v14  ;;  %v2710_v15 = vrot.slane %v9305_v23, %v11871_v14  ;;  %v1811_v54 = vld [vmem:[#allocation20 + $0x4] sm:$0x3] }
0x2c5c   :  { %v3637_v59 = vsel %vm1009_vm3, %v1809_v52, 0 }
0x2c5d   :  { %v2727_v16 = vcombine.low %v2662_v46, %v2678_v12  ;;  %v2759_v5 = vcombine.low %v2694_v47, %v2710_v15  ;;  %v2728_v26 = vcombine.high %v2662_v46, %v2678_v12  ;;  %v2760_v27 = vcombine.high %v2694_v47, %v2710_v15 }
0x2c5f   :  { %v2735_v37 = vrot.slane %v2727_v16, %v11877_v22  ;;  %v2767_v34 = vrot.slane %v2759_v5, %v11877_v22  ;;  %v2742_v20 = vrot.slane %v2728_v26, %v11877_v22  ;;  %v2774_v44 = vrot.slane %v2760_v27, %v11877_v22 }
0x2c60   :  { %v3729_v26 = vsel %vm1009_vm3, %v1811_v54, 0 }
0x2c61   :  { %v2779_v21 = vcombine.low %v2735_v37, %v2767_v34  ;;  %v2780_v43 = vcombine.high %v2735_v37, %v2767_v34  ;;  %v2781_v41 = vcombine.low %v2742_v20, %v2774_v44  ;;  %v2782_v53 = vcombine.high %v2742_v20, %v2774_v44  ;;  %v1814_v34 = vld [vmem:[#allocation20 + $0xa] sm:$0x3]  ;;  %v1813_v20 = vld [vmem:[#allocation20 + $0x8] sm:$0x3] }
0x2c62   :  { %v3821_v7 = vsel %vm1009_vm3, %v1813_v20, 0 }
0x2c63   :  { %v2787_v45 = vpack.c.bf16 %v2779_v21, %v2779_v21  ;;  %v2788_v6 = vpack.c.bf16 %v2780_v43, %v2780_v43  ;;  %v2789_v11 = vpack.c.bf16 %v2781_v41, %v2781_v41  ;;  %v2790_v1 = vpack.c.bf16 %v2782_v53, %v2782_v53 }
0x2c64   :  { %v3867_v41 = vsel %vm1009_vm3, %v1814_v34, 0 }
0x2c65   :  { %v3445_v60 = vsel %vm1013_vm5, %v2787_v45, 0  ;;  %v3491_v62 = vsel %vm1013_vm5, %v2788_v6, 0  ;;  %v3537_v17 = vsel %vm1013_vm5, %v2789_v11, 0  ;;  %v3583_v24 = vsel %vm1013_vm5, %v2790_v1, 0  ;;  %v1815_v11 = vld [vmem:[#allocation20 + $0xc] sm:$0x3] }
0x2c66   :  { %9896 = vmatpush3.bf16.msra.mxu0 %v3445_v60  ;;  %9902 = vmatpush3.bf16.msra.mxu1 %v3491_v62  ;;  %v1816_v1 = vld [vmem:[#allocation20 + $0xe] sm:$0x3] }
0x2c67   :  { %9907 = vmatprep.subr.bf16.mxu0 %v11163_v0  ;;  %9913 = vmatprep.subr.bf16.mxu1 %v11163_v0 }
0x2c69   :  { %9898 = vmatmul.mubr.msk.bf16.vlgmr.msra.gmra.mrb[64].mxu0 %vm3160_vm10, %v3253_v30  ;;  %9904 = vmatmul.mubr.msk.bf16.vlgmr.msra.gmra.mrb[64].mxu1 %vm3160_vm10, %v3254_v31 }
0x2c6a   :  { %9908 = vmatpush3.bf16.msra.mxu0 %v3537_v17  ;;  %9914 = vmatpush3.bf16.msra.mxu1 %v3583_v24 }
0x2c6b   :  { %9909 = vmatprep.mubr.msk.bf16.mxu0 %vm11164_vm0, %v11163_v0  ;;  %9915 = vmatprep.mubr.msk.bf16.mxu1 %vm11164_vm0, %v11163_v0 }
0x2c6c   :  { %9919 = vmatprep.subr.bf16.mxu0 %v11163_v0  ;;  %9925 = vmatprep.subr.bf16.mxu1 %v11163_v0 }
0x2c80   :  { %v3229_v42 = vpop.xlane.xlu1 %3228 }
0x2c81   :  { %10545 = vrcp.f32 %v3229_v42  ;;  %v3232_v35 = vpop.xlane.xlu0 %3231 }
0x2c82   :  { %10547 = vrcp.f32 %v3232_v35 }
0x2c8b   :  { %v10546_v28 = vpop.eup %10545 }
0x2c8c   :  { %v10548_v32 = vpop.eup %10547  ;;  %v3247_v49 = vmul.f32 %v10546_v28, %v12098_v9  ;;  %v3683_v9 = vsel %vm1009_vm3, %v1810_v56, 0  ;;  %v3913_v28 = vsel %vm1009_vm3, %v1815_v11, 0 }
0x2c8d   :  { %v3248_v51 = vmul.f32 %v10548_v32, %v12100_v10  ;;  %v1812_v10 = vld [vmem:[#allocation20 + $0x6] sm:$0x3]  ;;  %v3959_v32 = vsel %vm1009_vm3, %v1816_v1, 0 }
0x2c8e   :  { %v3255_v38 = vpack.c.bf16 %v3247_v49, %v3247_v49  ;;  %v3775_v47 = vsel %vm1009_vm3, %v1812_v10, 0 }
0x2c8f   :  { %v3256_v61 = vpack.c.bf16 %v3248_v51, %v3248_v51 }
0x2c90   :  { %9910 = vmatmul.mubr.msk.bf16.vlgmr.msra.gmra.mrb[68].mxu0 %vm3160_vm10, %v3255_v38 }
0x2c91   :  { %9916 = vmatmul.mubr.msk.bf16.vlgmr.msra.gmra.mrb[68].mxu1 %vm3160_vm10, %v3256_v61  ;;  %9921 = vmatprep.mubr.msk.bf16.mxu0 %vm11164_vm0, %v11163_v0 }
0x2c92   :  { %9927 = vmatprep.mubr.msk.bf16.mxu1 %vm11164_vm0, %v11163_v0  ;;  %9920 = vmatpush3.bf16.msra.mxu0 %v3637_v59 }
0x2c93   :  { %9926 = vmatpush3.bf16.msra.mxu1 %v3683_v9  ;;  %9931 = vmatprep.subr.bf16.mxu0 %v11163_v0 }
0x2c94   :  { %9937 = vmatprep.subr.bf16.mxu1 %v11163_v0 }
0x2d1e   :  { %v3343_v4 = vpop.f32.mrb[56].mxu1 }
0x2d1f   :  { %v3297_v23 = vpop.f32.mrb[56].mxu0  ;;  %v3626_v46 = vpack.c.bf16 %v3343_v4, %v3343_v4  ;;  %v9881_v12 = vpop.f32.mrb[57].mxu1 }
0x2d20   :  { %v3625_v15 = vpack.c.bf16 %v3297_v23, %v3297_v23  ;;  %v9875_v16 = vpop.f32.mrb[57].mxu0  ;;  %v3346_v5 = vpop.f32.mrb[58].mxu1 }
0x2d21   :  { %v3300_v27 = vpop.f32.mrb[58].mxu0  ;;  %v9882_v33 = vpop.f32.mrb[59].mxu1  ;;  %9928 = vmatmul.mubr.msk.bf16.vlgmr.msra.gmra.mrb[72].mxu1 %vm2791_vm9, %v3626_v46 }
0x2d22   :  { %v9876_v37 = vpop.f32.mrb[59].mxu0  ;;  %9922 = vmatmul.mubr.msk.bf16.vlgmr.msra.gmra.mrb[72].mxu0 %vm2791_vm9, %v3625_v15  ;;  %9938 = vmatpush3.bf16.msra.mxu1 %v3775_v47 }
0x2d23   :  { %9932 = vmatpush3.bf16.msra.mxu0 %v3729_v26  ;;  %9933 = vmatprep.mubr.msk.bf16.mxu0 %vm11164_vm0, %v11163_v0 }
0x2d24   :  { %9939 = vmatprep.mubr.msk.bf16.mxu1 %vm11164_vm0, %v11163_v0  ;;  %9943 = vmatprep.subr.bf16.mxu0 %v11163_v0 }
0x2d25   :  { %9949 = vmatprep.subr.bf16.mxu1 %v11163_v0 }
0x2d26   :  { %v3435_v44 = vpop.f32.mrb[60].mxu1 }
0x2d27   :  { %v3389_v57 = vpop.f32.mrb[60].mxu0  ;;  %v3628_v21 = vpack.c.bf16 %v3435_v44, %v3435_v44  ;;  %v9893_v43 = vpop.f32.mrb[61].mxu1 }
0x2d28   :  { %v3627_v53 = vpack.c.bf16 %v3389_v57, %v3389_v57  ;;  %v9887_v45 = vpop.f32.mrb[61].mxu0  ;;  %v3438_v6 = vpop.f32.mrb[62].mxu1 }
0x2d29   :  { %v3392_v48 = vpop.f32.mrb[62].mxu0  ;;  %v9894_v60 = vpop.f32.mrb[63].mxu1  ;;  %9940 = vmatmul.mubr.msk.bf16.vlgmr.msra.gmra.mrb[76].mxu1 %vm2791_vm9, %v3628_v21 }
0x2d2a   :  { %v9888_v62 = vpop.f32.mrb[63].mxu0  ;;  %9934 = vmatmul.mubr.msk.bf16.vlgmr.msra.gmra.mrb[76].mxu0 %vm2791_vm9, %v3627_v53  ;;  %9950 = vmatpush3.bf16.msra.mxu1 %v3867_v41 }
0x2d2b   :  { %9944 = vmatpush3.bf16.msra.mxu0 %v3821_v7  ;;  %9945 = vmatprep.mubr.msk.bf16.mxu0 %vm11164_vm0, %v11163_v0 }
0x2d2c   :  { %9951 = vmatprep.mubr.msk.bf16.mxu1 %vm11164_vm0, %v11163_v0  ;;  %9955 = vmatprep.subr.bf16.mxu0 %v11163_v0 }
0x2d2d   :  { %9961 = vmatprep.subr.bf16.mxu1 %v11163_v0 }
0x2d3c   :  { %v3481_v30 = vpop.f32.mrb[64].mxu0  ;;  %v3527_v31 = vpop.f32.mrb[64].mxu1 }
0x2d3d   :  { %v3629_v17 = vpack.c.bf16 %v3481_v30, %v3481_v30  ;;  %v3630_v24 = vpack.c.bf16 %v3527_v31, %v3527_v31  ;;  %v9899_v42 = vpop.f32.mrb[65].mxu0  ;;  %v9905_v35 = vpop.f32.mrb[65].mxu1 }
0x2d3e   :  { %v3484_v49 = vpop.f32.mrb[66].mxu0  ;;  %v3530_v51 = vpop.f32.mrb[66].mxu1 }
0x2d3f   :  { %v9900_v38 = vpop.f32.mrb[67].mxu0  ;;  %v9906_v61 = vpop.f32.mrb[67].mxu1  ;;  %9946 = vmatmul.mubr.msk.bf16.vlgmr.msra.gmra.mrb[80].mxu0 %vm2791_vm9, %v3629_v17  ;;  %9952 = vmatmul.mubr.msk.bf16.vlgmr.msra.gmra.mrb[80].mxu1 %vm2791_vm9, %v3630_v24 }
0x2d40   :  { %9956 = vmatpush3.bf16.msra.mxu0 %v3913_v28  ;;  %9962 = vmatpush3.bf16.msra.mxu1 %v3959_v32 }
0x2d41   :  { %9957 = vmatprep.mubr.msk.bf16.mxu0 %vm11164_vm0, %v11163_v0  ;;  %9963 = vmatprep.mubr.msk.bf16.mxu1 %vm11164_vm0, %v11163_v0 }
0x2d42   :  { %9967 = vmatprep.subr.bf16.mxu0 %v11163_v0  ;;  %9975 = vmatprep.subr.bf16.mxu1 %v11163_v0 }
0x2d63   :  { %v3573_v52 = vpop.f32.mrb[68].mxu0 }
0x2d64   :  { %v3631_v56 = vpack.c.bf16 %v3573_v52, %v3573_v52  ;;  %v3619_v59 = vpop.f32.mrb[68].mxu1  ;;  %v9911_v9 = vpop.f32.mrb[69].mxu0 }
0x2d65   :  { %v3632_v10 = vpack.c.bf16 %v3619_v59, %v3619_v59  ;;  %v9917_v54 = vpop.f32.mrb[69].mxu1  ;;  %v3576_v4 = vpop.f32.mrb[70].mxu0 }
0x2d66   :  { %v3622_v23 = vpop.f32.mrb[70].mxu1  ;;  %v9912_v46 = vpop.f32.mrb[71].mxu0  ;;  %9958 = vmatmul.mubr.msk.bf16.vlgmr.msra.gmra.mrb[84].mxu0 %vm2791_vm9, %v3631_v56  ;;  %v9330_v4 = vld [vmem:[#allocation22] ss:$0 sm:$0xff] }
0x2d67   :  { %v9918_v12 = vpop.f32.mrb[71].mxu1  ;;  %9964 = vmatmul.mubr.msk.bf16.vlgmr.msra.gmra.mrb[84].mxu1 %vm2791_vm9, %v3632_v10  ;;  %9971 = vmatprep.mubr.msk.bf16.mxu0 %vm11164_vm0, %v11163_v0 }
0x2d68   :  { %9979 = vmatprep.mubr.msk.bf16.mxu1 %vm11164_vm0, %v11163_v0 }
0x2df4   :  { %v3719_v47 = vpop.f32.mrb[72].mxu1 }
0x2df5   :  { %v3673_v15 = vpop.f32.mrb[72].mxu0  ;;  %v4002_v16 = vsel %vm1837_vm8, %v3719_v47, 0.0  ;;  %v9929_v5 = vpop.f32.mrb[73].mxu1 }
0x2df6   :  { %v4001_v26 = vsel %vm1837_vm8, %v3673_v15, 0.0  ;;  %v9923_v27 = vpop.f32.mrb[73].mxu0  ;;  %v3722_v33 = vpop.f32.mrb[74].mxu1 }
0x2df7   :  { %v4003_v37 = vadd.f32 %v4002_v16, %v4001_v26  ;;  %v3676_v34 = vpop.f32.mrb[74].mxu0  ;;  %v9930_v20 = vpop.f32.mrb[75].mxu1 }
0x2df8   :  { %v9924_v44 = vpop.f32.mrb[75].mxu0 }
0x2df9   :  { %v10383_v44 = vld [vmem:[%s13210_s15] sm:$0xff]  }
0x2dfa   :  { %9968 = vmatpush3.bf16.msra.mxu0 %v10383_v44 }
0x2dfb   :  { %9969 = vmatprep.subr.bf16.mxu0 %v11163_v0 }
0x2dfc   :  { %v3811_v57 = vpop.f32.mrb[76].mxu1 }
0x2dfd   :  { %v3765_v21 = vpop.f32.mrb[76].mxu0  ;;  %v9941_v43 = vpop.f32.mrb[77].mxu1  ;;  %v4006_v60 = vsel %vm1837_vm8, %v3811_v57, 0.0  ;;  %v10384_v57 = vld [vmem:[%s13210_s15 + $0x8] sm:$0xff]  }
0x2dfe   :  { %v4004_v41 = vsel %vm1837_vm8, %v3765_v21, 0.0  ;;  %v9935_v53 = vpop.f32.mrb[77].mxu0  ;;  %v3814_v45 = vpop.f32.mrb[78].mxu1  ;;  %9970 = vmatpush3.bf16.msra.mxu0 %v10384_v57 }
0x2dff   :  { %v4005_v6 = vadd.f32 %v4004_v41, %v4003_v37  ;;  %v3768_v7 = vpop.f32.mrb[78].mxu0  ;;  %v9942_v48 = vpop.f32.mrb[79].mxu1  ;;  %9983 = vmatprep.subr.bf16.mxu0 %v11163_v0 }
0x2e00   :  { %v9936_v62 = vpop.f32.mrb[79].mxu0  ;;  %v9331_v48 = vld [vmem:[#allocation23] ss:$0 sm:$0xff] }
0x2e01   :  { %v4007_v11 = vadd.f32 %v4006_v60, %v4005_v6 }
0x2e12   :  { %v3857_v1 = vpop.f32.mrb[80].mxu0  ;;  %v3903_v30 = vpop.f32.mrb[80].mxu1 }
0x2e13   :  { %v4008_v31 = vsel %vm1837_vm8, %v3857_v1, 0.0  ;;  %v9947_v17 = vpop.f32.mrb[81].mxu0  ;;  %v9953_v24 = vpop.f32.mrb[81].mxu1  ;;  %v4010_v32 = vsel %vm1837_vm8, %v3903_v30, 0.0 }
0x2e14   :  { %v4009_v42 = vadd.f32 %v4008_v31, %v4007_v11  ;;  %v3860_v35 = vpop.f32.mrb[82].mxu0  ;;  %v3906_v28 = vpop.f32.mrb[82].mxu1  ;;  %v9332_v11 = vld [vmem:[#allocation25] ss:$0 sm:$0xff]  ;;  %v10385_v17 = vld [vmem:[#allocation28] sm:$0xff]   ;;  %v10386_v24 = vld [vmem:[#allocation28 + $0x8] sm:$0xff]  }
0x2e15   :  { %v9948_v49 = vpop.f32.mrb[83].mxu0  ;;  %v9954_v51 = vpop.f32.mrb[83].mxu1  ;;  %9976 = vmatpush3.bf16.msra.mxu1 %v10385_v17 }
0x2e16   :  { %v4011_v38 = vadd.f32 %v4010_v32, %v4009_v42  ;;  %9977 = vmatprep.subr.bf16.mxu1 %v11163_v0  ;;  %v9333_v42 = vld [vmem:[#allocation26] ss:$0 sm:$0xff] }
0x2e19   :  { %9978 = vmatpush3.bf16.msra.mxu1 %v10386_v24 }
0x2e1a   :  { %9991 = vmatprep.subr.bf16.mxu1 %v11163_v0 }
0x2e39   :  { %v3949_v61 = vpop.f32.mrb[84].mxu0 }
0x2e3a   :  { %v4012_v52 = vsel %vm1837_vm8, %v3949_v61, 0.0  ;;  %v3995_v56 = vpop.f32.mrb[84].mxu1  ;;  %v9959_v59 = vpop.f32.mrb[85].mxu0 }
0x2e3b   :  { %v4013_v9 = vadd.f32 %v4012_v52, %v4011_v38  ;;  %v9965_v10 = vpop.f32.mrb[85].mxu1  ;;  %v3952_v54 = vpop.f32.mrb[86].mxu0  ;;  %v4014_v23 = vsel %vm1837_vm8, %v3995_v56, 0.0 }
0x2e3c   :  { %v3998_v46 = vpop.f32.mrb[86].mxu1  ;;  %v9960_v12 = vpop.f32.mrb[87].mxu0  ;;  %v9337_v10 = vld [vmem:[%s13213_s18] ss:$0 sm:$0xff] }
0x2e3d   :  { %v4015_v47 = vadd.f32 %v4014_v23, %v4013_v9  ;;  %v9966_v15 = vpop.f32.mrb[87].mxu1 }
0x2e3f   :  { %v4022_v16 = vadd.f32 %v9330_v4, %v4015_v47 }
0x2e41   :  { %v4023_v5 = vadd.f32 %v4022_v16, %v11829_v39 }
0x2e43   :  { %v4026_v26 = vsel %vm1837_vm8, %v4023_v5, 0.0 }
0x2e44   :  { %4027 = vadd.xlane.f32.xlu0 %v4026_v26 }
0x2ed1   :  { %v4028_v27 = vpop.xlane.xlu0 %4027 }
0x2ed2   :  { %v4030_v33 = vmul.f32 0.03125, %v4028_v27 }
0x2ed4   :  { %v4031_v37 = vsub.f32 %v4023_v5, %v4030_v33 }
0x2ed6   :  { %v4032_v34 = vmul.f32 %v4031_v37, %v4031_v37  ;;  %v4043_v60 = vmul.f32 %v9331_v48, %v4031_v37  ;;  %v10387_v37 = vld [vmem:[#allocation17 + $0x10] sm:$0xff]   ;;  %v9342_v48 = vld [vmem:[#allocation25 + $0x1] ss:$0 sm:$0xff] }
0x2ed8   :  { %v4033_v20 = vsel %vm1837_vm8, %v4032_v34, 0.0  ;;  %v10388_v34 = vld [vmem:[#allocation17 + $0x18] sm:$0xff]  }
0x2ed9   :  { %4034 = vadd.xlane.f32.xlu1 %v4033_v20 }
0x2f66   :  { %v4035_v39 = vpop.xlane.xlu1 %4034 }
0x2f67   :  { %v4036_v21 = vmul.f32 0.032258064, %v4035_v39 }
0x2f69   :  { %10549 = vrsqrt.f32 %v4036_v21  ;;  %vm4046_vm11 = vcmp.eq.f32.partialorder %v4036_v21, inf  ;;  %v4049_v53 = vand.u32 2147483648, %v4036_v21  ;;  %vm4048_vm12 = vcmp.eq.f32.partialorder %v4036_v21, 0.0 }
0x2f73   :  { %v10550_v43 = vpop.eup %10549 }
0x2f74   :  { %v4045_v41 = vmul.f32 %v10550_v43, %v4036_v21 }
0x2f76   :  { %v4047_v45 = vsel %vm4046_vm11, %v4036_v21, %v4045_v41 }
0x2f77   :  { %v4050_v6 = vsel %vm4048_vm12, %v4049_v53, %v4047_v45  ;;  %v9341_v45 = vld [vmem:[#allocation23 + $0x1] ss:$0 sm:$0xff] }
0x2f78   :  { %v4051_v7 = vadd.f32 1e-06, %v4050_v6 }
0x2f7a   :  { %10551 = vrcp.f32 %v4051_v7 }
0x2f84   :  { %v10552_v62 = vpop.eup %10551 }
0x2f85   :  { %v4053_v1 = vmul.f32 %v10552_v62, %v4043_v60 }
0x2f87   :  { %v4060_v30 = vadd.f32 %v9332_v11, %v4053_v1  ;;  %v9343_v1 = vld [vmem:[#allocation19 + $0x1] ss:$0 sm:$0xff] }
0x2f89   :  { %v4065_v31 = vpack.c.bf16 %v4060_v30, %v4060_v30 }
0x2f8b   :  { %9972 = vmatmul.mubr.msk.bf16.vlgmr.msra.gmra.mrb[88].mxu0 %vm1837_vm8, %v4065_v31 }
0x2f8c   :  { %9987 = vmatprep.mubr.msk.bf16.mxu0 %vm11164_vm0, %v11163_v0  ;;  %9984 = vmatpush3.bf16.msra.mxu0 %v10387_v37 }
0x2f8d   :  { %9985 = vmatprep.subr.bf16.mxu0 %v11163_v0 }
0x2f90   :  { %9986 = vmatpush3.bf16.msra.mxu0 %v10388_v34 }
0x2f91   :  { %9997 = vmatprep.subr.bf16.mxu0 %v11163_v0 }
0x305e   :  { %v4122_v35 = vpop.f32.mrb[88].mxu0 }
0x305f   :  { %v4123_v28 = vadd.f32 %v9333_v42, %v4122_v35  ;;  %v9973_v32 = vpop.f32.mrb[89].mxu0 }
0x3060   :  { %v4125_v49 = vpop.f32.mrb[90].mxu0 }
0x3061   :  { %v4129_v51 = vmul.f32 0.70710677, %v4123_v28  ;;  %v9974_v38 = vpop.f32.mrb[91].mxu0  ;;  %v4128_v52 = vmul.f32 0.5, %v4123_v28 }
0x3063   :  { %10553 = verf.f32 %v4129_v51 }
0x306d   :  { %v10554_v61 = vpop.eup %10553 }
0x306e   :  { %v4131_v56 = vadd.f32 1.0, %v10554_v61 }
0x3070   :  { %v4132_v59 = vmul.f32 %v4131_v56, %v4128_v52 }
0x3072   :  { %v4137_v9 = vpack.c.bf16 %v4132_v59, %v4132_v59 }
0x3074   :  { %9980 = vmatmul.mubr.msk.bf16.vlgmr.msra.gmra.mrb[88].mxu1 %vm1837_vm8, %v4137_v9 }
0x3075   :  { %9993 = vmatprep.mubr.msk.bf16.mxu1 %vm11164_vm0, %v11163_v0 }
0x3147   :  { %v4194_v54 = vpop.f32.mrb[88].mxu1 }
0x3148   :  { %v4195_v4 = vadd.f32 %v9337_v10, %v4194_v54  ;;  %v9981_v23 = vpop.f32.mrb[89].mxu1 }
0x3149   :  { %v4197_v46 = vpop.f32.mrb[90].mxu1 }
0x314a   :  { %v4200_v12 = vadd.f32 %v4195_v4, %v4060_v30  ;;  %v9982_v47 = vpop.f32.mrb[91].mxu1 }
0x314c   :  { %v4205_v15 = vsel %vm1837_vm8, %v4200_v12, 0.0 }
0x314d   :  { %4206 = vadd.xlane.f32.xlu0 %v4205_v15 }
0x31da   :  { %v4207_v16 = vpop.xlane.xlu0 %4206 }
0x31db   :  { %v4208_v5 = vmul.f32 0.03125, %v4207_v16 }
0x31dd   :  { %v4209_v26 = vsub.f32 %v4200_v12, %v4208_v5 }
0x31df   :  { %v4210_v27 = vmul.f32 %v4209_v26, %v4209_v26  ;;  %v4221_v6 = vmul.f32 %v9341_v45, %v4209_v26 }
0x31e1   :  { %v4211_v33 = vsel %vm1837_vm8, %v4210_v27, 0.0 }
0x31e2   :  { %4212 = vadd.xlane.f32.xlu1 %v4211_v33 }
0x326f   :  { %v4213_v20 = vpop.xlane.xlu1 %4212 }
0x3270   :  { %v4214_v44 = vmul.f32 0.032258064, %v4213_v20 }
0x3272   :  { %10555 = vrsqrt.f32 %v4214_v44  ;;  %vm4224_vm13 = vcmp.eq.f32.partialorder %v4214_v44, inf  ;;  %v4227_v21 = vand.u32 2147483648, %v4214_v44  ;;  %vm4226_vm14 = vcmp.eq.f32.partialorder %v4214_v44, 0.0 }
0x327c   :  { %v10556_v57 = vpop.eup %10555 }
0x327d   :  { %v4223_v39 = vmul.f32 %v10556_v57, %v4214_v44 }
0x327f   :  { %v4225_v43 = vsel %vm4224_vm13, %v4214_v44, %v4223_v39 }
0x3280   :  { %v4228_v41 = vsel %vm4226_vm14, %v4227_v21, %v4225_v43 }
0x3281   :  { %v4229_v53 = vadd.f32 1e-06, %v4228_v41 }
0x3283   :  { %10557 = vrcp.f32 %v4229_v53 }
0x328d   :  { %v10558_v7 = vpop.eup %10557 }
0x328e   :  { %v4231_v60 = vmul.f32 %v10558_v7, %v4221_v6 }
0x3290   :  { %v12241_v62 = vadd.f32 %v9342_v48, %v4231_v60 }
0x3292   :  { %v4257_v11 = vpack.c.bf16 %v12241_v62, %v12241_v62 }
0x3294   :  { %9988 = vmatmul.mubr.msk.bf16.vlgmr.msra.gmra.mrb[92].mxu0 %vm1837_vm8, %v4257_v11 }
0x3295   :  { %9999 = vmatprep.mubr.msk.bf16.mxu0 %vm11164_vm0, %v11163_v0 }
0x3367   :  { %v4313_v30 = vpop.f32.mrb[92].mxu0 }
0x3368   :  { %v4314_v31 = vadd.f32 %v9343_v1, %v4313_v30  ;;  %v9989_v17 = vpop.f32.mrb[93].mxu0 }
0x3369   :  { %v4316_v24 = vpop.f32.mrb[94].mxu0 }
0x336a   :  { %4323 = vrot.lane.b32.xlu1 %v4314_v31, %s11168_s22  ;;  %4320 = vrot.lane.b32.xlu0 %v4314_v31, %s11169_s13  ;;  %v9990_v42 = vpop.f32.mrb[95].mxu0 }
0x336e   :  { %4326 = vrot.lane.b32.xlu1 %v4314_v31, %s11171_s27  ;;  %4329 = vrot.lane.b32.xlu0 %v4314_v31, %s11170_s10 }
0x3372   :  { %4332 = vrot.lane.b32.xlu1 %v4314_v31, %s11173_s1  ;;  %4335 = vrot.lane.b32.xlu0 %v4314_v31, %s11172_s6 }
0x3376   :  { %4338 = vrot.lane.b32.xlu1 %v4314_v31, %s11174_s23  ;;  %4621 = vrot.lane.b32.xlu0 %v4314_v31, %s11166_s20 }
0x33dc   :  { %v12256_v35 = vpop.permute.xlu1 %4323  ;;  %v12258_v28 = vpop.permute.xlu0 %4320 }
0x33dd   :  { %4625 = vrot.lane.b32.xlu0 %v12256_v35, %s11166_s20  ;;  %4623 = vrot.lane.b32.xlu1 %v12258_v28, %s11166_s20  ;;  %v4341_v59 = vcombine.low %v4314_v31, %v12256_v35  ;;  %v4342_v9 = vcombine.high %v4314_v31, %v12256_v35 }
0x33df   :  { %v4349_v4 = vrot.slane %v4341_v59, %v11871_v14  ;;  %v4356_v23 = vrot.slane %v4342_v9, %v11871_v14 }
0x33e0   :  { %v12264_v32 = vpop.permute.xlu1 %4326  ;;  %v12266_v49 = vpop.permute.xlu0 %4329 }
0x33e1   :  { %4627 = vrot.lane.b32.xlu1 %v12264_v32, %s11166_s20  ;;  %4629 = vrot.lane.b32.xlu0 %v12266_v49, %s11166_s20  ;;  %v4357_v52 = vcombine.low %v12258_v28, %v12264_v32  ;;  %v4358_v56 = vcombine.high %v12258_v28, %v12264_v32 }
0x33e3   :  { %v4365_v10 = vrot.slane %v4357_v52, %v11871_v14  ;;  %v4372_v54 = vrot.slane %v4358_v56, %v11871_v14 }
0x33e4   :  { %v12272_v51 = vpop.permute.xlu1 %4332  ;;  %v12274_v38 = vpop.permute.xlu0 %4335 }
0x33e5   :  { %4631 = vrot.lane.b32.xlu1 %v12272_v51, %s11166_s20  ;;  %4633 = vrot.lane.b32.xlu0 %v12274_v38, %s11166_s20  ;;  %v4405_v46 = vcombine.low %v4349_v4, %v4365_v10  ;;  %v4406_v12 = vcombine.high %v4349_v4, %v4365_v10  ;;  %v4421_v47 = vcombine.low %v4356_v23, %v4372_v54 }
0x33e6   :  { %v4422_v15 = vcombine.high %v4356_v23, %v4372_v54  ;;  %v4373_v21 = vcombine.low %v12266_v49, %v12274_v38  ;;  %v4374_v43 = vcombine.high %v12266_v49, %v12274_v38 }
0x33e7   :  { %v4413_v16 = vrot.slane %v4405_v46, %v11877_v22  ;;  %v4420_v5 = vrot.slane %v4406_v12, %v11877_v22  ;;  %v4429_v26 = vrot.slane %v4421_v47, %v11877_v22 }
0x33e8   :  { %v12280_v61 = vpop.permute.xlu1 %4338  ;;  %v4436_v27 = vrot.slane %v4422_v15, %v11877_v22  ;;  %v4622_v33 = vpop.permute.xlu0 %4621  ;;  %v4381_v24 = vrot.slane %v4373_v21, %v11871_v14  ;;  %v12321_v42 = vrot.slane %v4374_v43, %v11871_v14 }
0x33e9   :  { %4635 = vrot.lane.b32.xlu1 %v12280_v61, %s11166_s20  ;;  %v9347_v37 = vcombine.low %v4413_v16, %v4420_v5  ;;  %v9349_v34 = vcombine.high %v4413_v16, %v4420_v5  ;;  %v4389_v41 = vcombine.low %v12272_v51, %v12280_v61  ;;  %v4390_v53 = vcombine.high %v12272_v51, %v12280_v61 }
0x33ea   :  { %v9351_v20 = vcombine.low %v4429_v26, %v4436_v27  ;;  %v9353_v44 = vcombine.high %v4429_v26, %v4436_v27 }
0x33eb   :  { %v12308_v7 = vrot.slane %v9347_v37, %v11871_v14  ;;  %v12311_v48 = vrot.slane %v9349_v34, %v11871_v14  ;;  %v4397_v52 = vrot.slane %v4389_v41, %v11871_v14  ;;  %v4404_v56 = vrot.slane %v4390_v53, %v11871_v14 }
0x33ec   :  { %v12314_v60 = vrot.slane %v9351_v20, %v11871_v14  ;;  %v12317_v11 = vrot.slane %v9353_v44, %v11871_v14 }
0x33ed   :  { %4925 = vrot.lane.b32.xlu1 %v4314_v31, %s11140_s25  ;;  %v4541_v23 = vcombine.low %v12308_v7, %v12311_v48  ;;  %v4542_v12 = vcombine.high %v12308_v7, %v12311_v48  ;;  %v4438_v37 = vcombine.high %v4381_v24, %v4397_v52  ;;  %v4453_v34 = vcombine.low %v12321_v42, %v4404_v56 }
0x33ee   :  { %v4573_v46 = vcombine.low %v12314_v60, %v12317_v11  ;;  %v4574_v47 = vcombine.high %v12314_v60, %v12317_v11  ;;  %v4454_v20 = vcombine.high %v12321_v42, %v4404_v56 }
0x344f   :  { %v4624_v57 = vpop.permute.xlu1 %4623  ;;  %v4626_v39 = vpop.permute.xlu0 %4625 }
0x3450   :  { %v4645_v45 = vcombine.low %v4622_v33, %v4626_v39  ;;  %v4646_v6 = vcombine.high %v4622_v33, %v4626_v39  ;;  %v4437_v33 = vcombine.low %v4381_v24, %v4397_v52  ;;  %v12349_v52 = vrot.slane %v4438_v37, %v11877_v22 }
0x3452   :  { %v4653_v59 = vrot.slane %v4645_v45, %v11871_v14  ;;  %v4660_v9 = vrot.slane %v4646_v6, %v11871_v14  ;;  %v4549_v45 = vrot.slane %v4541_v23, %v11877_v22  ;;  %v4581_v6 = vrot.slane %v4573_v46, %v11877_v22 }
0x3453   :  { %v4628_v1 = vpop.permute.xlu1 %4627  ;;  %v4630_v30 = vpop.permute.xlu0 %4629  ;;  %v12346_v42 = vrot.slane %v4437_v33, %v11877_v22 }
0x3454   :  { %v4661_v31 = vcombine.low %v4624_v57, %v4628_v1  ;;  %v4662_v17 = vcombine.high %v4624_v57, %v4628_v1 }
0x3456   :  { %v4669_v10 = vrot.slane %v4661_v31, %v11871_v14  ;;  %v4676_v54 = vrot.slane %v4662_v17, %v11871_v14 }
0x3457   :  { %v4632_v4 = vpop.permute.xlu1 %4631  ;;  %v4634_v27 = vpop.permute.xlu0 %4633 }
0x3458   :  { %v4709_v15 = vcombine.low %v4653_v59, %v4669_v10  ;;  %v4710_v16 = vcombine.high %v4653_v59, %v4669_v10  ;;  %v4725_v5 = vcombine.low %v4660_v9, %v4676_v54  ;;  %v4726_v26 = vcombine.high %v4660_v9, %v4676_v54 }
0x3459   :  { %v4677_v43 = vcombine.low %v4630_v30, %v4634_v27  ;;  %v4678_v41 = vcombine.high %v4630_v30, %v4634_v27 }
0x345a   :  { %v4717_v44 = vrot.slane %v4709_v15, %v11877_v22  ;;  %v4724_v57 = vrot.slane %v4710_v16, %v11877_v22  ;;  %v4733_v39 = vrot.slane %v4725_v5, %v11877_v22  ;;  %v4740_v21 = vrot.slane %v4726_v26, %v11877_v22 }
0x345b   :  { %v4636_v53 = vpop.permute.xlu1 %4635  ;;  %v4685_v23 = vrot.slane %v4677_v43, %v11871_v14  ;;  %v4692_v46 = vrot.slane %v4678_v41, %v11871_v14 }
0x345c   :  { %v9355_v1 = vcombine.low %v4717_v44, %v4724_v57  ;;  %v9357_v31 = vcombine.high %v4717_v44, %v4724_v57  ;;  %v9359_v17 = vcombine.low %v4733_v39, %v4740_v21  ;;  %v9361_v24 = vcombine.high %v4733_v39, %v4740_v21 }
0x345d   :  { %v4693_v56 = vcombine.low %v4632_v4, %v4636_v53  ;;  %v4694_v59 = vcombine.high %v4632_v4, %v4636_v53 }
0x345e   :  { %v4789_v9 = vrot.slane %v9355_v1, %v11871_v14  ;;  %v4805_v30 = vrot.slane %v9357_v31, %v11871_v14  ;;  %v4821_v10 = vrot.slane %v9359_v17, %v11871_v14  ;;  %v4837_v54 = vrot.slane %v9361_v24, %v11871_v14 }
0x345f   :  { %v4701_v15 = vrot.slane %v4693_v56, %v11871_v14  ;;  %v4708_v16 = vrot.slane %v4694_v59, %v11871_v14  ;;  %v4461_v24 = vrot.slane %v4453_v34, %v11877_v22  ;;  %v4468_v56 = vrot.slane %v4454_v20, %v11877_v22 }
0x3460   :  { %v4845_v5 = vcombine.low %v4789_v9, %v4805_v30  ;;  %v4877_v26 = vcombine.low %v4821_v10, %v4837_v54  ;;  %v4846_v27 = vcombine.high %v4789_v9, %v4805_v30  ;;  %v4878_v4 = vcombine.high %v4821_v10, %v4837_v54 }
0x3461   :  { %v4741_v33 = vcombine.low %v4685_v23, %v4701_v15  ;;  %v4742_v37 = vcombine.high %v4685_v23, %v4701_v15  ;;  %v4757_v44 = vcombine.low %v4692_v46, %v4708_v16  ;;  %v4758_v57 = vcombine.high %v4692_v46, %v4708_v16 }
0x3462   :  { %v4853_v39 = vrot.slane %v4845_v5, %v11877_v22  ;;  %v4885_v21 = vrot.slane %v4877_v26, %v11877_v22  ;;  %v4860_v43 = vrot.slane %v4846_v27, %v11877_v22  ;;  %v4892_v41 = vrot.slane %v4878_v4, %v11877_v22 }
0x3463   :  { %v4749_v53 = vrot.slane %v4741_v33, %v11877_v22  ;;  %v4756_v1 = vrot.slane %v4742_v37, %v11877_v22  ;;  %v4765_v31 = vrot.slane %v4757_v44, %v11877_v22  ;;  %v4772_v17 = vrot.slane %v4758_v57, %v11877_v22 }
0x3464   :  { %v4909_v59 = vcombine.low %v4853_v39, %v4885_v21  ;;  %v4910_v9 = vcombine.high %v4853_v39, %v4885_v21  ;;  %v4605_v16 = vcombine.low %v4549_v45, %v4581_v6  ;;  %v4911_v5 = vcombine.low %v4860_v43, %v4892_v41 }
0x3465   :  { %v9356_v30 = vcombine.low %v4749_v53, %v4756_v1  ;;  %v9358_v10 = vcombine.high %v4749_v53, %v4756_v1  ;;  %v9360_v54 = vcombine.low %v4765_v31, %v4772_v17  ;;  %v9362_v23 = vcombine.high %v4765_v31, %v4772_v17 }
0x3466   :  { %v4917_v46 = vpack.c.bf16 %v4909_v59, %v4909_v59  ;;  %v4918_v15 = vpack.c.bf16 %v4910_v9, %v4910_v9  ;;  %v4606_v37 = vcombine.high %v4549_v45, %v4581_v6  ;;  %v4912_v44 = vcombine.high %v4860_v43, %v4892_v41 }
0x3467   :  { %v4796_v26 = vrot.slane %v9356_v30, %v11871_v14  ;;  %v4812_v27 = vrot.slane %v9358_v10, %v11871_v14  ;;  %v4828_v4 = vrot.slane %v9360_v54, %v11871_v14  ;;  %v4844_v34 = vrot.slane %v9362_v23, %v11871_v14 }
0x3468   :  { %v5233_v20 = vsel %vm2791_vm9, %v4917_v46, 0  ;;  %v5279_v33 = vsel %vm2791_vm9, %v4918_v15, 0  ;;  %v9348_v57 = vcombine.low %v12346_v42, %v12349_v52  ;;  %v9350_v53 = vcombine.high %v12346_v42, %v12349_v52 }
0x3469   :  { %9992 = vmatpush3.bf16.xpose.msra.mxu1 %v5233_v20  ;;  %9998 = vmatpush3.bf16.xpose.msra.mxu0 %v5279_v33  ;;  %v4861_v39 = vcombine.low %v4796_v26, %v4812_v27  ;;  %v4893_v21 = vcombine.low %v4828_v4, %v4844_v34  ;;  %v9352_v1 = vcombine.low %v4461_v24, %v4468_v56 }
0x346a   :  { %v9354_v31 = vcombine.high %v4461_v24, %v4468_v56  ;;  %10003 = vmatprep.subr.bf16.mxu1 %v11163_v0  ;;  %10009 = vmatprep.subr.bf16.mxu0 %v11163_v0  ;;  %v4919_v17 = vpack.c.bf16 %v4911_v5, %v4911_v5  ;;  %v4920_v59 = vpack.c.bf16 %v4912_v44, %v4912_v44 }
0x346b   :  { %v4869_v45 = vrot.slane %v4861_v39, %v11877_v22  ;;  %v4901_v6 = vrot.slane %v4893_v21, %v11877_v22  ;;  %v4613_v43 = vpack.c.bf16 %v4605_v16, %v4605_v16  ;;  %v4614_v41 = vpack.c.bf16 %v4606_v37, %v4606_v37 }
0x346c   :  { %v4556_v9 = vrot.slane %v4542_v12, %v11877_v22  ;;  %v4588_v42 = vrot.slane %v4574_v47, %v11877_v22  ;;  %v4492_v52 = vrot.slane %v9348_v57, %v11871_v14  ;;  %v4508_v24 = vrot.slane %v9350_v53, %v11871_v14 }
0x346d   :  { %v4524_v56 = vrot.slane %v9352_v1, %v11871_v14  ;;  %v4540_v30 = vrot.slane %v9354_v31, %v11871_v14  ;;  %v5325_v10 = vsel %vm2791_vm9, %v4919_v17, 0  ;;  %v4862_v54 = vcombine.high %v4796_v26, %v4812_v27 }
0x346e   :  { %v5371_v7 = vsel %vm2791_vm9, %v4920_v59, 0  ;;  %v4913_v48 = vcombine.low %v4869_v45, %v4901_v6  ;;  %v4914_v60 = vcombine.high %v4869_v45, %v4901_v6  ;;  %v4894_v11 = vcombine.high %v4828_v4, %v4844_v34 }
0x346f   :  { %v4607_v12 = vcombine.low %v4556_v9, %v4588_v42  ;;  %v4608_v47 = vcombine.high %v4556_v9, %v4588_v42  ;;  %v4557_v23 = vcombine.low %v4492_v52, %v4508_v24  ;;  %v4589_v46 = vcombine.low %v4524_v56, %v4540_v30 }
0x3470   :  { %9994 = vmatmul.mubr.msk.bf16.vlgmr.msra.gmra.mrb[92].mxu1 %vm2791_vm9, %v4613_v43  ;;  %10000 = vmatmul.mubr.msk.bf16.vlgmr.msra.gmra.mrb[96].mxu0 %vm2791_vm9, %v4614_v41  ;;  %v4921_v15 = vpack.c.bf16 %v4913_v48, %v4913_v48  ;;  %v4922_v16 = vpack.c.bf16 %v4914_v60, %v4914_v60  ;;  %v4876_v5 = vrot.slane %v4862_v54, %v11877_v22 }
0x3471   :  { %10004 = vmatpush3.bf16.xpose.msra.mxu1 %v5325_v10  ;;  %10010 = vmatpush3.bf16.xpose.msra.mxu0 %v5371_v7  ;;  %v4908_v26 = vrot.slane %v4894_v11, %v11877_v22  ;;  %v4615_v27 = vpack.c.bf16 %v4607_v12, %v4607_v12  ;;  %v4616_v4 = vpack.c.bf16 %v4608_v47, %v4608_v47 }
0x3472   :  { %10005 = vmatprep.mubr.msk.bf16.mxu1 %vm11164_vm0, %v11163_v0  ;;  %10011 = vmatprep.mubr.msk.bf16.mxu0 %vm11164_vm0, %v11163_v0  ;;  %v4565_v34 = vrot.slane %v4557_v23, %v11877_v22  ;;  %v4597_v20 = vrot.slane %v4589_v46, %v11877_v22  ;;  %v5417_v33 = vsel %vm2791_vm9, %v4921_v15, 0  ;;  %v5463_v37 = vsel %vm2791_vm9, %v4922_v16, 0 }
0x3473   :  { %10015 = vmatprep.subr.bf16.mxu1 %v11163_v0  ;;  %10021 = vmatprep.subr.bf16.mxu0 %v11163_v0  ;;  %v4915_v44 = vcombine.low %v4876_v5, %v4908_v26  ;;  %v4916_v57 = vcombine.high %v4876_v5, %v4908_v26  ;;  %v4558_v39 = vcombine.high %v4492_v52, %v4508_v24 }
0x3474   :  { %v4609_v21 = vcombine.low %v4565_v34, %v4597_v20  ;;  %v4610_v53 = vcombine.high %v4565_v34, %v4597_v20  ;;  %v4590_v1 = vcombine.high %v4524_v56, %v4540_v30 }
0x3475   :  { %v4923_v31 = vpack.c.bf16 %v4915_v44, %v4915_v44  ;;  %v4924_v17 = vpack.c.bf16 %v4916_v57, %v4916_v57  ;;  %v4572_v6 = vrot.slane %v4558_v39, %v11877_v22 }
0x3476   :  { %v4617_v59 = vpack.c.bf16 %v4609_v21, %v4609_v21  ;;  %v4618_v45 = vpack.c.bf16 %v4610_v53, %v4610_v53  ;;  %v4604_v43 = vrot.slane %v4590_v1, %v11877_v22 }
0x3477   :  { %v5509_v41 = vsel %vm2791_vm9, %v4923_v31, 0  ;;  %v5555_v9 = vsel %vm2791_vm9, %v4924_v17, 0 }
0x3478   :  { %10006 = vmatmul.mubr.msk.bf16.vlgmr.msra.gmra.mrb[96].mxu1 %vm2791_vm9, %v4615_v27  ;;  %10012 = vmatmul.mubr.msk.bf16.vlgmr.msra.gmra.mrb[100].mxu0 %vm2791_vm9, %v4616_v4  ;;  %v4611_v42 = vcombine.low %v4572_v6, %v4604_v43  ;;  %v4612_v52 = vcombine.high %v4572_v6, %v4604_v43 }
0x3479   :  { %10016 = vmatpush3.bf16.xpose.msra.mxu1 %v5417_v33  ;;  %10022 = vmatpush3.bf16.xpose.msra.mxu0 %v5463_v37 }
0x347a   :  { %10017 = vmatprep.mubr.msk.bf16.mxu1 %vm11164_vm0, %v11163_v0  ;;  %10023 = vmatprep.mubr.msk.bf16.mxu0 %vm11164_vm0, %v11163_v0  ;;  %v4619_v24 = vpack.c.bf16 %v4611_v42, %v4611_v42  ;;  %v4620_v56 = vpack.c.bf16 %v4612_v52, %v4612_v52 }
0x347b   :  { %10027 = vmatprep.subr.bf16.mxu1 %v11163_v0  ;;  %10033 = vmatprep.subr.bf16.mxu0 %v11163_v0 }
0x3480   :  { %10018 = vmatmul.mubr.msk.bf16.vlgmr.msra.gmra.mrb[100].mxu1 %vm2791_vm9, %v4617_v59  ;;  %10024 = vmatmul.mubr.msk.bf16.vlgmr.msra.gmra.mrb[104].mxu0 %vm2791_vm9, %v4618_v45 }
0x3481   :  { %10028 = vmatpush3.bf16.xpose.msra.mxu1 %v5509_v41  ;;  %10034 = vmatpush3.bf16.xpose.msra.mxu0 %v5555_v9 }
0x3482   :  { %10029 = vmatprep.mubr.msk.bf16.mxu1 %vm11164_vm0, %v11163_v0  ;;  %10035 = vmatprep.mubr.msk.bf16.mxu0 %vm11164_vm0, %v11163_v0 }
0x3483   :  { %10039 = vmatprep.subr.bf16.mxu1 %v11163_v0  ;;  %10045 = vmatprep.subr.bf16.mxu0 %v11163_v0 }
0x3488   :  { %10030 = vmatmul.mubr.msk.bf16.vlgmr.msra.gmra.mrb[104].mxu1 %vm2791_vm9, %v4619_v24  ;;  %10036 = vmatmul.mubr.msk.bf16.vlgmr.msra.gmra.mrb[108].mxu0 %vm2791_vm9, %v4620_v56 }
0x3489   :  { %10041 = vmatprep.mubr.msk.bf16.mxu1 %vm11164_vm0, %v11163_v0  ;;  %10047 = vmatprep.mubr.msk.bf16.mxu0 %vm11164_vm0, %v11163_v0 }
0x3543   :  { %v5269_v30 = vpop.f32.mrb[92].mxu1  ;;  %v5315_v10 = vpop.f32.mrb[96].mxu0 }
0x3544   :  { %v9995_v54 = vpop.f32.mrb[93].mxu1  ;;  %v10001_v7 = vpop.f32.mrb[97].mxu0  ;;  %v5597_v48 = vsel %vm3160_vm10, %v5269_v30, -inf  ;;  %v5600_v60 = vsel %vm3160_vm10, %v5315_v10, -inf }
0x3545   :  { %5598 = vmax.xlane.f32.xlu0 %v5597_v48  ;;  %v5272_v11 = vpop.f32.mrb[94].mxu1  ;;  %5601 = vmax.xlane.f32.xlu1 %v5600_v60  ;;  %v5318_v12 = vpop.f32.mrb[98].mxu0 }
0x3546   :  { %v9996_v47 = vpop.f32.mrb[95].mxu1  ;;  %v10002_v23 = vpop.f32.mrb[99].mxu0 }
0x3547   :  { %v4926_v7 = vpop.permute.xlu1 %4925 }
0x354b   :  { %v5361_v46 = vpop.f32.mrb[96].mxu1  ;;  %v5407_v15 = vpop.f32.mrb[100].mxu0 }
0x354c   :  { %v10007_v16 = vpop.f32.mrb[97].mxu1  ;;  %v10013_v5 = vpop.f32.mrb[101].mxu0  ;;  %v5603_v26 = vsel %vm3160_vm10, %v5361_v46, -inf  ;;  %v5606_v33 = vsel %vm3160_vm10, %v5407_v15, -inf }
0x354d   :  { %5604 = vmax.xlane.f32.xlu0 %v5603_v26  ;;  %v5364_v27 = vpop.f32.mrb[98].mxu1  ;;  %v5410_v4 = vpop.f32.mrb[102].mxu0 }
0x354e   :  { %v10008_v34 = vpop.f32.mrb[99].mxu1  ;;  %v10014_v20 = vpop.f32.mrb[103].mxu0 }
0x3551   :  { %5607 = vmax.xlane.f32.xlu0 %v5606_v33 }
0x3553   :  { %v5453_v37 = vpop.f32.mrb[100].mxu1  ;;  %v5499_v44 = vpop.f32.mrb[104].mxu0 }
0x3554   :  { %v10019_v57 = vpop.f32.mrb[101].mxu1  ;;  %v10025_v39 = vpop.f32.mrb[105].mxu0  ;;  %v5609_v21 = vsel %vm3160_vm10, %v5453_v37, -inf  ;;  %v5612_v53 = vsel %vm3160_vm10, %v5499_v44, -inf }
0x3555   :  { %v5456_v1 = vpop.f32.mrb[102].mxu1  ;;  %5610 = vmax.xlane.f32.xlu1 %v5609_v21  ;;  %5613 = vmax.xlane.f32.xlu0 %v5612_v53  ;;  %v5502_v31 = vpop.f32.mrb[106].mxu0 }
0x3556   :  { %v10020_v17 = vpop.f32.mrb[103].mxu1  ;;  %v10026_v59 = vpop.f32.mrb[107].mxu0 }
0x355b   :  { %v12443_v45 = vpop.f32.mrb[104].mxu1  ;;  %v12445_v6 = vpop.f32.mrb[108].mxu0 }
0x355c   :  { %v10031_v43 = vpop.f32.mrb[105].mxu1  ;;  %v10037_v41 = vpop.f32.mrb[109].mxu0  ;;  %v5615_v9 = vsel %vm3160_vm10, %v12443_v45, -inf  ;;  %v5618_v42 = vsel %vm3160_vm10, %v12445_v6, -inf }
0x355d   :  { %v5548_v52 = vpop.f32.mrb[106].mxu1  ;;  %5616 = vmax.xlane.f32.xlu1 %v5615_v9  ;;  %5619 = vmax.xlane.f32.xlu0 %v5618_v42  ;;  %v5594_v24 = vpop.f32.mrb[110].mxu0 }
0x355e   :  { %v10032_v56 = vpop.f32.mrb[107].mxu1  ;;  %v10038_v54 = vpop.f32.mrb[111].mxu0 }
0x356e   :  { %4929 = vrot.lane.b32.xlu1 %v12256_v35, %s11140_s25 }
0x3572   :  { %4931 = vrot.lane.b32.xlu1 %v12264_v32, %s11140_s25 }
0x3573   :  { %4927 = vrot.lane.b32.xlu0 %v12258_v28, %s11140_s25 }
0x3576   :  { %4933 = vrot.lane.b32.xlu1 %v12266_v49, %s11140_s25 }
0x35d2   :  { %v5599_v48 = vpop.xlane.xlu0 %5598  ;;  %v5602_v60 = vpop.xlane.xlu1 %5601 }
0x35d3   :  { %v5621_v11 = vsub.f32 %v5269_v30, %v5599_v48  ;;  %v5622_v12 = vsub.f32 %v5315_v10, %v5602_v60 }
0x35d5   :  { %v5629_v47 = vmul.f32 1.442695, %v5621_v11  ;;  %v5631_v23 = vmul.f32 1.442695, %v5622_v12 }
0x35d7   :  { %10559 = vpow2.f32 %v5629_v47 }
0x35d8   :  { %10561 = vpow2.f32 %v5631_v23 }
0x35da   :  { %v5605_v16 = vpop.xlane.xlu0 %5604 }
0x35db   :  { %v5623_v35 = vsub.f32 %v5361_v46, %v5605_v16 }
0x35dd   :  { %v5633_v5 = vmul.f32 1.442695, %v5623_v35 }
0x35de   :  { %v5608_v26 = vpop.xlane.xlu0 %5607 }
0x35df   :  { %10563 = vpow2.f32 %v5633_v5  ;;  %v5624_v32 = vsub.f32 %v5407_v15, %v5608_v26 }
0x35e1   :  { %v12459_v27 = vpop.eup %10559  ;;  %v5635_v28 = vmul.f32 1.442695, %v5624_v32 }
0x35e2   :  { %v12461_v4 = vpop.eup %10561  ;;  %v5611_v49 = vpop.xlane.xlu1 %5610  ;;  %v5645_v30 = vsel %vm3160_vm10, %v12459_v27, 0.0 }
0x35e3   :  { %v5614_v34 = vpop.xlane.xlu0 %5613  ;;  %10565 = vpow2.f32 %v5635_v28  ;;  %v5625_v10 = vsub.f32 %v5453_v37, %v5611_v49  ;;  %5646 = vadd.xlane.f32.xlu1 %v5645_v30  ;;  %v5648_v46 = vsel %vm3160_vm10, %v12461_v4, 0.0 }
0x35e4   :  { %v5626_v20 = vsub.f32 %v5499_v44, %v5614_v34  ;;  %5649 = vadd.xlane.f32.xlu0 %v5648_v46 }
0x35e5   :  { %v5637_v33 = vmul.f32 1.442695, %v5625_v10 }
0x35e6   :  { %v5639_v15 = vmul.f32 1.442695, %v5626_v20 }
0x35e7   :  { %10567 = vpow2.f32 %v5637_v33 }
0x35e8   :  { %10569 = vpow2.f32 %v5639_v15 }
0x35e9   :  { %v12467_v57 = vpop.eup %10563 }
0x35ea   :  { %v12469_v39 = vpop.xlane.xlu1 %5616  ;;  %v5651_v21 = vsel %vm3160_vm10, %v12467_v57, 0.0  ;;  %v5620_v53 = vpop.xlane.xlu0 %5619 }
0x35eb   :  { %5652 = vadd.xlane.f32.xlu0 %v5651_v21 }
0x35ed   :  { %v12473_v37 = vpop.eup %10565 }
0x35ee   :  { %v4930_v44 = vpop.permute.xlu1 %4929  ;;  %v5654_v1 = vsel %vm3160_vm10, %v12473_v37, 0.0  ;;  %v4928_v43 = vpop.permute.xlu0 %4927 }
0x35ef   :  { %5655 = vadd.xlane.f32.xlu1 %v5654_v1  ;;  %v4949_v17 = vcombine.low %v4926_v7, %v4930_v44  ;;  %v4950_v59 = vcombine.high %v4926_v7, %v4930_v44 }
0x35f1   :  { %v12477_v31 = vpop.eup %10567  ;;  %v4957_v56 = vrot.slane %v4949_v17, %v11871_v14  ;;  %v4964_v54 = vrot.slane %v4950_v59, %v11871_v14 }
0x35f2   :  { %v4932_v41 = vpop.permute.xlu1 %4931  ;;  %v5657_v9 = vsel %vm3160_vm10, %v12477_v31, 0.0  ;;  %v12481_v42 = vpop.eup %10569 }
0x35f3   :  { %v4965_v52 = vcombine.low %v4928_v43, %v4932_v41  ;;  %v4966_v24 = vcombine.high %v4928_v43, %v4932_v41  ;;  %5658 = vadd.xlane.f32.xlu0 %v5657_v9  ;;  %v5660_v7 = vsel %vm3160_vm10, %v12481_v42, 0.0 }
0x35f5   :  { %v4973_v48 = vrot.slane %v4965_v52, %v11871_v14  ;;  %v4980_v60 = vrot.slane %v4966_v24, %v11871_v14 }
0x35f7   :  { %v5013_v11 = vcombine.low %v4957_v56, %v4973_v48  ;;  %v5014_v12 = vcombine.high %v4957_v56, %v4973_v48  ;;  %v5029_v47 = vcombine.low %v4964_v54, %v4980_v60  ;;  %v5030_v23 = vcombine.high %v4964_v54, %v4980_v60  ;;  %5661 = vadd.xlane.f32.xlu0 %v5660_v7 }
0x35f8   :  { %v5628_v60 = vsub.f32 %v12445_v6, %v5620_v53  ;;  %v4934_v6 = vpop.permute.xlu1 %4933 }
0x35f9   :  { %v5021_v16 = vrot.slane %v5013_v11, %v11877_v22  ;;  %v5028_v35 = vrot.slane %v5014_v12, %v11877_v22  ;;  %v5037_v5 = vrot.slane %v5029_v47, %v11877_v22  ;;  %v5044_v26 = vrot.slane %v5030_v23, %v11877_v22 }
0x35fa   :  { %v5643_v7 = vmul.f32 1.442695, %v5628_v60 }
0x35fb   :  { %v9363_v32 = vcombine.low %v5021_v16, %v5028_v35  ;;  %v9365_v28 = vcombine.high %v5021_v16, %v5028_v35  ;;  %v9367_v49 = vcombine.low %v5037_v5, %v5044_v26  ;;  %v9369_v34 = vcombine.high %v5037_v5, %v5044_v26 }
0x35fc   :  { %10571 = vpow2.f32 %v5643_v7 }
0x35fd   :  { %v5093_v30 = vrot.slane %v9363_v32, %v11871_v14  ;;  %v5109_v10 = vrot.slane %v9365_v28, %v11871_v14  ;;  %v5125_v20 = vrot.slane %v9367_v49, %v11871_v14  ;;  %v5141_v46 = vrot.slane %v9369_v34, %v11871_v14 }
0x35ff   :  { %v5149_v33 = vcombine.low %v5093_v30, %v5109_v10  ;;  %v5181_v15 = vcombine.low %v5125_v20, %v5141_v46  ;;  %v5150_v21 = vcombine.high %v5093_v30, %v5109_v10  ;;  %v5182_v44 = vcombine.high %v5125_v20, %v5141_v46 }
0x3600   :  { %4937 = vrot.lane.b32.xlu1 %v12274_v38, %s11140_s25 }
0x3601   :  { %v5157_v1 = vrot.slane %v5149_v33, %v11877_v22  ;;  %v5189_v17 = vrot.slane %v5181_v15, %v11877_v22  ;;  %v5164_v59 = vrot.slane %v5150_v21, %v11877_v22  ;;  %v5196_v43 = vrot.slane %v5182_v44, %v11877_v22 }
0x3603   :  { %v5213_v41 = vcombine.low %v5157_v1, %v5189_v17  ;;  %v5214_v9 = vcombine.high %v5157_v1, %v5189_v17  ;;  %v5215_v52 = vcombine.low %v5164_v59, %v5196_v43  ;;  %v5216_v24 = vcombine.high %v5164_v59, %v5196_v43 }
0x3604   :  { %4939 = vrot.lane.b32.xlu1 %v12280_v61, %s11140_s25  ;;  %v5627_v61 = vsub.f32 %v12443_v45, %v12469_v39 }
0x3605   :  { %v5221_v56 = vpack.c.bf16 %v5213_v41, %v5213_v41  ;;  %v5222_v54 = vpack.c.bf16 %v5214_v9, %v5214_v9  ;;  %v5223_v32 = vpack.c.bf16 %v5215_v52, %v5215_v52  ;;  %v5224_v49 = vpack.c.bf16 %v5216_v24, %v5216_v24 }
0x3606   :  { %v5641_v11 = vmul.f32 1.442695, %v5627_v61  ;;  %v12514_v12 = vpop.eup %10571 }
0x3607   :  { %v5697_v48 = vsel %vm1013_vm5, %v5221_v56, 0  ;;  %v5743_v38 = vsel %vm1013_vm5, %v5222_v54, 0  ;;  %v5666_v47 = vsel %vm3160_vm10, %v12514_v12, 0.0  ;;  %v5789_v10 = vsel %vm1013_vm5, %v5223_v32, 0 }
0x3608   :  { %10040 = vmatpush3.bf16.msra.mxu1 %v5697_v48  ;;  %10046 = vmatpush3.bf16.msra.mxu0 %v5743_v38  ;;  %10573 = vpow2.f32 %v5641_v11  ;;  %v5835_v46 = vsel %vm1013_vm5, %v5224_v49, 0 }
0x3609   :  { %10051 = vmatprep.subr.bf16.mxu1 %v11163_v0  ;;  %10057 = vmatprep.subr.bf16.mxu0 %v11163_v0 }
0x360d   :  { %4935 = vrot.lane.b32.xlu0 %v12272_v51, %s11140_s25 }
0x3612   :  { %v12518_v23 = vpop.eup %10573 }
0x3613   :  { %v5663_v51 = vsel %vm3160_vm10, %v12518_v23, 0.0 }
0x3628   :  { %5667 = vadd.xlane.f32.xlu1 %v5666_v47 }
0x362c   :  { %5664 = vadd.xlane.f32.xlu0 %v5663_v51 }
0x3670   :  { %v5647_v53 = vpop.xlane.xlu1 %5646 }
0x3671   :  { %10575 = vrcp.f32 %v5647_v53  ;;  %v5650_v45 = vpop.xlane.xlu0 %5649 }
0x3672   :  { %10577 = vrcp.f32 %v5650_v45 }
0x3678   :  { %v5653_v39 = vpop.xlane.xlu0 %5652 }
0x3679   :  { %10579 = vrcp.f32 %v5653_v39 }
0x367b   :  { %v10576_v16 = vpop.eup %10575 }
0x367c   :  { %v10578_v35 = vpop.eup %10577  ;;  %v5677_v5 = vmul.f32 %v10576_v16, %v12459_v27  ;;  %v5656_v26 = vpop.xlane.xlu1 %5655 }
0x367d   :  { %v5678_v28 = vmul.f32 %v10578_v35, %v12461_v4  ;;  %10581 = vrcp.f32 %v5656_v26 }
0x367e   :  { %v5685_v34 = vpack.c.bf16 %v5677_v5, %v5677_v5 }
0x367f   :  { %v5686_v30 = vpack.c.bf16 %v5678_v28, %v5678_v28 }
0x3680   :  { %10042 = vmatmul.mubr.msk.bf16.vlgmr.msra.gmra.mrb[108].mxu1 %vm3160_vm10, %v5685_v34  ;;  %v5659_v20 = vpop.xlane.xlu0 %5658  ;;  %v4938_v33 = vpop.permute.xlu1 %4937 }
0x3681   :  { %10048 = vmatmul.mubr.msk.bf16.vlgmr.msra.gmra.mrb[112].mxu0 %vm3160_vm10, %v5686_v30  ;;  %10052 = vmatpush3.bf16.msra.mxu1 %v5789_v10  ;;  %v4981_v1 = vcombine.low %v4934_v6, %v4938_v33  ;;  %v4982_v17 = vcombine.high %v4934_v6, %v4938_v33  ;;  %10583 = vrcp.f32 %v5659_v20 }
0x3682   :  { %10058 = vmatpush3.bf16.msra.mxu0 %v5835_v46  ;;  %10053 = vmatprep.mubr.msk.bf16.mxu1 %vm11164_vm0, %v11163_v0 }
0x3683   :  { %v10580_v27 = vpop.eup %10579  ;;  %10059 = vmatprep.mubr.msk.bf16.mxu0 %vm11164_vm0, %v11163_v0  ;;  %10063 = vmatprep.subr.bf16.mxu1 %v11163_v0  ;;  %v4996_v56 = vrot.slane %v4982_v17, %v11871_v14 }
0x3684   :  { %v5679_v4 = vmul.f32 %v10580_v27, %v12467_v57  ;;  %v5662_v15 = vpop.xlane.xlu0 %5661  ;;  %10069 = vmatprep.subr.bf16.mxu0 %v11163_v0  ;;  %v4940_v43 = vpop.permute.xlu1 %4939  ;;  %v4989_v57 = vrot.slane %v4981_v1, %v11871_v14 }
0x3685   :  { %10585 = vrcp.f32 %v5662_v15 }
0x3686   :  { %v5687_v21 = vpack.c.bf16 %v5679_v4, %v5679_v4 }
0x3687   :  { %v10582_v44 = vpop.eup %10581 }
0x3688   :  { %v5680_v59 = vmul.f32 %v10582_v44, %v12473_v37  ;;  %10054 = vmatmul.mubr.msk.bf16.vlgmr.msra.gmra.mrb[112].mxu1 %vm3160_vm10, %v5687_v21  ;;  %v4936_v41 = vpop.permute.xlu0 %4935 }
0x3689   :  { %v4997_v9 = vcombine.low %v4936_v41, %v4940_v43  ;;  %v4998_v52 = vcombine.high %v4936_v41, %v4940_v43  ;;  %10065 = vmatprep.mubr.msk.bf16.mxu1 %vm11164_vm0, %v11163_v0 }
0x368a   :  { %v5688_v24 = vpack.c.bf16 %v5680_v59, %v5680_v59 }
0x368b   :  { %v5005_v54 = vrot.slane %v4997_v9, %v11871_v14  ;;  %v5012_v48 = vrot.slane %v4998_v52, %v11871_v14  ;;  %v10584_v30 = vpop.eup %10583 }
0x368c   :  { %10060 = vmatmul.mubr.msk.bf16.vlgmr.msra.gmra.mrb[116].mxu0 %vm3160_vm10, %v5688_v24  ;;  %v5681_v1 = vmul.f32 %v10584_v30, %v12477_v31 }
0x368d   :  { %v5045_v37 = vcombine.low %v4989_v57, %v5005_v54  ;;  %v5046_v38 = vcombine.high %v4989_v57, %v5005_v54  ;;  %v5061_v60 = vcombine.low %v4996_v56, %v5012_v48  ;;  %v5062_v61 = vcombine.high %v4996_v56, %v5012_v48  ;;  %10071 = vmatprep.mubr.msk.bf16.mxu0 %vm11164_vm0, %v11163_v0 }
0x368e   :  { %v5689_v57 = vpack.c.bf16 %v5681_v1, %v5681_v1 }
0x368f   :  { %v5053_v7 = vrot.slane %v5045_v37, %v11877_v22  ;;  %v5060_v11 = vrot.slane %v5046_v38, %v11877_v22  ;;  %v5069_v47 = vrot.slane %v5061_v60, %v11877_v22  ;;  %v5076_v51 = vrot.slane %v5062_v61, %v11877_v22  ;;  %v10586_v27 = vpop.eup %10585 }
0x3690   :  { %v5682_v17 = vmul.f32 %v10586_v27, %v12481_v42 }
0x3691   :  { %v9364_v6 = vcombine.low %v5053_v7, %v5060_v11  ;;  %v9366_v53 = vcombine.high %v5053_v7, %v5060_v11  ;;  %v9368_v45 = vcombine.low %v5069_v47, %v5076_v51  ;;  %v9370_v39 = vcombine.high %v5069_v47, %v5076_v51  ;;  %v4247_v47 = vld [vmem:[#allocation20 + $0x10] sm:$0x3]  ;;  %v4248_v51 = vld [vmem:[#allocation20 + $0x12] sm:$0x3] }
0x3692   :  { %v5690_v56 = vpack.c.bf16 %v5682_v17, %v5682_v17 }
0x3693   :  { %v5100_v16 = vrot.slane %v9364_v6, %v11871_v14  ;;  %v5116_v35 = vrot.slane %v9366_v53, %v11871_v14  ;;  %v5132_v5 = vrot.slane %v9368_v45, %v11871_v14  ;;  %v5148_v26 = vrot.slane %v9370_v39, %v11871_v14  ;;  %v4250_v53 = vld [vmem:[#allocation20 + $0x16] sm:$0x3] }
0x3694   :  { %v6073_v6 = vsel %vm1009_vm3, %v4247_v47, 0 }
0x3695   :  { %v5165_v32 = vcombine.low %v5100_v16, %v5116_v35  ;;  %v5197_v28 = vcombine.low %v5132_v5, %v5148_v26  ;;  %v5166_v49 = vcombine.high %v5100_v16, %v5116_v35  ;;  %v5198_v34 = vcombine.high %v5132_v5, %v5148_v26 }
0x3697   :  { %v5173_v10 = vrot.slane %v5165_v32, %v11877_v22  ;;  %v5205_v20 = vrot.slane %v5197_v28, %v11877_v22  ;;  %v5180_v46 = vrot.slane %v5166_v49, %v11877_v22  ;;  %v5212_v33 = vrot.slane %v5198_v34, %v11877_v22 }
0x3698   :  { %v6211_v49 = vsel %vm1009_vm3, %v4250_v53, 0 }
0x3699   :  { %v5217_v4 = vcombine.low %v5173_v10, %v5205_v20  ;;  %v5218_v15 = vcombine.high %v5173_v10, %v5205_v20  ;;  %v5219_v21 = vcombine.low %v5180_v46, %v5212_v33  ;;  %v5220_v44 = vcombine.high %v5180_v46, %v5212_v33  ;;  %v4251_v20 = vld [vmem:[#allocation20 + $0x18] sm:$0x3] }
0x369b   :  { %v5225_v59 = vpack.c.bf16 %v5217_v4, %v5217_v4  ;;  %v5226_v43 = vpack.c.bf16 %v5218_v15, %v5218_v15  ;;  %v5227_v52 = vpack.c.bf16 %v5219_v21, %v5219_v21  ;;  %v5228_v24 = vpack.c.bf16 %v5220_v44, %v5220_v44  ;;  %v4252_v21 = vld [vmem:[#allocation20 + $0x1a] sm:$0x3] }
0x369c   :  { %v6257_v4 = vsel %vm1009_vm3, %v4251_v20, 0 }
0x369d   :  { %v5881_v41 = vsel %vm1013_vm5, %v5225_v59, 0  ;;  %v5927_v9 = vsel %vm1013_vm5, %v5226_v43, 0  ;;  %v5973_v31 = vsel %vm1013_vm5, %v5227_v52, 0  ;;  %v6019_v42 = vsel %vm1013_vm5, %v5228_v24, 0  ;;  %v4253_v52 = vld [vmem:[#allocation20 + $0x1c] sm:$0x3] }
0x369e   :  { %10064 = vmatpush3.bf16.msra.mxu1 %v5881_v41  ;;  %10070 = vmatpush3.bf16.msra.mxu0 %v5927_v9  ;;  %v6303_v43 = vsel %vm1009_vm3, %v4252_v21, 0  ;;  %v4254_v24 = vld [vmem:[#allocation20 + $0x1e] sm:$0x3] }
0x369f   :  { %10075 = vmatprep.subr.bf16.mxu1 %v11163_v0  ;;  %10081 = vmatprep.subr.bf16.mxu0 %v11163_v0 }
0x36a1   :  { %10066 = vmatmul.mubr.msk.bf16.vlgmr.msra.gmra.mrb[116].mxu1 %vm3160_vm10, %v5689_v57  ;;  %10072 = vmatmul.mubr.msk.bf16.vlgmr.msra.gmra.mrb[120].mxu0 %vm3160_vm10, %v5690_v56 }
0x36a2   :  { %10076 = vmatpush3.bf16.msra.mxu1 %v5973_v31  ;;  %10082 = vmatpush3.bf16.msra.mxu0 %v6019_v42 }
0x36a3   :  { %10083 = vmatprep.mubr.msk.bf16.mxu0 %vm11164_vm0, %v11163_v0  ;;  %10077 = vmatprep.mubr.msk.bf16.mxu1 %vm11164_vm0, %v11163_v0 }
0x36a4   :  { %10087 = vmatprep.subr.bf16.mxu1 %v11163_v0  ;;  %10093 = vmatprep.subr.bf16.mxu0 %v11163_v0 }
0x36b5   :  { %v5668_v54 = vpop.xlane.xlu1 %5667 }
0x36b6   :  { %10587 = vrcp.f32 %v5668_v54 }
0x36b9   :  { %v5665_v48 = vpop.xlane.xlu0 %5664 }
0x36ba   :  { %10589 = vrcp.f32 %v5665_v48 }
0x36c0   :  { %v10588_v37 = vpop.eup %10587 }
0x36c1   :  { %v5684_v38 = vmul.f32 %v10588_v37, %v12514_v12  ;;  %v6119_v12 = vsel %vm1009_vm3, %v4248_v51, 0  ;;  %v6349_v37 = vsel %vm1009_vm3, %v4253_v52, 0 }
0x36c3   :  { %v5692_v60 = vpack.c.bf16 %v5684_v38, %v5684_v38  ;;  %v6395_v38 = vsel %vm1009_vm3, %v4254_v24, 0 }
0x36c4   :  { %v10590_v61 = vpop.eup %10589 }
0x36c5   :  { %v5683_v7 = vmul.f32 %v10590_v61, %v12518_v23  ;;  %10084 = vmatmul.mubr.msk.bf16.vlgmr.msra.gmra.mrb[124].mxu0 %vm3160_vm10, %v5692_v60  ;;  %v4249_v23 = vld [vmem:[#allocation20 + $0x14] sm:$0x3] }
0x36c6   :  { %10095 = vmatprep.mubr.msk.bf16.mxu0 %vm11164_vm0, %v11163_v0  ;;  %10094 = vmatpush3.bf16.msra.mxu0 %v6119_v12  ;;  %v6165_v5 = vsel %vm1009_vm3, %v4249_v23, 0 }
0x36c7   :  { %v5691_v11 = vpack.c.bf16 %v5683_v7, %v5683_v7  ;;  %10105 = vmatprep.subr.bf16.mxu0 %v11163_v0 }
0x36c9   :  { %10078 = vmatmul.mubr.msk.bf16.vlgmr.msra.gmra.mrb[120].mxu1 %vm3160_vm10, %v5691_v11 }
0x36ca   :  { %10089 = vmatprep.mubr.msk.bf16.mxu1 %vm11164_vm0, %v11163_v0  ;;  %10088 = vmatpush3.bf16.msra.mxu1 %v6073_v6 }
0x36cb   :  { %10099 = vmatprep.subr.bf16.mxu1 %v11163_v0 }
0x3753   :  { %v5733_v45 = vpop.f32.mrb[108].mxu1 }
0x3754   :  { %v6061_v39 = vpack.c.bf16 %v5733_v45, %v5733_v45  ;;  %v5779_v16 = vpop.f32.mrb[112].mxu0  ;;  %v10043_v35 = vpop.f32.mrb[109].mxu1 }
0x3755   :  { %v6062_v26 = vpack.c.bf16 %v5779_v16, %v5779_v16  ;;  %v10049_v32 = vpop.f32.mrb[113].mxu0  ;;  %v5736_v28 = vpop.f32.mrb[110].mxu1 }
0x3756   :  { %v5782_v34 = vpop.f32.mrb[114].mxu0  ;;  %v10044_v30 = vpop.f32.mrb[111].mxu1  ;;  %10090 = vmatmul.mubr.msk.bf16.vlgmr.msra.gmra.mrb[124].mxu1 %vm2791_vm9, %v6061_v39 }
0x3757   :  { %v10050_v10 = vpop.f32.mrb[115].mxu0  ;;  %10096 = vmatmul.mubr.msk.bf16.vlgmr.msra.gmra.mrb[128].mxu0 %vm2791_vm9, %v6062_v26  ;;  %10100 = vmatpush3.bf16.msra.mxu1 %v6165_v5 }
0x3758   :  { %10101 = vmatprep.mubr.msk.bf16.mxu1 %vm11164_vm0, %v11163_v0  ;;  %10106 = vmatpush3.bf16.msra.mxu0 %v6211_v49 }
0x3759   :  { %10107 = vmatprep.mubr.msk.bf16.mxu0 %vm11164_vm0, %v11163_v0  ;;  %10111 = vmatprep.subr.bf16.mxu1 %v11163_v0 }
0x375a   :  { %10117 = vmatprep.subr.bf16.mxu0 %v11163_v0 }
0x375b   :  { %v5825_v46 = vpop.f32.mrb[112].mxu1 }
0x375c   :  { %v6063_v33 = vpack.c.bf16 %v5825_v46, %v5825_v46  ;;  %v10055_v27 = vpop.f32.mrb[113].mxu1 }
0x375d   :  { %v5828_v15 = vpop.f32.mrb[114].mxu1 }
0x375e   :  { %v10056_v44 = vpop.f32.mrb[115].mxu1  ;;  %10102 = vmatmul.mubr.msk.bf16.vlgmr.msra.gmra.mrb[128].mxu1 %vm2791_vm9, %v6063_v33 }
0x375f   :  { %v5871_v1 = vpop.f32.mrb[116].mxu0  ;;  %10112 = vmatpush3.bf16.msra.mxu1 %v6257_v4  ;;  %10113 = vmatprep.mubr.msk.bf16.mxu1 %vm11164_vm0, %v11163_v0 }
0x3760   :  { %v6064_v17 = vpack.c.bf16 %v5871_v1, %v5871_v1  ;;  %v10061_v59 = vpop.f32.mrb[117].mxu0  ;;  %10123 = vmatprep.subr.bf16.mxu1 %v11163_v0 }
0x3761   :  { %v5874_v41 = vpop.f32.mrb[118].mxu0 }
0x3762   :  { %v10062_v9 = vpop.f32.mrb[119].mxu0  ;;  %10108 = vmatmul.mubr.msk.bf16.vlgmr.msra.gmra.mrb[132].mxu0 %vm2791_vm9, %v6064_v17 }
0x3763   :  { %10118 = vmatpush3.bf16.msra.mxu0 %v6303_v43  ;;  %10119 = vmatprep.mubr.msk.bf16.mxu0 %vm11164_vm0, %v11163_v0 }
0x3764   :  { %10129 = vmatprep.subr.bf16.mxu0 %v11163_v0 }
0x3774   :  { %v5917_v57 = vpop.f32.mrb[116].mxu1  ;;  %v5963_v56 = vpop.f32.mrb[120].mxu0 }
0x3775   :  { %v6065_v31 = vpack.c.bf16 %v5917_v57, %v5917_v57  ;;  %v6066_v42 = vpack.c.bf16 %v5963_v56, %v5963_v56  ;;  %v10067_v54 = vpop.f32.mrb[117].mxu1  ;;  %v10073_v48 = vpop.f32.mrb[121].mxu0 }
0x3776   :  { %v5920_v60 = vpop.f32.mrb[118].mxu1  ;;  %v5966_v61 = vpop.f32.mrb[122].mxu0 }
0x3777   :  { %v10068_v7 = vpop.f32.mrb[119].mxu1  ;;  %v10074_v11 = vpop.f32.mrb[123].mxu0  ;;  %10114 = vmatmul.mubr.msk.bf16.vlgmr.msra.gmra.mrb[132].mxu1 %vm2791_vm9, %v6065_v31  ;;  %10120 = vmatmul.mubr.msk.bf16.vlgmr.msra.gmra.mrb[136].mxu0 %vm2791_vm9, %v6066_v42 }
0x3778   :  { %10124 = vmatpush3.bf16.msra.mxu1 %v6349_v37  ;;  %10130 = vmatpush3.bf16.msra.mxu0 %v6395_v38 }
0x3779   :  { %10131 = vmatprep.mubr.msk.bf16.mxu0 %vm11164_vm0, %v11163_v0  ;;  %10125 = vmatprep.mubr.msk.bf16.mxu1 %vm11164_vm0, %v11163_v0 }
0x377a   :  { %10135 = vmatprep.subr.bf16.mxu1 %v11163_v0  ;;  %10143 = vmatprep.subr.bf16.mxu0 %v11163_v0 }
0x3798   :  { %v6055_v47 = vpop.f32.mrb[124].mxu0 }
0x3799   :  { %v6068_v51 = vpack.c.bf16 %v6055_v47, %v6055_v47  ;;  %v10085_v6 = vpop.f32.mrb[125].mxu0 }
0x379a   :  { %v6058_v12 = vpop.f32.mrb[126].mxu0 }
0x379b   :  { %v10086_v23 = vpop.f32.mrb[127].mxu0  ;;  %10132 = vmatmul.mubr.msk.bf16.vlgmr.msra.gmra.mrb[140].mxu0 %vm2791_vm9, %v6068_v51 }
0x379c   :  { %v6009_v53 = vpop.f32.mrb[120].mxu1  ;;  %10147 = vmatprep.mubr.msk.bf16.mxu0 %vm11164_vm0, %v11163_v0 }
0x379d   :  { %v6067_v45 = vpack.c.bf16 %v6009_v53, %v6009_v53  ;;  %v10079_v39 = vpop.f32.mrb[121].mxu1 }
0x379e   :  { %v6012_v16 = vpop.f32.mrb[122].mxu1 }
0x379f   :  { %v10080_v35 = vpop.f32.mrb[123].mxu1  ;;  %10126 = vmatmul.mubr.msk.bf16.vlgmr.msra.gmra.mrb[136].mxu1 %vm2791_vm9, %v6067_v45 }
0x37a0   :  { %10139 = vmatprep.mubr.msk.bf16.mxu1 %vm11164_vm0, %v11163_v0  ;;  %v9395_v35 = vld [vmem:[#allocation22 + $0x1] ss:$0 sm:$0xff] }
0x3829   :  { %v6109_v5 = vpop.f32.mrb[124].mxu1 }
0x382a   :  { %v6437_v26 = vsel %vm1837_vm8, %v6109_v5, 0.0  ;;  %v6155_v32 = vpop.f32.mrb[128].mxu0  ;;  %v10091_v28 = vpop.f32.mrb[125].mxu1 }
0x382b   :  { %v6438_v49 = vsel %vm1837_vm8, %v6155_v32, 0.0  ;;  %v10097_v34 = vpop.f32.mrb[129].mxu0  ;;  %v6112_v30 = vpop.f32.mrb[126].mxu1 }
0x382c   :  { %v6439_v10 = vadd.f32 %v6438_v49, %v6437_v26  ;;  %v6158_v20 = vpop.f32.mrb[130].mxu0  ;;  %v10092_v46 = vpop.f32.mrb[127].mxu1 }
0x382d   :  { %v10098_v33 = vpop.f32.mrb[131].mxu0 }
0x382e   :  { %v10389_v33 = vld [vmem:[%s13210_s15 + $0x10] sm:$0xff]  }
0x382f   :  { %10136 = vmatpush3.bf16.msra.mxu1 %v10389_v33 }
0x3830   :  { %10137 = vmatprep.subr.bf16.mxu1 %v11163_v0 }
0x3831   :  { %v6201_v27 = vpop.f32.mrb[128].mxu1 }
0x3832   :  { %v6440_v4 = vsel %vm1837_vm8, %v6201_v27, 0.0  ;;  %v10103_v15 = vpop.f32.mrb[129].mxu1  ;;  %v10390_v27 = vld [vmem:[%s13210_s15 + $0x18] sm:$0xff]  }
0x3833   :  { %v6441_v21 = vadd.f32 %v6440_v4, %v6439_v10  ;;  %v6204_v44 = vpop.f32.mrb[130].mxu1  ;;  %10138 = vmatpush3.bf16.msra.mxu1 %v10390_v27 }
0x3834   :  { %v10104_v1 = vpop.f32.mrb[131].mxu1  ;;  %10151 = vmatprep.subr.bf16.mxu1 %v11163_v0 }
0x3835   :  { %v6247_v17 = vpop.f32.mrb[132].mxu0 }
0x3836   :  { %v6442_v59 = vsel %vm1837_vm8, %v6247_v17, 0.0  ;;  %v10109_v43 = vpop.f32.mrb[133].mxu0 }
0x3837   :  { %v6443_v41 = vadd.f32 %v6442_v59, %v6441_v21  ;;  %v6250_v9 = vpop.f32.mrb[134].mxu0  ;;  %v9396_v43 = vld [vmem:[#allocation23 + $0x2] ss:$0 sm:$0xff] }
0x3838   :  { %v10110_v52 = vpop.f32.mrb[135].mxu0 }
0x3839   :  { %v9397_v52 = vld [vmem:[#allocation25 + $0x2] ss:$0 sm:$0xff] }
0x384a   :  { %v6293_v24 = vpop.f32.mrb[132].mxu1  ;;  %v6339_v57 = vpop.f32.mrb[136].mxu0 }
0x384b   :  { %v6444_v56 = vsel %vm1837_vm8, %v6293_v24, 0.0  ;;  %v10115_v31 = vpop.f32.mrb[133].mxu1  ;;  %v10121_v42 = vpop.f32.mrb[137].mxu0  ;;  %v6446_v38 = vsel %vm1837_vm8, %v6339_v57, 0.0 }
0x384c   :  { %v6445_v54 = vadd.f32 %v6444_v56, %v6443_v41  ;;  %v6296_v48 = vpop.f32.mrb[134].mxu1  ;;  %v6342_v37 = vpop.f32.mrb[138].mxu0  ;;  %v10391_v31 = vld [vmem:[#allocation28 + $0x10] sm:$0xff]   ;;  %v10392_v42 = vld [vmem:[#allocation28 + $0x18] sm:$0xff]  }
0x384d   :  { %v10116_v60 = vpop.f32.mrb[135].mxu1  ;;  %v10122_v61 = vpop.f32.mrb[139].mxu0  ;;  %10144 = vmatpush3.bf16.msra.mxu0 %v10391_v31 }
0x384e   :  { %v6447_v7 = vadd.f32 %v6446_v38, %v6445_v54  ;;  %10145 = vmatprep.subr.bf16.mxu0 %v11163_v0  ;;  %v9402_v54 = vld [vmem:[#allocation26 + $0x1] ss:$0 sm:$0xff] }
0x3851   :  { %10146 = vmatpush3.bf16.msra.mxu0 %v10392_v42 }
0x3852   :  { %10159 = vmatprep.subr.bf16.mxu0 %v11163_v0 }
0x386e   :  { %v6431_v11 = vpop.f32.mrb[140].mxu0 }
0x386f   :  { %v10133_v47 = vpop.f32.mrb[141].mxu0  ;;  %v6450_v16 = vsel %vm1837_vm8, %v6431_v11, 0.0 }
0x3870   :  { %v6434_v51 = vpop.f32.mrb[142].mxu0 }
0x3871   :  { %v10134_v6 = vpop.f32.mrb[143].mxu0 }
0x3872   :  { %v6385_v12 = vpop.f32.mrb[136].mxu1 }
0x3873   :  { %v6448_v23 = vsel %vm1837_vm8, %v6385_v12, 0.0  ;;  %v10127_v53 = vpop.f32.mrb[137].mxu1 }
0x3874   :  { %v6449_v45 = vadd.f32 %v6448_v23, %v6447_v7  ;;  %v6388_v39 = vpop.f32.mrb[138].mxu1  ;;  %v9407_v23 = vld [vmem:[%s13213_s18 + $0x1] ss:$0 sm:$0xff] }
0x3875   :  { %v10128_v5 = vpop.f32.mrb[139].mxu1 }
0x3876   :  { %v6451_v26 = vadd.f32 %v6450_v16, %v6449_v45 }
0x3878   :  { %v6458_v32 = vadd.f32 %v9395_v35, %v6451_v26 }
0x387a   :  { %v6459_v28 = vadd.f32 %v6458_v32, %v12241_v62 }
0x387c   :  { %v6464_v49 = vsel %vm1837_vm8, %v6459_v28, 0.0 }
0x387d   :  { %6465 = vadd.xlane.f32.xlu0 %v6464_v49 }
0x390a   :  { %v6466_v34 = vpop.xlane.xlu0 %6465 }
0x390b   :  { %v6467_v30 = vmul.f32 0.03125, %v6466_v34 }
0x390d   :  { %v6468_v10 = vsub.f32 %v6459_v28, %v6467_v30 }
0x390f   :  { %v6469_v20 = vmul.f32 %v6468_v10, %v6468_v10  ;;  %v6480_v41 = vmul.f32 %v9396_v43, %v6468_v10  ;;  %v10393_v10 = vld [vmem:[#allocation17 + $0x20] sm:$0xff]   ;;  %v9412_v43 = vld [vmem:[#allocation25 + $0x3] ss:$0 sm:$0xff] }
0x3911   :  { %v6470_v46 = vsel %vm1837_vm8, %v6469_v20, 0.0  ;;  %v10394_v20 = vld [vmem:[#allocation17 + $0x28] sm:$0xff]  }
0x3912   :  { %6471 = vadd.xlane.f32.xlu0 %v6470_v46 }
0x399f   :  { %v6472_v62 = vpop.xlane.xlu0 %6471 }
0x39a0   :  { %v6473_v4 = vmul.f32 0.032258064, %v6472_v62 }
0x39a2   :  { %10591 = vrsqrt.f32 %v6473_v4  ;;  %vm6483_vm15 = vcmp.eq.f32.partialorder %v6473_v4, inf  ;;  %v6486_v44 = vand.u32 2147483648, %v6473_v4  ;;  %vm6485_vm11 = vcmp.eq.f32.partialorder %v6473_v4, 0.0 }
0x39ac   :  { %v10592_v15 = vpop.eup %10591 }
0x39ad   :  { %v6482_v21 = vmul.f32 %v10592_v15, %v6473_v4 }
0x39af   :  { %v6484_v1 = vsel %vm6483_vm15, %v6473_v4, %v6482_v21 }
0x39b0   :  { %v6487_v17 = vsel %vm6485_vm11, %v6486_v44, %v6484_v1  ;;  %v9411_v1 = vld [vmem:[#allocation23 + $0x3] ss:$0 sm:$0xff] }
0x39b1   :  { %v6488_v59 = vadd.f32 1e-06, %v6487_v17 }
0x39b3   :  { %10593 = vrcp.f32 %v6488_v59 }
0x39bd   :  { %v10594_v9 = vpop.eup %10593 }
0x39be   :  { %v6490_v24 = vmul.f32 %v10594_v9, %v6480_v41 }
0x39c0   :  { %v6497_v57 = vadd.f32 %v9397_v52, %v6490_v24  ;;  %v9413_v24 = vld [vmem:[#allocation19 + $0x2] ss:$0 sm:$0xff] }
0x39c2   :  { %v6503_v56 = vpack.c.bf16 %v6497_v57, %v6497_v57 }
0x39c4   :  { %10140 = vmatmul.mubr.msk.bf16.vlgmr.msra.gmra.mrb[140].mxu1 %vm1837_vm8, %v6503_v56 }
0x39c5   :  { %10155 = vmatprep.mubr.msk.bf16.mxu1 %vm11164_vm0, %v11163_v0  ;;  %10152 = vmatpush3.bf16.msra.mxu1 %v10393_v10 }
0x39c6   :  { %10153 = vmatprep.subr.bf16.mxu1 %v11163_v0 }
0x39c9   :  { %10154 = vmatpush3.bf16.msra.mxu1 %v10394_v20 }
0x39ca   :  { %10165 = vmatprep.subr.bf16.mxu1 %v11163_v0 }
0x3a97   :  { %v6561_v48 = vpop.f32.mrb[140].mxu1 }
0x3a98   :  { %v6562_v37 = vadd.f32 %v9402_v54, %v6561_v48  ;;  %v10141_v38 = vpop.f32.mrb[141].mxu1 }
0x3a99   :  { %v6564_v60 = vpop.f32.mrb[142].mxu1 }
0x3a9a   :  { %v6568_v61 = vmul.f32 0.70710677, %v6562_v37  ;;  %v10142_v7 = vpop.f32.mrb[143].mxu1  ;;  %v6567_v47 = vmul.f32 0.5, %v6562_v37 }
0x3a9c   :  { %10595 = verf.f32 %v6568_v61 }
0x3aa6   :  { %v10596_v11 = vpop.eup %10595 }
0x3aa7   :  { %v6570_v51 = vadd.f32 1.0, %v10596_v11 }
0x3aa9   :  { %v6571_v6 = vmul.f32 %v6570_v51, %v6567_v47 }
0x3aab   :  { %v6577_v12 = vpack.c.bf16 %v6571_v6, %v6571_v6 }
0x3aad   :  { %10148 = vmatmul.mubr.msk.bf16.vlgmr.msra.gmra.mrb[144].mxu0 %vm1837_vm8, %v6577_v12 }
0x3aae   :  { %10161 = vmatprep.mubr.msk.bf16.mxu0 %vm11164_vm0, %v11163_v0 }
0x3b80   :  { %v6635_v53 = vpop.f32.mrb[144].mxu0 }
0x3b81   :  { %v6636_v45 = vadd.f32 %v9407_v23, %v6635_v53  ;;  %v10149_v39 = vpop.f32.mrb[145].mxu0 }
0x3b82   :  { %v6638_v16 = vpop.f32.mrb[146].mxu0 }
0x3b83   :  { %v6641_v35 = vadd.f32 %v6636_v45, %v6497_v57  ;;  %v10150_v5 = vpop.f32.mrb[147].mxu0 }
0x3b85   :  { %v6646_v26 = vsel %vm1837_vm8, %v6641_v35, 0.0 }
0x3b86   :  { %6647 = vadd.xlane.f32.xlu1 %v6646_v26 }
0x3c13   :  { %v6648_v32 = vpop.xlane.xlu1 %6647 }
0x3c14   :  { %v6649_v28 = vmul.f32 0.03125, %v6648_v32 }
0x3c16   :  { %v6650_v49 = vsub.f32 %v6641_v35, %v6649_v28 }
0x3c18   :  { %v6651_v34 = vmul.f32 %v6650_v49, %v6650_v49  ;;  %v6662_v17 = vmul.f32 %v9411_v1, %v6650_v49 }
0x3c1a   :  { %v6652_v30 = vsel %vm1837_vm8, %v6651_v34, 0.0 }
0x3c1b   :  { %6653 = vadd.xlane.f32.xlu0 %v6652_v30 }
0x3ca8   :  { %v6654_v46 = vpop.xlane.xlu0 %6653 }
0x3ca9   :  { %v6655_v33 = vmul.f32 0.032258064, %v6654_v46 }
0x3cab   :  { %10597 = vrsqrt.f32 %v6655_v33  ;;  %vm6665_vm12 = vcmp.eq.f32.partialorder %v6655_v33, inf  ;;  %v6668_v4 = vand.u32 2147483648, %v6655_v33  ;;  %vm6667_vm13 = vcmp.eq.f32.partialorder %v6655_v33, 0.0 }
0x3cb5   :  { %v10598_v27 = vpop.eup %10597 }
0x3cb6   :  { %v6664_v62 = vmul.f32 %v10598_v27, %v6655_v33 }
0x3cb8   :  { %v6666_v15 = vsel %vm6665_vm12, %v6655_v33, %v6664_v62 }
0x3cb9   :  { %v6669_v21 = vsel %vm6667_vm13, %v6668_v4, %v6666_v15 }
0x3cba   :  { %v6670_v44 = vadd.f32 1e-06, %v6669_v21 }
0x3cbc   :  { %10599 = vrcp.f32 %v6670_v44 }
0x3cc6   :  { %v10600_v59 = vpop.eup %10599 }
0x3cc7   :  { %v6672_v41 = vmul.f32 %v10600_v59, %v6662_v17 }
0x3cc9   :  { %v6679_v9 = vadd.f32 %v9412_v43, %v6672_v41 }
0x3ccb   :  { %v6698_v52 = vpack.c.bf16 %v6679_v9, %v6679_v9 }
0x3ccd   :  { %10156 = vmatmul.mubr.msk.bf16.vlgmr.msra.gmra.mrb[144].mxu1 %vm1837_vm8, %v6698_v52 }
0x3cce   :  { %10167 = vmatprep.mubr.msk.bf16.mxu1 %vm11164_vm0, %v11163_v0 }
0x3da0   :  { %v6754_v57 = vpop.f32.mrb[144].mxu1 }
0x3da1   :  { %v6755_v56 = vadd.f32 %v9413_v24, %v6754_v57  ;;  %v10157_v31 = vpop.f32.mrb[145].mxu1 }
0x3da2   :  { %v6757_v42 = vpop.f32.mrb[146].mxu1 }
0x3da3   :  { %6764 = vrot.lane.b32.xlu0 %v6755_v56, %s11168_s22  ;;  %6761 = vrot.lane.b32.xlu1 %v6755_v56, %s11169_s13  ;;  %v10158_v54 = vpop.f32.mrb[147].mxu1 }
0x3da7   :  { %6773 = vrot.lane.b32.xlu0 %v6755_v56, %s11173_s1  ;;  %6767 = vrot.lane.b32.xlu1 %v6755_v56, %s11171_s27 }
0x3dab   :  { %6779 = vrot.lane.b32.xlu0 %v6755_v56, %s11174_s23  ;;  %6770 = vrot.lane.b32.xlu1 %v6755_v56, %s11170_s10 }
0x3daf   :  { %6776 = vrot.lane.b32.xlu1 %v6755_v56, %s11172_s6 }
0x3db3   :  { %7062 = vrot.lane.b32.xlu1 %v6755_v56, %s11166_s20 }
0x3e15   :  { %v6765_v48 = vpop.permute.xlu0 %6764  ;;  %v6762_v37 = vpop.permute.xlu1 %6761 }
0x3e16   :  { %7066 = vrot.lane.b32.xlu1 %v6765_v48, %s11166_s20  ;;  %7064 = vrot.lane.b32.xlu0 %v6762_v37, %s11166_s20  ;;  %v6782_v38 = vcombine.low %v6755_v56, %v6765_v48  ;;  %v6783_v60 = vcombine.high %v6755_v56, %v6765_v48 }
0x3e18   :  { %v6790_v51 = vrot.slane %v6782_v38, %v11871_v14  ;;  %v6797_v6 = vrot.slane %v6783_v60, %v11871_v14 }
0x3e19   :  { %v6768_v61 = vpop.permute.xlu1 %6767  ;;  %v12670_v47 = vpop.permute.xlu0 %6773 }
0x3e1a   :  { %v6798_v7 = vcombine.low %v6762_v37, %v6768_v61  ;;  %v6799_v11 = vcombine.high %v6762_v37, %v6768_v61  ;;  %7068 = vrot.lane.b32.xlu0 %v6768_v61, %s11166_s20 }
0x3e1c   :  { %v6806_v12 = vrot.slane %v6798_v7, %v11871_v14  ;;  %v6813_v23 = vrot.slane %v6799_v11, %v11871_v14 }
0x3e1d   :  { %v12676_v53 = vpop.permute.xlu1 %6770  ;;  %v12686_v49 = vpop.permute.xlu0 %6779 }
0x3e1e   :  { %v6846_v45 = vcombine.low %v6790_v51, %v6806_v12  ;;  %v6847_v39 = vcombine.high %v6790_v51, %v6806_v12  ;;  %v6862_v16 = vcombine.low %v6797_v6, %v6813_v23  ;;  %v6863_v35 = vcombine.high %v6797_v6, %v6813_v23  ;;  %7072 = vrot.lane.b32.xlu0 %v12670_v47, %s11166_s20 }
0x3e1f   :  { %7070 = vrot.lane.b32.xlu1 %v12676_v53, %s11166_s20  ;;  %v6830_v42 = vcombine.low %v12670_v47, %v12686_v49 }
0x3e20   :  { %v6854_v5 = vrot.slane %v6846_v45, %v11877_v22  ;;  %v6861_v26 = vrot.slane %v6847_v39, %v11877_v22  ;;  %v6870_v32 = vrot.slane %v6862_v16, %v11877_v22  ;;  %v6877_v28 = vrot.slane %v6863_v35, %v11877_v22 }
0x3e21   :  { %v12688_v34 = vpop.permute.xlu1 %6776  ;;  %v6838_v7 = vrot.slane %v6830_v42, %v11871_v14 }
0x3e22   :  { %v9417_v30 = vcombine.low %v6854_v5, %v6861_v26  ;;  %v9419_v10 = vcombine.high %v6854_v5, %v6861_v26  ;;  %v9421_v20 = vcombine.low %v6870_v32, %v6877_v28  ;;  %v9423_v46 = vcombine.high %v6870_v32, %v6877_v28  ;;  %7076 = vrot.lane.b32.xlu0 %v12686_v49, %s11166_s20 }
0x3e23   :  { %7074 = vrot.lane.b32.xlu1 %v12688_v34, %s11166_s20  ;;  %v6815_v54 = vcombine.high %v12676_v53, %v12688_v34 }
0x3e24   :  { %v6926_v33 = vrot.slane %v9417_v30, %v11871_v14  ;;  %v6942_v27 = vrot.slane %v9419_v10, %v11871_v14  ;;  %v6958_v62 = vrot.slane %v9421_v20, %v11871_v14  ;;  %v6974_v4 = vrot.slane %v9423_v46, %v11871_v14 }
0x3e25   :  { %v7063_v31 = vpop.permute.xlu1 %7062  ;;  %v6829_v51 = vrot.slane %v6815_v54, %v11871_v14 }
0x3e26   :  { %7366 = vrot.lane.b32.xlu0 %v6755_v56, %s11140_s25  ;;  %v6982_v15 = vcombine.low %v6926_v33, %v6942_v27  ;;  %v7014_v21 = vcombine.low %v6958_v62, %v6974_v4  ;;  %v6983_v44 = vcombine.high %v6926_v33, %v6942_v27  ;;  %v7015_v1 = vcombine.high %v6958_v62, %v6974_v4 }
0x3e27   :  { %7368 = vrot.lane.b32.xlu1 %v6762_v37, %s11140_s25  ;;  %v6814_v56 = vcombine.low %v12676_v53, %v12688_v34 }
0x3e28   :  { %v6990_v17 = vrot.slane %v6982_v15, %v11877_v22  ;;  %v7022_v59 = vrot.slane %v7014_v21, %v11877_v22  ;;  %v6997_v43 = vrot.slane %v6983_v44, %v11877_v22  ;;  %v7029_v41 = vrot.slane %v7015_v1, %v11877_v22 }
0x3e29   :  { %v6822_v37 = vrot.slane %v6814_v56, %v11871_v14 }
0x3e2a   :  { %7372 = vrot.lane.b32.xlu0 %v6768_v61, %s11140_s25  ;;  %v12705_v9 = vcombine.low %v6990_v17, %v7022_v59  ;;  %v12707_v52 = vcombine.high %v6990_v17, %v7022_v59  ;;  %v12709_v24 = vcombine.low %v6997_v43, %v7029_v41  ;;  %v12711_v57 = vcombine.high %v6997_v43, %v7029_v41 }
0x3e2b   :  { %7370 = vrot.lane.b32.xlu1 %v6765_v48, %s11140_s25  ;;  %v6831_v61 = vcombine.high %v12670_v47, %v12686_v49  ;;  %v6878_v6 = vcombine.low %v6822_v37, %v6838_v7  ;;  %v6879_v12 = vcombine.high %v6822_v37, %v6838_v7 }
0x3e2d   :  { %v6845_v16 = vrot.slane %v6831_v61, %v11871_v14  ;;  %v12731_v28 = vrot.slane %v6878_v6, %v11877_v22  ;;  %v12734_v30 = vrot.slane %v6879_v12, %v11877_v22 }
0x3e2f   :  { %v6894_v10 = vcombine.low %v6829_v51, %v6845_v16  ;;  %v6895_v20 = vcombine.high %v6829_v51, %v6845_v16  ;;  %v9418_v41 = vcombine.low %v12731_v28, %v12734_v30 }
0x3e31   :  { %v12741_v59 = vrot.slane %v6894_v10, %v11877_v22  ;;  %v12744_v43 = vrot.slane %v6895_v20, %v11877_v22 }
0x3e88   :  { %v7065_v38 = vpop.permute.xlu0 %7064  ;;  %v7067_v60 = vpop.permute.xlu1 %7066 }
0x3e89   :  { %v7086_v48 = vcombine.low %v7063_v31, %v7067_v60  ;;  %v7087_v11 = vcombine.high %v7063_v31, %v7067_v60 }
0x3e8b   :  { %v7094_v35 = vrot.slane %v7086_v48, %v11871_v14  ;;  %v7101_v5 = vrot.slane %v7087_v11, %v11871_v14 }
0x3e8c   :  { %v7069_v23 = vpop.permute.xlu0 %7068 }
0x3e8d   :  { %v7102_v45 = vcombine.low %v7065_v38, %v7069_v23  ;;  %v7103_v39 = vcombine.high %v7065_v38, %v7069_v23 }
0x3e8f   :  { %v7110_v26 = vrot.slane %v7102_v45, %v11871_v14  ;;  %v7117_v32 = vrot.slane %v7103_v39, %v11871_v14 }
0x3e90   :  { %v7073_v46 = vpop.permute.xlu0 %7072 }
0x3e91   :  { %v7150_v33 = vcombine.low %v7094_v35, %v7110_v26  ;;  %v7151_v27 = vcombine.high %v7094_v35, %v7110_v26  ;;  %v7166_v62 = vcombine.low %v7101_v5, %v7117_v32  ;;  %v7167_v4 = vcombine.high %v7101_v5, %v7117_v32  ;;  %v7071_v15 = vpop.permute.xlu1 %7070 }
0x3e93   :  { %v7158_v21 = vrot.slane %v7150_v33, %v11877_v22  ;;  %v7165_v44 = vrot.slane %v7151_v27, %v11877_v22  ;;  %v7174_v1 = vrot.slane %v7166_v62, %v11877_v22  ;;  %v7181_v17 = vrot.slane %v7167_v4, %v11877_v22 }
0x3e94   :  { %v7077_v56 = vpop.permute.xlu0 %7076 }
0x3e95   :  { %v9425_v31 = vcombine.low %v7158_v21, %v7165_v44  ;;  %v9427_v42 = vcombine.high %v7158_v21, %v7165_v44  ;;  %v9429_v54 = vcombine.low %v7174_v1, %v7181_v17  ;;  %v9431_v37 = vcombine.high %v7174_v1, %v7181_v17  ;;  %v7075_v38 = vpop.permute.xlu1 %7074 }
0x3e96   :  { %v7134_v60 = vcombine.low %v7073_v46, %v7077_v56  ;;  %v7135_v61 = vcombine.high %v7073_v46, %v7077_v56  ;;  %v7118_v7 = vcombine.low %v7071_v15, %v7075_v38  ;;  %v7119_v48 = vcombine.high %v7071_v15, %v7075_v38 }
0x3e97   :  { %v7230_v11 = vrot.slane %v9425_v31, %v11871_v14  ;;  %v7246_v51 = vrot.slane %v9427_v42, %v11871_v14  ;;  %v7262_v6 = vrot.slane %v9429_v54, %v11871_v14  ;;  %v7278_v12 = vrot.slane %v9431_v37, %v11871_v14 }
0x3e98   :  { %v7142_v23 = vrot.slane %v7134_v60, %v11871_v14  ;;  %v7149_v45 = vrot.slane %v7135_v61, %v11871_v14  ;;  %v7126_v39 = vrot.slane %v7118_v7, %v11871_v14  ;;  %v7133_v16 = vrot.slane %v7119_v48, %v11871_v14  ;;  %v7367_v35 = vpop.permute.xlu0 %7366 }
0x3e99   :  { %v7369_v5 = vpop.permute.xlu1 %7368  ;;  %v7286_v26 = vcombine.low %v7230_v11, %v7246_v51  ;;  %v7318_v32 = vcombine.low %v7262_v6, %v7278_v12  ;;  %v7287_v10 = vcombine.high %v7230_v11, %v7246_v51  ;;  %v7319_v20 = vcombine.high %v7262_v6, %v7278_v12 }
0x3e9a   :  { %v7182_v46 = vcombine.low %v7126_v39, %v7142_v23  ;;  %v7183_v33 = vcombine.high %v7126_v39, %v7142_v23  ;;  %v7198_v27 = vcombine.low %v7133_v16, %v7149_v45  ;;  %v7199_v62 = vcombine.high %v7133_v16, %v7149_v45 }
0x3e9b   :  { %v7294_v4 = vrot.slane %v7286_v26, %v11877_v22  ;;  %v7326_v15 = vrot.slane %v7318_v32, %v11877_v22  ;;  %v7301_v21 = vrot.slane %v7287_v10, %v11877_v22  ;;  %v7333_v44 = vrot.slane %v7319_v20, %v11877_v22 }
0x3e9c   :  { %v7190_v1 = vrot.slane %v7182_v46, %v11877_v22  ;;  %v7197_v17 = vrot.slane %v7183_v33, %v11877_v22  ;;  %v7206_v56 = vrot.slane %v7198_v27, %v11877_v22  ;;  %v7213_v31 = vrot.slane %v7199_v62, %v11877_v22  ;;  %v7373_v42 = vpop.permute.xlu0 %7372 }
0x3e9d   :  { %v7406_v54 = vcombine.low %v7369_v5, %v7373_v42  ;;  %v7407_v37 = vcombine.high %v7369_v5, %v7373_v42  ;;  %v7371_v38 = vpop.permute.xlu1 %7370  ;;  %v7350_v60 = vcombine.low %v7294_v4, %v7326_v15  ;;  %v7351_v61 = vcombine.high %v7294_v4, %v7326_v15 }
0x3e9e   :  { %v9426_v7 = vcombine.low %v7190_v1, %v7197_v17  ;;  %v9428_v48 = vcombine.high %v7190_v1, %v7197_v17  ;;  %v9430_v11 = vcombine.low %v7206_v56, %v7213_v31  ;;  %v9432_v51 = vcombine.high %v7206_v56, %v7213_v31 }
0x3e9f   :  { %v7414_v6 = vrot.slane %v7406_v54, %v11871_v14  ;;  %v7421_v12 = vrot.slane %v7407_v37, %v11871_v14  ;;  %v7390_v23 = vcombine.low %v7367_v35, %v7371_v38  ;;  %v7391_v45 = vcombine.high %v7367_v35, %v7371_v38 }
0x3ea0   :  { %v12767_v39 = vrot.slane %v9426_v7, %v11871_v14  ;;  %v12770_v16 = vrot.slane %v9428_v48, %v11871_v14  ;;  %v12773_v5 = vrot.slane %v9430_v11, %v11871_v14  ;;  %v12776_v26 = vrot.slane %v9432_v51, %v11871_v14 }
0x3ea1   :  { %v7398_v32 = vrot.slane %v7390_v23, %v11871_v14  ;;  %v7405_v10 = vrot.slane %v7391_v45, %v11871_v14  ;;  %v7358_v20 = vpack.c.bf16 %v7350_v60, %v7350_v60  ;;  %v7359_v46 = vpack.c.bf16 %v7351_v61, %v7351_v61 }
0x3ea2   :  { %v9420_v35 = vcombine.high %v12731_v28, %v12734_v30  ;;  %v9422_v33 = vcombine.low %v12741_v59, %v12744_v43  ;;  %v7302_v27 = vcombine.low %v12767_v39, %v12770_v16  ;;  %v7334_v62 = vcombine.low %v12773_v5, %v12776_v26 }
0x3ea3   :  { %v7454_v4 = vcombine.low %v7398_v32, %v7414_v6  ;;  %v7455_v15 = vcombine.high %v7398_v32, %v7414_v6  ;;  %v7470_v1 = vcombine.low %v7405_v10, %v7421_v12  ;;  %v7471_v17 = vcombine.high %v7405_v10, %v7421_v12 }
0x3ea4   :  { %v7674_v56 = vsel %vm2791_vm9, %v7358_v20, 0  ;;  %v7720_v31 = vsel %vm2791_vm9, %v7359_v46, 0  ;;  %v7352_v42 = vcombine.low %v7301_v21, %v7333_v44  ;;  %v7353_v54 = vcombine.high %v7301_v21, %v7333_v44 }
0x3ea5   :  { %v7462_v37 = vrot.slane %v7454_v4, %v11877_v22  ;;  %v7469_v38 = vrot.slane %v7455_v15, %v11877_v22  ;;  %v7478_v60 = vrot.slane %v7470_v1, %v11877_v22  ;;  %v7485_v61 = vrot.slane %v7471_v17, %v11877_v22  ;;  %10160 = vmatpush3.bf16.xpose.msra.mxu0 %v7674_v56 }
0x3ea6   :  { %v9424_v7 = vcombine.high %v12741_v59, %v12744_v43  ;;  %10166 = vmatpush3.bf16.xpose.msra.mxu1 %v7720_v31  ;;  %10171 = vmatprep.subr.bf16.mxu0 %v11163_v0  ;;  %v7310_v48 = vrot.slane %v7302_v27, %v11877_v22  ;;  %v7342_v11 = vrot.slane %v7334_v62, %v11877_v22 }
0x3ea7   :  { %v9433_v21 = vcombine.low %v7462_v37, %v7469_v38  ;;  %v9435_v44 = vcombine.high %v7462_v37, %v7469_v38  ;;  %v9437_v51 = vcombine.low %v7478_v60, %v7485_v61  ;;  %v9439_v6 = vcombine.high %v7478_v60, %v7485_v61  ;;  %10177 = vmatprep.subr.bf16.mxu1 %v11163_v0 }
0x3ea8   :  { %v7054_v12 = vpack.c.bf16 %v12705_v9, %v12705_v9  ;;  %v7360_v23 = vpack.c.bf16 %v7352_v42, %v7352_v42  ;;  %v7361_v45 = vpack.c.bf16 %v7353_v54, %v7353_v54  ;;  %v6933_v20 = vrot.slane %v9418_v41, %v11871_v14 }
0x3ea9   :  { %v7534_v59 = vrot.slane %v9433_v21, %v11871_v14  ;;  %v7550_v43 = vrot.slane %v9435_v44, %v11871_v14  ;;  %v7566_v32 = vrot.slane %v9437_v51, %v11871_v14  ;;  %v7582_v10 = vrot.slane %v9439_v6, %v11871_v14 }
0x3eaa   :  { %v6949_v46 = vrot.slane %v9420_v35, %v11871_v14  ;;  %v6965_v27 = vrot.slane %v9422_v33, %v11871_v14  ;;  %v6981_v9 = vrot.slane %v9424_v7, %v11871_v14  ;;  %v7055_v62 = vpack.c.bf16 %v12707_v52, %v12707_v52 }
0x3eab   :  { %v7354_v4 = vcombine.low %v7310_v48, %v7342_v11  ;;  %v7591_v15 = vcombine.high %v7534_v59, %v7550_v43  ;;  %v7623_v1 = vcombine.high %v7566_v32, %v7582_v10  ;;  %v7766_v17 = vsel %vm2791_vm9, %v7360_v23, 0 }
0x3eac   :  { %10162 = vmatmul.mubr.msk.bf16.vlgmr.msra.gmra.mrb[148].mxu0 %vm2791_vm9, %v7054_v12  ;;  %v7303_v28 = vcombine.high %v12767_v39, %v12770_v16  ;;  %v7335_v30 = vcombine.high %v12773_v5, %v12776_v26  ;;  %v7812_v41 = vsel %vm2791_vm9, %v7361_v45, 0  ;;  %v7355_v35 = vcombine.high %v7310_v48, %v7342_v11 }
0x3ead   :  { %10168 = vmatmul.mubr.msk.bf16.vlgmr.msra.gmra.mrb[148].mxu1 %vm2791_vm9, %v7055_v62  ;;  %10172 = vmatpush3.bf16.xpose.msra.mxu0 %v7766_v17  ;;  %v7605_v52 = vrot.slane %v7591_v15, %v11877_v22  ;;  %v6998_v33 = vcombine.low %v6933_v20, %v6949_v46  ;;  %v7030_v56 = vcombine.low %v6965_v27, %v6981_v9 }
0x3eae   :  { %10178 = vmatpush3.bf16.xpose.msra.mxu1 %v7812_v41  ;;  %10173 = vmatprep.mubr.msk.bf16.mxu0 %vm11164_vm0, %v11163_v0  ;;  %v7637_v31 = vrot.slane %v7623_v1, %v11877_v22  ;;  %v7362_v39 = vpack.c.bf16 %v7354_v4, %v7354_v4  ;;  %v7317_v16 = vrot.slane %v7303_v28, %v11877_v22 }
0x3eaf   :  { %10179 = vmatprep.mubr.msk.bf16.mxu1 %vm11164_vm0, %v11163_v0  ;;  %10183 = vmatprep.subr.bf16.mxu0 %v11163_v0  ;;  %v7349_v5 = vrot.slane %v7335_v30, %v11877_v22  ;;  %v7363_v54 = vpack.c.bf16 %v7355_v35, %v7355_v35  ;;  %v7056_v37 = vpack.c.bf16 %v12709_v24, %v12709_v24 }
0x3eb0   :  { %10189 = vmatprep.subr.bf16.mxu1 %v11163_v0  ;;  %v12833_v26 = vcombine.high %v7605_v52, %v7637_v31  ;;  %v12835_v42 = vcombine.low %v7605_v52, %v7637_v31  ;;  %v7006_v38 = vrot.slane %v6998_v33, %v11877_v22  ;;  %v7038_v60 = vrot.slane %v7030_v56, %v11877_v22 }
0x3eb1   :  { %v7057_v61 = vpack.c.bf16 %v12711_v57, %v12711_v57  ;;  %v7858_v7 = vsel %vm2791_vm9, %v7362_v39, 0  ;;  %v7356_v48 = vcombine.low %v7317_v16, %v7349_v5  ;;  %v7590_v11 = vcombine.low %v7534_v59, %v7550_v43 }
0x3eb2   :  { %v7622_v21 = vcombine.low %v7566_v32, %v7582_v10  ;;  %v7904_v44 = vsel %vm2791_vm9, %v7363_v54, 0  ;;  %v7357_v24 = vcombine.high %v7317_v16, %v7349_v5  ;;  %v7050_v51 = vcombine.low %v7006_v38, %v7038_v60 }
0x3eb3   :  { %v6999_v6 = vcombine.high %v6933_v20, %v6949_v46  ;;  %v7031_v57 = vcombine.high %v6965_v27, %v6981_v9  ;;  %v7051_v12 = vcombine.high %v7006_v38, %v7038_v60  ;;  %v7364_v23 = vpack.c.bf16 %v7356_v48, %v7356_v48 }
0x3eb4   :  { %10174 = vmatmul.mubr.msk.bf16.vlgmr.msra.gmra.mrb[152].mxu0 %vm2791_vm9, %v7056_v37  ;;  %v7598_v45 = vrot.slane %v7590_v11, %v11877_v22  ;;  %v7630_v59 = vrot.slane %v7622_v21, %v11877_v22  ;;  %v7365_v43 = vpack.c.bf16 %v7357_v24, %v7357_v24  ;;  %v7058_v32 = vpack.c.bf16 %v7050_v51, %v7050_v51 }
0x3eb5   :  { %10180 = vmatmul.mubr.msk.bf16.vlgmr.msra.gmra.mrb[152].mxu1 %vm2791_vm9, %v7057_v61  ;;  %10184 = vmatpush3.bf16.xpose.msra.mxu0 %v7858_v7  ;;  %v7013_v10 = vrot.slane %v6999_v6, %v11877_v22  ;;  %v7045_v20 = vrot.slane %v7031_v57, %v11877_v22  ;;  %v7059_v46 = vpack.c.bf16 %v7051_v12, %v7051_v12  ;;  %v7950_v27 = vsel %vm2791_vm9, %v7364_v23, 0 }
0x3eb6   :  { %10190 = vmatpush3.bf16.xpose.msra.mxu1 %v7904_v44  ;;  %10185 = vmatprep.mubr.msk.bf16.mxu0 %vm11164_vm0, %v11163_v0  ;;  %v7654_v9 = vcombine.low %v7598_v45, %v7630_v59  ;;  %v7996_v62 = vsel %vm2791_vm9, %v7365_v43, 0  ;;  %v7655_v4 = vcombine.high %v7598_v45, %v7630_v59 }
0x3eb7   :  { %10191 = vmatprep.mubr.msk.bf16.mxu1 %vm11164_vm0, %v11163_v0  ;;  %10195 = vmatprep.subr.bf16.mxu0 %v11163_v0  ;;  %v7052_v15 = vcombine.low %v7013_v10, %v7045_v20  ;;  %v7053_v1 = vcombine.high %v7013_v10, %v7045_v20 }
0x3eb8   :  { %10201 = vmatprep.subr.bf16.mxu1 %v11163_v0  ;;  %v7662_v17 = vpack.c.bf16 %v7654_v9, %v7654_v9  ;;  %v7663_v28 = vpack.c.bf16 %v7655_v4, %v7655_v4 }
0x3eb9   :  { %v7060_v30 = vpack.c.bf16 %v7052_v15, %v7052_v15  ;;  %v7061_v41 = vpack.c.bf16 %v7053_v1, %v7053_v1 }
0x3eba   :  { %v8138_v35 = vsel %vm1013_vm5, %v7662_v17, 0  ;;  %v8184_v52 = vsel %vm1013_vm5, %v7663_v28, 0 }
0x3ebc   :  { %10186 = vmatmul.mubr.msk.bf16.vlgmr.msra.gmra.mrb[156].mxu0 %vm2791_vm9, %v7058_v32 }
0x3ebd   :  { %10192 = vmatmul.mubr.msk.bf16.vlgmr.msra.gmra.mrb[156].mxu1 %vm2791_vm9, %v7059_v46  ;;  %10196 = vmatpush3.bf16.xpose.msra.mxu0 %v7950_v27 }
0x3ebe   :  { %10202 = vmatpush3.bf16.xpose.msra.mxu1 %v7996_v62  ;;  %10197 = vmatprep.mubr.msk.bf16.mxu0 %vm11164_vm0, %v11163_v0 }
0x3ebf   :  { %10203 = vmatprep.mubr.msk.bf16.mxu1 %vm11164_vm0, %v11163_v0  ;;  %10207 = vmatprep.subr.bf16.mxu0 %v11163_v0 }
0x3ec0   :  { %10213 = vmatprep.subr.bf16.mxu1 %v11163_v0 }
0x3ec4   :  { %10198 = vmatmul.mubr.msk.bf16.vlgmr.msra.gmra.mrb[160].mxu0 %vm2791_vm9, %v7060_v30 }
0x3ec5   :  { %10204 = vmatmul.mubr.msk.bf16.vlgmr.msra.gmra.mrb[160].mxu1 %vm2791_vm9, %v7061_v41  ;;  %10208 = vmatpush3.bf16.msra.mxu0 %v8138_v35 }
0x3ec6   :  { %10214 = vmatpush3.bf16.msra.mxu1 %v8184_v52  ;;  %10209 = vmatprep.mubr.msk.bf16.mxu0 %vm11164_vm0, %v11163_v0 }
0x3ec7   :  { %10215 = vmatprep.mubr.msk.bf16.mxu1 %vm11164_vm0, %v11163_v0  ;;  %10219 = vmatprep.subr.bf16.mxu0 %v11163_v0 }
0x3ec8   :  { %10225 = vmatprep.subr.bf16.mxu1 %v11163_v0 }
0x3f7f   :  { %v7710_v33 = vpop.f32.mrb[148].mxu0 }
0x3f80   :  { %v7756_v56 = vpop.f32.mrb[148].mxu1  ;;  %v10163_v31 = vpop.f32.mrb[149].mxu0  ;;  %v8038_v39 = vsel %vm3160_vm10, %v7710_v33, -inf }
0x3f81   :  { %v10169_v16 = vpop.f32.mrb[149].mxu1  ;;  %v8041_v5 = vsel %vm3160_vm10, %v7756_v56, -inf  ;;  %8039 = vmax.xlane.f32.xlu1 %v8038_v39  ;;  %v7713_v54 = vpop.f32.mrb[150].mxu0 }
0x3f82   :  { %8042 = vmax.xlane.f32.xlu0 %v8041_v5  ;;  %v7759_v37 = vpop.f32.mrb[150].mxu1  ;;  %v10164_v38 = vpop.f32.mrb[151].mxu0 }
0x3f83   :  { %v10170_v60 = vpop.f32.mrb[151].mxu1 }
0x3f87   :  { %v7802_v61 = vpop.f32.mrb[152].mxu0 }
0x3f88   :  { %v7848_v7 = vpop.f32.mrb[152].mxu1  ;;  %v10175_v48 = vpop.f32.mrb[153].mxu0  ;;  %v8044_v11 = vsel %vm3160_vm10, %v7802_v61, -inf }
0x3f89   :  { %v10181_v21 = vpop.f32.mrb[153].mxu1  ;;  %v8047_v44 = vsel %vm3160_vm10, %v7848_v7, -inf  ;;  %8045 = vmax.xlane.f32.xlu0 %v8044_v11  ;;  %v7805_v24 = vpop.f32.mrb[154].mxu0 }
0x3f8a   :  { %v7851_v51 = vpop.f32.mrb[154].mxu1  ;;  %8048 = vmax.xlane.f32.xlu1 %v8047_v44  ;;  %v10176_v6 = vpop.f32.mrb[155].mxu0 }
0x3f8b   :  { %v10182_v57 = vpop.f32.mrb[155].mxu1 }
0x3f8f   :  { %v7894_v12 = vpop.f32.mrb[156].mxu0 }
0x3f90   :  { %v7940_v23 = vpop.f32.mrb[156].mxu1  ;;  %v10187_v45 = vpop.f32.mrb[157].mxu0  ;;  %v8050_v59 = vsel %vm3160_vm10, %v7894_v12, -inf }
0x3f91   :  { %v10193_v43 = vpop.f32.mrb[157].mxu1  ;;  %v8053_v32 = vsel %vm3160_vm10, %v7940_v23, -inf  ;;  %8051 = vmax.xlane.f32.xlu0 %v8050_v59  ;;  %v7897_v10 = vpop.f32.mrb[158].mxu0 }
0x3f92   :  { %v7943_v20 = vpop.f32.mrb[158].mxu1  ;;  %8054 = vmax.xlane.f32.xlu1 %v8053_v32  ;;  %v10188_v46 = vpop.f32.mrb[159].mxu0 }
0x3f93   :  { %v10194_v27 = vpop.f32.mrb[159].mxu1 }
0x3f97   :  { %v12883_v9 = vpop.f32.mrb[160].mxu0 }
0x3f98   :  { %v8032_v62 = vpop.f32.mrb[160].mxu1  ;;  %v10199_v4 = vpop.f32.mrb[161].mxu0  ;;  %v8056_v15 = vsel %vm3160_vm10, %v12883_v9, -inf }
0x3f99   :  { %v10205_v1 = vpop.f32.mrb[161].mxu1  ;;  %v8059_v17 = vsel %vm3160_vm10, %v8032_v62, -inf  ;;  %8057 = vmax.xlane.f32.xlu0 %v8056_v15  ;;  %v7989_v28 = vpop.f32.mrb[162].mxu0 }
0x3f9a   :  { %v8035_v30 = vpop.f32.mrb[162].mxu1  ;;  %8060 = vmax.xlane.f32.xlu1 %v8059_v17  ;;  %v10200_v41 = vpop.f32.mrb[163].mxu0 }
0x3f9b   :  { %v10206_v35 = vpop.f32.mrb[163].mxu1  ;;  %v977_v30 = vrot.slane %v11723_v13, 1 }
0x3fab   :  { %7376 = vrot.lane.b32.xlu1 %v12670_v47, %s11140_s25 }
0x3faf   :  { %7374 = vrot.lane.b32.xlu0 %v12676_v53, %s11140_s25 }
0x400e   :  { %v8040_v52 = vpop.xlane.xlu1 %8039 }
0x400f   :  { %v8043_v31 = vpop.xlane.xlu0 %8042  ;;  %v8062_v39 = vsub.f32 %v7710_v33, %v8040_v52 }
0x4010   :  { %v8063_v16 = vsub.f32 %v7756_v56, %v8043_v31 }
0x4011   :  { %v8070_v5 = vmul.f32 1.442695, %v8062_v39 }
0x4012   :  { %v8072_v54 = vmul.f32 1.442695, %v8063_v16 }
0x4013   :  { %10601 = vpow2.f32 %v8070_v5 }
0x4014   :  { %10603 = vpow2.f32 %v8072_v54  ;;  %v7664_v54 = vpack.c.bf16 %v12835_v42, %v12835_v42 }
0x4016   :  { %v8046_v37 = vpop.xlane.xlu0 %8045 }
0x4017   :  { %v8049_v38 = vpop.xlane.xlu1 %8048  ;;  %v8064_v60 = vsub.f32 %v7802_v61, %v8046_v37 }
0x4018   :  { %v8065_v48 = vsub.f32 %v7848_v7, %v8049_v38  ;;  %v7665_v38 = vpack.c.bf16 %v12833_v26, %v12833_v26 }
0x4019   :  { %v8074_v11 = vmul.f32 1.442695, %v8064_v60 }
0x401a   :  { %v8076_v21 = vmul.f32 1.442695, %v8065_v48 }
0x401b   :  { %10605 = vpow2.f32 %v8074_v11  ;;  %v8230_v11 = vsel %vm1013_vm5, %v7664_v54, 0 }
0x401c   :  { %10607 = vpow2.f32 %v8076_v21 }
0x401d   :  { %v12892_v47 = vpop.eup %10601 }
0x401e   :  { %v12894_v44 = vpop.eup %10603  ;;  %v8052_v53 = vpop.xlane.xlu0 %8051  ;;  %v8086_v33 = vsel %vm3160_vm10, %v12892_v47, 0.0 }
0x401f   :  { %v8055_v56 = vpop.xlane.xlu1 %8054  ;;  %v8066_v24 = vsub.f32 %v7894_v12, %v8052_v53  ;;  %v8089_v51 = vsel %vm3160_vm10, %v12894_v44, 0.0  ;;  %8087 = vadd.xlane.f32.xlu0 %v8086_v33  ;;  %v8276_v53 = vsel %vm1013_vm5, %v7665_v38, 0 }
0x4020   :  { %v8067_v61 = vsub.f32 %v7940_v23, %v8055_v56  ;;  %8090 = vadd.xlane.f32.xlu1 %v8089_v51 }
0x4021   :  { %v8078_v7 = vmul.f32 1.442695, %v8066_v24 }
0x4022   :  { %v8080_v6 = vmul.f32 1.442695, %v8067_v61 }
0x4023   :  { %10609 = vpow2.f32 %v8078_v7 }
0x4024   :  { %10611 = vpow2.f32 %v8080_v6 }
0x4025   :  { %v12900_v57 = vpop.eup %10605 }
0x4026   :  { %v12902_v45 = vpop.eup %10607  ;;  %v8092_v59 = vsel %vm3160_vm10, %v12900_v57, 0.0  ;;  %v8058_v46 = vpop.xlane.xlu0 %8057 }
0x4027   :  { %8093 = vadd.xlane.f32.xlu1 %v8092_v59  ;;  %v8095_v12 = vsel %vm3160_vm10, %v12902_v45, 0.0  ;;  %v8061_v20 = vpop.xlane.xlu1 %8060  ;;  %v8068_v4 = vsub.f32 %v12883_v9, %v8058_v46  ;;  %v12931_v9 = vadd.f32 %v977_v30, %v11623_v8 }
0x4028   :  { %8096 = vadd.xlane.f32.xlu0 %v8095_v12  ;;  %v8069_v27 = vsub.f32 %v8032_v62, %v8061_v20  ;;  %v12936_v62 = vadd.f32 %v11838_v40, %v11725_v18 }
0x4029   :  { %v8082_v1 = vmul.f32 1.442695, %v8068_v4 }
0x402a   :  { %v8084_v15 = vmul.f32 1.442695, %v8069_v27  ;;  %v7375_v35 = vpop.permute.xlu0 %7374 }
0x402b   :  { %v7377_v52 = vpop.permute.xlu1 %7376 }
0x402c   :  { %10613 = vpow2.f32 %v8084_v15 }
0x402d   :  { %v12908_v43 = vpop.eup %10609  ;;  %10615 = vpow2.f32 %v8082_v1 }
0x402e   :  { %v12910_v23 = vpop.eup %10611  ;;  %v8098_v32 = vsel %vm3160_vm10, %v12908_v43, 0.0  ;;  %10617 = vtanh.f32 %v12931_v9 }
0x402f   :  { %v8101_v10 = vsel %vm3160_vm10, %v12910_v23, 0.0  ;;  %8099 = vadd.xlane.f32.xlu0 %v8098_v32  ;;  %10619 = vtanh.f32 %v12936_v62 }
0x4030   :  { %8102 = vadd.xlane.f32.xlu1 %v8101_v10 }
0x4036   :  { %v12921_v17 = vpop.eup %10613 }
0x4037   :  { %v12923_v28 = vpop.eup %10615 }
0x4038   :  { %v10618_v13 = vpop.eup %10617 }
0x4039   :  { %v10620_v41 = vpop.eup %10619 }
0x4041   :  { %7378 = vrot.lane.b32.xlu1 %v12688_v34, %s11140_s25  ;;  %v8107_v34 = vsel %vm3160_vm10, %v12921_v17, 0.0 }
0x4045   :  { %7380 = vrot.lane.b32.xlu0 %v12686_v49, %s11140_s25  ;;  %v8104_v49 = vsel %vm3160_vm10, %v12923_v28, 0.0 }
0x4064   :  { %8108 = vadd.xlane.f32.xlu0 %v8107_v34 }
0x4065   :  { %8105 = vadd.xlane.f32.xlu1 %v8104_v49 }
0x4076   :  { %992 = vrot.lane.b32.xlu1 %v10618_v13, %s11166_s20 }
0x407a   :  { %1694 = vrot.lane.b32.xlu0 %v10620_v41, %s11166_s20 }
0x40ac   :  { %v8088_v31 = vpop.xlane.xlu0 %8087 }
0x40ad   :  { %v8091_v39 = vpop.xlane.xlu1 %8090  ;;  %10621 = vrcp.f32 %v8088_v31 }
0x40ae   :  { %10623 = vrcp.f32 %v8091_v39 }
0x40b4   :  { %v8094_v8 = vpop.xlane.xlu1 %8093 }
0x40b5   :  { %10625 = vrcp.f32 %v8094_v8  ;;  %v8097_v16 = vpop.xlane.xlu0 %8096 }
0x40b6   :  { %10627 = vrcp.f32 %v8097_v16 }
0x40b7   :  { %v10622_v18 = vpop.eup %10621 }
0x40b8   :  { %v10624_v40 = vpop.eup %10623  ;;  %v8118_v5 = vmul.f32 %v10622_v18, %v12892_v47 }
0x40b9   :  { %v8119_v37 = vmul.f32 %v10624_v40, %v12894_v44 }
0x40ba   :  { %v8126_v60 = vpack.c.bf16 %v8118_v5, %v8118_v5 }
0x40bb   :  { %v8127_v48 = vpack.c.bf16 %v8119_v37, %v8119_v37 }
0x40bc   :  { %10210 = vmatmul.mubr.msk.bf16.vlgmr.msra.gmra.mrb[164].mxu0 %vm3160_vm10, %v8126_v60  ;;  %v8100_v21 = vpop.xlane.xlu0 %8099 }
0x40bd   :  { %10216 = vmatmul.mubr.msk.bf16.vlgmr.msra.gmra.mrb[164].mxu1 %vm3160_vm10, %v8127_v48  ;;  %v8103_v47 = vpop.xlane.xlu1 %8102  ;;  %10220 = vmatpush3.bf16.msra.mxu0 %v8230_v11  ;;  %10629 = vrcp.f32 %v8100_v21  ;;  %v980_v21 = vsub.f32 0.0, %v12931_v9 }
0x40be   :  { %10226 = vmatpush3.bf16.msra.mxu1 %v8276_v53  ;;  %10221 = vmatprep.mubr.msk.bf16.mxu0 %vm11164_vm0, %v11163_v0  ;;  %10631 = vrcp.f32 %v8103_v47  ;;  %v1682_v53 = vsub.f32 0.0, %v12936_v62 }
0x40bf   :  { %v10626_v42 = vpop.eup %10625  ;;  %10227 = vmatprep.mubr.msk.bf16.mxu1 %vm11164_vm0, %v11163_v0  ;;  %10231 = vmatprep.subr.bf16.mxu0 %v11163_v0 }
0x40c0   :  { %v10628_v26 = vpop.eup %10627  ;;  %v8120_v44 = vmul.f32 %v10626_v42, %v12900_v57  ;;  %v7381_v33 = vpop.permute.xlu0 %7380  ;;  %10237 = vmatprep.subr.bf16.mxu1 %v11163_v0 }
0x40c1   :  { %v8121_v56 = vmul.f32 %v10628_v26, %v12902_v45  ;;  %v7379_v24 = vpop.permute.xlu1 %7378  ;;  %v7438_v51 = vcombine.low %v7377_v52, %v7381_v33  ;;  %v7439_v61 = vcombine.high %v7377_v52, %v7381_v33 }
0x40c2   :  { %v7422_v7 = vcombine.low %v7375_v35, %v7379_v24  ;;  %v7423_v6 = vcombine.high %v7375_v35, %v7379_v24  ;;  %v8128_v59 = vpack.c.bf16 %v8120_v44, %v8120_v44 }
0x40c3   :  { %v7446_v12 = vrot.slane %v7438_v51, %v11871_v14  ;;  %v7453_v32 = vrot.slane %v7439_v61, %v11871_v14  ;;  %v8129_v10 = vpack.c.bf16 %v8121_v56, %v8121_v56  ;;  %v981_v51 = vmul.f32 1.442695, %v980_v21 }
0x40c4   :  { %v7430_v20 = vrot.slane %v7422_v7, %v11871_v14  ;;  %v7437_v57 = vrot.slane %v7423_v6, %v11871_v14  ;;  %10222 = vmatmul.mubr.msk.bf16.vlgmr.msra.gmra.mrb[168].mxu0 %vm3160_vm10, %v8128_v59  ;;  %v1683_v61 = vmul.f32 1.442695, %v1682_v53 }
0x40c5   :  { %10228 = vmatmul.mubr.msk.bf16.vlgmr.msra.gmra.mrb[168].mxu1 %vm3160_vm10, %v8129_v10  ;;  %10233 = vmatprep.mubr.msk.bf16.mxu0 %vm11164_vm0, %v11163_v0 }
0x40c6   :  { %v7486_v45 = vcombine.low %v7430_v20, %v7446_v12  ;;  %v7487_v46 = vcombine.high %v7430_v20, %v7446_v12  ;;  %v7502_v27 = vcombine.low %v7437_v57, %v7453_v32  ;;  %v7503_v4 = vcombine.high %v7437_v57, %v7453_v32  ;;  %10239 = vmatprep.mubr.msk.bf16.mxu1 %vm11164_vm0, %v11163_v0 }
0x40c7   :  { %v10630_v38 = vpop.eup %10629  ;;  %10633 = vpow2.f32 %v1683_v61  ;;  %v6692_v61 = vld [vmem:[#allocation20 + $0x28] sm:$0x3] }
0x40c8   :  { %v7494_v15 = vrot.slane %v7486_v45, %v11877_v22  ;;  %v7501_v1 = vrot.slane %v7487_v46, %v11877_v22  ;;  %v7510_v30 = vrot.slane %v7502_v27, %v11877_v22  ;;  %v7517_v34 = vrot.slane %v7503_v4, %v11877_v22  ;;  %v10632_v11 = vpop.eup %10631 }
0x40c9   :  { %v8123_v44 = vmul.f32 %v10632_v11, %v12910_v23  ;;  %v8122_v33 = vmul.f32 %v10630_v38, %v12908_v43  ;;  %10635 = vpow2.f32 %v981_v51 }
0x40ca   :  { %v9434_v49 = vcombine.low %v7494_v15, %v7501_v1  ;;  %v9436_v13 = vcombine.high %v7494_v15, %v7501_v1  ;;  %v9438_v41 = vcombine.low %v7510_v30, %v7517_v34  ;;  %v9440_v35 = vcombine.high %v7510_v30, %v7517_v34 }
0x40cb   :  { %v8130_v62 = vpack.c.bf16 %v8122_v33, %v8122_v33  ;;  %v8131_v59 = vpack.c.bf16 %v8123_v44, %v8123_v44 }
0x40cc   :  { %v7541_v52 = vrot.slane %v9434_v49, %v11871_v14  ;;  %v7557_v31 = vrot.slane %v9436_v13, %v11871_v14  ;;  %v7573_v39 = vrot.slane %v9438_v41, %v11871_v14  ;;  %v7589_v8 = vrot.slane %v9440_v35, %v11871_v14 }
0x40ce   :  { %v7606_v16 = vcombine.low %v7541_v52, %v7557_v31  ;;  %v7607_v18 = vcombine.high %v7541_v52, %v7557_v31  ;;  %v7638_v40 = vcombine.low %v7573_v39, %v7589_v8  ;;  %v7639_v5 = vcombine.high %v7573_v39, %v7589_v8  ;;  %v6688_v31 = vld [vmem:[#allocation20 + $0x20] sm:$0x3]  ;;  %v6689_v39 = vld [vmem:[#allocation20 + $0x22] sm:$0x3] }
0x40cf   :  { %v8514_v8 = vsel %vm1009_vm3, %v6688_v31, 0 }
0x40d0   :  { %v7614_v54 = vrot.slane %v7606_v16, %v11877_v22  ;;  %v7621_v37 = vrot.slane %v7607_v18, %v11877_v22  ;;  %v7646_v60 = vrot.slane %v7638_v40, %v11877_v22  ;;  %v7653_v48 = vrot.slane %v7639_v5, %v11877_v22 }
0x40d1   :  { %v10634_v12 = vpop.eup %10633  ;;  %v988_v16 = vrot.slane %v11696_v58, 7  ;;  %v6690_v58 = vld [vmem:[#allocation20 + $0x24] sm:$0x3] }
0x40d2   :  { %v7658_v47 = vcombine.low %v7614_v54, %v7646_v60  ;;  %v7659_v14 = vcombine.high %v7614_v54, %v7646_v60  ;;  %v7660_v42 = vcombine.low %v7621_v37, %v7653_v48  ;;  %v7661_v26 = vcombine.high %v7621_v37, %v7653_v48 }
0x40d3   :  { %v10636_v32 = vpop.eup %10635  ;;  %v1685_v10 = vadd.f32 1.0, %v10634_v12 }
0x40d4   :  { %v7666_v56 = vpack.c.bf16 %v7658_v47, %v7658_v47  ;;  %v7667_v24 = vpack.c.bf16 %v7659_v14, %v7659_v14  ;;  %v7668_v6 = vpack.c.bf16 %v7660_v42, %v7660_v42  ;;  %v7669_v9 = vpack.c.bf16 %v7661_v26, %v7661_v26 }
0x40d5   :  { %v983_v20 = vadd.f32 1.0, %v10636_v32  ;;  %10637 = vrcp.f32 %v1685_v10  ;;  %v8606_v14 = vsel %vm1009_vm3, %v6690_v58, 0 }
0x40d6   :  { %v8322_v7 = vsel %vm1013_vm5, %v7666_v56, 0  ;;  %v8368_v22 = vsel %vm1013_vm5, %v7667_v24, 0  ;;  %v8414_v43 = vsel %vm1013_vm5, %v7668_v6, 0  ;;  %v8460_v23 = vsel %vm1013_vm5, %v7669_v9, 0 }
0x40d7   :  { %10232 = vmatpush3.bf16.msra.mxu0 %v8322_v7  ;;  %10238 = vmatpush3.bf16.msra.mxu1 %v8368_v22  ;;  %10639 = vrcp.f32 %v983_v20  ;;  %v6693_v7 = vld [vmem:[#allocation20 + $0x2a] sm:$0x3] }
0x40d8   :  { %10243 = vmatprep.subr.bf16.mxu0 %v11163_v0  ;;  %10249 = vmatprep.subr.bf16.mxu1 %v11163_v0  ;;  %v8744_v32 = vsel %vm1009_vm3, %v6693_v7, 0 }
0x40da   :  { %10234 = vmatmul.mubr.msk.bf16.vlgmr.msra.gmra.mrb[172].mxu0 %vm3160_vm10, %v8130_v62  ;;  %10240 = vmatmul.mubr.msk.bf16.vlgmr.msra.gmra.mrb[172].mxu1 %vm3160_vm10, %v8131_v59  ;;  %v8698_v59 = vsel %vm1009_vm3, %v6692_v61, 0 }
0x40db   :  { %10244 = vmatpush3.bf16.msra.mxu0 %v8414_v43  ;;  %10250 = vmatpush3.bf16.msra.mxu1 %v8460_v23 }
0x40dc   :  { %10245 = vmatprep.mubr.msk.bf16.mxu0 %vm11164_vm0, %v11163_v0  ;;  %10251 = vmatprep.mubr.msk.bf16.mxu1 %vm11164_vm0, %v11163_v0 }
0x40dd   :  { %10255 = vmatprep.subr.bf16.mxu0 %v11163_v0  ;;  %10261 = vmatprep.subr.bf16.mxu1 %v11163_v0 }
0x40df   :  { %v12999_v46 = vpop.eup %10637 }
0x40e1   :  { %v13001_v4 = vpop.eup %10639 }
0x40e2   :  { %v990_v5 = vmul.f32 %v13001_v4, %v988_v16 }
0x40f1   :  { %v8109_v57 = vpop.xlane.xlu0 %8108 }
0x40f2   :  { %v8106_v45 = vpop.xlane.xlu1 %8105  ;;  %10641 = vrcp.f32 %v8109_v57 }
0x40f3   :  { %10643 = vrcp.f32 %v8106_v45  ;;  %v6694_v45 = vld [vmem:[#allocation20 + $0x2c] sm:$0x3] }
0x40f5   :  { %v1695_v27 = vpop.permute.xlu0 %1694 }
0x40f6   :  { %v993_v15 = vpop.permute.xlu1 %992  ;;  %v1697_v1 = vmul.f32 %v12999_v46, %v1695_v27  ;;  %v6695_v27 = vld [vmem:[#allocation20 + $0x2e] sm:$0x3] }
0x40f7   :  { %v995_v30 = vmul.f32 %v13001_v4, %v993_v15 }
0x40f8   :  { %1699 = vrot.lane.b32.xlu1 %v1697_v1, %s11151_s3 }
0x40f9   :  { %997 = vrot.lane.b32.xlu0 %v995_v30, %s11151_s3 }
0x40fc   :  { %v10642_v34 = vpop.eup %10641 }
0x40fd   :  { %v10644_v49 = vpop.eup %10643  ;;  %v8125_v13 = vmul.f32 %v10642_v34, %v12921_v17  ;;  %v8560_v17 = vsel %vm1009_vm3, %v6689_v39, 0 }
0x40fe   :  { %v8124_v41 = vmul.f32 %v10644_v49, %v12923_v28  ;;  %v1690_v28 = vrot.slane %v11817_v19, 1  ;;  %v6691_v19 = vld [vmem:[#allocation20 + $0x26] sm:$0x3] }
0x40ff   :  { %v8133_v35 = vpack.c.bf16 %v8125_v13, %v8125_v13  ;;  %v8652_v33 = vsel %vm1009_vm3, %v6691_v19, 0 }
0x4100   :  { %v8132_v52 = vpack.c.bf16 %v8124_v41, %v8124_v41  ;;  %v1692_v18 = vmul.f32 %v12999_v46, %v1690_v28  ;;  %v8790_v41 = vsel %vm1009_vm3, %v6694_v45, 0 }
0x4101   :  { %10252 = vmatmul.mubr.msk.bf16.vlgmr.msra.gmra.mrb[176].mxu1 %vm3160_vm10, %v8133_v35  ;;  %v8836_v35 = vsel %vm1009_vm3, %v6695_v27, 0 }
0x4102   :  { %10246 = vmatmul.mubr.msk.bf16.vlgmr.msra.gmra.mrb[176].mxu0 %vm3160_vm10, %v8132_v52  ;;  %10263 = vmatprep.mubr.msk.bf16.mxu1 %vm11164_vm0, %v11163_v0  ;;  %vm1019_vm10 = vcmask 1046528  }
0x4103   :  { %10257 = vmatprep.mubr.msk.bf16.mxu0 %vm11164_vm0, %v11163_v0  ;;  %10256 = vmatpush3.bf16.msra.mxu0 %v8514_v8 }
0x4104   :  { %10262 = vmatpush3.bf16.msra.mxu1 %v8560_v17  ;;  %10267 = vmatprep.subr.bf16.mxu0 %v11163_v0 }
0x4105   :  { %10273 = vmatprep.subr.bf16.mxu1 %v11163_v0 }
0x416a   :  { %v1700_v40 = vpop.permute.xlu1 %1699 }
0x416b   :  { %v13023_v54 = vadd.f32 %v1700_v40, %v1692_v18  ;;  %v998_v37 = vpop.permute.xlu0 %997 }
0x416c   :  { %v13025_v38 = vadd.f32 %v998_v37, %v990_v5 }
0x416d   :  { %10645 = vtanh.f32 %v13023_v54  ;;  %v1730_v61 = vrot.slane %v13023_v54, 1 }
0x416e   :  { %10647 = vtanh.f32 %v13025_v38 }
0x4177   :  { %v10646_v60 = vpop.eup %10645 }
0x4178   :  { %v10648_v48 = vpop.eup %10647  ;;  %1705 = vrot.lane.b32.xlu1 %v10646_v60, %s11147_s9 }
0x4179   :  { %1003 = vrot.lane.b32.xlu0 %v10648_v48, %s11147_s9 }
0x418f   :  { %v8174_v11 = vpop.f32.mrb[164].mxu0 }
0x4190   :  { %v8502_v21 = vpack.c.bf16 %v8174_v11, %v8174_v11  ;;  %v8220_v53 = vpop.f32.mrb[164].mxu1  ;;  %v10211_v47 = vpop.f32.mrb[165].mxu0 }
0x4191   :  { %v8503_v42 = vpack.c.bf16 %v8220_v53, %v8220_v53  ;;  %v10217_v26 = vpop.f32.mrb[165].mxu1  ;;  %v8177_v44 = vpop.f32.mrb[166].mxu0 }
0x4192   :  { %v8223_v56 = vpop.f32.mrb[166].mxu1  ;;  %v10212_v24 = vpop.f32.mrb[167].mxu0  ;;  %10258 = vmatmul.mubr.msk.bf16.vlgmr.msra.gmra.mrb[180].mxu0 %vm2791_vm9, %v8502_v21 }
0x4193   :  { %v10218_v51 = vpop.f32.mrb[167].mxu1  ;;  %10264 = vmatmul.mubr.msk.bf16.vlgmr.msra.gmra.mrb[180].mxu1 %vm2791_vm9, %v8503_v42  ;;  %10268 = vmatpush3.bf16.msra.mxu0 %v8606_v14 }
0x4194   :  { %10274 = vmatpush3.bf16.msra.mxu1 %v8652_v33  ;;  %10269 = vmatprep.mubr.msk.bf16.mxu0 %vm11164_vm0, %v11163_v0 }
0x4195   :  { %10275 = vmatprep.mubr.msk.bf16.mxu1 %vm11164_vm0, %v11163_v0  ;;  %10279 = vmatprep.subr.bf16.mxu0 %v11163_v0 }
0x4196   :  { %10285 = vmatprep.subr.bf16.mxu1 %v11163_v0 }
0x4197   :  { %v8266_v22 = vpop.f32.mrb[168].mxu0 }
0x4198   :  { %v8504_v6 = vpack.c.bf16 %v8266_v22, %v8266_v22  ;;  %v8312_v9 = vpop.f32.mrb[168].mxu1  ;;  %v10223_v62 = vpop.f32.mrb[169].mxu0 }
0x4199   :  { %v8505_v43 = vpack.c.bf16 %v8312_v9, %v8312_v9  ;;  %v10229_v23 = vpop.f32.mrb[169].mxu1  ;;  %v8269_v12 = vpop.f32.mrb[170].mxu0 }
0x419a   :  { %v8315_v10 = vpop.f32.mrb[170].mxu1  ;;  %v10224_v20 = vpop.f32.mrb[171].mxu0  ;;  %10270 = vmatmul.mubr.msk.bf16.vlgmr.msra.gmra.mrb[184].mxu0 %vm2791_vm9, %v8504_v6 }
0x419b   :  { %v10230_v57 = vpop.f32.mrb[171].mxu1  ;;  %10276 = vmatmul.mubr.msk.bf16.vlgmr.msra.gmra.mrb[184].mxu1 %vm2791_vm9, %v8505_v43  ;;  %10280 = vmatpush3.bf16.msra.mxu0 %v8698_v59 }
0x419c   :  { %10286 = vmatpush3.bf16.msra.mxu1 %v8744_v32  ;;  %10281 = vmatprep.mubr.msk.bf16.mxu0 %vm11164_vm0, %v11163_v0 }
0x419d   :  { %10287 = vmatprep.mubr.msk.bf16.mxu1 %vm11164_vm0, %v11163_v0  ;;  %10291 = vmatprep.subr.bf16.mxu0 %v11163_v0 }
0x419e   :  { %10297 = vmatprep.subr.bf16.mxu1 %v11163_v0 }
0x41ad   :  { %v8358_v15 = vpop.f32.mrb[172].mxu0  ;;  %v8404_v1 = vpop.f32.mrb[172].mxu1 }
0x41ae   :  { %v8506_v30 = vpack.c.bf16 %v8358_v15, %v8358_v15  ;;  %v8507_v34 = vpack.c.bf16 %v8404_v1, %v8404_v1  ;;  %v10235_v49 = vpop.f32.mrb[173].mxu0  ;;  %v10241_v13 = vpop.f32.mrb[173].mxu1 }
0x41af   :  { %v8361_v52 = vpop.f32.mrb[174].mxu0  ;;  %v8407_v31 = vpop.f32.mrb[174].mxu1 }
0x41b0   :  { %v10236_v39 = vpop.f32.mrb[175].mxu0  ;;  %v10242_v8 = vpop.f32.mrb[175].mxu1  ;;  %10282 = vmatmul.mubr.msk.bf16.vlgmr.msra.gmra.mrb[188].mxu0 %vm2791_vm9, %v8506_v30  ;;  %10288 = vmatmul.mubr.msk.bf16.vlgmr.msra.gmra.mrb[188].mxu1 %vm2791_vm9, %v8507_v34 }
0x41b1   :  { %10292 = vmatpush3.bf16.msra.mxu0 %v8790_v41  ;;  %10298 = vmatpush3.bf16.msra.mxu1 %v8836_v35 }
0x41b2   :  { %10293 = vmatprep.mubr.msk.bf16.mxu0 %vm11164_vm0, %v11163_v0  ;;  %10299 = vmatprep.mubr.msk.bf16.mxu1 %vm11164_vm0, %v11163_v0 }
0x41b3   :  { %10303 = vmatprep.subr.bf16.mxu0 %v11163_v0  ;;  %10311 = vmatprep.subr.bf16.mxu1 %v11163_v0 }
0x41d4   :  { %v8496_v17 = vpop.f32.mrb[176].mxu1 }
0x41d5   :  { %v8450_v28 = vpop.f32.mrb[176].mxu0  ;;  %v8509_v16 = vpack.c.bf16 %v8496_v17, %v8496_v17  ;;  %v10253_v18 = vpop.f32.mrb[177].mxu1 }
0x41d6   :  { %v8508_v40 = vpack.c.bf16 %v8450_v28, %v8450_v28  ;;  %v10247_v5 = vpop.f32.mrb[177].mxu0  ;;  %v8499_v37 = vpop.f32.mrb[178].mxu1 }
0x41d7   :  { %v8453_v60 = vpop.f32.mrb[178].mxu0  ;;  %v10254_v48 = vpop.f32.mrb[179].mxu1  ;;  %10300 = vmatmul.mubr.msk.bf16.vlgmr.msra.gmra.mrb[192].mxu1 %vm2791_vm9, %v8509_v16 }
0x41d8   :  { %v10248_v58 = vpop.f32.mrb[179].mxu0  ;;  %10294 = vmatmul.mubr.msk.bf16.vlgmr.msra.gmra.mrb[192].mxu0 %vm2791_vm9, %v8508_v40  ;;  %10315 = vmatprep.mubr.msk.bf16.mxu1 %vm11164_vm0, %v11163_v0 }
0x41d9   :  { %10307 = vmatprep.mubr.msk.bf16.mxu0 %vm11164_vm0, %v11163_v0  ;;  %v9465_v58 = vld [vmem:[#allocation22 + $0x2] ss:$0 sm:$0xff] }
0x41ea   :  { %v1706_v19 = vpop.permute.xlu1 %1705 }
0x41eb   :  { %v13068_v11 = vmul.f32 %v12999_v46, %v1706_v19  ;;  %v1004_v21 = vpop.permute.xlu0 %1003 }
0x41ec   :  { %v13071_v53 = vmul.f32 %v13001_v4, %v1004_v21 }
0x41ed   :  { %v1709_v47 = vsel %vm1007_vm2, %v13068_v11, %v11821_v25 }
0x41ee   :  { %v1710_v14 = vsel %vm1009_vm3, %v1709_v47, %v11801_v50  ;;  %v1020_v42 = vsel %vm1019_vm10, %v11710_v3, %v13071_v53  ;;  %v10395_v3 = vld [vmem:[%s13210_s15 + $0x20] sm:$0xff]   ;;  %vm9199_vm3 = vcmask 261127  }
0x41ef   :  { %v1711_v26 = vsel %vm1011_vm4, %v1710_v14, %v11787_v2  ;;  %1717 = vrot.lane.b32.xlu1 %v1020_v42, %s11167_s8  ;;  %10304 = vmatpush3.bf16.msra.mxu0 %v10395_v3 }
0x41f0   :  { %v1712_v46 = vsel %vm1013_vm5, %v1711_v26, %v11773_v55  ;;  %10305 = vmatprep.subr.bf16.mxu0 %v11163_v0  ;;  %v10397_v26 = vld [vmem:[#allocation28 + $0x20] sm:$0xff]  }
0x41f1   :  { %v1713_v4 = vsel %vm1015_vm6, %v1712_v46, %v11759_v29  ;;  %v10396_v29 = vld [vmem:[%s13210_s15 + $0x28] sm:$0xff]   ;;  %10312 = vmatpush3.bf16.msra.mxu1 %v10397_v26  ;;  %v10398_v46 = vld [vmem:[#allocation28 + $0x28] sm:$0xff]  }
0x41f2   :  { %v1714_v25 = vsel %vm1017_vm7, %v1713_v4, %v11745_v63  ;;  %10313 = vmatprep.subr.bf16.mxu1 %v11163_v0  ;;  %v10401_v4 = vld [vmem:[#allocation29] sm:$0xff]  }
0x41f3   :  { %v1715_v44 = vsel %vm1019_vm10, %v1714_v25, %v11731_v36  ;;  %10306 = vmatpush3.bf16.msra.mxu0 %v10396_v29  ;;  %v9470_v25 = vld [vmem:[#allocation26 + $0x2] ss:$0 sm:$0xff] }
0x41f4   :  { %1721 = vrot.lane.b32.xlu0 %v1715_v44, %s11166_s20  ;;  %10319 = vmatprep.subr.bf16.mxu0 %v11163_v0 }
0x41f5   :  { %10314 = vmatpush3.bf16.msra.mxu1 %v10398_v46 }
0x41f6   :  { %10327 = vmatprep.subr.bf16.mxu1 %v11163_v0 }
0x41f8   :  { %1726 = vrot.lane.b32.xlu0 %v13025_v38, %s11170_s10 }
0x4265   :  { %v8550_v36 = vpop.f32.mrb[180].mxu0 }
0x4266   :  { %v8878_v63 = vsel %vm1837_vm8, %v8550_v36, 0.0  ;;  %v8596_v55 = vpop.f32.mrb[180].mxu1  ;;  %v13102_v2 = vpop.permute.xlu0 %1721 }
0x4267   :  { %v8879_v50 = vsel %vm1837_vm8, %v8596_v55, 0.0  ;;  %v10265_v38 = vpop.f32.mrb[181].mxu1  ;;  %v10259_v33 = vpop.f32.mrb[181].mxu0 }
0x4268   :  { %v8880_v56 = vadd.f32 %v8879_v50, %v8878_v63  ;;  %v8553_v24 = vpop.f32.mrb[182].mxu0  ;;  %v8599_v51 = vpop.f32.mrb[182].mxu1 }
0x4269   :  { %v10260_v7 = vpop.f32.mrb[183].mxu0  ;;  %v10266_v22 = vpop.f32.mrb[183].mxu1  ;;  %v10399_v24 = vld [vmem:[%s13214_s19] sm:$0xff]  }
0x426a   :  { %v1727_v6 = vpop.permute.xlu0 %1726  ;;  %v1718_v7 = vpop.permute.xlu1 %1717 }
0x426b   :  { %v1732_v9 = vsel %vm332_vm1, %v1727_v6, %v1730_v61  ;;  %v10400_v61 = vld [vmem:[%s13214_s19 + $0x8] sm:$0xff]   ;;  %v1724_v22 = vsel %vm332_vm1, %v1718_v7, %v13102_v2 }
0x426c   :  { %9200 = vst.msk [vmem:[#allocation32 - $0x7] sm:$0x80] %vm9199_vm3, %v1732_v9  ;;  %v9047_v6 = vpack.c.bf16 %v1724_v22, %v1724_v22  ;;  %v10402_v9 = vld [vmem:[#allocation29 + $0x8] sm:$0xff]  }
0x426d   :  { %v8642_v62 = vpop.f32.mrb[184].mxu0 }
0x426e   :  { %v8881_v59 = vsel %vm1837_vm8, %v8642_v62, 0.0  ;;  %v8688_v43 = vpop.f32.mrb[184].mxu1  ;;  %v10271_v23 = vpop.f32.mrb[185].mxu0  ;;  %v9475_v62 = vld [vmem:[%s13213_s18 + $0x2] ss:$0 sm:$0xff]  ;;  %s11177_s18 = smov [#allocation32]  }
0x426f   :  { %v8882_v12 = vadd.f32 %v8881_v59, %v8880_v56  ;;  %v10277_v32 = vpop.f32.mrb[185].mxu1  ;;  %v8645_v10 = vpop.f32.mrb[186].mxu0  ;;  %v8883_v20 = vsel %vm1837_vm8, %v8688_v43, 0.0  ;;  %s9218_s23 = sshll.u32 %s11177_s18, 4  ;;  %s9219_s23 = int_to_ptr.vmem [resolvable:$true] %s9218_s23 }
0x4270   :  { %v8691_v57 = vpop.f32.mrb[186].mxu1  ;;  %v10272_v54 = vpop.f32.mrb[187].mxu0  ;;  %s11049_s16 = scalar_lea.vmem %s9219_s23, 16  ;;  %s11053_s29 = scalar_lea.vmem %s9219_s23, 32 }
0x4271   :  { %v8884_v45 = vadd.f32 %v8883_v20, %v8882_v12  ;;  %v10278_v27 = vpop.f32.mrb[187].mxu1  ;;  %p11050_p4 = scmp.ne.s32.totalorder %s9219_s23, %s11049_s16  ;;  %p11054_p5 = scmp.lt.s32.totalorder %s9219_s23, %s9219_s23 }
0x4272   :  { %p11055_p6 = scmp.lt.s32.totalorder %s11053_s29, %s11049_s16 }
0x4274   :  { %p11056_p7 = por %p11055_p6, %p11054_p5 }
0x4276   :  { %p11057_p8 = pnand %p11056_p7, %p11050_p4 }
0x4283   :  { %v8734_v15 = vpop.f32.mrb[188].mxu0  ;;  %v8780_v1 = vpop.f32.mrb[188].mxu1 }
0x4284   :  { %v8885_v30 = vsel %vm1837_vm8, %v8734_v15, 0.0  ;;  %v10283_v34 = vpop.f32.mrb[189].mxu0  ;;  %v10289_v49 = vpop.f32.mrb[189].mxu1  ;;  %v8887_v52 = vsel %vm1837_vm8, %v8780_v1, 0.0 }
0x4285   :  { %v8886_v13 = vadd.f32 %v8885_v30, %v8884_v45  ;;  %v8737_v41 = vpop.f32.mrb[190].mxu0  ;;  %v8783_v35 = vpop.f32.mrb[190].mxu1  ;;  %v9485_v45 = vld [vmem:[%s13216_s21] ss:$0 sm:$0xff] }
0x4286   :  { %v10284_v31 = vpop.f32.mrb[191].mxu0  ;;  %v10290_v39 = vpop.f32.mrb[191].mxu1 }
0x4287   :  { %v8888_v8 = vadd.f32 %v8887_v52, %v8886_v13 }
0x42aa   :  { %v8872_v17 = vpop.f32.mrb[192].mxu1 }
0x42ab   :  { %v8826_v28 = vpop.f32.mrb[192].mxu0  ;;  %v10301_v16 = vpop.f32.mrb[193].mxu1  ;;  %v8891_v19 = vsel %vm1837_vm8, %v8872_v17, 0.0 }
0x42ac   :  { %v8889_v18 = vsel %vm1837_vm8, %v8826_v28, 0.0  ;;  %v10295_v40 = vpop.f32.mrb[193].mxu0  ;;  %v8875_v5 = vpop.f32.mrb[194].mxu1 }
0x42ad   :  { %v8890_v37 = vadd.f32 %v8889_v18, %v8888_v8  ;;  %v8829_v60 = vpop.f32.mrb[194].mxu0  ;;  %v10302_v48 = vpop.f32.mrb[195].mxu1 }
0x42ae   :  { %v10296_v21 = vpop.f32.mrb[195].mxu0 }
0x42af   :  { %v8892_v47 = vadd.f32 %v8891_v19, %v8890_v37 }
0x42b1   :  { %v8899_v14 = vadd.f32 %v9465_v58, %v8892_v47 }
0x42b3   :  { %v8905_v42 = vpack.c.bf16 %v8899_v14, %v8899_v14 }
0x42b5   :  { %10308 = vmatmul.mubr.msk.bf16.vlgmr.msra.gmra.mrb[196].mxu0 %vm1837_vm8, %v8905_v42 }
0x42b6   :  { %10323 = vmatprep.mubr.msk.bf16.mxu0 %vm11164_vm0, %v11163_v0  ;;  %10320 = vmatpush3.bf16.msra.mxu0 %v10401_v4 }
0x42b7   :  { %10321 = vmatprep.subr.bf16.mxu0 %v11163_v0 }
0x42ba   :  { %10322 = vmatpush3.bf16.msra.mxu0 %v10402_v9 }
0x4388   :  { %v8963_v44 = vpop.f32.mrb[196].mxu0 }
0x4389   :  { %v8964_v3 = vadd.f32 %v9470_v25, %v8963_v44  ;;  %v10309_v29 = vpop.f32.mrb[197].mxu0 }
0x438a   :  { %v8966_v36 = vpop.f32.mrb[198].mxu0 }
0x438b   :  { %v8970_v63 = vmul.f32 0.70710677, %v8964_v3  ;;  %v10310_v55 = vpop.f32.mrb[199].mxu0  ;;  %v8969_v38 = vmul.f32 0.5, %v8964_v3 }
0x438d   :  { %10649 = verf.f32 %v8970_v63 }
0x4397   :  { %v10650_v50 = vpop.eup %10649 }
0x4398   :  { %v8972_v33 = vadd.f32 1.0, %v10650_v50 }
0x439a   :  { %v8973_v56 = vmul.f32 %v8972_v33, %v8969_v38 }
0x439c   :  { %v8979_v51 = vpack.c.bf16 %v8973_v56, %v8973_v56 }
0x439e   :  { %10316 = vmatmul.mubr.msk.bf16.vlgmr.msra.gmra.mrb[196].mxu1 %vm1837_vm8, %v8979_v51 }
0x439f   :  { %10328 = vmatpush3.bf16.msra.mxu1 %v10399_v24  ;;  %10331 = vmatprep.mubr.msk.bf16.mxu1 %vm11164_vm0, %v11163_v0 }
0x43a0   :  { %10329 = vmatprep.subr.bf16.mxu1 %v11163_v0 }
0x43a3   :  { %10330 = vmatpush3.bf16.msra.mxu1 %v10400_v61 }
0x43a6   :  { %10332 = vmatmul.mubr.msk.bf16.vlgmr.msra.gmra.mrb[200].mxu1 %vm1837_vm8, %v9047_v6 }
0x4471   :  { %v9037_v59 = vpop.f32.mrb[196].mxu1 }
0x4472   :  { %v9038_v43 = vadd.f32 %v9475_v62, %v9037_v59  ;;  %v10317_v23 = vpop.f32.mrb[197].mxu1 }
0x4473   :  { %v9040_v12 = vpop.f32.mrb[198].mxu1 }
0x4474   :  { %v9052_v32 = vpack.c.bf16 %v9038_v43, %v9038_v43  ;;  %v10318_v10 = vpop.f32.mrb[199].mxu1 }
0x4476   :  { %10324 = vmatmul.mubr.msk.bf16.vlgmr.msra.gmra.mrb[200].mxu0 %vm1837_vm8, %v9052_v32 }
0x4479   :  { %v9157_v0 = vpop.f32.mrb[200].mxu1 }
0x447a   :  { %v10333_v2 = vpop.f32.mrb[201].mxu1 }
0x447b   :  { %v9160_v20 = vpop.f32.mrb[202].mxu1 }
0x447c   :  { %v10334_v57 = vpop.f32.mrb[203].mxu1 }
0x4549   :  { %v9102_v54 = vpop.f32.mrb[200].mxu0 }
0x454a   :  { %v9158_v27 = vadd.f32 %v9157_v0, %v9102_v54  ;;  %v10325_v15 = vpop.f32.mrb[201].mxu0 }
0x454b   :  { %v9105_v1 = vpop.f32.mrb[202].mxu0 }
0x454c   :  { %v9170_v30 = vadd.f32 %v9485_v45, %v9158_v27  ;;  %v10326_v34 = vpop.f32.mrb[203].mxu0 }
0x454e   :  { %v9172_v49 = vmul.f32 0.70710677, %v9170_v30  ;;  %v9171_v41 = vmul.f32 0.5, %v9170_v30 }
0x4550   :  { %10651 = verf.f32 %v9172_v49 }
0x455a   :  { %v10652_v13 = vpop.eup %10651 }
0x455b   :  { %v9174_v35 = vadd.f32 1.0, %v10652_v13 }
0x455d   :  { %v9175_v52 = vmul.f32 %v9174_v35, %v9171_v41 }
0x455f   :  { %v9181_v31 = vrot.slane %v9175_v52, 2  ;;  %v9177_v39 = vrot.slane %v9175_v52, 1 }
0x4560   :  { %11060 = shalt.err (!%p11057_p8)
}
0x4561   :  { %s13253_s5 = sld [smem:[#allocation57_spill]] }
0x4567   :  { %s11061_s2 = scalar_lea.hbm %s13253_s5, 16 }
0x4568   :  { %p11062_p9 = scmp.ne.s32.totalorder %s13253_s5, %s11061_s2  ;;  %p11065_p10 = scmp.lt.u32.totalorder %s11061_s2, %s13253_s5 }
0x456a   :  { %p11067_p11 = pnand %p11065_p10, %p11062_p9 }
0x456c   :  { %11070 = shalt.err (!%p11067_p11)
}
0x456d   :  { %9221 = dma.vmem_to_hbm [thread:$0]  %s9219_s23, 16, %s13253_s5, [#allocation33]   ;;  %9182 = vrot.lane.b32.xlu0 %v9181_v31, %s11140_s25  ;;  %9178 = vrot.lane.b32.xlu1 %v9177_v39, %s11147_s9  ;;  %v1738_v8 = vrot.slane %v13068_v11, 1  ;;  %v9185_v17 = vrot.slane %v9175_v52, 3  ;;  %vm9190_vm0 = vcmask 523264   ;;  %vm9192_vm4 = vcmask 785408  }
0x456e   :  { %s11178_s25 = smov [#allocation31]   ;;  %s11179_s30 = smov [#allocation34]  }
0x456f   :  { %s9208_s9 = sshll.u32 %s11178_s25, 4  ;;  %s9228_s3 = sshll.u32 %s11179_s30, 4  ;;  %s9209_s9 = int_to_ptr.vmem [resolvable:$true] %s9208_s9  ;;  %s13161_s3 = int_to_ptr.vmem [resolvable:$true] %s9228_s3 }
0x4570   :  { %p11076_p13 = scmp.lt.s32.totalorder %s9209_s9, %s9209_s9 }
0x4571   :  { %1739 = vrot.lane.b32.xlu0 %v1738_v8, %s11166_s20  ;;  %9186 = vrot.lane.b32.xlu1 %v9185_v17, %s11166_s20  ;;  %s11071_s20 = scalar_lea.vmem %s9209_s9, 32 }
0x4572   :  { %p11072_p12 = scmp.ne.s32.totalorder %s9209_s9, %s11071_s20  ;;  %p11077_p0 = scmp.lt.s32.totalorder %s11071_s20, %s11071_s20 }
0x4574   :  { %p11078_p1 = por %p11077_p0, %p11076_p13 }
0x4575   :  { %1734 = vrot.lane.b32.xlu1 %v13071_v53, %s11167_s8 }
0x4576   :  { %p11079_p2 = pnand %p11078_p1, %p11072_p12 }
0x45df   :  { %v9179_v28 = vpop.permute.xlu1 %9178  ;;  %v9183_v16 = vpop.permute.xlu0 %9182 }
0x45e0   :  { %v9189_v18 = vsel %vm1837_vm8, %v9175_v52, %v9179_v28 }
0x45e1   :  { %v9191_v40 = vsel %vm9190_vm0, %v9189_v18, %v9183_v16 }
0x45e3   :  { %v9187_v5 = vpop.permute.xlu1 %9186  ;;  %v1740_v60 = vpop.permute.xlu0 %1739 }
0x45e4   :  { %v9193_v37 = vsel %vm9192_vm4, %v9191_v40, %v9187_v5 }
0x45e5   :  { %v9195_v11 = vrot.slane %v9193_v37, 3 }
0x45e7   :  { %v1735_v48 = vpop.permute.xlu1 %1734  ;;  %v9197_v58 = vsel %vm1007_vm2, %v9193_v37, %v9195_v11 }
0x45e8   :  { %v1742_v53 = vsel %vm332_vm1, %v1735_v48, %v1740_v60  ;;  %9198 = vst [vmem:[#allocation31] sm:$0x3] %v9197_v58 }
0x45e9   :  { %9201 = vst.msk [vmem:[#allocation34 - $0x7] sm:$0x80] %vm9199_vm3, %v1742_v53 }
0x45ea   :  { %11082 = shalt.err (!%p11079_p2)
}
0x45eb   :  { %s13254_s17 = sld [smem:[#allocation56_spill]] }
0x45f1   :  { %s11083_s11 = scalar_lea.hbm %s13254_s17, 32 }
0x45f2   :  { %p11084_p3 = scmp.ne.s32.totalorder %s13254_s17, %s11083_s11  ;;  %p11087_p4 = scmp.lt.u32.totalorder %s11083_s11, %s13254_s17 }
0x45f4   :  { %p11089_p5 = pnand %p11087_p4, %p11084_p3 }
0x45f6   :  { %11092 = shalt.err (!%p11089_p5)
}
0x45f7   :  { %9211 = dma.vmem_to_hbm [thread:$0]  %s9209_s9, 32, %s13254_s17, [#allocation4]  }
0x45f8   :  { %s11093_s19 = scalar_lea.vmem %s13161_s3, 16  ;;  %s11097_s1 = scalar_lea.vmem %s13161_s3, 32 }
0x45f9   :  { %p11094_p6 = scmp.ne.s32.totalorder %s13161_s3, %s11093_s19  ;;  %p11098_p7 = scmp.lt.s32.totalorder %s13161_s3, %s13161_s3 }
0x45fa   :  { %p11099_p8 = scmp.lt.s32.totalorder %s11097_s1, %s11093_s19 }
0x45fc   :  { %p11100_p9 = por %p11099_p8, %p11098_p7 }
0x45fe   :  { %p11101_p10 = pnand %p11100_p9, %p11094_p6 }
0x4600   :  { %11104 = shalt.err (!%p11101_p10)
}
0x4601   :  { %s13255_s16 = sld [smem:[#allocation58_spill]] }
0x4607   :  { %s11105_s29 = scalar_lea.hbm %s13255_s16, 16 }
0x4608   :  { %p11106_p11 = scmp.ne.s32.totalorder %s13255_s16, %s11105_s29  ;;  %p11109_p12 = scmp.lt.u32.totalorder %s11105_s29, %s13255_s16 }
0x460a   :  { %p11111_p13 = pnand %p11109_p12, %p11106_p11 }
0x460c   :  { %11114 = shalt.err (!%p11111_p13)
}
0x460d   :  { %9231 = dma.vmem_to_hbm [thread:$0]  %s13161_s3, 16, %s13255_s16, [#allocation33]  }
0x460e   :  { %11135 = dma.done.wait [#allocation4], 32  }
0x460f   :  { %11136 = vsyncadd [#allocation4], 4294967264 }
0x4610   :  { %11137 = dma.done.wait [#allocation33], 32  }
0x4611   :  { %11138 = vsyncadd [#allocation33], 4294967264 }
0x4612   :  { %9241 = vsyncpa [#allocation3], 1 }
0x4613   :  { %9242 = vsyncpa [#allocation6], 1 }
0x4614   :  { %9243 = vsyncpa [#allocation9], 1 }
0x4615   :  { %9244 = vsyncpa [#allocation12], 1 }
0x4616   :  { %9245 = vsyncpa [#allocation15], 1 }
0x4617   :  { %9246 = vsyncpa [#allocation18], 1 }
0x4618   :  { %9247 = vsyncpa [#allocation21], 1 }
0x4619   :  { %9248 = vsyncpa [#allocation24], 1 }
0x461a   :  { %9249 = vsyncpa [#allocation27], 1 }
0x461b   :  { %9250 = vsyncpa [#allocation30], 1 }
0x461c   :  { %9251 = vsyncpa [#allocation4], 1 }
0x461d   :  { %9252 = vsyncpa [#allocation33], 1 }

</bundles_post_ra>
